<compile_context>
chip_gen: v7x
topology: tpu7x:2x2x1
jax: 0.10.0
libtpu: 0.0.40
codegen_flags: <defaults>
</compile_context>

<pallas_src>
import jax
import jax.numpy as jnp
from jax.experimental import pallas as pl
from jax.experimental.pallas import tpu as pltpu


def _round_up(a, m):
    return ((a + m - 1) // m) * m


def part_branch_kernel(x_ref, w_ref, b_ref, out_ref):
    """Pooling (single pass) + 3-head 1x1-conv matmuls (BN scale & 1/half folded) + bias.

    x_ref:   (TB, C, HW) bf16  activations, native NCHW layout with spatial flattened
    w_ref:   (3, C, F)   bf16  conv1x1 weights^T; BN scale (and 1/half for heads 1,2) folded in
    b_ref:   (3, 1, F)   f32   folded BN bias = beta - running_mean * scale
    out_ref: (3, TB, F)  f32   head 0 = global max, 1 = top-half mean, 2 = bottom-half mean
    """
    hw = x_ref.shape[-1]
    half = hw // 2                                   # row-major (H, W) flatten => first H/2 rows

    # Single load of the tile, upcast once; each half feeds both its max and its sum,
    # so the spatial data is traversed once per half for the whole pooling stage.
    x = x_ref[...].astype(jnp.float32)               # (TB, C, HW) f32
    x_top = x[:, :, :half]
    x_bot = x[:, :, half:]

    gmax = jnp.maximum(jnp.max(x_top, axis=-1),
                       jnp.max(x_bot, axis=-1))      # (TB, C): adaptive_max_pool2d((1,1))
    s_top = jnp.sum(x_top, axis=-1)                  # (TB, C): AvgPool (2,1) row 0 (x half)
    s_bot = jnp.sum(x_bot, axis=-1)                  # (TB, C): AvgPool (2,1) row 1 (x half)

    # Three unrolled MXU matmuls (no (3,TB,C) stack / k-batched dot_general); bf16 operands,
    # f32 accumulation; 1/half and the eval-mode BN scale already live in w_ref.
    for k, pooled in enumerate((gmax, s_top, s_bot)):
        y = jnp.dot(pooled.astype(w_ref.dtype), w_ref[k],
                    preferred_element_type=jnp.float32)      # (TB, F) f32
        out_ref[k] = y + b_ref[k]                            # b_ref[k]: (1, F); f32 epilogue


def part_branch_forward(x_nchw, conv_w, gamma, beta, run_mean, run_var, eps=1e-5):
    """x_nchw: (B, 512, H, W) float32 (output of backbone2 -- identity here).
    conv_w: (3, F, C) PyTorch Conv2d(512, F, 1, bias=False) weights (kernel dims squeezed).
    gamma/beta/run_mean/run_var: (3, F) BatchNorm1d params per reduction head.
    Returns (B, F, 3), matching torch.stack([feat1, feat2, feat3], dim=2) in eval mode.
    """
    B, C, H, W = x_nchw.shape
    F_ = conv_w.shape[1]
    assert H % 2 == 0, "AdaptiveAvgPool2d((2,1)) split implemented for even H"
    HW = H * W
    half = (H // 2) * W

    # Native-layout reshape only (contiguous (H,W)->HW collapse) and a bf16 cast: the x
    # stream dominates HBM traffic, so DMA it at half width; pooling math stays f32 in-kernel.
    x = x_nchw.reshape(B, C, HW).astype(jnp.bfloat16)

    # Fold eval-mode BN scale and the (2,1)-avg-pool 1/half factor into the 1x1-conv weights.
    scale = gamma / jnp.sqrt(run_var + eps)                        # (3, F)
    bias = (beta - run_mean * scale).astype(jnp.float32)           # (3, F)
    head_scale = jnp.array([1.0, 1.0 / half, 1.0 / half], jnp.float32)
    w = jnp.transpose(conv_w, (0, 2, 1)) * scale[:, None, :]       # (3, C, F)
    w = (w * head_scale[:, None, None]).astype(jnp.bfloat16)       # halve weight DMA
    # TODO(synk): on v7x the MXU also accepts fp8 weights; kept bf16 everywhere for accuracy.
    bias = bias.reshape(3, 1, F_)

    # ---- generation-aware batch tile ------------------------------------------------
    try:
        vmem_cap = int(getattr(pltpu.get_tpu_info(), "vmem_capacity_bytes", 64 << 20))
    except Exception:
        vmem_cap = 64 << 20                         # conservative default = v7x per-core VMEM
    budget = int(0.5 * min(vmem_cap, 128 << 20))    # leave headroom for compiler scratch

    lanes = _round_up(HW, 128)                      # account for lane padding of the HW axis
    x_row_bytes = C * lanes * 2                     # bf16 VMEM bytes per batch row of the block
    per_row = 2 * x_row_bytes + C * lanes * 4       # double-buffered block + f32 pooling working set
    tb_cap = max(8, (budget // per_row) // 8 * 8)

    if B <= 8:
        TB = B                                      # tiny batch: one step, whole batch resident
    else:
        # multiple of 8, <= B/2 (>= 2 grid steps => DMA/compute overlap + megacore sharding),
        # capped by the per-generation VMEM budget and at 128 MXU rows.
        TB = min(tb_cap, 128, max(8, (B // 2) // 8 * 8))
    grid = (pl.cdiv(B, TB),)
    # NOTE: if B % TB != 0 the padded tail block pools over garbage rows; those output rows
    # fall outside the (3, B, F) result and are discarded, so the result stays correct.

    w_bytes = 3 * C * _round_up(F_, 128) * 2
    out_blk_bytes = 3 * _round_up(TB, 8) * _round_up(F_, 128) * 4
    need = 2 * TB * x_row_bytes + TB * C * lanes * 4 + 2 * w_bytes + 2 * out_blk_bytes
    vmem_limit = int(min(vmem_cap, max(need + (16 << 20), 32 << 20)))

    cost = pl.CostEstimate(
        flops=2 * 3 * B * C * F_ + 2 * B * C * HW,              # 3 matmuls + max/sum pooling
        transcendentals=0,
        bytes_accessed=B * C * HW * 2 + 3 * C * F_ * 2 + 3 * F_ * 4 + 3 * B * F_ * 4,
    )

    out = pl.pallas_call(
        part_branch_kernel,
        out_shape=jax.ShapeDtypeStruct((3, B, F_), jnp.float32),
        grid=grid,
        in_specs=[
            pl.BlockSpec((TB, C, HW), lambda b: (b, 0, 0)),     # x, tiled over batch
            pl.BlockSpec((3, C, F_), lambda b: (0, 0, 0)),      # weights, resident
            pl.BlockSpec((3, 1, F_), lambda b: (0, 0, 0)),      # bias, resident
        ],
        out_specs=pl.BlockSpec((3, TB, F_), lambda b: (0, b, 0)),
        compiler_params=pltpu.CompilerParams(
            dimension_semantics=("parallel",),
            vmem_limit_bytes=vmem_limit),
        cost_estimate=cost,
    )(x, w, bias)

    # (3, B, F) -> (B, F, 3): tiny transpose in the wrapper (lane-dense stores in-kernel).
    return jnp.transpose(out, (1, 2, 0))


def reference_forward(x_nchw, conv_w, gamma, beta, run_mean, run_var, eps=1e-5):
    """Pure-JAX f32 reference mirroring the PyTorch eval-mode graph."""
    B, C, H, W = x_nchw.shape
    gmax = jnp.max(x_nchw, axis=(2, 3))                        # adaptive_max_pool2d (1,1)
    top = jnp.mean(x_nchw[:, :, : H // 2, :], axis=(2, 3))     # AdaptiveAvgPool2d (2,1) row 0
    bot = jnp.mean(x_nchw[:, :, H // 2 :, :], axis=(2, 3))     #                        row 1
    feats = []
    for i, f in enumerate((gmax, top, bot)):
        y = f @ conv_w[i].T                                    # Conv2d 1x1, bias=False
        y = (y - run_mean[i]) / jnp.sqrt(run_var[i] + eps) * gamma[i] + beta[i]
        feats.append(y)
    return jnp.stack(feats, axis=2)                            # (B, F, 3)


if __name__ == "__main__":
    # Small shapes consistent with the module: BNNeck3(512, num_classes, feats)
    # fixes C_in = 512; spatial kept small; feats = 128 (lane-aligned).
    B, C, H, W = 2, 512, 8, 4
    F_ = 128

    key = jax.random.PRNGKey(0)
    kx, kw, kg, kb, km, kv = jax.random.split(key, 6)

    # TODO(synk): osnet.conv3[1:]/conv4/conv5 (backbone2) not defined in the given source;
    #             the kernel takes its 512-channel output directly (identity backbone2).
    x = jax.random.normal(kx, (B, C, H, W), dtype=jnp.float32)

    # BNNeck3 parameters (deterministic synthetic init), one set per reduction head.
    conv_w = 0.05 * jax.random.normal(kw, (3, F_, C), dtype=jnp.float32)   # Conv2d(512,F,1,bias=False)
    gamma = 1.0 + 0.1 * jax.random.normal(kg, (3, F_), dtype=jnp.float32)  # BatchNorm1d weight
    beta = 0.1 * jax.random.normal(kb, (3, F_), dtype=jnp.float32)         # BatchNorm1d bias
    run_mean = 0.1 * jax.random.normal(km, (3, F_), dtype=jnp.float32)     # running_mean
    run_var = 0.5 + jnp.abs(jax.random.normal(kv, (3, F_), dtype=jnp.float32))  # running_var

    out = part_branch_forward(x, conv_w, gamma, beta, run_mean, run_var)
    out = jax.block_until_ready(out)

    ref = reference_forward(x, conv_w, gamma, beta, run_mean, run_var)
    assert out.shape == (B, F_, 3), out.shape
    # bf16 x + bf16 folded weights on the MXU (f32 accumulation) => loosened tolerance
    # vs the all-f32 reference.
    assert jnp.allclose(out, ref, rtol=5e-2, atol=1e-1), float(jnp.max(jnp.abs(out - ref)))

    print("KERNEL_OK")
</pallas_src>

<mosaic_0001>
module attributes {stable_mosaic.version = 11 : i64} {
  func.func @part_branch_kernel(%arg0: i32, %arg1: memref<2x512x32xbf16, #tpu.memory_space<vmem>>, %arg2: memref<3x512x128xbf16, #tpu.memory_space<vmem>>, %arg3: memref<3x1x128xf32, #tpu.memory_space<vmem>>, %arg4: memref<3x2x128xf32, #tpu.memory_space<vmem>>) attributes {dimension_semantics = [#tpu.dimension_semantics<parallel>], iteration_bounds = array<i64: 1>, scalar_prefetch = 0 : i64, scratch_operands = 0 : i64, tpu.core_type = #tpu.core_type<tc>, window_params = [{transform_indices = @transform_0, window_bounds = array<i64: 2, 512, 32>}, {pipeline_mode = #tpu.pipeline_mode<synchronous>, transform_indices = @transform_1, window_bounds = array<i64: 3, 512, 128>}, {pipeline_mode = #tpu.pipeline_mode<synchronous>, transform_indices = @transform_2, window_bounds = array<i64: 3, 1, 128>}, {transform_indices = @transform_3, window_bounds = array<i64: 3, 2, 128>}]} {
    %c0 = arith.constant 0 : index
    %c0_0 = arith.constant 0 : index
    %c0_1 = arith.constant 0 : index
    %0 = vector.load %arg1[%c0, %c0_0, %c0_1] : memref<2x512x32xbf16, #tpu.memory_space<vmem>>, vector<2x512x32xbf16>
    %1 = arith.extf %0 : vector<2x512x32xbf16> to vector<2x512x32xf32>
    %2 = vector.extract_strided_slice %1 {offsets = [0, 0, 0], sizes = [2, 512, 16], strides = [1, 1, 1]} : vector<2x512x32xf32> to vector<2x512x16xf32>
    %3 = vector.extract_strided_slice %1 {offsets = [0, 0, 16], sizes = [2, 512, 16], strides = [1, 1, 1]} : vector<2x512x32xf32> to vector<2x512x16xf32>
    %cst = arith.constant dense<0xFF800000> : vector<2x512xf32>
    %4 = vector.multi_reduction <maximumf>, %2, %cst [2] : vector<2x512x16xf32> to vector<2x512xf32>
    %cst_2 = arith.constant dense<0xFF800000> : vector<2x512xf32>
    %5 = vector.multi_reduction <maximumf>, %3, %cst_2 [2] : vector<2x512x16xf32> to vector<2x512xf32>
    %6 = arith.maximumf %4, %5 : vector<2x512xf32>
    %cst_3 = arith.constant dense<0.000000e+00> : vector<2x512xf32>
    %7 = vector.multi_reduction <add>, %2, %cst_3 [2] : vector<2x512x16xf32> to vector<2x512xf32>
    %cst_4 = arith.constant dense<0.000000e+00> : vector<2x512xf32>
    %8 = vector.multi_reduction <add>, %3, %cst_4 [2] : vector<2x512x16xf32> to vector<2x512xf32>
    %9 = arith.truncf %6 : vector<2x512xf32> to vector<2x512xbf16>
    %c0_5 = arith.constant 0 : index
    %c0_6 = arith.constant 0 : index
    %c0_7 = arith.constant 0 : index
    %10 = vector.load %arg2[%c0_5, %c0_6, %c0_7] : memref<3x512x128xbf16, #tpu.memory_space<vmem>>, vector<1x512x128xbf16>
    %11 = vector.shape_cast %10 : vector<1x512x128xbf16> to vector<512x128xbf16>
    %cst_8 = arith.constant dense<0.000000e+00> : vector<2x128xf32>
    %12 = tpu.matmul %9, %11, %cst_8 {dimension_numbers = #tpu.dot_dimension_numbers<[1], [0], [0], [1], [0, 0, 1, 1], [], []>} : vector<2x512xbf16>, vector<512x128xbf16>, vector<2x128xf32> -> vector<2x128xf32>
    %c0_9 = arith.constant 0 : index
    %c0_10 = arith.constant 0 : index
    %c0_11 = arith.constant 0 : index
    %13 = vector.load %arg3[%c0_9, %c0_10, %c0_11] : memref<3x1x128xf32, #tpu.memory_space<vmem>>, vector<1x1x128xf32>
    %14 = vector.shape_cast %13 : vector<1x1x128xf32> to vector<1x128xf32>
    %15 = vector.broadcast %14 : vector<1x128xf32> to vector<2x128xf32>
    %16 = arith.addf %12, %15 : vector<2x128xf32>
    %c0_12 = arith.constant 0 : index
    %c0_13 = arith.constant 0 : index
    %c0_14 = arith.constant 0 : index
    %17 = vector.load %arg4[%c0_12, %c0_13, %c0_14] : memref<3x2x128xf32, #tpu.memory_space<vmem>>, vector<1x2x128xf32>
    %18 = vector.shape_cast %17 : vector<1x2x128xf32> to vector<2x128xf32>
    %19 = vector.shape_cast %16 : vector<2x128xf32> to vector<1x2x128xf32>
    tpu.vector_store %arg4[%c0_12, %c0_13, %c0_14], %19 {strides = array<i32>} : memref<3x2x128xf32, #tpu.memory_space<vmem>>, vector<1x2x128xf32>,
    %20 = arith.truncf %7 : vector<2x512xf32> to vector<2x512xbf16>
    %c1 = arith.constant 1 : index
    %c0_15 = arith.constant 0 : index
    %c0_16 = arith.constant 0 : index
    %21 = vector.load %arg2[%c1, %c0_15, %c0_16] : memref<3x512x128xbf16, #tpu.memory_space<vmem>>, vector<1x512x128xbf16>
    %22 = vector.shape_cast %21 : vector<1x512x128xbf16> to vector<512x128xbf16>
    %cst_17 = arith.constant dense<0.000000e+00> : vector<2x128xf32>
    %23 = tpu.matmul %20, %22, %cst_17 {dimension_numbers = #tpu.dot_dimension_numbers<[1], [0], [0], [1], [0, 0, 1, 1], [], []>} : vector<2x512xbf16>, vector<512x128xbf16>, vector<2x128xf32> -> vector<2x128xf32>
    %c1_18 = arith.constant 1 : index
    %c0_19 = arith.constant 0 : index
    %c0_20 = arith.constant 0 : index
    %24 = vector.load %arg3[%c1_18, %c0_19, %c0_20] : memref<3x1x128xf32, #tpu.memory_space<vmem>>, vector<1x1x128xf32>
    %25 = vector.shape_cast %24 : vector<1x1x128xf32> to vector<1x128xf32>
    %26 = vector.broadcast %25 : vector<1x128xf32> to vector<2x128xf32>
    %27 = arith.addf %23, %26 : vector<2x128xf32>
    %c1_21 = arith.constant 1 : index
    %c0_22 = arith.constant 0 : index
    %c0_23 = arith.constant 0 : index
    %28 = vector.load %arg4[%c1_21, %c0_22, %c0_23] : memref<3x2x128xf32, #tpu.memory_space<vmem>>, vector<1x2x128xf32>
    %29 = vector.shape_cast %28 : vector<1x2x128xf32> to vector<2x128xf32>
    %30 = vector.shape_cast %27 : vector<2x128xf32> to vector<1x2x128xf32>
    tpu.vector_store %arg4[%c1_21, %c0_22, %c0_23], %30 {strides = array<i32>} : memref<3x2x128xf32, #tpu.memory_space<vmem>>, vector<1x2x128xf32>,
    %31 = arith.truncf %8 : vector<2x512xf32> to vector<2x512xbf16>
    %c2 = arith.constant 2 : index
    %c0_24 = arith.constant 0 : index
    %c0_25 = arith.constant 0 : index
    %32 = vector.load %arg2[%c2, %c0_24, %c0_25] : memref<3x512x128xbf16, #tpu.memory_space<vmem>>, vector<1x512x128xbf16>
    %33 = vector.shape_cast %32 : vector<1x512x128xbf16> to vector<512x128xbf16>
    %cst_26 = arith.constant dense<0.000000e+00> : vector<2x128xf32>
    %34 = tpu.matmul %31, %33, %cst_26 {dimension_numbers = #tpu.dot_dimension_numbers<[1], [0], [0], [1], [0, 0, 1, 1], [], []>} : vector<2x512xbf16>, vector<512x128xbf16>, vector<2x128xf32> -> vector<2x128xf32>
    %c2_27 = arith.constant 2 : index
    %c0_28 = arith.constant 0 : index
    %c0_29 = arith.constant 0 : index
    %35 = vector.load %arg3[%c2_27, %c0_28, %c0_29] : memref<3x1x128xf32, #tpu.memory_space<vmem>>, vector<1x1x128xf32>
    %36 = vector.shape_cast %35 : vector<1x1x128xf32> to vector<1x128xf32>
    %37 = vector.broadcast %36 : vector<1x128xf32> to vector<2x128xf32>
    %38 = arith.addf %34, %37 : vector<2x128xf32>
    %c2_30 = arith.constant 2 : index
    %c0_31 = arith.constant 0 : index
    %c0_32 = arith.constant 0 : index
    %39 = vector.load %arg4[%c2_30, %c0_31, %c0_32] : memref<3x2x128xf32, #tpu.memory_space<vmem>>, vector<1x2x128xf32>
    %40 = vector.shape_cast %39 : vector<1x2x128xf32> to vector<2x128xf32>
    %41 = vector.shape_cast %38 : vector<2x128xf32> to vector<1x2x128xf32>
    tpu.vector_store %arg4[%c2_30, %c0_31, %c0_32], %41 {strides = array<i32>} : memref<3x2x128xf32, #tpu.memory_space<vmem>>, vector<1x2x128xf32>,
    return
  }
  func.func @transform_0(%arg0: i32) -> (i32, i32, i32) {
    %c0_i32 = arith.constant 0 : i32
    %c0_i32_0 = arith.constant 0 : i32
    %c0_i32_1 = arith.constant 0 : i32
    return %arg0, %c0_i32, %c0_i32_0 : i32, i32, i32
  }
  func.func @transform_1(%arg0: i32) -> (i32, i32, i32) {
    %c0_i32 = arith.constant 0 : i32
    %c0_i32_0 = arith.constant 0 : i32
    %c0_i32_1 = arith.constant 0 : i32
    %c0_i32_2 = arith.constant 0 : i32
    return %c0_i32, %c0_i32_0, %c0_i32_1 : i32, i32, i32
  }
  func.func @transform_2(%arg0: i32) -> (i32, i32, i32) {
    %c0_i32 = arith.constant 0 : i32
    %c0_i32_0 = arith.constant 0 : i32
    %c0_i32_1 = arith.constant 0 : i32
    %c0_i32_2 = arith.constant 0 : i32
    return %c0_i32, %c0_i32_0, %c0_i32_1 : i32, i32, i32
  }
  func.func @transform_3(%arg0: i32) -> (i32, i32, i32) {
    %c0_i32 = arith.constant 0 : i32
    %c0_i32_0 = arith.constant 0 : i32
    %c0_i32_1 = arith.constant 0 : i32
    return %c0_i32, %arg0, %c0_i32_0 : i32, i32, i32
  }
}

</mosaic_0001>

<bundles_post_ra>
// kernel: tpu_custom_call.1
= control target key start
LH: loop header
LB: loop body
LE: loop exit
PB: predicated region body
PF: predicated region fallthrough
CT: control target
= control target key end

     0   :  { %8 = vsyncpa [#allocation3], 0  ;;  %s10893_s0 = inlined_call_operand.vmem [shape: bf16[2,512,32], index: 0, kind: input, shape index: {}]   ;;  %s10894_s1 = inlined_call_operand.hbm [shape: bf16[3,512,128], index: 1, kind: input, shape index: {}]   ;;  %s10895_s2 = inlined_call_operand.vmem [shape: f32[3,1,128], index: 2, kind: input, shape index: {}]   ;;  %s10896_s3 = inlined_call_operand.hbm [shape: f32[3,2,128], index: 3, kind: output, shape index: {}]  }
   0x1   :  { %9 = vsyncpa [#allocation4], 0  ;;  %s7275_s12 = smov [#allocation2]   ;;  %s7227_s16 = scalar_lea.hbm %s10894_s1, 12288 }
   0x2   :  { %s17_s13 = sshll.u32 %s7275_s12, 4  ;;  %p7228_p0 = scmp.ne.s32.totalorder %s10894_s1, %s7227_s16  ;;  %s18_s13 = int_to_ptr.vmem [resolvable:$true] %s17_s13 }
   0x3   :  { %p7231_p1 = scmp.lt.u32.totalorder %s7227_s16, %s10894_s1 }
   0x5   :  { %p7233_p2 = pnand %p7231_p1, %p7228_p0 }
   0x7   :  { %7236 = shalt.err (!%p7233_p2)
}
   0x8   :  { %s7237_s21 = scalar_lea.vmem %s18_s13, 12288  ;;  %p7242_p4 = scmp.lt.s32.totalorder %s18_s13, %s18_s13 }
   0x9   :  { %p7238_p3 = scmp.ne.s32.totalorder %s18_s13, %s7237_s21  ;;  %p7243_p5 = scmp.lt.s32.totalorder %s7237_s21, %s7237_s21 }
   0xb   :  { %p7244_p6 = por %p7243_p5, %p7242_p4 }
   0xd   :  { %p7245_p7 = pnand %p7244_p6, %p7238_p3 }
   0xf   :  { %7248 = shalt.err (!%p7245_p7)
}
  0x10   :  { %s7276_s22 = smov 64   ;;  %s7277_s23 = smov 4  }
  0x11   :  { %23 = dma.hbm_to_vmem [thread:$0]  %s10894_s1, 12288, %s18_s13, [#allocation3], %s7276_s22, %s7276_s22, %s7277_s23  }
  0x12   :  { %7271 = dma.done.wait [#allocation3], 12288  }
  0x13   :  { %7272 = vsyncadd [#allocation3], 4294955008  ;;  %v6609_v0 = vld [vmem:[%s10893_s0 + $0x8] sm:$0xff]   ;;  %vm11103_vm0 = vcmask 130048   ;;  %v6354_v1 = vld [vmem:[%s10893_s0] sm:$0xff]   ;;  %vm671_vm1 = vcmask 261248  }
  0x14   :  { %v7320_v2 = vunpack.c.l.bf16 %v6609_v0  ;;  %v7322_v3 = vunpack.c.l.bf16 %v6354_v1  ;;  %v7324_v4 = vunpack.c.h.bf16 %v6609_v0  ;;  %v7326_v5 = vunpack.c.h.bf16 %v6354_v1  ;;  %v6610_v6 = vld [vmem:[%s10893_s0 + $0x10] sm:$0xff]   ;;  %v6611_v13 = vld [vmem:[%s10893_s0 + $0x18] sm:$0xff]   ;;  %v6612_v18 = vld [vmem:[%s10893_s0 + $0x20] sm:$0xff]   ;;  %s7279_s20 = smov [#allocation5]  }
  0x15   :  { %v7339_v11 = vunpack.c.h.bf16 %v6610_v6  ;;  %v7341_v12 = vunpack.c.l.bf16 %v6610_v6  ;;  %v7350_v16 = vunpack.c.h.bf16 %v6611_v13  ;;  %v7352_v17 = vunpack.c.l.bf16 %v6611_v13  ;;  %v6613_v23 = vld [vmem:[%s10893_s0 + $0x28] sm:$0xff]   ;;  %v6614_v28 = vld [vmem:[%s10893_s0 + $0x30] sm:$0xff]   ;;  %v6615_v33 = vld [vmem:[%s10893_s0 + $0x38] sm:$0xff]   ;;  %s6240_s21 = sshll.u32 %s7279_s20, 4  ;;  %s6241_s21 = int_to_ptr.vmem [resolvable:$true] %s6240_s21 }
  0x16   :  { %11157 = vst [vmem:[#allocation8_spill] sm:$0xff] %v7326_v5  ;;  %v293_v7 = vsel %vm11103_vm0, %v7320_v2, -inf  ;;  %v287_v8 = vsel %vm11103_vm0, %v7322_v3, -inf  ;;  %v296_v9 = vsel %vm11103_vm0, %v7324_v4, -inf  ;;  %v290_v10 = vsel %vm11103_vm0, %v7326_v5, -inf  ;;  %v6616_v38 = vld [vmem:[%s10893_s0 + $0x40] sm:$0xff]   ;;  %p7254_p9 = scmp.lt.s32.totalorder %s6241_s21, %s6241_s21 }
  0x17   :  { %294 = vmax.xlane.f32.xlu1 %v293_v7  ;;  %288 = vmax.xlane.f32.xlu0 %v287_v8  ;;  %v302_v14 = vsel %vm11103_vm0, %v7339_v11, -inf  ;;  %v299_v15 = vsel %vm11103_vm0, %v7341_v12, -inf  ;;  %11158 = vst [vmem:[#allocation9_spill] sm:$0xff] %v7350_v16  ;;  %11159 = vst [vmem:[#allocation10_spill] sm:$0xff] %v7352_v17  ;;  %v7357_v19 = vunpack.c.h.bf16 %v6612_v18  ;;  %v7359_v20 = vunpack.c.l.bf16 %v6612_v18  ;;  %v6617_v43 = vld [vmem:[%s10893_s0 + $0x48] sm:$0xff]   ;;  %v6618_v48 = vld [vmem:[%s10893_s0 + $0x50] sm:$0xff]  }
  0x18   :  { %v308_v21 = vsel %vm11103_vm0, %v7350_v16, -inf  ;;  %v305_v22 = vsel %vm11103_vm0, %v7352_v17, -inf  ;;  %v7372_v26 = vunpack.c.h.bf16 %v6613_v23  ;;  %v7374_v27 = vunpack.c.l.bf16 %v6613_v23  ;;  %v6619_v53 = vld [vmem:[%s10893_s0 + $0x58] sm:$0xff]   ;;  %v6620_v58 = vld [vmem:[%s10893_s0 + $0x60] sm:$0xff]   ;;  %v6621_v63 = vld [vmem:[%s10893_s0 + $0x68] sm:$0xff]   ;;  %s7249_s22 = scalar_lea.vmem %s6241_s21, 96 }
  0x19   :  { %11160 = vst [vmem:[#allocation11_spill] sm:$0xff] %v7357_v19  ;;  %11161 = vst [vmem:[#allocation12_spill] sm:$0xff] %v7359_v20  ;;  %v314_v24 = vsel %vm11103_vm0, %v7357_v19, -inf  ;;  %v311_v25 = vsel %vm11103_vm0, %v7359_v20, -inf  ;;  %v7383_v31 = vunpack.c.h.bf16 %v6614_v28  ;;  %v7385_v32 = vunpack.c.l.bf16 %v6614_v28  ;;  %v6622_v0 = vld [vmem:[%s10893_s0 + $0x70] sm:$0xff]   ;;  %v6624_v18 = vld [vmem:[%s10893_s0 + $0x80] sm:$0xff]   ;;  %p7250_p8 = scmp.ne.s32.totalorder %s6241_s21, %s7249_s22  ;;  %p7255_p10 = scmp.lt.s32.totalorder %s7249_s22, %s7249_s22 }
  0x1a   :  { %11162 = vst [vmem:[#allocation13_spill] sm:$0xff] %v7372_v26  ;;  %11163 = vst [vmem:[#allocation14_spill] sm:$0xff] %v7374_v27  ;;  %v320_v29 = vsel %vm11103_vm0, %v7372_v26, -inf  ;;  %v317_v30 = vsel %vm11103_vm0, %v7374_v27, -inf  ;;  %v7394_v36 = vunpack.c.h.bf16 %v6615_v33  ;;  %v7396_v37 = vunpack.c.l.bf16 %v6615_v33 }
  0x1b   :  { %297 = vmax.xlane.f32.xlu1 %v296_v9  ;;  %291 = vmax.xlane.f32.xlu0 %v290_v10  ;;  %11164 = vst [vmem:[#allocation15_spill] sm:$0xff] %v7383_v31  ;;  %11165 = vst [vmem:[#allocation16_spill] sm:$0xff] %v7385_v32  ;;  %v326_v34 = vsel %vm11103_vm0, %v7383_v31, -inf  ;;  %v323_v35 = vsel %vm11103_vm0, %v7385_v32, -inf  ;;  %v7405_v41 = vunpack.c.h.bf16 %v6616_v38  ;;  %v7407_v42 = vunpack.c.l.bf16 %v6616_v38  ;;  %v6623_v9 = vld [vmem:[%s10893_s0 + $0x78] sm:$0xff]   ;;  %p7256_p11 = por %p7255_p10, %p7254_p9 }
  0x1c   :  { %11166 = vst [vmem:[#allocation17_spill] sm:$0xff] %v7394_v36  ;;  %11167 = vst [vmem:[#allocation18_spill] sm:$0xff] %v7396_v37  ;;  %v332_v39 = vsel %vm11103_vm0, %v7394_v36, -inf  ;;  %v329_v40 = vsel %vm11103_vm0, %v7396_v37, -inf  ;;  %v7416_v46 = vunpack.c.h.bf16 %v6617_v43  ;;  %v7418_v47 = vunpack.c.l.bf16 %v6617_v43  ;;  %v6627_v43 = vld [vmem:[%s10893_s0 + $0x98] sm:$0xff]  }
  0x1d   :  { %11168 = vst [vmem:[#allocation19_spill] sm:$0xff] %v7405_v41  ;;  %11169 = vst [vmem:[#allocation20_spill] sm:$0xff] %v7407_v42  ;;  %v338_v44 = vsel %vm11103_vm0, %v7405_v41, -inf  ;;  %v335_v45 = vsel %vm11103_vm0, %v7407_v42, -inf  ;;  %v7427_v51 = vunpack.c.h.bf16 %v6618_v48  ;;  %v7429_v52 = vunpack.c.l.bf16 %v6618_v48  ;;  %p7257_p12 = pnand %p7256_p11, %p7250_p8 }
  0x1e   :  { %11170 = vst [vmem:[#allocation21_spill] sm:$0xff] %v7416_v46  ;;  %11171 = vst [vmem:[#allocation22_spill] sm:$0xff] %v7418_v47  ;;  %v344_v49 = vsel %vm11103_vm0, %v7416_v46, -inf  ;;  %v341_v50 = vsel %vm11103_vm0, %v7418_v47, -inf  ;;  %v7438_v56 = vunpack.c.h.bf16 %v6619_v53  ;;  %v7440_v57 = vunpack.c.l.bf16 %v6619_v53 }
  0x1f   :  { %303 = vmax.xlane.f32.xlu1 %v302_v14  ;;  %300 = vmax.xlane.f32.xlu0 %v299_v15  ;;  %11172 = vst [vmem:[#allocation23_spill] sm:$0xff] %v7427_v51  ;;  %11173 = vst [vmem:[#allocation24_spill] sm:$0xff] %v7429_v52  ;;  %v350_v54 = vsel %vm11103_vm0, %v7427_v51, -inf  ;;  %v347_v55 = vsel %vm11103_vm0, %v7429_v52, -inf  ;;  %v7449_v61 = vunpack.c.h.bf16 %v6620_v58  ;;  %v7451_v62 = vunpack.c.l.bf16 %v6620_v58 }
  0x20   :  { %11174 = vst [vmem:[#allocation25_spill] sm:$0xff] %v7438_v56  ;;  %11175 = vst [vmem:[#allocation26_spill] sm:$0xff] %v7440_v57  ;;  %v356_v59 = vsel %vm11103_vm0, %v7438_v56, -inf  ;;  %v353_v60 = vsel %vm11103_vm0, %v7440_v57, -inf  ;;  %v7463_v7 = vunpack.c.h.bf16 %v6621_v63  ;;  %v7465_v8 = vunpack.c.l.bf16 %v6621_v63 }
  0x21   :  { %11176 = vst [vmem:[#allocation27_spill] sm:$0xff] %v7449_v61  ;;  %11177 = vst [vmem:[#allocation28_spill] sm:$0xff] %v7451_v62  ;;  %v362_v1 = vsel %vm11103_vm0, %v7449_v61, -inf  ;;  %v359_v6 = vsel %vm11103_vm0, %v7451_v62, -inf  ;;  %v7474_v14 = vunpack.c.h.bf16 %v6622_v0  ;;  %v7476_v15 = vunpack.c.l.bf16 %v6622_v0 }
  0x22   :  { %11178 = vst [vmem:[#allocation29_spill] sm:$0xff] %v7463_v7  ;;  %11179 = vst [vmem:[#allocation30_spill] sm:$0xff] %v7465_v8  ;;  %v368_v10 = vsel %vm11103_vm0, %v7463_v7, -inf  ;;  %v365_v13 = vsel %vm11103_vm0, %v7465_v8, -inf  ;;  %v7485_v23 = vunpack.c.h.bf16 %v6623_v9  ;;  %v7498_v33 = vunpack.c.l.bf16 %v6624_v18 }
  0x23   :  { %309 = vmax.xlane.f32.xlu1 %v308_v21  ;;  %306 = vmax.xlane.f32.xlu0 %v305_v22  ;;  %11180 = vst [vmem:[#allocation31_spill] sm:$0xff] %v7474_v14  ;;  %11181 = vst [vmem:[#allocation32_spill] sm:$0xff] %v7476_v15  ;;  %v374_v21 = vsel %vm11103_vm0, %v7474_v14, -inf  ;;  %v371_v22 = vsel %vm11103_vm0, %v7476_v15, -inf  ;;  %v7531_v58 = vunpack.c.l.bf16 %v6627_v43  ;;  %vm2802_vm2 = vcmask 130112  }
  0x24   :  { %11182 = vst [vmem:[#allocation33_spill] sm:$0xff] %v7485_v23  ;;  %v380_v28 = vsel %vm11103_vm0, %v7485_v23, -inf  ;;  %11185 = vst [vmem:[#allocation36_spill] sm:$0xff] %v7498_v33  ;;  %v383_v38 = vsel %vm11103_vm0, %v7498_v33, -inf  ;;  %vm2809_vm3 = vcmask 195712   ;;  %vm11112_vm4 = vcmask 261312  }
  0x25   :  { %11191 = vst [vmem:[#allocation42_spill] sm:$0xff] %v7531_v58  ;;  %v401_v63 = vsel %vm11103_vm0, %v7531_v58, -inf  ;;  %vm2823_vm5 = vcmask 326912   ;;  %vm2830_vm6 = vcmask 392512   ;;  %vm2837_vm7 = vcmask 458112  }
  0x26   :  { %vm2844_vm8 = vcmask 523712   ;;  %vm2851_vm9 = vcmask 589312   ;;  %vm2858_vm10 = vcmask 654912   ;;  %vm11150_vm11 = vcmask 720512  }
  0x27   :  { %315 = vmax.xlane.f32.xlu1 %v314_v24  ;;  %312 = vmax.xlane.f32.xlu0 %v311_v25  ;;  %v7487_v24 = vunpack.c.l.bf16 %v6623_v9  ;;  %v6625_v25 = vld [vmem:[%s10893_s0 + $0x88] sm:$0xff]   ;;  %vm11132_vm12 = vcmask 786112   ;;  %vm11131_vm13 = vcmask 851712   ;;  %vm11113_vm14 = vcmask 917312  }
  0x28   :  { %vm11126_vm15 = vcmask 982912  }
  0x29   :  { %11183 = vst [vmem:[#allocation34_spill] sm:$0xff] %v7487_v24 }
  0x2b   :  { %321 = vmax.xlane.f32.xlu1 %v320_v29  ;;  %318 = vmax.xlane.f32.xlu0 %v317_v30  ;;  %v377_v29 = vsel %vm11103_vm0, %v7487_v24, -inf  ;;  %v7496_v30 = vunpack.c.h.bf16 %v6624_v18 }
  0x2d   :  { %11184 = vst [vmem:[#allocation35_spill] sm:$0xff] %v7496_v30 }
  0x2f   :  { %327 = vmax.xlane.f32.xlu1 %v326_v34  ;;  %324 = vmax.xlane.f32.xlu0 %v323_v35  ;;  %v6626_v34 = vld [vmem:[%s10893_s0 + $0x90] sm:$0xff]   ;;  %v386_v35 = vsel %vm11103_vm0, %v7496_v30, -inf }
  0x30   :  { %v7518_v48 = vunpack.c.h.bf16 %v6626_v34 }
  0x32   :  { %11188 = vst [vmem:[#allocation39_spill] sm:$0xff] %v7518_v48  ;;  %v398_v53 = vsel %vm11103_vm0, %v7518_v48, -inf }
  0x33   :  { %333 = vmax.xlane.f32.xlu1 %v332_v39  ;;  %330 = vmax.xlane.f32.xlu0 %v329_v40  ;;  %v7507_v39 = vunpack.c.h.bf16 %v6625_v25  ;;  %v7509_v40 = vunpack.c.l.bf16 %v6625_v25 }
  0x35   :  { %11186 = vst [vmem:[#allocation37_spill] sm:$0xff] %v7507_v39  ;;  %11187 = vst [vmem:[#allocation38_spill] sm:$0xff] %v7509_v40 }
  0x37   :  { %339 = vmax.xlane.f32.xlu1 %v338_v44  ;;  %336 = vmax.xlane.f32.xlu0 %v335_v45  ;;  %v392_v44 = vsel %vm11103_vm0, %v7507_v39, -inf  ;;  %v389_v45 = vsel %vm11103_vm0, %v7509_v40, -inf }
  0x3b   :  { %345 = vmax.xlane.f32.xlu1 %v344_v49  ;;  %342 = vmax.xlane.f32.xlu0 %v341_v50  ;;  %v7520_v49 = vunpack.c.l.bf16 %v6626_v34  ;;  %v6628_v50 = vld [vmem:[%s10893_s0 + $0xa0] sm:$0xff]  }
  0x3c   :  { %v7540_v0 = vunpack.c.h.bf16 %v6628_v50  ;;  %v6632_v34 = vld [vmem:[%s10893_s0 + $0xc0] sm:$0xff]  }
  0x3d   :  { %11189 = vst [vmem:[#allocation40_spill] sm:$0xff] %v7520_v49 }
  0x3e   :  { %11192 = vst [vmem:[#allocation43_spill] sm:$0xff] %v7540_v0  ;;  %v410_v9 = vsel %vm11103_vm0, %v7540_v0, -inf }
  0x3f   :  { %351 = vmax.xlane.f32.xlu1 %v350_v54  ;;  %348 = vmax.xlane.f32.xlu0 %v347_v55  ;;  %v395_v54 = vsel %vm11103_vm0, %v7520_v49, -inf  ;;  %v7529_v55 = vunpack.c.h.bf16 %v6627_v43 }
  0x41   :  { %11190 = vst [vmem:[#allocation41_spill] sm:$0xff] %v7529_v55 }
  0x43   :  { %357 = vmax.xlane.f32.xlu1 %v356_v59  ;;  %354 = vmax.xlane.f32.xlu0 %v353_v60  ;;  %v6629_v59 = vld [vmem:[%s10893_s0 + $0xa8] sm:$0xff]   ;;  %v404_v60 = vsel %vm11103_vm0, %v7529_v55, -inf }
  0x44   :  { %v7553_v18 = vunpack.c.l.bf16 %v6629_v59 }
  0x46   :  { %11195 = vst [vmem:[#allocation46_spill] sm:$0xff] %v7553_v18  ;;  %v413_v25 = vsel %vm11103_vm0, %v7553_v18, -inf }
  0x47   :  { %363 = vmax.xlane.f32.xlu1 %v362_v1  ;;  %360 = vmax.xlane.f32.xlu0 %v359_v6  ;;  %v7542_v1 = vunpack.c.l.bf16 %v6628_v50  ;;  %v6630_v6 = vld [vmem:[%s10893_s0 + $0xb0] sm:$0xff]  }
  0x49   :  { %11193 = vst [vmem:[#allocation44_spill] sm:$0xff] %v7542_v1 }
  0x4b   :  { %369 = vmax.xlane.f32.xlu1 %v368_v10  ;;  %366 = vmax.xlane.f32.xlu0 %v365_v13  ;;  %v407_v10 = vsel %vm11103_vm0, %v7542_v1, -inf  ;;  %v7551_v13 = vunpack.c.h.bf16 %v6629_v59  ;;  %v6633_v59 = vld [vmem:[%s10893_s0 + $0xc8] sm:$0xff]  }
  0x4d   :  { %11194 = vst [vmem:[#allocation45_spill] sm:$0xff] %v7551_v13 }
  0x4f   :  { %375 = vmax.xlane.f32.xlu1 %v374_v21  ;;  %372 = vmax.xlane.f32.xlu0 %v371_v22  ;;  %v6631_v21 = vld [vmem:[%s10893_s0 + $0xb8] sm:$0xff]   ;;  %v416_v22 = vsel %vm11103_vm0, %v7551_v13, -inf }
  0x50   :  { %v7573_v43 = vunpack.c.h.bf16 %v6631_v21 }
  0x52   :  { %11198 = vst [vmem:[#allocation49_spill] sm:$0xff] %v7573_v43 }
  0x53   :  { %381 = vmax.xlane.f32.xlu1 %v380_v28  ;;  %378 = vmax.xlane.f32.xlu0 %v377_v29  ;;  %v7562_v28 = vunpack.c.h.bf16 %v6630_v6  ;;  %v7564_v29 = vunpack.c.l.bf16 %v6630_v6  ;;  %v6634_v6 = vld [vmem:[%s10893_s0 + $0xd0] sm:$0xff]  }
  0x55   :  { %11196 = vst [vmem:[#allocation47_spill] sm:$0xff] %v7562_v28  ;;  %11197 = vst [vmem:[#allocation48_spill] sm:$0xff] %v7564_v29 }
  0x57   :  { %387 = vmax.xlane.f32.xlu1 %v386_v35  ;;  %384 = vmax.xlane.f32.xlu0 %v383_v38  ;;  %v422_v35 = vsel %vm11103_vm0, %v7562_v28, -inf  ;;  %v419_v38 = vsel %vm11103_vm0, %v7564_v29, -inf }
  0x5b   :  { %393 = vmax.xlane.f32.xlu1 %v392_v44  ;;  %390 = vmax.xlane.f32.xlu0 %v389_v45  ;;  %v7575_v44 = vunpack.c.l.bf16 %v6631_v21  ;;  %v428_v45 = vsel %vm11103_vm0, %v7573_v43, -inf }
  0x5d   :  { %11199 = vst [vmem:[#allocation50_spill] sm:$0xff] %v7575_v44  ;;  %v425_v50 = vsel %vm11103_vm0, %v7575_v44, -inf }
  0x5f   :  { %399 = vmax.xlane.f32.xlu1 %v398_v53  ;;  %396 = vmax.xlane.f32.xlu0 %v395_v54  ;;  %v7581_v53 = vunpack.c.h.bf16 %v6632_v34  ;;  %v7583_v54 = vunpack.c.l.bf16 %v6632_v34  ;;  %v7605_v34 = vunpack.c.l.bf16 %v6634_v6 }
  0x61   :  { %11200 = vst [vmem:[#allocation51_spill] sm:$0xff] %v7581_v53  ;;  %11201 = vst [vmem:[#allocation52_spill] sm:$0xff] %v7583_v54 }
  0x62   :  { %11205 = vst [vmem:[#allocation56_spill] sm:$0xff] %v7605_v34 }
  0x63   :  { %405 = vmax.xlane.f32.xlu1 %v404_v60  ;;  %402 = vmax.xlane.f32.xlu0 %v401_v63  ;;  %v434_v60 = vsel %vm11103_vm0, %v7581_v53, -inf  ;;  %v431_v63 = vsel %vm11103_vm0, %v7583_v54, -inf }
  0x67   :  { %411 = vmax.xlane.f32.xlu1 %v410_v9  ;;  %408 = vmax.xlane.f32.xlu0 %v407_v10  ;;  %v7595_v9 = vunpack.c.h.bf16 %v6633_v59  ;;  %v7597_v10 = vunpack.c.l.bf16 %v6633_v59 }
  0x69   :  { %11202 = vst [vmem:[#allocation53_spill] sm:$0xff] %v7595_v9  ;;  %11203 = vst [vmem:[#allocation54_spill] sm:$0xff] %v7597_v10  ;;  %v440_v21 = vsel %vm11103_vm0, %v7595_v9, -inf }
  0x6b   :  { %417 = vmax.xlane.f32.xlu1 %v416_v22  ;;  %414 = vmax.xlane.f32.xlu0 %v413_v25  ;;  %v437_v22 = vsel %vm11103_vm0, %v7597_v10, -inf  ;;  %v7603_v25 = vunpack.c.h.bf16 %v6634_v6 }
  0x6d   :  { %11204 = vst [vmem:[#allocation55_spill] sm:$0xff] %v7603_v25 }
  0x6f   :  { %423 = vmax.xlane.f32.xlu1 %v422_v35  ;;  %420 = vmax.xlane.f32.xlu0 %v419_v38  ;;  %v6635_v35 = vld [vmem:[%s10893_s0 + $0xd8] sm:$0xff]   ;;  %v446_v38 = vsel %vm11103_vm0, %v7603_v25, -inf  ;;  %v6646_v25 = vld [vmem:[%s10893_s0 + $0x130] sm:$0xff]  }
  0x70   :  { %v7616_v59 = vunpack.c.l.bf16 %v6635_v35 }
  0x72   :  { %11207 = vst [vmem:[#allocation58_spill] sm:$0xff] %v7616_v59  ;;  %v449_v6 = vsel %vm11103_vm0, %v7616_v59, -inf }
  0x73   :  { %429 = vmax.xlane.f32.xlu1 %v428_v45  ;;  %426 = vmax.xlane.f32.xlu0 %v425_v50  ;;  %v443_v45 = vsel %vm11103_vm0, %v7605_v34, -inf  ;;  %v7614_v50 = vunpack.c.h.bf16 %v6635_v35  ;;  %v6637_v35 = vld [vmem:[%s10893_s0 + $0xe8] sm:$0xff]  }
  0x74   :  { %v7638_v34 = vunpack.c.l.bf16 %v6637_v35 }
  0x75   :  { %11206 = vst [vmem:[#allocation57_spill] sm:$0xff] %v7614_v50 }
  0x76   :  { %11211 = vst [vmem:[#allocation62_spill] sm:$0xff] %v7638_v34 }
  0x77   :  { %435 = vmax.xlane.f32.xlu1 %v434_v60  ;;  %432 = vmax.xlane.f32.xlu0 %v431_v63  ;;  %v6636_v60 = vld [vmem:[%s10893_s0 + $0xe0] sm:$0xff]   ;;  %v452_v63 = vsel %vm11103_vm0, %v7614_v50, -inf  ;;  %v7636_v50 = vunpack.c.h.bf16 %v6637_v35  ;;  %v6639_v35 = vld [vmem:[%s10893_s0 + $0xf8] sm:$0xff]  }
  0x79   :  { %11210 = vst [vmem:[#allocation61_spill] sm:$0xff] %v7636_v50 }
  0x7b   :  { %441 = vmax.xlane.f32.xlu1 %v440_v21  ;;  %438 = vmax.xlane.f32.xlu0 %v437_v22  ;;  %v7625_v21 = vunpack.c.h.bf16 %v6636_v60  ;;  %v7627_v22 = vunpack.c.l.bf16 %v6636_v60  ;;  %v6638_v60 = vld [vmem:[%s10893_s0 + $0xf0] sm:$0xff]  }
  0x7c   :  { %v7649_v59 = vunpack.c.l.bf16 %v6638_v60 }
  0x7d   :  { %11208 = vst [vmem:[#allocation59_spill] sm:$0xff] %v7625_v21  ;;  %11209 = vst [vmem:[#allocation60_spill] sm:$0xff] %v7627_v22 }
  0x7e   :  { %11213 = vst [vmem:[#allocation64_spill] sm:$0xff] %v7649_v59 }
  0x7f   :  { %447 = vmax.xlane.f32.xlu1 %v446_v38  ;;  %444 = vmax.xlane.f32.xlu0 %v443_v45  ;;  %v458_v38 = vsel %vm11103_vm0, %v7625_v21, -inf  ;;  %v455_v45 = vsel %vm11103_vm0, %v7627_v22, -inf  ;;  %v7647_v21 = vunpack.c.h.bf16 %v6638_v60  ;;  %v7660_v22 = vunpack.c.l.bf16 %v6639_v35  ;;  %v6640_v60 = vld [vmem:[%s10893_s0 + $0x100] sm:$0xff]  }
  0x81   :  { %11212 = vst [vmem:[#allocation63_spill] sm:$0xff] %v7647_v21  ;;  %11215 = vst [vmem:[#allocation66_spill] sm:$0xff] %v7660_v22 }
  0x83   :  { %453 = vmax.xlane.f32.xlu1 %v452_v63  ;;  %450 = vmax.xlane.f32.xlu0 %v449_v6  ;;  %v464_v63 = vsel %vm11103_vm0, %v7636_v50, -inf  ;;  %v461_v6 = vsel %vm11103_vm0, %v7638_v34, -inf  ;;  %v7658_v50 = vunpack.c.h.bf16 %v6639_v35  ;;  %v7671_v34 = vunpack.c.l.bf16 %v6640_v60  ;;  %v6641_v35 = vld [vmem:[%s10893_s0 + $0x108] sm:$0xff]  }
  0x85   :  { %11214 = vst [vmem:[#allocation65_spill] sm:$0xff] %v7658_v50  ;;  %11217 = vst [vmem:[#allocation68_spill] sm:$0xff] %v7671_v34 }
  0x87   :  { %459 = vmax.xlane.f32.xlu1 %v458_v38  ;;  %456 = vmax.xlane.f32.xlu0 %v455_v45  ;;  %v470_v38 = vsel %vm11103_vm0, %v7647_v21, -inf  ;;  %v467_v45 = vsel %vm11103_vm0, %v7649_v59, -inf  ;;  %v7669_v21 = vunpack.c.h.bf16 %v6640_v60  ;;  %v7682_v59 = vunpack.c.l.bf16 %v6641_v35  ;;  %v6642_v60 = vld [vmem:[%s10893_s0 + $0x110] sm:$0xff]  }
  0x89   :  { %11216 = vst [vmem:[#allocation67_spill] sm:$0xff] %v7669_v21  ;;  %11219 = vst [vmem:[#allocation70_spill] sm:$0xff] %v7682_v59 }
  0x8b   :  { %465 = vmax.xlane.f32.xlu1 %v464_v63  ;;  %462 = vmax.xlane.f32.xlu0 %v461_v6  ;;  %v476_v63 = vsel %vm11103_vm0, %v7658_v50, -inf  ;;  %v473_v6 = vsel %vm11103_vm0, %v7660_v22, -inf  ;;  %v7680_v50 = vunpack.c.h.bf16 %v6641_v35  ;;  %v7693_v22 = vunpack.c.l.bf16 %v6642_v60  ;;  %v6643_v35 = vld [vmem:[%s10893_s0 + $0x118] sm:$0xff]  }
  0x8d   :  { %11218 = vst [vmem:[#allocation69_spill] sm:$0xff] %v7680_v50  ;;  %11221 = vst [vmem:[#allocation72_spill] sm:$0xff] %v7693_v22 }
  0x8f   :  { %471 = vmax.xlane.f32.xlu1 %v470_v38  ;;  %468 = vmax.xlane.f32.xlu0 %v467_v45  ;;  %v482_v38 = vsel %vm11103_vm0, %v7669_v21, -inf  ;;  %v479_v45 = vsel %vm11103_vm0, %v7671_v34, -inf  ;;  %v7691_v21 = vunpack.c.h.bf16 %v6642_v60  ;;  %v7704_v34 = vunpack.c.l.bf16 %v6643_v35  ;;  %v6644_v60 = vld [vmem:[%s10893_s0 + $0x120] sm:$0xff]  }
  0x91   :  { %11220 = vst [vmem:[#allocation71_spill] sm:$0xff] %v7691_v21  ;;  %11223 = vst [vmem:[#allocation74_spill] sm:$0xff] %v7704_v34 }
  0x93   :  { %477 = vmax.xlane.f32.xlu1 %v476_v63  ;;  %474 = vmax.xlane.f32.xlu0 %v473_v6  ;;  %v488_v63 = vsel %vm11103_vm0, %v7680_v50, -inf  ;;  %v485_v6 = vsel %vm11103_vm0, %v7682_v59, -inf  ;;  %v7702_v50 = vunpack.c.h.bf16 %v6643_v35  ;;  %v7715_v59 = vunpack.c.l.bf16 %v6644_v60  ;;  %v6645_v35 = vld [vmem:[%s10893_s0 + $0x128] sm:$0xff]  }
  0x95   :  { %11222 = vst [vmem:[#allocation73_spill] sm:$0xff] %v7702_v50  ;;  %11225 = vst [vmem:[#allocation76_spill] sm:$0xff] %v7715_v59 }
  0x97   :  { %483 = vmax.xlane.f32.xlu1 %v482_v38  ;;  %480 = vmax.xlane.f32.xlu0 %v479_v45  ;;  %v494_v38 = vsel %vm11103_vm0, %v7691_v21, -inf  ;;  %v491_v45 = vsel %vm11103_vm0, %v7693_v22, -inf  ;;  %v7713_v21 = vunpack.c.h.bf16 %v6644_v60  ;;  %v7730_v60 = vunpack.c.l.bf16 %v6645_v35 }
  0x99   :  { %11224 = vst [vmem:[#allocation75_spill] sm:$0xff] %v7713_v21  ;;  %11229 = vst [vmem:[#allocation80_spill] sm:$0xff] %v7730_v60 }
  0x9b   :  { %489 = vmax.xlane.f32.xlu1 %v488_v63  ;;  %486 = vmax.xlane.f32.xlu0 %v485_v6  ;;  %v500_v63 = vsel %vm11103_vm0, %v7702_v50, -inf  ;;  %v497_v6 = vsel %vm11103_vm0, %v7704_v34, -inf  ;;  %v503_v34 = vsel %vm11103_vm0, %v7715_v59, -inf  ;;  %v7728_v50 = vunpack.c.h.bf16 %v6645_v35 }
  0x9c   :  { %v7743_v59 = vunpack.c.h.bf16 %v6646_v25  ;;  %v7745_v35 = vunpack.c.l.bf16 %v6646_v25 }
  0x9d   :  { %11228 = vst [vmem:[#allocation79_spill] sm:$0xff] %v7728_v50 }
  0x9e   :  { %11232 = vst [vmem:[#allocation83_spill] sm:$0xff] %v7743_v59  ;;  %11233 = vst [vmem:[#allocation84_spill] sm:$0xff] %v7745_v35 }
  0x9f   :  { %495 = vmax.xlane.f32.xlu1 %v494_v38  ;;  %492 = vmax.xlane.f32.xlu0 %v491_v45  ;;  %v506_v45 = vsel %vm11103_vm0, %v7713_v21, -inf  ;;  %v6647_v21 = vld [vmem:[%s10893_s0 + $0x138] sm:$0xff]  }
  0xa0   :  { %v7760_v25 = vunpack.c.l.bf16 %v6647_v21 }
  0xa2   :  { %11237 = vst [vmem:[#allocation88_spill] sm:$0xff] %v7760_v25 }
  0xa3   :  { %501 = vmax.xlane.f32.xlu1 %v500_v63  ;;  %498 = vmax.xlane.f32.xlu0 %v497_v6 }
  0xa4   :  { %v7720_v22 = vpop.xlane.xlu1 %294  ;;  %v7722_v38 = vpop.xlane.xlu0 %288 }
  0xa5   :  { %11226 = vst [vmem:[#allocation77_spill] sm:$0xff] %v7720_v22  ;;  %11227 = vst [vmem:[#allocation78_spill] sm:$0xff] %v7722_v38  ;;  %v512_v22 = vsel %vm11103_vm0, %v7728_v50, -inf  ;;  %v509_v38 = vsel %vm11103_vm0, %v7730_v60, -inf  ;;  %v515_v60 = vsel %vm11103_vm0, %v7745_v35, -inf  ;;  %v7758_v50 = vunpack.c.h.bf16 %v6647_v21 }
  0xa7   :  { %507 = vmax.xlane.f32.xlu1 %v506_v45  ;;  %504 = vmax.xlane.f32.xlu0 %v503_v34  ;;  %11236 = vst [vmem:[#allocation87_spill] sm:$0xff] %v7758_v50 }
  0xa8   :  { %v7735_v63 = vpop.xlane.xlu1 %297  ;;  %v7737_v6 = vpop.xlane.xlu0 %291 }
  0xa9   :  { %11230 = vst [vmem:[#allocation81_spill] sm:$0xff] %v7735_v63  ;;  %11231 = vst [vmem:[#allocation82_spill] sm:$0xff] %v7737_v6  ;;  %v518_v63 = vsel %vm11103_vm0, %v7743_v59, -inf  ;;  %v6648_v6 = vld [vmem:[%s10893_s0 + $0x140] sm:$0xff]   ;;  %v6649_v59 = vld [vmem:[%s10893_s0 + $0x148] sm:$0xff]  }
  0xaa   :  { %v7773_v35 = vunpack.c.h.bf16 %v6648_v6  ;;  %v7775_v21 = vunpack.c.l.bf16 %v6648_v6  ;;  %v7790_v6 = vunpack.c.l.bf16 %v6649_v59 }
  0xab   :  { %513 = vmax.xlane.f32.xlu1 %v512_v22  ;;  %510 = vmax.xlane.f32.xlu0 %v509_v38 }
  0xac   :  { %v7750_v34 = vpop.xlane.xlu1 %303  ;;  %v7752_v45 = vpop.xlane.xlu0 %300  ;;  %11240 = vst [vmem:[#allocation91_spill] sm:$0xff] %v7773_v35  ;;  %11241 = vst [vmem:[#allocation92_spill] sm:$0xff] %v7775_v21 }
  0xad   :  { %11234 = vst [vmem:[#allocation85_spill] sm:$0xff] %v7750_v34  ;;  %11235 = vst [vmem:[#allocation86_spill] sm:$0xff] %v7752_v45  ;;  %v524_v45 = vsel %vm11103_vm0, %v7758_v50, -inf  ;;  %v521_v34 = vsel %vm11103_vm0, %v7760_v25, -inf  ;;  %v7788_v25 = vunpack.c.h.bf16 %v6649_v59  ;;  %v6650_v50 = vld [vmem:[%s10893_s0 + $0x150] sm:$0xff]  }
  0xae   :  { %11245 = vst [vmem:[#allocation96_spill] sm:$0xff] %v7790_v6  ;;  %v7805_v59 = vunpack.c.l.bf16 %v6650_v50 }
  0xaf   :  { %519 = vmax.xlane.f32.xlu1 %v518_v63  ;;  %516 = vmax.xlane.f32.xlu0 %v515_v60  ;;  %11244 = vst [vmem:[#allocation95_spill] sm:$0xff] %v7788_v25 }
  0xb0   :  { %v7765_v22 = vpop.xlane.xlu1 %309  ;;  %v7767_v38 = vpop.xlane.xlu0 %306  ;;  %11249 = vst [vmem:[#allocation100_spill] sm:$0xff] %v7805_v59 }
  0xb1   :  { %11238 = vst [vmem:[#allocation89_spill] sm:$0xff] %v7765_v22  ;;  %11239 = vst [vmem:[#allocation90_spill] sm:$0xff] %v7767_v38  ;;  %v530_v38 = vsel %vm11103_vm0, %v7773_v35, -inf  ;;  %v527_v22 = vsel %vm11103_vm0, %v7775_v21, -inf  ;;  %v7803_v21 = vunpack.c.h.bf16 %v6650_v50  ;;  %v6651_v35 = vld [vmem:[%s10893_s0 + $0x158] sm:$0xff]  }
  0xb2   :  { %v7820_v50 = vunpack.c.l.bf16 %v6651_v35 }
  0xb3   :  { %525 = vmax.xlane.f32.xlu1 %v524_v45  ;;  %522 = vmax.xlane.f32.xlu0 %v521_v34  ;;  %11248 = vst [vmem:[#allocation99_spill] sm:$0xff] %v7803_v21 }
  0xb4   :  { %v7780_v60 = vpop.xlane.xlu1 %315  ;;  %v7782_v63 = vpop.xlane.xlu0 %312  ;;  %11253 = vst [vmem:[#allocation104_spill] sm:$0xff] %v7820_v50 }
  0xb5   :  { %11242 = vst [vmem:[#allocation93_spill] sm:$0xff] %v7780_v60  ;;  %11243 = vst [vmem:[#allocation94_spill] sm:$0xff] %v7782_v63  ;;  %v536_v63 = vsel %vm11103_vm0, %v7788_v25, -inf  ;;  %v533_v60 = vsel %vm11103_vm0, %v7790_v6, -inf  ;;  %v7818_v6 = vunpack.c.h.bf16 %v6651_v35  ;;  %v6652_v25 = vld [vmem:[%s10893_s0 + $0x160] sm:$0xff]  }
  0xb6   :  { %v7835_v35 = vunpack.c.l.bf16 %v6652_v25 }
  0xb7   :  { %531 = vmax.xlane.f32.xlu1 %v530_v38  ;;  %528 = vmax.xlane.f32.xlu0 %v527_v22  ;;  %11252 = vst [vmem:[#allocation103_spill] sm:$0xff] %v7818_v6 }
  0xb8   :  { %v7795_v34 = vpop.xlane.xlu1 %321  ;;  %v7797_v45 = vpop.xlane.xlu0 %318  ;;  %11257 = vst [vmem:[#allocation108_spill] sm:$0xff] %v7835_v35 }
  0xb9   :  { %11246 = vst [vmem:[#allocation97_spill] sm:$0xff] %v7795_v34  ;;  %11247 = vst [vmem:[#allocation98_spill] sm:$0xff] %v7797_v45  ;;  %v542_v45 = vsel %vm11103_vm0, %v7803_v21, -inf  ;;  %v539_v34 = vsel %vm11103_vm0, %v7805_v59, -inf  ;;  %v7833_v59 = vunpack.c.h.bf16 %v6652_v25  ;;  %v6653_v21 = vld [vmem:[%s10893_s0 + $0x168] sm:$0xff]  }
  0xba   :  { %v7850_v25 = vunpack.c.l.bf16 %v6653_v21 }
  0xbb   :  { %537 = vmax.xlane.f32.xlu1 %v536_v63  ;;  %534 = vmax.xlane.f32.xlu0 %v533_v60  ;;  %11256 = vst [vmem:[#allocation107_spill] sm:$0xff] %v7833_v59 }
  0xbc   :  { %v7810_v22 = vpop.xlane.xlu1 %327  ;;  %v7812_v38 = vpop.xlane.xlu0 %324  ;;  %11261 = vst [vmem:[#allocation112_spill] sm:$0xff] %v7850_v25 }
  0xbd   :  { %11250 = vst [vmem:[#allocation101_spill] sm:$0xff] %v7810_v22  ;;  %11251 = vst [vmem:[#allocation102_spill] sm:$0xff] %v7812_v38  ;;  %v548_v38 = vsel %vm11103_vm0, %v7818_v6, -inf  ;;  %v545_v22 = vsel %vm11103_vm0, %v7820_v50, -inf  ;;  %v7848_v50 = vunpack.c.h.bf16 %v6653_v21  ;;  %v6654_v6 = vld [vmem:[%s10893_s0 + $0x170] sm:$0xff]  }
  0xbe   :  { %v7865_v21 = vunpack.c.l.bf16 %v6654_v6 }
  0xbf   :  { %543 = vmax.xlane.f32.xlu1 %v542_v45  ;;  %540 = vmax.xlane.f32.xlu0 %v539_v34  ;;  %11260 = vst [vmem:[#allocation111_spill] sm:$0xff] %v7848_v50 }
  0xc0   :  { %v7825_v60 = vpop.xlane.xlu1 %333  ;;  %v7827_v63 = vpop.xlane.xlu0 %330  ;;  %11265 = vst [vmem:[#allocation116_spill] sm:$0xff] %v7865_v21 }
  0xc1   :  { %11254 = vst [vmem:[#allocation105_spill] sm:$0xff] %v7825_v60  ;;  %11255 = vst [vmem:[#allocation106_spill] sm:$0xff] %v7827_v63  ;;  %v554_v63 = vsel %vm11103_vm0, %v7833_v59, -inf  ;;  %v551_v60 = vsel %vm11103_vm0, %v7835_v35, -inf  ;;  %v7863_v35 = vunpack.c.h.bf16 %v6654_v6  ;;  %v6655_v59 = vld [vmem:[%s10893_s0 + $0x178] sm:$0xff]  }
  0xc2   :  { %v7880_v6 = vunpack.c.l.bf16 %v6655_v59 }
  0xc3   :  { %549 = vmax.xlane.f32.xlu1 %v548_v38  ;;  %546 = vmax.xlane.f32.xlu0 %v545_v22  ;;  %11264 = vst [vmem:[#allocation115_spill] sm:$0xff] %v7863_v35 }
  0xc4   :  { %v7840_v34 = vpop.xlane.xlu1 %339  ;;  %v7842_v45 = vpop.xlane.xlu0 %336  ;;  %11269 = vst [vmem:[#allocation120_spill] sm:$0xff] %v7880_v6 }
  0xc5   :  { %11258 = vst [vmem:[#allocation109_spill] sm:$0xff] %v7840_v34  ;;  %11259 = vst [vmem:[#allocation110_spill] sm:$0xff] %v7842_v45  ;;  %v560_v45 = vsel %vm11103_vm0, %v7848_v50, -inf  ;;  %v557_v34 = vsel %vm11103_vm0, %v7850_v25, -inf  ;;  %v563_v25 = vsel %vm11103_vm0, %v7865_v21, -inf  ;;  %v6656_v50 = vld [vmem:[%s10893_s0 + $0x180] sm:$0xff]  }
  0xc6   :  { %v7893_v21 = vunpack.c.h.bf16 %v6656_v50 }
  0xc7   :  { %555 = vmax.xlane.f32.xlu1 %v554_v63  ;;  %552 = vmax.xlane.f32.xlu0 %v551_v60 }
  0xc8   :  { %v7855_v22 = vpop.xlane.xlu1 %345  ;;  %v7857_v38 = vpop.xlane.xlu0 %342  ;;  %11272 = vst [vmem:[#allocation123_spill] sm:$0xff] %v7893_v21 }
  0xc9   :  { %11262 = vst [vmem:[#allocation113_spill] sm:$0xff] %v7855_v22  ;;  %11263 = vst [vmem:[#allocation114_spill] sm:$0xff] %v7857_v38  ;;  %v566_v38 = vsel %vm11103_vm0, %v7863_v35, -inf  ;;  %v7878_v22 = vunpack.c.h.bf16 %v6655_v59  ;;  %v7895_v59 = vunpack.c.l.bf16 %v6656_v50  ;;  %v6657_v35 = vld [vmem:[%s10893_s0 + $0x188] sm:$0xff]  }
  0xca   :  { %v7910_v50 = vunpack.c.l.bf16 %v6657_v35 }
  0xcb   :  { %561 = vmax.xlane.f32.xlu1 %v560_v45  ;;  %558 = vmax.xlane.f32.xlu0 %v557_v34  ;;  %11268 = vst [vmem:[#allocation119_spill] sm:$0xff] %v7878_v22  ;;  %11273 = vst [vmem:[#allocation124_spill] sm:$0xff] %v7895_v59 }
  0xcc   :  { %v7870_v60 = vpop.xlane.xlu1 %351  ;;  %v7872_v63 = vpop.xlane.xlu0 %348  ;;  %11277 = vst [vmem:[#allocation128_spill] sm:$0xff] %v7910_v50 }
  0xcd   :  { %11266 = vst [vmem:[#allocation117_spill] sm:$0xff] %v7870_v60  ;;  %11267 = vst [vmem:[#allocation118_spill] sm:$0xff] %v7872_v63  ;;  %v572_v63 = vsel %vm11103_vm0, %v7878_v22, -inf  ;;  %v569_v60 = vsel %vm11103_vm0, %v7880_v6, -inf  ;;  %v7908_v6 = vunpack.c.h.bf16 %v6657_v35  ;;  %v6658_v22 = vld [vmem:[%s10893_s0 + $0x190] sm:$0xff]  }
  0xce   :  { %v7925_v35 = vunpack.c.l.bf16 %v6658_v22 }
  0xcf   :  { %567 = vmax.xlane.f32.xlu1 %v566_v38  ;;  %564 = vmax.xlane.f32.xlu0 %v563_v25  ;;  %11276 = vst [vmem:[#allocation127_spill] sm:$0xff] %v7908_v6 }
  0xd0   :  { %v7885_v34 = vpop.xlane.xlu1 %357  ;;  %v7887_v45 = vpop.xlane.xlu0 %354  ;;  %11281 = vst [vmem:[#allocation132_spill] sm:$0xff] %v7925_v35 }
  0xd1   :  { %11270 = vst [vmem:[#allocation121_spill] sm:$0xff] %v7885_v34  ;;  %11271 = vst [vmem:[#allocation122_spill] sm:$0xff] %v7887_v45  ;;  %v578_v45 = vsel %vm11103_vm0, %v7893_v21, -inf  ;;  %v575_v34 = vsel %vm11103_vm0, %v7895_v59, -inf  ;;  %v581_v59 = vsel %vm11103_vm0, %v7910_v50, -inf  ;;  %v6659_v21 = vld [vmem:[%s10893_s0 + $0x198] sm:$0xff]  }
  0xd2   :  { %v7938_v50 = vunpack.c.h.bf16 %v6659_v21 }
  0xd3   :  { %573 = vmax.xlane.f32.xlu1 %v572_v63  ;;  %570 = vmax.xlane.f32.xlu0 %v569_v60 }
  0xd4   :  { %v7900_v25 = vpop.xlane.xlu1 %363  ;;  %v7902_v38 = vpop.xlane.xlu0 %360  ;;  %11284 = vst [vmem:[#allocation135_spill] sm:$0xff] %v7938_v50 }
  0xd5   :  { %11274 = vst [vmem:[#allocation125_spill] sm:$0xff] %v7900_v25  ;;  %11275 = vst [vmem:[#allocation126_spill] sm:$0xff] %v7902_v38  ;;  %v584_v38 = vsel %vm11103_vm0, %v7908_v6, -inf  ;;  %v7923_v25 = vunpack.c.h.bf16 %v6658_v22  ;;  %v7940_v22 = vunpack.c.l.bf16 %v6659_v21  ;;  %v6660_v6 = vld [vmem:[%s10893_s0 + $0x1a0] sm:$0xff]  }
  0xd6   :  { %v7955_v21 = vunpack.c.l.bf16 %v6660_v6 }
  0xd7   :  { %579 = vmax.xlane.f32.xlu1 %v578_v45  ;;  %576 = vmax.xlane.f32.xlu0 %v575_v34  ;;  %11280 = vst [vmem:[#allocation131_spill] sm:$0xff] %v7923_v25  ;;  %11285 = vst [vmem:[#allocation136_spill] sm:$0xff] %v7940_v22 }
  0xd8   :  { %v7915_v60 = vpop.xlane.xlu1 %369  ;;  %v7917_v63 = vpop.xlane.xlu0 %366  ;;  %11289 = vst [vmem:[#allocation140_spill] sm:$0xff] %v7955_v21 }
  0xd9   :  { %11278 = vst [vmem:[#allocation129_spill] sm:$0xff] %v7915_v60  ;;  %11279 = vst [vmem:[#allocation130_spill] sm:$0xff] %v7917_v63  ;;  %v590_v63 = vsel %vm11103_vm0, %v7923_v25, -inf  ;;  %v587_v60 = vsel %vm11103_vm0, %v7925_v35, -inf  ;;  %v7953_v35 = vunpack.c.h.bf16 %v6660_v6  ;;  %v6661_v25 = vld [vmem:[%s10893_s0 + $0x1a8] sm:$0xff]  }
  0xda   :  { %v7970_v6 = vunpack.c.l.bf16 %v6661_v25 }
  0xdb   :  { %585 = vmax.xlane.f32.xlu1 %v584_v38  ;;  %582 = vmax.xlane.f32.xlu0 %v581_v59  ;;  %11288 = vst [vmem:[#allocation139_spill] sm:$0xff] %v7953_v35 }
  0xdc   :  { %v7930_v34 = vpop.xlane.xlu1 %375  ;;  %v7932_v45 = vpop.xlane.xlu0 %372  ;;  %11293 = vst [vmem:[#allocation144_spill] sm:$0xff] %v7970_v6 }
  0xdd   :  { %11282 = vst [vmem:[#allocation133_spill] sm:$0xff] %v7930_v34  ;;  %11283 = vst [vmem:[#allocation134_spill] sm:$0xff] %v7932_v45  ;;  %v596_v45 = vsel %vm11103_vm0, %v7938_v50, -inf  ;;  %v593_v34 = vsel %vm11103_vm0, %v7940_v22, -inf  ;;  %v599_v22 = vsel %vm11103_vm0, %v7955_v21, -inf  ;;  %v6662_v50 = vld [vmem:[%s10893_s0 + $0x1b0] sm:$0xff]  }
  0xde   :  { %v7983_v21 = vunpack.c.h.bf16 %v6662_v50 }
  0xdf   :  { %591 = vmax.xlane.f32.xlu1 %v590_v63  ;;  %588 = vmax.xlane.f32.xlu0 %v587_v60 }
  0xe0   :  { %v7945_v59 = vpop.xlane.xlu1 %381  ;;  %v7947_v38 = vpop.xlane.xlu0 %378  ;;  %11296 = vst [vmem:[#allocation147_spill] sm:$0xff] %v7983_v21 }
  0xe1   :  { %11286 = vst [vmem:[#allocation137_spill] sm:$0xff] %v7945_v59  ;;  %11287 = vst [vmem:[#allocation138_spill] sm:$0xff] %v7947_v38  ;;  %v602_v38 = vsel %vm11103_vm0, %v7953_v35, -inf  ;;  %v7968_v59 = vunpack.c.h.bf16 %v6661_v25  ;;  %v7985_v25 = vunpack.c.l.bf16 %v6662_v50  ;;  %v6663_v35 = vld [vmem:[%s10893_s0 + $0x1b8] sm:$0xff]  }
  0xe2   :  { %v8000_v50 = vunpack.c.l.bf16 %v6663_v35 }
  0xe3   :  { %597 = vmax.xlane.f32.xlu1 %v596_v45  ;;  %594 = vmax.xlane.f32.xlu0 %v593_v34  ;;  %11292 = vst [vmem:[#allocation143_spill] sm:$0xff] %v7968_v59  ;;  %11297 = vst [vmem:[#allocation148_spill] sm:$0xff] %v7985_v25 }
  0xe4   :  { %v7960_v60 = vpop.xlane.xlu1 %387  ;;  %v7962_v63 = vpop.xlane.xlu0 %384  ;;  %11301 = vst [vmem:[#allocation152_spill] sm:$0xff] %v8000_v50 }
  0xe5   :  { %11290 = vst [vmem:[#allocation141_spill] sm:$0xff] %v7960_v60  ;;  %11291 = vst [vmem:[#allocation142_spill] sm:$0xff] %v7962_v63  ;;  %v608_v63 = vsel %vm11103_vm0, %v7968_v59, -inf  ;;  %v605_v60 = vsel %vm11103_vm0, %v7970_v6, -inf  ;;  %v7998_v6 = vunpack.c.h.bf16 %v6663_v35  ;;  %v6664_v59 = vld [vmem:[%s10893_s0 + $0x1c0] sm:$0xff]  }
  0xe6   :  { %v8015_v35 = vunpack.c.l.bf16 %v6664_v59 }
  0xe7   :  { %603 = vmax.xlane.f32.xlu1 %v602_v38  ;;  %600 = vmax.xlane.f32.xlu0 %v599_v22  ;;  %11300 = vst [vmem:[#allocation151_spill] sm:$0xff] %v7998_v6 }
  0xe8   :  { %v7975_v34 = vpop.xlane.xlu1 %393  ;;  %v7977_v45 = vpop.xlane.xlu0 %390  ;;  %11305 = vst [vmem:[#allocation156_spill] sm:$0xff] %v8015_v35 }
  0xe9   :  { %11294 = vst [vmem:[#allocation145_spill] sm:$0xff] %v7975_v34  ;;  %11295 = vst [vmem:[#allocation146_spill] sm:$0xff] %v7977_v45  ;;  %v614_v45 = vsel %vm11103_vm0, %v7983_v21, -inf  ;;  %v611_v34 = vsel %vm11103_vm0, %v7985_v25, -inf  ;;  %v617_v25 = vsel %vm11103_vm0, %v8000_v50, -inf  ;;  %v6665_v21 = vld [vmem:[%s10893_s0 + $0x1c8] sm:$0xff]  }
  0xea   :  { %v623_v50 = vsel %vm11103_vm0, %v8015_v35, -inf }
  0xeb   :  { %609 = vmax.xlane.f32.xlu1 %v608_v63  ;;  %606 = vmax.xlane.f32.xlu0 %v605_v60 }
  0xec   :  { %v7990_v22 = vpop.xlane.xlu1 %399  ;;  %v7992_v38 = vpop.xlane.xlu0 %396 }
  0xed   :  { %11298 = vst [vmem:[#allocation149_spill] sm:$0xff] %v7990_v22  ;;  %11299 = vst [vmem:[#allocation150_spill] sm:$0xff] %v7992_v38  ;;  %v620_v38 = vsel %vm11103_vm0, %v7998_v6, -inf  ;;  %v8013_v22 = vunpack.c.h.bf16 %v6664_v59  ;;  %v8030_v59 = vunpack.c.l.bf16 %v6665_v21  ;;  %v6666_v6 = vld [vmem:[%s10893_s0 + $0x1d0] sm:$0xff]  }
  0xee   :  { %v8043_v35 = vunpack.c.h.bf16 %v6666_v6 }
  0xef   :  { %615 = vmax.xlane.f32.xlu1 %v614_v45  ;;  %612 = vmax.xlane.f32.xlu0 %v611_v34  ;;  %11304 = vst [vmem:[#allocation155_spill] sm:$0xff] %v8013_v22  ;;  %11309 = vst [vmem:[#allocation160_spill] sm:$0xff] %v8030_v59 }
  0xf0   :  { %v8005_v60 = vpop.xlane.xlu1 %405  ;;  %v8007_v63 = vpop.xlane.xlu0 %402  ;;  %11312 = vst [vmem:[#allocation163_spill] sm:$0xff] %v8043_v35 }
  0xf1   :  { %11302 = vst [vmem:[#allocation153_spill] sm:$0xff] %v8005_v60  ;;  %11303 = vst [vmem:[#allocation154_spill] sm:$0xff] %v8007_v63  ;;  %v626_v63 = vsel %vm11103_vm0, %v8013_v22, -inf  ;;  %v8028_v60 = vunpack.c.h.bf16 %v6665_v21  ;;  %v8045_v21 = vunpack.c.l.bf16 %v6666_v6  ;;  %v6667_v22 = vld [vmem:[%s10893_s0 + $0x1d8] sm:$0xff]  }
  0xf2   :  { %v8060_v6 = vunpack.c.l.bf16 %v6667_v22 }
  0xf3   :  { %621 = vmax.xlane.f32.xlu1 %v620_v38  ;;  %618 = vmax.xlane.f32.xlu0 %v617_v25  ;;  %11308 = vst [vmem:[#allocation159_spill] sm:$0xff] %v8028_v60  ;;  %11313 = vst [vmem:[#allocation164_spill] sm:$0xff] %v8045_v21 }
  0xf4   :  { %v8020_v34 = vpop.xlane.xlu1 %411  ;;  %v8022_v45 = vpop.xlane.xlu0 %408  ;;  %11317 = vst [vmem:[#allocation168_spill] sm:$0xff] %v8060_v6 }
  0xf5   :  { %11306 = vst [vmem:[#allocation157_spill] sm:$0xff] %v8020_v34  ;;  %11307 = vst [vmem:[#allocation158_spill] sm:$0xff] %v8022_v45  ;;  %v632_v45 = vsel %vm11103_vm0, %v8028_v60, -inf  ;;  %v629_v34 = vsel %vm11103_vm0, %v8030_v59, -inf  ;;  %v8058_v59 = vunpack.c.h.bf16 %v6667_v22  ;;  %v6668_v60 = vld [vmem:[%s10893_s0 + $0x1e0] sm:$0xff]  }
  0xf6   :  { %v8075_v22 = vunpack.c.l.bf16 %v6668_v60 }
  0xf7   :  { %627 = vmax.xlane.f32.xlu1 %v626_v63  ;;  %624 = vmax.xlane.f32.xlu0 %v623_v50  ;;  %11316 = vst [vmem:[#allocation167_spill] sm:$0xff] %v8058_v59 }
  0xf8   :  { %v8035_v25 = vpop.xlane.xlu1 %417  ;;  %v8037_v38 = vpop.xlane.xlu0 %414  ;;  %11321 = vst [vmem:[#allocation172_spill] sm:$0xff] %v8075_v22 }
  0xf9   :  { %11310 = vst [vmem:[#allocation161_spill] sm:$0xff] %v8035_v25  ;;  %11311 = vst [vmem:[#allocation162_spill] sm:$0xff] %v8037_v38  ;;  %v638_v38 = vsel %vm11103_vm0, %v8043_v35, -inf  ;;  %v635_v25 = vsel %vm11103_vm0, %v8045_v21, -inf  ;;  %v641_v21 = vsel %vm11103_vm0, %v8060_v6, -inf  ;;  %v6669_v35 = vld [vmem:[%s10893_s0 + $0x1e8] sm:$0xff]  }
  0xfa   :  { %v8088_v6 = vunpack.c.h.bf16 %v6669_v35 }
  0xfb   :  { %633 = vmax.xlane.f32.xlu1 %v632_v45  ;;  %630 = vmax.xlane.f32.xlu0 %v629_v34 }
  0xfc   :  { %v8050_v50 = vpop.xlane.xlu1 %423  ;;  %v8052_v63 = vpop.xlane.xlu0 %420  ;;  %11324 = vst [vmem:[#allocation175_spill] sm:$0xff] %v8088_v6 }
  0xfd   :  { %11314 = vst [vmem:[#allocation165_spill] sm:$0xff] %v8050_v50  ;;  %11315 = vst [vmem:[#allocation166_spill] sm:$0xff] %v8052_v63  ;;  %v644_v63 = vsel %vm11103_vm0, %v8058_v59, -inf  ;;  %v8073_v50 = vunpack.c.h.bf16 %v6668_v60  ;;  %v8090_v60 = vunpack.c.l.bf16 %v6669_v35  ;;  %v6670_v59 = vld [vmem:[%s10893_s0 + $0x1f0] sm:$0xff]  }
  0xfe   :  { %v8105_v35 = vunpack.c.l.bf16 %v6670_v59 }
  0xff   :  { %639 = vmax.xlane.f32.xlu1 %v638_v38  ;;  %636 = vmax.xlane.f32.xlu0 %v635_v25  ;;  %11320 = vst [vmem:[#allocation171_spill] sm:$0xff] %v8073_v50  ;;  %11325 = vst [vmem:[#allocation176_spill] sm:$0xff] %v8090_v60 }
 0x100   :  { %v8065_v34 = vpop.xlane.xlu1 %429  ;;  %v8067_v45 = vpop.xlane.xlu0 %426  ;;  %11329 = vst [vmem:[#allocation180_spill] sm:$0xff] %v8105_v35 }
 0x101   :  { %11318 = vst [vmem:[#allocation169_spill] sm:$0xff] %v8065_v34  ;;  %11319 = vst [vmem:[#allocation170_spill] sm:$0xff] %v8067_v45  ;;  %v650_v45 = vsel %vm11103_vm0, %v8073_v50, -inf  ;;  %v647_v34 = vsel %vm11103_vm0, %v8075_v22, -inf  ;;  %v8103_v22 = vunpack.c.h.bf16 %v6670_v59  ;;  %v6671_v50 = vld [vmem:[%s10893_s0 + $0x1f8] sm:$0xff]   ;;  %s7278_s0 = smov 112  }
 0x102   :  { %v8120_v59 = vunpack.c.l.bf16 %v6671_v50 }
 0x103   :  { %645 = vmax.xlane.f32.xlu1 %v644_v63  ;;  %642 = vmax.xlane.f32.xlu0 %v641_v21  ;;  %11328 = vst [vmem:[#allocation179_spill] sm:$0xff] %v8103_v22 }
 0x104   :  { %v8080_v25 = vpop.xlane.xlu1 %435  ;;  %v8082_v38 = vpop.xlane.xlu0 %432  ;;  %11333 = vst [vmem:[#allocation184_spill] sm:$0xff] %v8120_v59 }
 0x105   :  { %11322 = vst [vmem:[#allocation173_spill] sm:$0xff] %v8080_v25  ;;  %11323 = vst [vmem:[#allocation174_spill] sm:$0xff] %v8082_v38  ;;  %v656_v38 = vsel %vm11103_vm0, %v8088_v6, -inf  ;;  %v653_v25 = vsel %vm11103_vm0, %v8090_v60, -inf  ;;  %v659_v60 = vsel %vm11103_vm0, %v8105_v35, -inf }
 0x107   :  { %651 = vmax.xlane.f32.xlu1 %v650_v45  ;;  %648 = vmax.xlane.f32.xlu0 %v647_v34 }
 0x108   :  { %v8095_v21 = vpop.xlane.xlu1 %441  ;;  %v8097_v63 = vpop.xlane.xlu0 %438 }
 0x109   :  { %11326 = vst [vmem:[#allocation177_spill] sm:$0xff] %v8095_v21  ;;  %11327 = vst [vmem:[#allocation178_spill] sm:$0xff] %v8097_v63  ;;  %v662_v63 = vsel %vm11103_vm0, %v8103_v22, -inf  ;;  %v8118_v21 = vunpack.c.h.bf16 %v6671_v50  ;;  %v675_v50 = vsel %vm671_vm1, %v7326_v5, -inf }
 0x10b   :  { %657 = vmax.xlane.f32.xlu1 %v656_v38  ;;  %654 = vmax.xlane.f32.xlu0 %v653_v25  ;;  %11332 = vst [vmem:[#allocation183_spill] sm:$0xff] %v8118_v21  ;;  %v668_v25 = vsel %vm11103_vm0, %v8118_v21, -inf }
 0x10c   :  { %v8110_v34 = vpop.xlane.xlu1 %447  ;;  %v8112_v45 = vpop.xlane.xlu0 %444 }
 0x10d   :  { %11330 = vst [vmem:[#allocation181_spill] sm:$0xff] %v8110_v34  ;;  %11331 = vst [vmem:[#allocation182_spill] sm:$0xff] %v8112_v45  ;;  %v665_v45 = vsel %vm11103_vm0, %v8120_v59, -inf  ;;  %vm11114_vm0 = vcmask 1048512  }
 0x10f   :  { %663 = vmax.xlane.f32.xlu1 %v662_v63  ;;  %660 = vmax.xlane.f32.xlu0 %v659_v60  ;;  %v672_v60 = vsel %vm671_vm1, %v7322_v3, -inf }
 0x110   :  { %v8122_v6 = vpop.xlane.xlu1 %453  ;;  %v8124_v38 = vpop.xlane.xlu0 %450 }
 0x111   :  { %11334 = vst [vmem:[#allocation185_spill] sm:$0xff] %v8124_v38 }
 0x113   :  { %669 = vmax.xlane.f32.xlu1 %v668_v25  ;;  %666 = vmax.xlane.f32.xlu0 %v665_v45  ;;  %v681_v25 = vsel %vm671_vm1, %v7324_v4, -inf  ;;  %v678_v45 = vsel %vm671_vm1, %v7320_v2, -inf }
 0x114   :  { %v8130_v34 = vpop.xlane.xlu1 %459  ;;  %v8132_v35 = vpop.xlane.xlu0 %456 }
 0x115   :  { %11335 = vst [vmem:[#allocation186_spill] sm:$0xff] %v8130_v34  ;;  %11336 = vst [vmem:[#allocation187_spill] sm:$0xff] %v8132_v35 }
 0x117   :  { %676 = vmax.xlane.f32.xlu1 %v675_v50  ;;  %673 = vmax.xlane.f32.xlu0 %v672_v60  ;;  %v687_v50 = vsel %vm671_vm1, %v7339_v11, -inf  ;;  %v684_v60 = vsel %vm671_vm1, %v7341_v12, -inf }
 0x118   :  { %v8138_v63 = vpop.xlane.xlu1 %465  ;;  %v8140_v38 = vpop.xlane.xlu0 %462 }
 0x119   :  { %11337 = vst [vmem:[#allocation188_spill] sm:$0xff] %v8138_v63  ;;  %11338 = vst [vmem:[#allocation189_spill] sm:$0xff] %v8140_v38 }
 0x11b   :  { %682 = vmax.xlane.f32.xlu1 %v681_v25  ;;  %679 = vmax.xlane.f32.xlu0 %v678_v45  ;;  %v693_v25 = vsel %vm671_vm1, %v7350_v16, -inf  ;;  %v690_v45 = vsel %vm671_vm1, %v7352_v17, -inf }
 0x11c   :  { %v8146_v35 = vpop.xlane.xlu1 %471  ;;  %v8148_v34 = vpop.xlane.xlu0 %468 }
 0x11d   :  { %11339 = vst [vmem:[#allocation190_spill] sm:$0xff] %v8146_v35  ;;  %11340 = vst [vmem:[#allocation191_spill] sm:$0xff] %v8148_v34 }
 0x11f   :  { %688 = vmax.xlane.f32.xlu1 %v687_v50  ;;  %685 = vmax.xlane.f32.xlu0 %v684_v60  ;;  %v699_v50 = vsel %vm671_vm1, %v7357_v19, -inf  ;;  %v696_v60 = vsel %vm671_vm1, %v7359_v20, -inf }
 0x120   :  { %v8154_v38 = vpop.xlane.xlu1 %477  ;;  %v8156_v63 = vpop.xlane.xlu0 %474 }
 0x121   :  { %11341 = vst [vmem:[#allocation192_spill] sm:$0xff] %v8154_v38  ;;  %11342 = vst [vmem:[#allocation193_spill] sm:$0xff] %v8156_v63 }
 0x123   :  { %694 = vmax.xlane.f32.xlu1 %v693_v25  ;;  %691 = vmax.xlane.f32.xlu0 %v690_v45  ;;  %v705_v25 = vsel %vm671_vm1, %v7372_v26, -inf  ;;  %v702_v45 = vsel %vm671_vm1, %v7374_v27, -inf }
 0x124   :  { %v8162_v34 = vpop.xlane.xlu1 %483  ;;  %v8164_v35 = vpop.xlane.xlu0 %480 }
 0x125   :  { %11343 = vst [vmem:[#allocation194_spill] sm:$0xff] %v8162_v34  ;;  %11344 = vst [vmem:[#allocation195_spill] sm:$0xff] %v8164_v35 }
 0x127   :  { %700 = vmax.xlane.f32.xlu1 %v699_v50  ;;  %697 = vmax.xlane.f32.xlu0 %v696_v60  ;;  %v711_v50 = vsel %vm671_vm1, %v7383_v31, -inf  ;;  %v708_v60 = vsel %vm671_vm1, %v7385_v32, -inf }
 0x128   :  { %v8170_v63 = vpop.xlane.xlu1 %489  ;;  %v8172_v38 = vpop.xlane.xlu0 %486 }
 0x129   :  { %11345 = vst [vmem:[#allocation196_spill] sm:$0xff] %v8170_v63  ;;  %11346 = vst [vmem:[#allocation197_spill] sm:$0xff] %v8172_v38 }
 0x12b   :  { %706 = vmax.xlane.f32.xlu1 %v705_v25  ;;  %703 = vmax.xlane.f32.xlu0 %v702_v45  ;;  %v717_v25 = vsel %vm671_vm1, %v7394_v36, -inf  ;;  %v714_v45 = vsel %vm671_vm1, %v7396_v37, -inf }
 0x12c   :  { %v8178_v35 = vpop.xlane.xlu1 %495  ;;  %v8180_v34 = vpop.xlane.xlu0 %492 }
 0x12d   :  { %11347 = vst [vmem:[#allocation198_spill] sm:$0xff] %v8178_v35  ;;  %11348 = vst [vmem:[#allocation199_spill] sm:$0xff] %v8180_v34 }
 0x12f   :  { %712 = vmax.xlane.f32.xlu1 %v711_v50  ;;  %709 = vmax.xlane.f32.xlu0 %v708_v60  ;;  %v723_v50 = vsel %vm671_vm1, %v7405_v41, -inf  ;;  %v720_v60 = vsel %vm671_vm1, %v7407_v42, -inf }
 0x130   :  { %v8186_v38 = vpop.xlane.xlu1 %501  ;;  %v8188_v63 = vpop.xlane.xlu0 %498 }
 0x131   :  { %11349 = vst [vmem:[#allocation200_spill] sm:$0xff] %v8186_v38  ;;  %11350 = vst [vmem:[#allocation201_spill] sm:$0xff] %v8188_v63 }
 0x133   :  { %718 = vmax.xlane.f32.xlu1 %v717_v25  ;;  %715 = vmax.xlane.f32.xlu0 %v714_v45  ;;  %v729_v25 = vsel %vm671_vm1, %v7416_v46, -inf  ;;  %v726_v45 = vsel %vm671_vm1, %v7418_v47, -inf }
 0x134   :  { %v8194_v34 = vpop.xlane.xlu1 %507  ;;  %v8196_v35 = vpop.xlane.xlu0 %504 }
 0x135   :  { %11351 = vst [vmem:[#allocation202_spill] sm:$0xff] %v8194_v34  ;;  %11352 = vst [vmem:[#allocation203_spill] sm:$0xff] %v8196_v35 }
 0x137   :  { %724 = vmax.xlane.f32.xlu1 %v723_v50  ;;  %721 = vmax.xlane.f32.xlu0 %v720_v60  ;;  %v735_v50 = vsel %vm671_vm1, %v7427_v51, -inf  ;;  %v732_v60 = vsel %vm671_vm1, %v7429_v52, -inf  ;;  %v11480_v52 = vld [vmem:[#allocation120_spill] sm:$0xff]  ;;  %v11491_v51 = vld [vmem:[#allocation131_spill] sm:$0xff] }
 0x138   :  { %v8202_v63 = vpop.xlane.xlu1 %513  ;;  %v8204_v38 = vpop.xlane.xlu0 %510 }
 0x139   :  { %11353 = vst [vmem:[#allocation204_spill] sm:$0xff] %v8202_v63  ;;  %11354 = vst [vmem:[#allocation205_spill] sm:$0xff] %v8204_v38 }
 0x13b   :  { %730 = vmax.xlane.f32.xlu1 %v729_v25  ;;  %727 = vmax.xlane.f32.xlu0 %v726_v45  ;;  %v741_v25 = vsel %vm671_vm1, %v7438_v56, -inf  ;;  %v738_v45 = vsel %vm671_vm1, %v7440_v57, -inf  ;;  %v11463_v56 = vld [vmem:[#allocation106_spill] sm:$0xff] }
 0x13c   :  { %v8210_v35 = vpop.xlane.xlu1 %519  ;;  %v8212_v34 = vpop.xlane.xlu0 %516 }
 0x13d   :  { %11355 = vst [vmem:[#allocation206_spill] sm:$0xff] %v8210_v35  ;;  %11356 = vst [vmem:[#allocation207_spill] sm:$0xff] %v8212_v34 }
 0x13f   :  { %736 = vmax.xlane.f32.xlu1 %v735_v50  ;;  %733 = vmax.xlane.f32.xlu0 %v732_v60  ;;  %v747_v50 = vsel %vm671_vm1, %v7449_v61, -inf  ;;  %v744_v60 = vsel %vm671_vm1, %v7451_v62, -inf }
 0x140   :  { %v8218_v38 = vpop.xlane.xlu1 %525  ;;  %v8220_v63 = vpop.xlane.xlu0 %522 }
 0x141   :  { %11357 = vst [vmem:[#allocation208_spill] sm:$0xff] %v8218_v38  ;;  %11358 = vst [vmem:[#allocation209_spill] sm:$0xff] %v8220_v63 }
 0x143   :  { %742 = vmax.xlane.f32.xlu1 %v741_v25  ;;  %739 = vmax.xlane.f32.xlu0 %v738_v45  ;;  %v753_v25 = vsel %vm671_vm1, %v7463_v7, -inf  ;;  %v750_v45 = vsel %vm671_vm1, %v7465_v8, -inf }
 0x144   :  { %v8226_v34 = vpop.xlane.xlu1 %531  ;;  %v8228_v35 = vpop.xlane.xlu0 %528 }
 0x145   :  { %11359 = vst [vmem:[#allocation210_spill] sm:$0xff] %v8226_v34  ;;  %11360 = vst [vmem:[#allocation211_spill] sm:$0xff] %v8228_v35 }
 0x147   :  { %748 = vmax.xlane.f32.xlu1 %v747_v50  ;;  %745 = vmax.xlane.f32.xlu0 %v744_v60  ;;  %v759_v50 = vsel %vm671_vm1, %v7474_v14, -inf  ;;  %v756_v60 = vsel %vm671_vm1, %v7476_v15, -inf }
 0x148   :  { %v8234_v63 = vpop.xlane.xlu1 %537  ;;  %v8236_v38 = vpop.xlane.xlu0 %534 }
 0x149   :  { %11361 = vst [vmem:[#allocation212_spill] sm:$0xff] %v8234_v63  ;;  %11362 = vst [vmem:[#allocation213_spill] sm:$0xff] %v8236_v38 }
 0x14b   :  { %754 = vmax.xlane.f32.xlu1 %v753_v25  ;;  %751 = vmax.xlane.f32.xlu0 %v750_v45  ;;  %v765_v25 = vsel %vm671_vm1, %v7485_v23, -inf  ;;  %v762_v45 = vsel %vm671_vm1, %v7487_v24, -inf }
 0x14c   :  { %v8242_v35 = vpop.xlane.xlu1 %543  ;;  %v8244_v34 = vpop.xlane.xlu0 %540 }
 0x14d   :  { %11363 = vst [vmem:[#allocation214_spill] sm:$0xff] %v8242_v35  ;;  %11364 = vst [vmem:[#allocation215_spill] sm:$0xff] %v8244_v34 }
 0x14f   :  { %760 = vmax.xlane.f32.xlu1 %v759_v50  ;;  %757 = vmax.xlane.f32.xlu0 %v756_v60  ;;  %v771_v50 = vsel %vm671_vm1, %v7496_v30, -inf  ;;  %v768_v60 = vsel %vm671_vm1, %v7498_v33, -inf  ;;  %v11441_v33 = vld [vmem:[#allocation87_spill] sm:$0xff] }
 0x150   :  { %v8250_v38 = vpop.xlane.xlu1 %549  ;;  %v8252_v63 = vpop.xlane.xlu0 %546 }
 0x151   :  { %11365 = vst [vmem:[#allocation216_spill] sm:$0xff] %v8250_v38  ;;  %11366 = vst [vmem:[#allocation217_spill] sm:$0xff] %v8252_v63 }
 0x153   :  { %766 = vmax.xlane.f32.xlu1 %v765_v25  ;;  %763 = vmax.xlane.f32.xlu0 %v762_v45  ;;  %v777_v25 = vsel %vm671_vm1, %v7507_v39, -inf  ;;  %v774_v45 = vsel %vm671_vm1, %v7509_v40, -inf  ;;  %v11438_v40 = vld [vmem:[#allocation84_spill] sm:$0xff] }
 0x154   :  { %v8258_v34 = vpop.xlane.xlu1 %555  ;;  %v8260_v35 = vpop.xlane.xlu0 %552 }
 0x155   :  { %11367 = vst [vmem:[#allocation218_spill] sm:$0xff] %v8258_v34  ;;  %11368 = vst [vmem:[#allocation219_spill] sm:$0xff] %v8260_v35 }
 0x157   :  { %772 = vmax.xlane.f32.xlu1 %v771_v50  ;;  %769 = vmax.xlane.f32.xlu0 %v768_v60  ;;  %v783_v50 = vsel %vm671_vm1, %v7518_v48, -inf  ;;  %v780_v60 = vsel %vm671_vm1, %v7520_v49, -inf  ;;  %v11436_v48 = vld [vmem:[#allocation77_spill] sm:$0xff] }
 0x158   :  { %v8266_v63 = vpop.xlane.xlu1 %561  ;;  %v8268_v38 = vpop.xlane.xlu0 %558 }
 0x159   :  { %11369 = vst [vmem:[#allocation220_spill] sm:$0xff] %v8266_v63  ;;  %11370 = vst [vmem:[#allocation221_spill] sm:$0xff] %v8268_v38 }
 0x15b   :  { %778 = vmax.xlane.f32.xlu1 %v777_v25  ;;  %775 = vmax.xlane.f32.xlu0 %v774_v45  ;;  %v789_v25 = vsel %vm671_vm1, %v7529_v55, -inf  ;;  %v786_v45 = vsel %vm671_vm1, %v7531_v58, -inf }
 0x15c   :  { %v8274_v35 = vpop.xlane.xlu1 %567  ;;  %v8276_v34 = vpop.xlane.xlu0 %564 }
 0x15d   :  { %11371 = vst [vmem:[#allocation222_spill] sm:$0xff] %v8274_v35  ;;  %11372 = vst [vmem:[#allocation223_spill] sm:$0xff] %v8276_v34 }
 0x15f   :  { %784 = vmax.xlane.f32.xlu1 %v783_v50  ;;  %781 = vmax.xlane.f32.xlu0 %v780_v60  ;;  %v795_v50 = vsel %vm671_vm1, %v7540_v0, -inf  ;;  %v792_v60 = vsel %vm671_vm1, %v7542_v1, -inf }
 0x160   :  { %v8282_v38 = vpop.xlane.xlu1 %573  ;;  %v8284_v63 = vpop.xlane.xlu0 %570 }
 0x161   :  { %11373 = vst [vmem:[#allocation224_spill] sm:$0xff] %v8282_v38  ;;  %11374 = vst [vmem:[#allocation225_spill] sm:$0xff] %v8284_v63 }
 0x163   :  { %790 = vmax.xlane.f32.xlu1 %v789_v25  ;;  %787 = vmax.xlane.f32.xlu0 %v786_v45  ;;  %v801_v25 = vsel %vm671_vm1, %v7551_v13, -inf  ;;  %v798_v45 = vsel %vm671_vm1, %v7553_v18, -inf }
 0x164   :  { %v8290_v34 = vpop.xlane.xlu1 %579  ;;  %v8292_v35 = vpop.xlane.xlu0 %576 }
 0x165   :  { %11375 = vst [vmem:[#allocation226_spill] sm:$0xff] %v8290_v34  ;;  %11376 = vst [vmem:[#allocation227_spill] sm:$0xff] %v8292_v35 }
 0x167   :  { %796 = vmax.xlane.f32.xlu1 %v795_v50  ;;  %793 = vmax.xlane.f32.xlu0 %v792_v60  ;;  %v807_v50 = vsel %vm671_vm1, %v7562_v28, -inf  ;;  %v804_v60 = vsel %vm671_vm1, %v7564_v29, -inf  ;;  %v11429_v29 = vld [vmem:[#allocation82_spill] sm:$0xff] }
 0x168   :  { %v8298_v63 = vpop.xlane.xlu1 %585  ;;  %v8300_v38 = vpop.xlane.xlu0 %582 }
 0x169   :  { %11377 = vst [vmem:[#allocation228_spill] sm:$0xff] %v8298_v63  ;;  %11378 = vst [vmem:[#allocation229_spill] sm:$0xff] %v8300_v38 }
 0x16b   :  { %802 = vmax.xlane.f32.xlu1 %v801_v25  ;;  %799 = vmax.xlane.f32.xlu0 %v798_v45  ;;  %v813_v25 = vsel %vm671_vm1, %v7573_v43, -inf  ;;  %v810_v45 = vsel %vm671_vm1, %v7575_v44, -inf  ;;  %v11427_v44 = vld [vmem:[#allocation75_spill] sm:$0xff] }
 0x16c   :  { %v8306_v35 = vpop.xlane.xlu1 %591  ;;  %v8308_v34 = vpop.xlane.xlu0 %588  ;;  %v891_v43 = vsel %vm671_vm1, %v11427_v44, -inf }
 0x16d   :  { %11379 = vst [vmem:[#allocation230_spill] sm:$0xff] %v8306_v35  ;;  %11380 = vst [vmem:[#allocation231_spill] sm:$0xff] %v8308_v34 }
 0x16f   :  { %808 = vmax.xlane.f32.xlu1 %v807_v50  ;;  %805 = vmax.xlane.f32.xlu0 %v804_v60  ;;  %v819_v50 = vsel %vm671_vm1, %v7581_v53, -inf  ;;  %v816_v60 = vsel %vm671_vm1, %v7583_v54, -inf  ;;  %v11389_v53 = vld [vmem:[#allocation55_spill] sm:$0xff]  ;;  %v11393_v54 = vld [vmem:[#allocation57_spill] sm:$0xff] }
 0x170   :  { %v8314_v38 = vpop.xlane.xlu1 %597  ;;  %v8316_v63 = vpop.xlane.xlu0 %594 }
 0x171   :  { %11381 = vst [vmem:[#allocation232_spill] sm:$0xff] %v8314_v38  ;;  %11382 = vst [vmem:[#allocation233_spill] sm:$0xff] %v8316_v63 }
 0x173   :  { %814 = vmax.xlane.f32.xlu1 %v813_v25  ;;  %811 = vmax.xlane.f32.xlu0 %v810_v45  ;;  %v825_v25 = vsel %vm671_vm1, %v7595_v9, -inf  ;;  %v822_v45 = vsel %vm671_vm1, %v7597_v10, -inf  ;;  %v11397_v10 = vld [vmem:[#allocation59_spill] sm:$0xff] }
 0x174   :  { %v8322_v34 = vpop.xlane.xlu1 %603  ;;  %v8324_v35 = vpop.xlane.xlu0 %600 }
 0x175   :  { %11383 = vst [vmem:[#allocation234_spill] sm:$0xff] %v8322_v34  ;;  %11384 = vst [vmem:[#allocation235_spill] sm:$0xff] %v8324_v35 }
 0x177   :  { %820 = vmax.xlane.f32.xlu1 %v819_v50  ;;  %817 = vmax.xlane.f32.xlu0 %v816_v60  ;;  %v831_v50 = vsel %vm671_vm1, %v11389_v53, -inf  ;;  %v11390_v60 = vld [vmem:[#allocation56_spill] sm:$0xff] }
 0x178   :  { %v8330_v63 = vpop.xlane.xlu1 %609  ;;  %v8332_v38 = vpop.xlane.xlu0 %606 }
 0x179   :  { %11385 = vst [vmem:[#allocation236_spill] sm:$0xff] %v8330_v63  ;;  %11386 = vst [vmem:[#allocation237_spill] sm:$0xff] %v8332_v38  ;;  %v828_v63 = vsel %vm671_vm1, %v11390_v60, -inf  ;;  %v11401_v60 = vld [vmem:[#allocation61_spill] sm:$0xff] }
 0x17b   :  { %826 = vmax.xlane.f32.xlu1 %v825_v25  ;;  %823 = vmax.xlane.f32.xlu0 %v822_v45  ;;  %v837_v25 = vsel %vm671_vm1, %v11393_v54, -inf  ;;  %v11394_v45 = vld [vmem:[#allocation58_spill] sm:$0xff] }
 0x17c   :  { %v8338_v35 = vpop.xlane.xlu1 %615  ;;  %v8340_v34 = vpop.xlane.xlu0 %612 }
 0x17d   :  { %11387 = vst [vmem:[#allocation238_spill] sm:$0xff] %v8338_v35  ;;  %11388 = vst [vmem:[#allocation239_spill] sm:$0xff] %v8340_v34  ;;  %v834_v35 = vsel %vm671_vm1, %v11394_v45, -inf  ;;  %v11405_v45 = vld [vmem:[#allocation63_spill] sm:$0xff] }
 0x17f   :  { %832 = vmax.xlane.f32.xlu1 %v831_v50  ;;  %829 = vmax.xlane.f32.xlu0 %v828_v63  ;;  %v843_v50 = vsel %vm671_vm1, %v11397_v10, -inf  ;;  %v11398_v63 = vld [vmem:[#allocation60_spill] sm:$0xff] }
 0x180   :  { %v8346_v38 = vpop.xlane.xlu1 %621  ;;  %v8348_v9 = vpop.xlane.xlu0 %618 }
 0x181   :  { %11391 = vst [vmem:[#allocation240_spill] sm:$0xff] %v8346_v38  ;;  %11392 = vst [vmem:[#allocation241_spill] sm:$0xff] %v8348_v9  ;;  %v840_v38 = vsel %vm671_vm1, %v11398_v63, -inf  ;;  %v11409_v63 = vld [vmem:[#allocation65_spill] sm:$0xff] }
 0x183   :  { %838 = vmax.xlane.f32.xlu1 %v837_v25  ;;  %835 = vmax.xlane.f32.xlu0 %v834_v35  ;;  %v849_v25 = vsel %vm671_vm1, %v11401_v60, -inf  ;;  %v11402_v35 = vld [vmem:[#allocation62_spill] sm:$0xff] }
 0x184   :  { %v8354_v34 = vpop.xlane.xlu1 %627  ;;  %v8356_v53 = vpop.xlane.xlu0 %624 }
 0x185   :  { %11395 = vst [vmem:[#allocation242_spill] sm:$0xff] %v8354_v34  ;;  %11396 = vst [vmem:[#allocation243_spill] sm:$0xff] %v8356_v53  ;;  %v846_v34 = vsel %vm671_vm1, %v11402_v35, -inf  ;;  %v11413_v35 = vld [vmem:[#allocation67_spill] sm:$0xff] }
 0x187   :  { %844 = vmax.xlane.f32.xlu1 %v843_v50  ;;  %841 = vmax.xlane.f32.xlu0 %v840_v38  ;;  %v855_v50 = vsel %vm671_vm1, %v11405_v45, -inf  ;;  %v11406_v38 = vld [vmem:[#allocation64_spill] sm:$0xff] }
 0x188   :  { %v8362_v9 = vpop.xlane.xlu1 %633  ;;  %v8364_v54 = vpop.xlane.xlu0 %630 }
 0x189   :  { %11399 = vst [vmem:[#allocation244_spill] sm:$0xff] %v8362_v9  ;;  %11400 = vst [vmem:[#allocation245_spill] sm:$0xff] %v8364_v54  ;;  %v852_v9 = vsel %vm671_vm1, %v11406_v38, -inf  ;;  %v11417_v38 = vld [vmem:[#allocation69_spill] sm:$0xff] }
 0x18b   :  { %850 = vmax.xlane.f32.xlu1 %v849_v25  ;;  %847 = vmax.xlane.f32.xlu0 %v846_v34  ;;  %v861_v25 = vsel %vm671_vm1, %v11409_v63, -inf  ;;  %v11410_v34 = vld [vmem:[#allocation66_spill] sm:$0xff] }
 0x18c   :  { %v8370_v53 = vpop.xlane.xlu1 %639  ;;  %v8372_v10 = vpop.xlane.xlu0 %636 }
 0x18d   :  { %11403 = vst [vmem:[#allocation246_spill] sm:$0xff] %v8370_v53  ;;  %11404 = vst [vmem:[#allocation247_spill] sm:$0xff] %v8372_v10  ;;  %v858_v53 = vsel %vm671_vm1, %v11410_v34, -inf }
 0x18f   :  { %856 = vmax.xlane.f32.xlu1 %v855_v50  ;;  %853 = vmax.xlane.f32.xlu0 %v852_v9  ;;  %v867_v50 = vsel %vm671_vm1, %v11413_v35, -inf  ;;  %v11414_v9 = vld [vmem:[#allocation68_spill] sm:$0xff] }
 0x190   :  { %v8378_v54 = vpop.xlane.xlu1 %645  ;;  %v8380_v60 = vpop.xlane.xlu0 %642 }
 0x191   :  { %11407 = vst [vmem:[#allocation248_spill] sm:$0xff] %v8378_v54  ;;  %11408 = vst [vmem:[#allocation249_spill] sm:$0xff] %v8380_v60  ;;  %v864_v54 = vsel %vm671_vm1, %v11414_v9, -inf  ;;  %v11421_v9 = vld [vmem:[#allocation71_spill] sm:$0xff] }
 0x193   :  { %862 = vmax.xlane.f32.xlu1 %v861_v25  ;;  %859 = vmax.xlane.f32.xlu0 %v858_v53  ;;  %v873_v25 = vsel %vm671_vm1, %v11417_v38, -inf  ;;  %v11418_v53 = vld [vmem:[#allocation70_spill] sm:$0xff] }
 0x194   :  { %v8386_v10 = vpop.xlane.xlu1 %651  ;;  %v8388_v45 = vpop.xlane.xlu0 %648 }
 0x195   :  { %11411 = vst [vmem:[#allocation250_spill] sm:$0xff] %v8386_v10  ;;  %11412 = vst [vmem:[#allocation251_spill] sm:$0xff] %v8388_v45  ;;  %v870_v10 = vsel %vm671_vm1, %v11418_v53, -inf  ;;  %v2791_v45 = vlaneseq }
 0x197   :  { %868 = vmax.xlane.f32.xlu1 %v867_v50  ;;  %865 = vmax.xlane.f32.xlu0 %v864_v54  ;;  %v879_v54 = vsel %vm671_vm1, %v11421_v9, -inf  ;;  %v11422_v50 = vld [vmem:[#allocation72_spill] sm:$0xff]  ;;  %v8420_v9 = vshrl.u32 %v2791_v45, 7 }
 0x198   :  { %v8394_v60 = vpop.xlane.xlu1 %657  ;;  %v8396_v63 = vpop.xlane.xlu0 %654 }
 0x199   :  { %11415 = vst [vmem:[#allocation252_spill] sm:$0xff] %v8394_v60  ;;  %11416 = vst [vmem:[#allocation253_spill] sm:$0xff] %v8396_v63  ;;  %v876_v60 = vsel %vm671_vm1, %v11422_v50, -inf  ;;  %v8410_v63 = vand.u32 127, %v2791_v45 }
 0x19b   :  { %874 = vmax.xlane.f32.xlu1 %v873_v25  ;;  %871 = vmax.xlane.f32.xlu0 %v870_v10  ;;  %v11425_v10 = vld [vmem:[#allocation73_spill] sm:$0xff]  ;;  %v2797_v50 = vadd.s32 4294967288, %v8410_v63  ;;  %v8433_v45 = vsub.s32 %v8410_v63, %v8420_v9  ;;  %v2818_v1 = vadd.s32 4294967264, %v8410_v63  ;;  %v2825_v0 = vadd.s32 4294967256, %v8410_v63 }
 0x19c   :  { %v8402_v34 = vpop.xlane.xlu1 %663  ;;  %v8404_v35 = vpop.xlane.xlu0 %660  ;;  %v885_v25 = vsel %vm671_vm1, %v11425_v10, -inf  ;;  %v11430_v10 = vld [vmem:[#allocation78_spill] sm:$0xff]  ;;  %v2888_v62 = vadd.s32 4294967184, %v8410_v63 }
 0x19d   :  { %11419 = vst [vmem:[#allocation254_spill] sm:$0xff] %v8402_v34  ;;  %11420 = vst [vmem:[#allocation255_spill] sm:$0xff] %v8404_v35  ;;  %v11426_v34 = vld [vmem:[#allocation74_spill] sm:$0xff]  ;;  %v8465_v39 = vsub.s32 %v2825_v0, %v8420_v9 }
 0x19e   :  { %v882_v35 = vsel %vm671_vm1, %v11426_v34, -inf  ;;  %v2804_v34 = vadd.s32 4294967280, %v8410_v63  ;;  %11431 = vst [vmem:[#allocation82_spill] sm:$0xff] %v8433_v45 }
 0x19f   :  { %880 = vmax.xlane.f32.xlu1 %v879_v54  ;;  %877 = vmax.xlane.f32.xlu0 %v876_v60 }
 0x1a0   :  { %v8412_v38 = vpop.xlane.xlu1 %669  ;;  %v8414_v53 = vpop.xlane.xlu0 %666 }
 0x1a1   :  { %11423 = vst [vmem:[#allocation256_spill] sm:$0xff] %v8412_v38  ;;  %11424 = vst [vmem:[#allocation257_spill] sm:$0xff] %v8414_v53  ;;  %v11428_v38 = vld [vmem:[#allocation76_spill] sm:$0xff] }
 0x1a2   :  { %v888_v53 = vsel %vm671_vm1, %v11428_v38, -inf }
 0x1a3   :  { %886 = vmax.xlane.f32.xlu1 %v885_v25  ;;  %883 = vmax.xlane.f32.xlu0 %v882_v35  ;;  %v2811_v35 = vadd.s32 4294967272, %v8410_v63  ;;  %v8436_v25 = vsub.s32 %v2797_v50, %v8420_v9  ;;  %v11435_v50 = vld [vmem:[#allocation81_spill] sm:$0xff] }
 0x1a4   :  { %v677_v54 = vpop.xlane.xlu1 %676  ;;  %v674_v60 = vpop.xlane.xlu0 %673 }
 0x1a5   :  { %v1057_v28 = vmax.f32 %v11429_v29, %v677_v54  ;;  %v1056_v18 = vmax.f32 %v11430_v10, %v674_v60  ;;  %11432 = vst [vmem:[#allocation78_spill] sm:$0xff] %v8436_v25  ;;  %v11433_v29 = vld [vmem:[#allocation79_spill] sm:$0xff]  ;;  %v11434_v54 = vld [vmem:[#allocation80_spill] sm:$0xff] }
 0x1a6   :  { %v897_v10 = vsel %vm671_vm1, %v11433_v29, -inf  ;;  %v894_v60 = vsel %vm671_vm1, %v11434_v54, -inf  ;;  %v11437_v54 = vld [vmem:[#allocation83_spill] sm:$0xff] }
 0x1a7   :  { %v2464_v44 = vpack.c.bf16 %v1057_v28, %v1056_v18  ;;  %892 = vmax.xlane.f32.xlu1 %v891_v43  ;;  %889 = vmax.xlane.f32.xlu0 %v888_v53  ;;  %v8447_v28 = vsub.s32 %v2804_v34, %v8420_v9  ;;  %v8450_v43 = vsub.s32 %v2811_v35, %v8420_v9  ;;  %v903_v29 = vsel %vm671_vm1, %v11437_v54, -inf }
 0x1a8   :  { %v683_v38 = vpop.xlane.xlu1 %682  ;;  %v680_v13 = vpop.xlane.xlu0 %679  ;;  %v8460_v35 = vsub.s32 %v2818_v1, %v8420_v9 }
 0x1a9   :  { %v2663_v58 = vunpack.c.l.b16 %v2464_v44  ;;  %v2664_v55 = vunpack.c.h.b16 %v2464_v44  ;;  %v1059_v49 = vmax.f32 %v11435_v50, %v683_v38  ;;  %v1058_v18 = vmax.f32 %v11436_v48, %v680_v13 }
 0x1aa   :  { %v900_v44 = vsel %vm671_vm1, %v11438_v40, -inf  ;;  %v2832_v38 = vadd.s32 4294967248, %v8410_v63  ;;  %v11440_v40 = vld [vmem:[#allocation86_spill] sm:$0xff] }
 0x1ab   :  { %v2465_v53 = vpack.c.bf16 %v1059_v49, %v1058_v18  ;;  %898 = vmax.xlane.f32.xlu1 %v897_v10  ;;  %895 = vmax.xlane.f32.xlu0 %v894_v60  ;;  %v2796_v48 = vrot.slane %v2663_v58, %v8433_v45  ;;  %v2801_v13 = vrot.slane %v2664_v55, %v8436_v25  ;;  %v2839_v49 = vadd.s32 4294967240, %v8410_v63  ;;  %v11439_v18 = vld [vmem:[#allocation85_spill] sm:$0xff] }
 0x1ac   :  { %v689_v34 = vpop.xlane.xlu1 %688  ;;  %v686_v50 = vpop.xlane.xlu0 %685  ;;  %v909_v55 = vsel %vm671_vm1, %v11441_v33, -inf }
 0x1ad   :  { %v2665_v10 = vunpack.c.l.b16 %v2465_v53  ;;  %v2666_v60 = vunpack.c.h.b16 %v2465_v53  ;;  %v1061_v54 = vmax.f32 %v11439_v18, %v689_v34  ;;  %v1060_v58 = vmax.f32 %v11440_v40, %v686_v50  ;;  %v11442_v34 = vld [vmem:[#allocation88_spill] sm:$0xff] }
 0x1ae   :  { %v8473_v53 = vsub.s32 %v2832_v38, %v8420_v9  ;;  %v906_v0 = vsel %vm671_vm1, %v11442_v34, -inf  ;;  %v2803_v18 = vsel %vm2802_vm2, %v2801_v13, %v2796_v48  ;;  %v8479_v40 = vsub.s32 %v2839_v49, %v8420_v9  ;;  %v11444_v38 = vld [vmem:[#allocation90_spill] sm:$0xff]  ;;  %v11445_v13 = vld [vmem:[#allocation91_spill] sm:$0xff] }
 0x1af   :  { %v2808_v1 = vrot.slane %v2665_v10, %v8447_v28  ;;  %v2815_v30 = vrot.slane %v2666_v60, %v8450_v43  ;;  %904 = vmax.xlane.f32.xlu1 %v903_v29  ;;  %901 = vmax.xlane.f32.xlu0 %v900_v44  ;;  %v2466_v24 = vpack.c.bf16 %v1061_v54, %v1060_v58  ;;  %v2846_v10 = vadd.s32 4294967232, %v8410_v63  ;;  %v11443_v29 = vld [vmem:[#allocation89_spill] sm:$0xff]  ;;  %v11446_v58 = vld [vmem:[#allocation92_spill] sm:$0xff] }
 0x1b0   :  { %v695_v23 = vpop.xlane.xlu1 %694  ;;  %v692_v50 = vpop.xlane.xlu0 %691  ;;  %v2853_v54 = vadd.s32 4294967224, %v8410_v63  ;;  %v915_v49 = vsel %vm671_vm1, %v11445_v13, -inf }
 0x1b1   :  { %v2810_v60 = vsel %vm2809_vm3, %v2808_v1, %v2803_v18  ;;  %v1063_v44 = vmax.f32 %v11443_v29, %v695_v23  ;;  %v1062_v33 = vmax.f32 %v11444_v38, %v692_v50  ;;  %v2667_v34 = vunpack.c.l.b16 %v2466_v24 }
 0x1b2   :  { %v2817_v15 = vsel %vm11112_vm4, %v2815_v30, %v2810_v60  ;;  %v2668_v14 = vunpack.c.h.b16 %v2466_v24  ;;  %v912_v1 = vsel %vm671_vm1, %v11446_v58, -inf  ;;  %v8494_v30 = vsub.s32 %v2846_v10, %v8420_v9 }
 0x1b3   :  { %v2467_v48 = vpack.c.bf16 %v1063_v44, %v1062_v33  ;;  %910 = vmax.xlane.f32.xlu1 %v909_v55  ;;  %907 = vmax.xlane.f32.xlu0 %v906_v0  ;;  %v2822_v23 = vrot.slane %v2667_v34, %v8460_v35  ;;  %v2860_v60 = vadd.s32 4294967216, %v8410_v63  ;;  %v11447_v0 = vld [vmem:[#allocation93_spill] sm:$0xff]  ;;  %v11448_v44 = vld [vmem:[#allocation94_spill] sm:$0xff]  ;;  %v8501_v34 = vsub.s32 %v2853_v54, %v8420_v9 }
 0x1b4   :  { %v2829_v18 = vrot.slane %v2668_v14, %v8465_v39  ;;  %v701_v50 = vpop.xlane.xlu1 %700  ;;  %v698_v24 = vpop.xlane.xlu0 %697  ;;  %v2867_v14 = vadd.s32 4294967208, %v8410_v63 }
 0x1b5   :  { %v2669_v33 = vunpack.c.l.b16 %v2467_v48  ;;  %v2670_v55 = vunpack.c.h.b16 %v2467_v48  ;;  %v1065_v29 = vmax.f32 %v11447_v0, %v701_v50  ;;  %v1064_v38 = vmax.f32 %v11448_v44, %v698_v24  ;;  %v11450_v24 = vld [vmem:[#allocation96_spill] sm:$0xff] }
 0x1b6   :  { %v2824_v13 = vsel %vm2823_vm5, %v2822_v23, %v2817_v15  ;;  %v8508_v50 = vsub.s32 %v2860_v60, %v8420_v9  ;;  %v11449_v23 = vld [vmem:[#allocation95_spill] sm:$0xff]  ;;  %v918_v0 = vsel %vm671_vm1, %v11450_v24, -inf  ;;  %v11453_v60 = vld [vmem:[#allocation98_spill] sm:$0xff]  ;;  %v2874_v24 = vadd.s32 4294967200, %v8410_v63 }
 0x1b7   :  { %v2831_v10 = vsel %vm2830_vm6, %v2829_v18, %v2824_v13  ;;  %v2836_v58 = vrot.slane %v2669_v33, %v8473_v53  ;;  %v2843_v8 = vrot.slane %v2670_v55, %v8479_v40  ;;  %v2468_v7 = vpack.c.bf16 %v1065_v29, %v1064_v38  ;;  %916 = vmax.xlane.f32.xlu1 %v915_v49  ;;  %v11451_v55 = vld [vmem:[#allocation97_spill] sm:$0xff] }
 0x1b8   :  { %913 = vmax.xlane.f32.xlu0 %v912_v1  ;;  %v707_v48 = vpop.xlane.xlu1 %706  ;;  %v704_v15 = vpop.xlane.xlu0 %703  ;;  %v921_v54 = vsel %vm671_vm1, %v11449_v23, -inf  ;;  %v8518_v1 = vsub.s32 %v2867_v14, %v8420_v9  ;;  %v8536_v57 = vsub.s32 %v2874_v24, %v8420_v9 }
 0x1b9   :  { %v2838_v13 = vsel %vm2837_vm7, %v2836_v58, %v2831_v10  ;;  %v2671_v18 = vunpack.c.l.b16 %v2468_v7  ;;  %v2672_v33 = vunpack.c.h.b16 %v2468_v7  ;;  %v1067_v29 = vmax.f32 %v11451_v55, %v707_v48  ;;  %v11454_v48 = vld [vmem:[#allocation99_spill] sm:$0xff]  ;;  %v11456_v55 = vld [vmem:[#allocation101_spill] sm:$0xff] }
 0x1ba   :  { %v2845_v49 = vsel %vm2844_vm8, %v2843_v8, %v2838_v13  ;;  %11452 = vst [vmem:[#allocation81_spill] sm:$0xff] %v8518_v1  ;;  %v1066_v44 = vmax.f32 %v11453_v60, %v704_v15  ;;  %v2881_v58 = vadd.s32 4294967192, %v8410_v63  ;;  %v927_v14 = vsel %vm671_vm1, %v11454_v48, -inf  ;;  %v11455_v13 = vld [vmem:[#allocation100_spill] sm:$0xff]  ;;  %11458 = vst [vmem:[#allocation77_spill] sm:$0xff] %v8536_v57  ;;  %v11462_v48 = vld [vmem:[#allocation105_spill] sm:$0xff] }
 0x1bb   :  { %v2850_v38 = vrot.slane %v2671_v18, %v8494_v30  ;;  %v2857_v23 = vrot.slane %v2672_v33, %v8501_v34  ;;  %922 = vmax.xlane.f32.xlu1 %v921_v54  ;;  %v924_v15 = vsel %vm671_vm1, %v11455_v13, -inf  ;;  %v11457_v54 = vld [vmem:[#allocation102_spill] sm:$0xff] }
 0x1bc   :  { %v2469_v7 = vpack.c.bf16 %v1067_v29, %v1066_v44  ;;  %919 = vmax.xlane.f32.xlu0 %v918_v0  ;;  %v713_v10 = vpop.xlane.xlu1 %712  ;;  %v710_v8 = vpop.xlane.xlu0 %709  ;;  %v2895_v44 = vadd.s32 4294967176, %v8410_v63  ;;  %v8539_v13 = vsub.s32 %v2881_v58, %v8420_v9  ;;  %v11461_v63 = vld [vmem:[#allocation104_spill] sm:$0xff] }
 0x1bd   :  { %v2852_v18 = vsel %vm2851_vm9, %v2850_v38, %v2845_v49  ;;  %v1069_v33 = vmax.f32 %v11456_v55, %v713_v10  ;;  %v1068_v60 = vmax.f32 %v11457_v54, %v710_v8  ;;  %v930_v24 = vsel %vm671_vm1, %v11461_v63, -inf }
 0x1be   :  { %v2859_v61 = vsel %vm2858_vm10, %v2857_v23, %v2852_v18  ;;  %v2673_v29 = vunpack.c.l.b16 %v2469_v7  ;;  %v2674_v0 = vunpack.c.h.b16 %v2469_v7  ;;  %11459 = vst [vmem:[#allocation85_spill] sm:$0xff] %v8539_v13  ;;  %v11460_v18 = vld [vmem:[#allocation103_spill] sm:$0xff] }
 0x1bf   :  { %v2470_v49 = vpack.c.bf16 %v1069_v33, %v1068_v60  ;;  %928 = vmax.xlane.f32.xlu1 %v927_v14  ;;  %v933_v7 = vsel %vm671_vm1, %v11460_v18, -inf  ;;  %v8551_v60 = vsub.s32 %v2888_v62, %v8420_v9  ;;  %v11467_v62 = vld [vmem:[#allocation108_spill] sm:$0xff] }
 0x1c0   :  { %v2864_v38 = vrot.slane %v2673_v29, %v8508_v50  ;;  %v2871_v10 = vrot.slane %v2674_v0, %v8518_v1  ;;  %925 = vmax.xlane.f32.xlu0 %v924_v15  ;;  %v719_v8 = vpop.xlane.xlu1 %718  ;;  %v716_v23 = vpop.xlane.xlu0 %715  ;;  %v8554_v15 = vsub.s32 %v2895_v44, %v8420_v9 }
 0x1c1   :  { %v2675_v55 = vunpack.c.l.b16 %v2470_v49  ;;  %v2676_v54 = vunpack.c.h.b16 %v2470_v49  ;;  %v1071_v58 = vmax.f32 %v11462_v48, %v719_v8  ;;  %v1070_v33 = vmax.f32 %v11463_v56, %v716_v23  ;;  %11464 = vst [vmem:[#allocation86_spill] sm:$0xff] %v8551_v60  ;;  %v11466_v8 = vld [vmem:[#allocation107_spill] sm:$0xff] }
 0x1c2   :  { %v2866_v14 = vsel %vm11150_vm11, %v2864_v38, %v2859_v61  ;;  %11465 = vst [vmem:[#allocation89_spill] sm:$0xff] %v8554_v15  ;;  %v939_v61 = vsel %vm671_vm1, %v11466_v8, -inf  ;;  %v936_v38 = vsel %vm671_vm1, %v11467_v62, -inf }
 0x1c3   :  { %v2873_v29 = vsel %vm11132_vm12, %v2871_v10, %v2866_v14  ;;  %v2878_v0 = vrot.slane %v2675_v55, %v8536_v57  ;;  %v2885_v63 = vrot.slane %v2676_v54, %v8539_v13  ;;  %v2471_v49 = vpack.c.bf16 %v1071_v58, %v1070_v33  ;;  %934 = vmax.xlane.f32.xlu1 %v933_v7  ;;  %v11468_v10 = vld [vmem:[#allocation109_spill] sm:$0xff]  ;;  %v11469_v55 = vld [vmem:[#allocation110_spill] sm:$0xff] }
 0x1c4   :  { %931 = vmax.xlane.f32.xlu0 %v930_v24  ;;  %v725_v48 = vpop.xlane.xlu1 %724  ;;  %v722_v56 = vpop.xlane.xlu0 %721 }
 0x1c5   :  { %v2880_v9 = vsel %vm11131_vm13, %v2878_v0, %v2873_v29  ;;  %v2677_v44 = vunpack.c.l.b16 %v2471_v49  ;;  %v2678_v23 = vunpack.c.h.b16 %v2471_v49  ;;  %v1073_v14 = vmax.f32 %v11468_v10, %v725_v48  ;;  %v11470_v29 = vld [vmem:[#allocation111_spill] sm:$0xff]  ;;  %v11471_v49 = vld [vmem:[#allocation113_spill] sm:$0xff]  ;;  %v11472_v10 = vld [vmem:[#allocation114_spill] sm:$0xff] }
 0x1c6   :  { %v1072_v18 = vmax.f32 %v11469_v55, %v722_v56  ;;  %v2887_v7 = vsel %vm11113_vm14, %v2885_v63, %v2880_v9  ;;  %v945_v0 = vsel %vm671_vm1, %v11470_v29, -inf  ;;  %v11473_v55 = vld [vmem:[#allocation112_spill] sm:$0xff]  ;;  %v11477_v29 = vld [vmem:[#allocation117_spill] sm:$0xff] }
 0x1c7   :  { %v2892_v24 = vrot.slane %v2677_v44, %v8551_v60  ;;  %v2899_v54 = vrot.slane %v2678_v23, %v8554_v15  ;;  %940 = vmax.xlane.f32.xlu1 %v939_v61  ;;  %v942_v63 = vsel %vm671_vm1, %v11473_v55, -inf  ;;  %v11476_v55 = vld [vmem:[#allocation116_spill] sm:$0xff] }
 0x1c8   :  { %v2472_v58 = vpack.c.bf16 %v1073_v14, %v1072_v18  ;;  %937 = vmax.xlane.f32.xlu0 %v936_v38  ;;  %v731_v33 = vpop.xlane.xlu1 %730  ;;  %v728_v62 = vpop.xlane.xlu0 %727 }
 0x1c9   :  { %v1075_v48 = vmax.f32 %v11471_v49, %v731_v33  ;;  %v1074_v56 = vmax.f32 %v11472_v10, %v728_v62  ;;  %v2894_v9 = vsel %vm11126_vm15, %v2892_v24, %v2887_v7  ;;  %v11475_v62 = vld [vmem:[#allocation115_spill] sm:$0xff]  ;;  %v948_v7 = vsel %vm671_vm1, %v11476_v55, -inf }
 0x1ca   :  { %v2679_v44 = vunpack.c.l.b16 %v2472_v58  ;;  %v2680_v23 = vunpack.c.h.b16 %v2472_v58  ;;  %v8577_v61 = vsel %vm11114_vm0, %v2899_v54, %v2894_v9  ;;  %v951_v10 = vsel %vm671_vm1, %v11475_v62, -inf  ;;  %v11478_v9 = vld [vmem:[#allocation118_spill] sm:$0xff]  ;;  %v11479_v55 = vld [vmem:[#allocation119_spill] sm:$0xff] }
 0x1cb   :  { %11474 = vst [vmem:[#allocation90_spill] sm:$0xff] %v8577_v61  ;;  %v2473_v18 = vpack.c.bf16 %v1075_v48, %v1074_v56  ;;  %946 = vmax.xlane.f32.xlu1 %v945_v0  ;;  %v7131_v0 = vld [vmem:[#allocation2 + $0x40] sm:$0xff]  }
 0x1cc   :  { %v2905_v38 = vrot.slane %v2679_v44, %v8433_v45  ;;  %v2909_v14 = vrot.slane %v2680_v23, %v8436_v25  ;;  %943 = vmax.xlane.f32.xlu0 %v942_v63  ;;  %v737_v33 = vpop.xlane.xlu1 %736  ;;  %v734_v49 = vpop.xlane.xlu0 %733  ;;  %v7132_v23 = vld [vmem:[#allocation2] sm:$0xff]   ;;  %6672 = vmatprep.subr.bf16.mxu0 %v7131_v0 }
 0x1cd   :  { %v2681_v24 = vunpack.c.l.b16 %v2473_v18  ;;  %v2682_v58 = vunpack.c.h.b16 %v2473_v18  ;;  %v1077_v54 = vmax.f32 %v11477_v29, %v737_v33  ;;  %v1076_v48 = vmax.f32 %v11478_v9, %v734_v49  ;;  %6673 = vmatpush3.bf16.msra.mxu0 %v7132_v23 }
 0x1ce   :  { %v2910_v8 = vsel %vm2802_vm2, %v2909_v14, %v2905_v38  ;;  %v957_v18 = vsel %vm671_vm1, %v11479_v55, -inf  ;;  %v954_v29 = vsel %vm671_vm1, %v11480_v52, -inf  ;;  %v11482_v38 = vld [vmem:[#allocation122_spill] sm:$0xff]  ;;  %v7134_v55 = vld [vmem:[#allocation2 + $0x8] sm:$0xff]  }
 0x1cf   :  { %v2914_v56 = vrot.slane %v2681_v24, %v8447_v28  ;;  %v2919_v44 = vrot.slane %v2682_v58, %v8450_v43  ;;  %v2474_v63 = vpack.c.bf16 %v1077_v54, %v1076_v48  ;;  %952 = vmax.xlane.f32.xlu1 %v951_v10  ;;  %v11481_v58 = vld [vmem:[#allocation121_spill] sm:$0xff] }
 0x1d0   :  { %949 = vmax.xlane.f32.xlu0 %v948_v7  ;;  %v743_v62 = vpop.xlane.xlu1 %742  ;;  %v740_v61 = vpop.xlane.xlu0 %739  ;;  %v7133_v7 = vld [vmem:[#allocation2 + $0x48] sm:$0xff]  }
 0x1d1   :  { %v2915_v33 = vsel %vm2809_vm3, %v2914_v56, %v2910_v8  ;;  %v2683_v49 = vunpack.c.l.b16 %v2474_v63  ;;  %v2684_v24 = vunpack.c.h.b16 %v2474_v63  ;;  %v1079_v54 = vmax.f32 %v11481_v58, %v743_v62  ;;  %v11483_v56 = vld [vmem:[#allocation123_spill] sm:$0xff]  ;;  %6674 = vmatprep.subr.bf16.mxu0 %v7133_v7  ;;  %v11486_v58 = vld [vmem:[#allocation124_spill] sm:$0xff] }
 0x1d2   :  { %v2920_v10 = vsel %vm11112_vm4, %v2919_v44, %v2915_v33  ;;  %v1078_v14 = vmax.f32 %v11482_v38, %v740_v61  ;;  %v963_v63 = vsel %vm671_vm1, %v11483_v56, -inf  ;;  %v11484_v44 = vld [vmem:[#allocation125_spill] sm:$0xff]  ;;  %v11485_v61 = vld [vmem:[#allocation126_spill] sm:$0xff]  ;;  %6675 = vmatpush3.bf16.msra.mxu0 %v7134_v55 }
 0x1d3   :  { %v2924_v9 = vrot.slane %v2683_v49, %v8460_v35  ;;  %v2929_v48 = vrot.slane %v2684_v24, %v8465_v39  ;;  %958 = vmax.xlane.f32.xlu1 %v957_v18  ;;  %v960_v49 = vsel %vm671_vm1, %v11486_v58, -inf }
 0x1d4   :  { %v2475_v52 = vpack.c.bf16 %v1079_v54, %v1078_v14  ;;  %955 = vmax.xlane.f32.xlu0 %v954_v29  ;;  %v749_v0 = vpop.xlane.xlu1 %748  ;;  %v746_v8 = vpop.xlane.xlu0 %745  ;;  %v7135_v54 = vld [vmem:[#allocation2 + $0x50] sm:$0xff]  }
 0x1d5   :  { %v2925_v62 = vsel %vm2823_vm5, %v2924_v9, %v2920_v10  ;;  %v1081_v23 = vmax.f32 %v11484_v44, %v749_v0  ;;  %v1080_v33 = vmax.f32 %v11485_v61, %v746_v8  ;;  %v7136_v14 = vld [vmem:[#allocation2 + $0x10] sm:$0xff]   ;;  %v11487_v8 = vld [vmem:[#allocation127_spill] sm:$0xff]  ;;  %v11488_v61 = vld [vmem:[#allocation128_spill] sm:$0xff]  ;;  %6676 = vmatprep.subr.bf16.mxu0 %v7135_v54 }
 0x1d6   :  { %v2930_v18 = vsel %vm2830_vm6, %v2929_v48, %v2925_v62  ;;  %v2685_v24 = vunpack.c.l.b16 %v2475_v52  ;;  %v2686_v29 = vunpack.c.h.b16 %v2475_v52  ;;  %v969_v44 = vsel %vm671_vm1, %v11487_v8, -inf  ;;  %v11489_v62 = vld [vmem:[#allocation129_spill] sm:$0xff]  ;;  %6677 = vmatpush3.bf16.msra.mxu0 %v7136_v14 }
 0x1d7   :  { %v2476_v38 = vpack.c.bf16 %v1081_v23, %v1080_v33  ;;  %964 = vmax.xlane.f32.xlu1 %v963_v63  ;;  %v966_v55 = vsel %vm671_vm1, %v11488_v61, -inf  ;;  %v11490_v63 = vld [vmem:[#allocation130_spill] sm:$0xff] }
 0x1d8   :  { %v2934_v7 = vrot.slane %v2685_v24, %v8473_v53  ;;  %v2939_v10 = vrot.slane %v2686_v29, %v8479_v40  ;;  %961 = vmax.xlane.f32.xlu0 %v960_v49  ;;  %v755_v9 = vpop.xlane.xlu1 %754  ;;  %v752_v0 = vpop.xlane.xlu0 %751  ;;  %v7137_v29 = vld [vmem:[#allocation2 + $0x58] sm:$0xff]  }
 0x1d9   :  { %v2687_v48 = vunpack.c.l.b16 %v2476_v38  ;;  %v2688_v52 = vunpack.c.h.b16 %v2476_v38  ;;  %v1083_v23 = vmax.f32 %v11489_v62, %v755_v9  ;;  %v1082_v33 = vmax.f32 %v11490_v63, %v752_v0  ;;  %v7138_v61 = vld [vmem:[#allocation2 + $0x18] sm:$0xff]   ;;  %v11492_v0 = vld [vmem:[#allocation132_spill] sm:$0xff]  ;;  %6678 = vmatprep.subr.bf16.mxu0 %v7137_v29 }
 0x1da   :  { %v2935_v24 = vsel %vm2837_vm7, %v2934_v7, %v2930_v18  ;;  %v975_v9 = vsel %vm671_vm1, %v11491_v51, -inf  ;;  %v972_v14 = vsel %vm671_vm1, %v11492_v0, -inf  ;;  %6679 = vmatpush3.bf16.msra.mxu0 %v7138_v61 }
 0x1db   :  { %v2940_v49 = vsel %vm2844_vm8, %v2939_v10, %v2935_v24  ;;  %v2944_v58 = vrot.slane %v2687_v48, %v8494_v30  ;;  %v2949_v8 = vrot.slane %v2688_v52, %v8501_v34  ;;  %v2477_v56 = vpack.c.bf16 %v1083_v23, %v1082_v33  ;;  %970 = vmax.xlane.f32.xlu1 %v969_v44  ;;  %v11493_v48 = vld [vmem:[#allocation133_spill] sm:$0xff]  ;;  %v11494_v52 = vld [vmem:[#allocation134_spill] sm:$0xff]  ;;  %v7139_v23 = vld [vmem:[#allocation2 + $0x60] sm:$0xff]  }
 0x1dc   :  { %967 = vmax.xlane.f32.xlu0 %v966_v55  ;;  %v761_v54 = vpop.xlane.xlu1 %760  ;;  %v758_v38 = vpop.xlane.xlu0 %757  ;;  %v7140_v24 = vld [vmem:[#allocation2 + $0x20] sm:$0xff]   ;;  %6680 = vmatprep.subr.bf16.mxu0 %v7139_v23 }
 0x1dd   :  { %v2945_v18 = vsel %vm2851_vm9, %v2944_v58, %v2940_v49  ;;  %v2689_v7 = vunpack.c.l.b16 %v2477_v56  ;;  %v2690_v10 = vunpack.c.h.b16 %v2477_v56  ;;  %v1085_v62 = vmax.f32 %v11493_v48, %v761_v54  ;;  %v11495_v49 = vld [vmem:[#allocation135_spill] sm:$0xff]  ;;  %v11498_v48 = vld [vmem:[#allocation136_spill] sm:$0xff] }
 0x1de   :  { %v2950_v44 = vsel %vm2858_vm10, %v2949_v8, %v2945_v18  ;;  %v1084_v55 = vmax.f32 %v11494_v52, %v758_v38  ;;  %v981_v56 = vsel %vm671_vm1, %v11495_v49, -inf  ;;  %v11496_v8 = vld [vmem:[#allocation137_spill] sm:$0xff]  ;;  %v11497_v38 = vld [vmem:[#allocation138_spill] sm:$0xff]  ;;  %6681 = vmatpush3.bf16.msra.mxu0 %v7140_v24 }
 0x1df   :  { %v2954_v63 = vrot.slane %v2689_v7, %v8508_v50  ;;  %v2959_v33 = vrot.slane %v2690_v10, %v8518_v1  ;;  %976 = vmax.xlane.f32.xlu1 %v975_v9  ;;  %v978_v7 = vsel %vm671_vm1, %v11498_v48, -inf  ;;  %v7144_v49 = vld [vmem:[#allocation2 + $0x30] sm:$0xff]  }
 0x1e0   :  { %v2478_v0 = vpack.c.bf16 %v1085_v62, %v1084_v55  ;;  %973 = vmax.xlane.f32.xlu0 %v972_v14  ;;  %v767_v29 = vpop.xlane.xlu1 %766  ;;  %v764_v58 = vpop.xlane.xlu0 %763  ;;  %v7141_v62 = vld [vmem:[#allocation2 + $0x68] sm:$0xff]  }
 0x1e1   :  { %v2955_v61 = vsel %vm11150_vm11, %v2954_v63, %v2950_v44  ;;  %v1087_v54 = vmax.f32 %v11496_v8, %v767_v29  ;;  %v1086_v18 = vmax.f32 %v11497_v38, %v764_v58  ;;  %v7142_v55 = vld [vmem:[#allocation2 + $0x28] sm:$0xff]   ;;  %v11499_v58 = vld [vmem:[#allocation139_spill] sm:$0xff]  ;;  %6682 = vmatprep.subr.bf16.mxu0 %v7141_v62 }
 0x1e2   :  { %v2691_v9 = vunpack.c.l.b16 %v2478_v0  ;;  %v2692_v10 = vunpack.c.h.b16 %v2478_v0  ;;  %v2960_v14 = vsel %vm11132_vm12, %v2959_v33, %v2955_v61  ;;  %v987_v8 = vsel %vm671_vm1, %v11499_v58, -inf  ;;  %v11500_v38 = vld [vmem:[#allocation140_spill] sm:$0xff]  ;;  %v11501_v33 = vld [vmem:[#allocation141_spill] sm:$0xff]  ;;  %6683 = vmatpush3.bf16.msra.mxu0 %v7142_v55 }
 0x1e3   :  { %v2479_v52 = vpack.c.bf16 %v1087_v54, %v1086_v18  ;;  %982 = vmax.xlane.f32.xlu1 %v981_v56  ;;  %v984_v24 = vsel %vm671_vm1, %v11500_v38, -inf  ;;  %v11502_v56 = vld [vmem:[#allocation142_spill] sm:$0xff]  ;;  %v11503_v38 = vld [vmem:[#allocation143_spill] sm:$0xff] }
 0x1e4   :  { %v2964_v23 = vrot.slane %v2691_v9, %v8536_v57  ;;  %v2969_v44 = vrot.slane %v2692_v10, %v8539_v13  ;;  %979 = vmax.xlane.f32.xlu0 %v978_v7  ;;  %v773_v63 = vpop.xlane.xlu1 %772  ;;  %v770_v29 = vpop.xlane.xlu0 %769  ;;  %v7143_v18 = vld [vmem:[#allocation2 + $0x70] sm:$0xff]   ;;  %v993_v62 = vsel %vm671_vm1, %v11503_v38, -inf  ;;  %v7146_v38 = vld [vmem:[#allocation2 + $0x38] sm:$0xff]  }
 0x1e5   :  { %v2693_v0 = vunpack.c.l.b16 %v2479_v52  ;;  %v2694_v48 = vunpack.c.h.b16 %v2479_v52  ;;  %v1089_v61 = vmax.f32 %v11501_v33, %v773_v63  ;;  %v1088_v54 = vmax.f32 %v11502_v56, %v770_v29  ;;  %v11504_v52 = vld [vmem:[#allocation144_spill] sm:$0xff]  ;;  %6684 = vmatprep.subr.bf16.mxu0 %v7143_v18 }
 0x1e6   :  { %v2965_v9 = vsel %vm11131_vm13, %v2964_v23, %v2960_v14  ;;  %v990_v63 = vsel %vm671_vm1, %v11504_v52, -inf  ;;  %6685 = vmatpush3.bf16.msra.mxu0 %v7144_v49 }
 0x1e7   :  { %v2974_v7 = vrot.slane %v2693_v0, %v8551_v60  ;;  %v2480_v10 = vpack.c.bf16 %v1089_v61, %v1088_v54  ;;  %988 = vmax.xlane.f32.xlu1 %v987_v8  ;;  %v2970_v55 = vsel %vm11113_vm14, %v2969_v44, %v2965_v9  ;;  %v2979_v29 = vrot.slane %v2694_v48, %v8554_v15  ;;  %v11505_v0 = vld [vmem:[#allocation145_spill] sm:$0xff]  ;;  %v11506_v8 = vld [vmem:[#allocation146_spill] sm:$0xff]  ;;  %v11507_v9 = vld [vmem:[#allocation147_spill] sm:$0xff] }
 0x1e8   :  { %985 = vmax.xlane.f32.xlu0 %v984_v24  ;;  %v779_v58 = vpop.xlane.xlu1 %778  ;;  %v776_v51 = vpop.xlane.xlu0 %775  ;;  %v7145_v24 = vld [vmem:[#allocation2 + $0x78] sm:$0xff]  }
 0x1e9   :  { %v2695_v14 = vunpack.c.l.b16 %v2480_v10  ;;  %v2696_v23 = vunpack.c.h.b16 %v2480_v10  ;;  %v1091_v33 = vmax.f32 %v11505_v0, %v779_v58  ;;  %v1090_v61 = vmax.f32 %v11506_v8, %v776_v51  ;;  %6686 = vmatprep.subr.bf16.mxu0 %v7145_v24 }
 0x1ea   :  { %v2975_v56 = vsel %vm11126_vm15, %v2974_v7, %v2970_v55  ;;  %v999_v10 = vsel %vm671_vm1, %v11507_v9, -inf  ;;  %v11508_v7 = vld [vmem:[#allocation149_spill] sm:$0xff]  ;;  %6687 = vmatpush3.bf16.msra.mxu0 %v7146_v38  ;;  %v11520_v9 = vld [vmem:[#allocation160_spill] sm:$0xff] }
 0x1eb   :  { %v2481_v54 = vpack.c.bf16 %v1091_v33, %v1090_v61  ;;  %994 = vmax.xlane.f32.xlu1 %v993_v62  ;;  %v2984_v52 = vrot.slane %v2695_v14, %v8433_v45  ;;  %v2988_v18 = vrot.slane %v2696_v23, %v8436_v25  ;;  %v8662_v51 = vsel %vm11114_vm0, %v2979_v29, %v2975_v56  ;;  %v11509_v62 = vld [vmem:[#allocation148_spill] sm:$0xff]  ;;  %v11510_v14 = vld [vmem:[#allocation150_spill] sm:$0xff]  ;;  %v11511_v56 = vld [vmem:[#allocation151_spill] sm:$0xff] }
 0x1ec   :  { %991 = vmax.xlane.f32.xlu0 %v990_v63  ;;  %v785_v44 = vpop.xlane.xlu1 %784  ;;  %v782_v48 = vpop.xlane.xlu0 %781  ;;  %v996_v0 = vsel %vm671_vm1, %v11509_v62, -inf  ;;  %v11513_v62 = vld [vmem:[#allocation154_spill] sm:$0xff] }
 0x1ed   :  { %v2697_v49 = vunpack.c.l.b16 %v2481_v54  ;;  %v2698_v58 = vunpack.c.h.b16 %v2481_v54  ;;  %v1093_v55 = vmax.f32 %v11508_v7, %v785_v44  ;;  %v1092_v23 = vmax.f32 %v11510_v14, %v782_v48  ;;  %v11512_v7 = vld [vmem:[#allocation153_spill] sm:$0xff]  ;;  %v11514_v14 = vld [vmem:[#allocation152_spill] sm:$0xff] }
 0x1ee   :  { %v2989_v8 = vsel %vm2802_vm2, %v2988_v18, %v2984_v52  ;;  %v1005_v54 = vsel %vm671_vm1, %v11511_v56, -inf }
 0x1ef   :  { %v2993_v63 = vrot.slane %v2697_v49, %v8447_v28  ;;  %v2998_v33 = vrot.slane %v2698_v58, %v8450_v43  ;;  %1000 = vmax.xlane.f32.xlu1 %v999_v10  ;;  %v2482_v61 = vpack.c.bf16 %v1093_v55, %v1092_v23  ;;  %v1002_v49 = vsel %vm671_vm1, %v11514_v14, -inf }
 0x1f0   :  { %997 = vmax.xlane.f32.xlu0 %v996_v0  ;;  %v791_v29 = vpop.xlane.xlu1 %790  ;;  %v788_v24 = vpop.xlane.xlu0 %787 }
 0x1f1   :  { %v2994_v44 = vsel %vm2809_vm3, %v2993_v63, %v2989_v8  ;;  %v1095_v38 = vmax.f32 %v11512_v7, %v791_v29  ;;  %v1094_v48 = vmax.f32 %v11513_v62, %v788_v24  ;;  %v2699_v58 = vunpack.c.l.b16 %v2482_v61  ;;  %v11515_v8 = vld [vmem:[#allocation155_spill] sm:$0xff]  ;;  %v11516_v62 = vld [vmem:[#allocation156_spill] sm:$0xff] }
 0x1f2   :  { %v2999_v10 = vsel %vm11112_vm4, %v2998_v33, %v2994_v44  ;;  %v2700_v52 = vunpack.c.h.b16 %v2482_v61  ;;  %v1011_v29 = vsel %vm671_vm1, %v11515_v8, -inf  ;;  %v1008_v24 = vsel %vm671_vm1, %v11516_v62, -inf  ;;  %v11517_v33 = vld [vmem:[#allocation157_spill] sm:$0xff]  ;;  %v11518_v61 = vld [vmem:[#allocation158_spill] sm:$0xff]  ;;  %v11519_v62 = vld [vmem:[#allocation159_spill] sm:$0xff] }
 0x1f3   :  { %v2483_v18 = vpack.c.bf16 %v1095_v38, %v1094_v48  ;;  %1006 = vmax.xlane.f32.xlu1 %v1005_v54  ;;  %v3003_v55 = vrot.slane %v2699_v58, %v8460_v35 }
 0x1f4   :  { %v3008_v0 = vrot.slane %v2700_v52, %v8465_v39  ;;  %1003 = vmax.xlane.f32.xlu0 %v1002_v49  ;;  %v797_v23 = vpop.xlane.xlu1 %796  ;;  %v794_v63 = vpop.xlane.xlu0 %793 }
 0x1f5   :  { %v2701_v7 = vunpack.c.l.b16 %v2483_v18  ;;  %v2702_v14 = vunpack.c.h.b16 %v2483_v18  ;;  %v1097_v44 = vmax.f32 %v11517_v33, %v797_v23  ;;  %v1096_v38 = vmax.f32 %v11518_v61, %v794_v63 }
 0x1f6   :  { %v3004_v54 = vsel %vm2823_vm5, %v3003_v55, %v2999_v10  ;;  %v1017_v18 = vsel %vm671_vm1, %v11519_v62, -inf  ;;  %v1014_v23 = vsel %vm671_vm1, %v11520_v9, -inf  ;;  %v11523_v9 = vld [vmem:[#allocation163_spill] sm:$0xff]  ;;  %v11532_v62 = vld [vmem:[#allocation172_spill] sm:$0xff] }
 0x1f7   :  { %v3009_v48 = vsel %vm2830_vm6, %v3008_v0, %v3004_v54  ;;  %v3013_v49 = vrot.slane %v2701_v7, %v8473_v53  ;;  %v3018_v58 = vrot.slane %v2702_v14, %v8479_v40  ;;  %v2484_v52 = vpack.c.bf16 %v1097_v44, %v1096_v38  ;;  %1012 = vmax.xlane.f32.xlu1 %v1011_v29  ;;  %v11521_v0 = vld [vmem:[#allocation161_spill] sm:$0xff]  ;;  %v11522_v14 = vld [vmem:[#allocation162_spill] sm:$0xff] }
 0x1f8   :  { %1009 = vmax.xlane.f32.xlu0 %v1008_v24  ;;  %v803_v8 = vpop.xlane.xlu1 %802  ;;  %v800_v56 = vpop.xlane.xlu0 %799 }
 0x1f9   :  { %v3014_v63 = vsel %vm2837_vm7, %v3013_v49, %v3009_v48  ;;  %v2703_v10 = vunpack.c.l.b16 %v2484_v52  ;;  %v2704_v55 = vunpack.c.h.b16 %v2484_v52  ;;  %v1099_v33 = vmax.f32 %v11521_v0, %v803_v8  ;;  %v11524_v52 = vld [vmem:[#allocation165_spill] sm:$0xff]  ;;  %v11525_v0 = vld [vmem:[#allocation166_spill] sm:$0xff] }
 0x1fa   :  { %v3019_v7 = vsel %vm2844_vm8, %v3018_v58, %v3014_v63  ;;  %v1098_v44 = vmax.f32 %v11522_v14, %v800_v56  ;;  %v1023_v48 = vsel %vm671_vm1, %v11523_v9, -inf  ;;  %v11526_v63 = vld [vmem:[#allocation164_spill] sm:$0xff] }
 0x1fb   :  { %v3023_v29 = vrot.slane %v2703_v10, %v8494_v30  ;;  %v3028_v24 = vrot.slane %v2704_v55, %v8501_v34  ;;  %1018 = vmax.xlane.f32.xlu1 %v1017_v18  ;;  %v1020_v56 = vsel %vm671_vm1, %v11526_v63, -inf }
 0x1fc   :  { %v2485_v61 = vpack.c.bf16 %v1099_v33, %v1098_v44  ;;  %1015 = vmax.xlane.f32.xlu0 %v1014_v23  ;;  %v809_v38 = vpop.xlane.xlu1 %808  ;;  %v806_v54 = vpop.xlane.xlu0 %805 }
 0x1fd   :  { %v3024_v49 = vsel %vm2851_vm9, %v3023_v29, %v3019_v7  ;;  %v1101_v8 = vmax.f32 %v11524_v52, %v809_v38  ;;  %v1100_v58 = vmax.f32 %v11525_v0, %v806_v54  ;;  %v11527_v29 = vld [vmem:[#allocation167_spill] sm:$0xff]  ;;  %v11528_v54 = vld [vmem:[#allocation168_spill] sm:$0xff] }
 0x1fe   :  { %v3029_v10 = vsel %vm2858_vm10, %v3028_v24, %v3024_v49  ;;  %v2705_v55 = vunpack.c.l.b16 %v2485_v61  ;;  %v2706_v18 = vunpack.c.h.b16 %v2485_v61  ;;  %v1029_v38 = vsel %vm671_vm1, %v11527_v29, -inf  ;;  %v11529_v24 = vld [vmem:[#allocation169_spill] sm:$0xff]  ;;  %v11530_v61 = vld [vmem:[#allocation170_spill] sm:$0xff] }
 0x1ff   :  { %v2486_v33 = vpack.c.bf16 %v1101_v8, %v1100_v58  ;;  %1024 = vmax.xlane.f32.xlu1 %v1023_v48  ;;  %v1026_v52 = vsel %vm671_vm1, %v11528_v54, -inf  ;;  %v11531_v54 = vld [vmem:[#allocation171_spill] sm:$0xff] }
 0x200   :  { %v3033_v23 = vrot.slane %v2705_v55, %v8508_v50  ;;  %v3038_v14 = vrot.slane %v2706_v18, %v8518_v1  ;;  %1021 = vmax.xlane.f32.xlu0 %v1020_v56  ;;  %v815_v44 = vpop.xlane.xlu1 %814  ;;  %v812_v7 = vpop.xlane.xlu0 %811 }
 0x201   :  { %v2707_v0 = vunpack.c.l.b16 %v2486_v33  ;;  %v2708_v63 = vunpack.c.h.b16 %v2486_v33  ;;  %v1103_v49 = vmax.f32 %v11529_v24, %v815_v44  ;;  %v1102_v8 = vmax.f32 %v11530_v61, %v812_v7 }
 0x202   :  { %v3034_v48 = vsel %vm11150_vm11, %v3033_v23, %v3029_v10  ;;  %v1035_v33 = vsel %vm671_vm1, %v11531_v54, -inf  ;;  %v1032_v44 = vsel %vm671_vm1, %v11532_v62, -inf  ;;  %v11535_v62 = vld [vmem:[#allocation175_spill] sm:$0xff]  ;;  %v11537_v54 = vld [vmem:[#allocation178_spill] sm:$0xff] }
 0x203   :  { %v3039_v58 = vsel %vm11132_vm12, %v3038_v14, %v3034_v48  ;;  %v3043_v56 = vrot.slane %v2707_v0, %v8536_v57  ;;  %v3048_v55 = vrot.slane %v2708_v63, %v8539_v13  ;;  %v2487_v18 = vpack.c.bf16 %v1103_v49, %v1102_v8  ;;  %1030 = vmax.xlane.f32.xlu1 %v1029_v38  ;;  %v11533_v14 = vld [vmem:[#allocation173_spill] sm:$0xff]  ;;  %v11534_v0 = vld [vmem:[#allocation174_spill] sm:$0xff] }
 0x204   :  { %1027 = vmax.xlane.f32.xlu0 %v1026_v52  ;;  %v821_v29 = vpop.xlane.xlu1 %820  ;;  %v818_v9 = vpop.xlane.xlu0 %817 }
 0x205   :  { %v3044_v7 = vsel %vm11131_vm13, %v3043_v56, %v3039_v58  ;;  %v2709_v10 = vunpack.c.l.b16 %v2487_v18  ;;  %v2710_v23 = vunpack.c.h.b16 %v2487_v18  ;;  %v1105_v24 = vmax.f32 %v11533_v14, %v821_v29  ;;  %v11536_v56 = vld [vmem:[#allocation177_spill] sm:$0xff]  ;;  %v11538_v14 = vld [vmem:[#allocation176_spill] sm:$0xff] }
 0x206   :  { %v1104_v61 = vmax.f32 %v11534_v0, %v818_v9  ;;  %v3049_v63 = vsel %vm11113_vm14, %v3048_v55, %v3044_v7  ;;  %v1041_v58 = vsel %vm671_vm1, %v11535_v62, -inf  ;;  %v1038_v9 = vsel %vm671_vm1, %v11538_v14, -inf }
 0x207   :  { %v3053_v38 = vrot.slane %v2709_v10, %v8551_v60  ;;  %v3058_v52 = vrot.slane %v2710_v23, %v8554_v15  ;;  %1036 = vmax.xlane.f32.xlu1 %v1035_v33 }
 0x208   :  { %v2488_v49 = vpack.c.bf16 %v1105_v24, %v1104_v61  ;;  %1033 = vmax.xlane.f32.xlu0 %v1032_v44  ;;  %v827_v8 = vpop.xlane.xlu1 %826  ;;  %v824_v48 = vpop.xlane.xlu0 %823 }
 0x209   :  { %v1107_v18 = vmax.f32 %v11536_v56, %v827_v8  ;;  %v1106_v29 = vmax.f32 %v11537_v54, %v824_v48  ;;  %v3054_v55 = vsel %vm11126_vm15, %v3053_v38, %v3049_v63  ;;  %v1047_v54 = vsel %vm671_vm1, %v8103_v22, -inf  ;;  %v11539_v8 = vld [vmem:[#allocation180_spill] sm:$0xff]  ;;  %v11540_v48 = vld [vmem:[#allocation181_spill] sm:$0xff]  ;;  %v11541_v56 = vld [vmem:[#allocation182_spill] sm:$0xff] }
 0x20a   :  { %v2711_v7 = vunpack.c.l.b16 %v2488_v49  ;;  %v2712_v10 = vunpack.c.h.b16 %v2488_v49  ;;  %v8739_v33 = vsel %vm11114_vm0, %v3058_v52, %v3054_v55  ;;  %v1044_v63 = vsel %vm671_vm1, %v11539_v8, -inf }
 0x20b   :  { %v2489_v44 = vpack.c.bf16 %v1107_v18, %v1106_v29  ;;  %1042 = vmax.xlane.f32.xlu1 %v1041_v58  ;;  %v1053_v8 = vsel %vm671_vm1, %v8118_v21, -inf }
 0x20c   :  { %v3063_v23 = vrot.slane %v2711_v7, %v8433_v45  ;;  %v3067_v24 = vrot.slane %v2712_v10, %v8436_v25  ;;  %1039 = vmax.xlane.f32.xlu0 %v1038_v9  ;;  %v833_v0 = vpop.xlane.xlu1 %832  ;;  %v830_v61 = vpop.xlane.xlu0 %829  ;;  %v7147_v9 = vld [vmem:[#allocation2 + $0xc0] sm:$0xff]  }
 0x20d   :  { %v2713_v38 = vunpack.c.l.b16 %v2489_v44  ;;  %v2714_v49 = vunpack.c.h.b16 %v2489_v44  ;;  %v1109_v52 = vmax.f32 %v11540_v48, %v833_v0  ;;  %v1108_v18 = vmax.f32 %v11541_v56, %v830_v61  ;;  %v7148_v0 = vld [vmem:[#allocation2 + $0x80] sm:$0xff]   ;;  %6694 = vmatprep.subr.bf16.mxu1 %v7147_v9  ;;  %v7149_v56 = vld [vmem:[#allocation2 + $0xc8] sm:$0xff]  }
 0x20e   :  { %v3068_v7 = vsel %vm2802_vm2, %v3067_v24, %v3063_v23  ;;  %v1050_v44 = vsel %vm671_vm1, %v8120_v59, -inf  ;;  %v11542_v23 = vld [vmem:[#allocation185_spill] sm:$0xff]  ;;  %6695 = vmatpush3.bf16.msra.mxu1 %v7148_v0  ;;  %vm11543_vm1 = vcmask 130048  }
 0x20f   :  { %v3072_v58 = vrot.slane %v2713_v38, %v8447_v28  ;;  %v3077_v29 = vrot.slane %v2714_v49, %v8450_v43  ;;  %v2490_v55 = vpack.c.bf16 %v1109_v52, %v1108_v18  ;;  %1048 = vmax.xlane.f32.xlu1 %v1047_v54  ;;  %6696 = vmatprep.subr.bf16.mxu1 %v7149_v56 }
 0x210   :  { %1045 = vmax.xlane.f32.xlu0 %v1044_v63  ;;  %v839_v10 = vpop.xlane.xlu1 %838  ;;  %v836_v22 = vpop.xlane.xlu0 %835 }
 0x211   :  { %v3073_v61 = vsel %vm2809_vm3, %v3072_v58, %v3068_v7  ;;  %v2715_v38 = vunpack.c.l.b16 %v2490_v55  ;;  %v2716_v48 = vunpack.c.h.b16 %v2490_v55  ;;  %v1111_v49 = vmax.f32 %v8122_v6, %v839_v10  ;;  %v7150_v6 = vld [vmem:[#allocation2 + $0x88] sm:$0xff]  }
 0x212   :  { %v3078_v54 = vsel %vm11112_vm4, %v3077_v29, %v3073_v61  ;;  %v1110_v24 = vmax.f32 %v11542_v23, %v836_v22  ;;  %v1187_v55 = vsel %vm11543_vm1, %v7326_v5, 0.0  ;;  %v11544_v29 = vld [vmem:[#allocation186_spill] sm:$0xff]  ;;  %v11545_v22 = vld [vmem:[#allocation187_spill] sm:$0xff]  ;;  %vm11546_vm4 = vmmov %vm11543_vm1  ;;  %6697 = vmatpush3.bf16.msra.mxu1 %v7150_v6 }
 0x213   :  { %v3082_v63 = vrot.slane %v2715_v38, %v8460_v35  ;;  %v3087_v52 = vrot.slane %v2716_v48, %v8465_v39  ;;  %1054 = vmax.xlane.f32.xlu1 %v1053_v8  ;;  %v1184_v0 = vsel %vm11546_vm4, %v7322_v3, 0.0  ;;  %v7151_v48 = vld [vmem:[#allocation2 + $0xd0] sm:$0xff]   ;;  %vm11547_vm4 = vmmov %vm11543_vm1 }
 0x214   :  { %v2491_v18 = vpack.c.bf16 %v1111_v49, %v1110_v24  ;;  %1051 = vmax.xlane.f32.xlu0 %v1050_v44  ;;  %v845_v59 = vpop.xlane.xlu1 %844  ;;  %v842_v58 = vpop.xlane.xlu0 %841  ;;  %v1193_v24 = vsel %vm11543_vm1, %v7324_v4, 0.0  ;;  %6698 = vmatprep.subr.bf16.mxu1 %v7151_v48 }
 0x215   :  { %v3083_v9 = vsel %vm2823_vm5, %v3082_v63, %v3078_v54  ;;  %v1113_v7 = vmax.f32 %v11544_v29, %v845_v59  ;;  %v1112_v10 = vmax.f32 %v11545_v22, %v842_v58  ;;  %v1190_v63 = vsel %vm11547_vm4, %v7320_v2, 0.0  ;;  %v11548_v58 = vld [vmem:[#allocation188_spill] sm:$0xff]  ;;  %vm11550_vm4 = vmmov %vm11543_vm1 }
 0x216   :  { %v3088_v8 = vsel %vm2830_vm6, %v3087_v52, %v3083_v9  ;;  %v2717_v61 = vunpack.c.l.b16 %v2491_v18  ;;  %v2718_v44 = vunpack.c.h.b16 %v2491_v18  ;;  %v7152_v52 = vld [vmem:[#allocation2 + $0x90] sm:$0xff]   ;;  %v1196_v48 = vsel %vm11550_vm4, %v7341_v12, 0.0  ;;  %vm11555_vm4 = vmmov %vm11543_vm1 }
 0x217   :  { %v2492_v38 = vpack.c.bf16 %v1113_v7, %v1112_v10  ;;  %1188 = vadd.xlane.f32.xlu1 %v1187_v55  ;;  %v11549_v55 = vld [vmem:[#allocation189_spill] sm:$0xff]  ;;  %6699 = vmatpush3.bf16.msra.mxu1 %v7152_v52  ;;  %v11551_v52 = vld [vmem:[#allocation190_spill] sm:$0xff] }
 0x218   :  { %v3092_v49 = vrot.slane %v2717_v61, %v8473_v53  ;;  %v3097_v54 = vrot.slane %v2718_v44, %v8479_v40  ;;  %1185 = vadd.xlane.f32.xlu0 %v1184_v0  ;;  %v851_v59 = vpop.xlane.xlu1 %850  ;;  %v848_v23 = vpop.xlane.xlu0 %847  ;;  %v7153_v61 = vld [vmem:[#allocation2 + $0xd8] sm:$0xff]  }
 0x219   :  { %v2719_v56 = vunpack.c.l.b16 %v2492_v38  ;;  %v2720_v18 = vunpack.c.h.b16 %v2492_v38  ;;  %v1115_v6 = vmax.f32 %v11548_v58, %v851_v59  ;;  %v1114_v9 = vmax.f32 %v11549_v55, %v848_v23  ;;  %6700 = vmatprep.subr.bf16.mxu1 %v7153_v61  ;;  %v7155_v55 = vld [vmem:[#allocation2 + $0xe0] sm:$0xff]  }
 0x21a   :  { %v3093_v29 = vsel %vm2837_vm7, %v3092_v49, %v3088_v8  ;;  %v1199_v59 = vsel %vm11543_vm1, %v7339_v11, 0.0  ;;  %v7154_v8 = vld [vmem:[#allocation2 + $0x98] sm:$0xff]  }
 0x21b   :  { %v3098_v7 = vsel %vm2844_vm8, %v3097_v54, %v3093_v29  ;;  %v3102_v22 = vrot.slane %v2719_v56, %v8494_v30  ;;  %v3107_v10 = vrot.slane %v2720_v18, %v8501_v34  ;;  %v2493_v0 = vpack.c.bf16 %v1115_v6, %v1114_v9  ;;  %1194 = vadd.xlane.f32.xlu1 %v1193_v24  ;;  %v11552_v18 = vld [vmem:[#allocation191_spill] sm:$0xff] }
 0x21c   :  { %1191 = vadd.xlane.f32.xlu0 %v1190_v63  ;;  %v857_v44 = vpop.xlane.xlu1 %856  ;;  %v854_v38 = vpop.xlane.xlu0 %853  ;;  %6701 = vmatpush3.bf16.msra.mxu1 %v7154_v8 }
 0x21d   :  { %v3103_v49 = vsel %vm2851_vm9, %v3102_v22, %v3098_v7  ;;  %v2721_v54 = vunpack.c.l.b16 %v2493_v0  ;;  %v2722_v23 = vunpack.c.h.b16 %v2493_v0  ;;  %v1117_v56 = vmax.f32 %v11551_v52, %v857_v44  ;;  %v7156_v0 = vld [vmem:[#allocation2 + $0xa0] sm:$0xff]   ;;  %6702 = vmatprep.subr.bf16.mxu1 %v7155_v55  ;;  %v7157_v52 = vld [vmem:[#allocation2 + $0xe8] sm:$0xff]  }
 0x21e   :  { %v3108_v24 = vsel %vm2858_vm10, %v3107_v10, %v3103_v49  ;;  %v1116_v63 = vmax.f32 %v11552_v18, %v854_v38  ;;  %v1205_v22 = vsel %vm11543_vm1, %v7350_v16, 0.0  ;;  %v11553_v10 = vld [vmem:[#allocation192_spill] sm:$0xff]  ;;  %v11554_v38 = vld [vmem:[#allocation193_spill] sm:$0xff]  ;;  %v1202_v49 = vsel %vm11555_vm4, %v7352_v17, 0.0  ;;  %vm11556_vm4 = vmmov %vm11543_vm1 }
 0x21f   :  { %v3112_v58 = vrot.slane %v2721_v54, %v8508_v50  ;;  %v3117_v6 = vrot.slane %v2722_v23, %v8518_v1  ;;  %1200 = vadd.xlane.f32.xlu1 %v1199_v59  ;;  %v11598_v17 = vld [vmem:[#allocation204_spill] sm:$0xff] }
 0x220   :  { %v2494_v9 = vpack.c.bf16 %v1117_v56, %v1116_v63  ;;  %1197 = vadd.xlane.f32.xlu0 %v1196_v48  ;;  %v863_v29 = vpop.xlane.xlu1 %862  ;;  %v860_v7 = vpop.xlane.xlu0 %859  ;;  %6703 = vmatpush3.bf16.msra.mxu1 %v7156_v0  ;;  %v7159_v0 = vld [vmem:[#allocation2 + $0xf0] sm:$0xff]  }
 0x221   :  { %v3113_v61 = vsel %vm11150_vm11, %v3112_v58, %v3108_v24  ;;  %v1119_v44 = vmax.f32 %v11553_v10, %v863_v29  ;;  %v1118_v8 = vmax.f32 %v11554_v38, %v860_v7  ;;  %v1211_v58 = vsel %vm11543_vm1, %v7357_v19, 0.0  ;;  %v7158_v29 = vld [vmem:[#allocation2 + $0xa8] sm:$0xff]   ;;  %6704 = vmatprep.subr.bf16.mxu1 %v7157_v52 }
 0x222   :  { %v2723_v59 = vunpack.c.l.b16 %v2494_v9  ;;  %v2724_v54 = vunpack.c.h.b16 %v2494_v9  ;;  %v3118_v48 = vsel %vm11132_vm12, %v3117_v6, %v3113_v61  ;;  %v1208_v9 = vsel %vm11556_vm4, %v7359_v20, 0.0  ;;  %vm11557_vm4 = vmmov %vm11543_vm1  ;;  %v11597_v20 = vld [vmem:[#allocation213_spill] sm:$0xff] }
 0x223   :  { %v2495_v23 = vpack.c.bf16 %v1119_v44, %v1118_v8  ;;  %1206 = vadd.xlane.f32.xlu1 %v1205_v22  ;;  %v1217_v8 = vsel %vm11543_vm1, %v7372_v26, 0.0 }
 0x224   :  { %v3122_v56 = vrot.slane %v2723_v59, %v8536_v57  ;;  %v3127_v24 = vrot.slane %v2724_v54, %v8539_v13  ;;  %1203 = vadd.xlane.f32.xlu0 %v1202_v49  ;;  %v869_v18 = vpop.xlane.xlu1 %868  ;;  %v866_v63 = vpop.xlane.xlu0 %865  ;;  %6705 = vmatpush3.bf16.msra.mxu1 %v7158_v29  ;;  %v7160_v49 = vld [vmem:[#allocation2 + $0xb0] sm:$0xff]   ;;  %v1214_v59 = vsel %vm11557_vm4, %v7374_v27, 0.0  ;;  %v1220_v29 = vsel %vm11543_vm1, %v7385_v32, 0.0  ;;  %vm11559_vm4 = vmmov %vm11543_vm1 }
 0x225   :  { %v2725_v55 = vunpack.c.l.b16 %v2495_v23  ;;  %v2726_v7 = vunpack.c.h.b16 %v2495_v23  ;;  %6706 = vmatprep.subr.bf16.mxu1 %v7159_v0  ;;  %v11583_v32 = vld [vmem:[#allocation210_spill] sm:$0xff] }
 0x226   :  { %v3123_v6 = vsel %vm11131_vm13, %v3122_v56, %v3118_v48  ;;  %v7161_v48 = vld [vmem:[#allocation2 + $0xf8] sm:$0xff]  }
 0x227   :  { %v3132_v22 = vrot.slane %v2725_v55, %v8551_v60  ;;  %1212 = vadd.xlane.f32.xlu1 %v1211_v58  ;;  %v3128_v61 = vsel %vm11113_vm14, %v3127_v24, %v3123_v6  ;;  %v3137_v10 = vrot.slane %v2726_v7, %v8554_v15  ;;  %vm11558_vm14 = vmmov %vm11543_vm1  ;;  %v7162_v58 = vld [vmem:[#allocation2 + $0xb8] sm:$0xff]  }
 0x228   :  { %1209 = vadd.xlane.f32.xlu0 %v1208_v9  ;;  %v875_v44 = vpop.xlane.xlu1 %874  ;;  %v872_v38 = vpop.xlane.xlu0 %871  ;;  %6707 = vmatpush3.bf16.msra.mxu1 %v7160_v49  ;;  %v1223_v24 = vsel %vm11558_vm14, %v7383_v31, 0.0  ;;  %v1229_v9 = vsel %vm11559_vm4, %v7394_v36, 0.0  ;;  %v11563_v49 = vld [vmem:[#allocation195_spill] sm:$0xff]  ;;  %v11577_v31 = vld [vmem:[#allocation26_spill] sm:$0xff] }
 0x229   :  { %v3133_v54 = vsel %vm11126_vm15, %v3132_v22, %v3128_v61  ;;  %6708 = vmatprep.subr.bf16.mxu1 %v7161_v48  ;;  %v11565_v48 = vld [vmem:[#allocation196_spill] sm:$0xff]  ;;  %vm11595_vm15 = vcmask 261312  }
 0x22a   :  { %v8816_v23 = vsel %vm11114_vm0, %v3137_v10, %v3133_v54  ;;  %vm11560_vm0 = vmmov %vm11543_vm1  ;;  %v11562_v10 = vld [vmem:[#allocation194_spill] sm:$0xff] }
 0x22b   :  { %1218 = vadd.xlane.f32.xlu1 %v1217_v8  ;;  %v1226_v6 = vsel %vm11560_vm0, %v7396_v37, 0.0  ;;  %vm11561_vm14 = vmmov %vm11560_vm0  ;;  %v1121_v8 = vmax.f32 %v11562_v10, %v869_v18  ;;  %v11568_v10 = vld [vmem:[#allocation198_spill] sm:$0xff] }
 0x22c   :  { %1215 = vadd.xlane.f32.xlu0 %v1214_v59  ;;  %v881_v52 = vpop.xlane.xlu1 %880  ;;  %v878_v56 = vpop.xlane.xlu0 %877  ;;  %6709 = vmatpush3.bf16.msra.mxu1 %v7162_v58  ;;  %v1235_v61 = vsel %vm11561_vm14, %v7405_v41, 0.0  ;;  %v1120_v59 = vmax.f32 %v11563_v49, %v866_v63  ;;  %vm11564_vm1 = vmmov %vm11560_vm0  ;;  %v11566_v58 = vld [vmem:[#allocation197_spill] sm:$0xff]  ;;  %v1241_v41 = vsel %vm11560_vm0, %v7416_v46, 0.0 }
 0x22d   :  { %v1232_v54 = vsel %vm11564_vm1, %v7407_v42, 0.0  ;;  %vm11567_vm4 = vmmov %vm11560_vm0  ;;  %v1125_v49 = vmax.f32 %v11568_v10, %v881_v52  ;;  %v11569_v42 = vld [vmem:[#allocation199_spill] sm:$0xff]  ;;  %v11575_v10 = vld [vmem:[#allocation201_spill] sm:$0xff] }
 0x22e   :  { %v2496_v36 = vpack.c.bf16 %v1121_v8, %v1120_v59  ;;  %v1238_v18 = vsel %vm11567_vm4, %v7418_v47, 0.0  ;;  %vm11571_vm14 = vmmov %vm11560_vm0  ;;  %v11572_v8 = vld [vmem:[#allocation24_spill] sm:$0xff] }
 0x22f   :  { %1224 = vadd.xlane.f32.xlu1 %v1223_v24  ;;  %v1123_v24 = vmax.f32 %v11565_v48, %v875_v44  ;;  %v1124_v44 = vmax.f32 %v11569_v42, %v878_v56  ;;  %vm11573_vm1 = vmmov %vm11560_vm0 }
 0x230   :  { %1221 = vadd.xlane.f32.xlu0 %v1220_v29  ;;  %v887_v55 = vpop.xlane.xlu1 %886  ;;  %v884_v7 = vpop.xlane.xlu0 %883  ;;  %v1122_v29 = vmax.f32 %v11566_v58, %v872_v38  ;;  %v2727_v58 = vunpack.c.l.b16 %v2496_v36  ;;  %v2728_v46 = vunpack.c.h.b16 %v2496_v36  ;;  %v1244_v59 = vsel %vm11573_vm1, %v11572_v8, 0.0  ;;  %vm11578_vm4 = vmmov %vm11560_vm0 }
 0x231   :  { %v1126_v42 = vmax.f32 %v11575_v10, %v884_v7  ;;  %v11581_v10 = vld [vmem:[#allocation28_spill] sm:$0xff]  ;;  %vm11582_vm1 = vmmov %vm11560_vm0 }
 0x232   :  { %v2497_v63 = vpack.c.bf16 %v1123_v24, %v1122_v29  ;;  %v2498_v24 = vpack.c.bf16 %v1125_v49, %v1124_v44  ;;  %v11574_v29 = vld [vmem:[#allocation200_spill] sm:$0xff]  ;;  %v3142_v36 = vrot.slane %v2727_v58, %v8433_v45  ;;  %v3146_v37 = vrot.slane %v2728_v46, %v8436_v25 }
 0x233   :  { %1230 = vadd.xlane.f32.xlu1 %v1229_v9  ;;  %v1127_v52 = vmax.f32 %v11574_v29, %v887_v55  ;;  %v1250_v49 = vsel %vm11578_vm4, %v11577_v31, 0.0  ;;  %vm11589_vm4 = vmmov %vm11560_vm0 }
 0x234   :  { %1227 = vadd.xlane.f32.xlu0 %v1226_v6  ;;  %v8826_v22 = vpop.xlane.xlu1 %892  ;;  %v8828_v0 = vpop.xlane.xlu0 %889  ;;  %v2729_v47 = vunpack.c.l.b16 %v2497_v63  ;;  %v2730_v8 = vunpack.c.h.b16 %v2497_v63  ;;  %v2731_v7 = vunpack.c.l.b16 %v2498_v24  ;;  %v3147_v58 = vsel %vm2802_vm2, %v3146_v37, %v3142_v36  ;;  %v11587_v37 = vld [vmem:[#allocation203_spill] sm:$0xff] }
 0x235   :  { %v2499_v44 = vpack.c.bf16 %v1127_v52, %v1126_v42  ;;  %v2732_v63 = vunpack.c.h.b16 %v2498_v24  ;;  %v11584_v52 = vld [vmem:[#allocation211_spill] sm:$0xff]  ;;  %v11588_v24 = vld [vmem:[#allocation30_spill] sm:$0xff] }
 0x236   :  { %v3151_v55 = vrot.slane %v2729_v47, %v8447_v28  ;;  %v3156_v46 = vrot.slane %v2730_v8, %v8450_v43  ;;  %v1128_v8 = vmax.f32 %v11587_v37, %v8828_v0 }
 0x237   :  { %1236 = vadd.xlane.f32.xlu1 %v1235_v61  ;;  %v2733_v27 = vunpack.c.l.b16 %v2499_v44  ;;  %v3166_v0 = vrot.slane %v2732_v63, %v8465_v39 }
 0x238   :  { %1233 = vadd.xlane.f32.xlu0 %v1232_v54  ;;  %v8838_v9 = vpop.xlane.xlu1 %898  ;;  %v8840_v6 = vpop.xlane.xlu0 %895  ;;  %v11570_v54 = vld [vmem:[#allocation23_spill] sm:$0xff]  ;;  %v3152_v47 = vsel %vm2809_vm3, %v3151_v55, %v3147_v58 }
 0x239   :  { %v1247_v48 = vsel %vm11571_vm14, %v11570_v54, 0.0  ;;  %vm11580_vm14 = vmmov %vm11560_vm0  ;;  %v3171_v16 = vrot.slane %v2733_v27, %v8473_v53 }
 0x23b   :  { %1242 = vadd.xlane.f32.xlu1 %v1241_v41 }
 0x23c   :  { %1239 = vadd.xlane.f32.xlu0 %v1238_v18  ;;  %v8848_v38 = vpop.xlane.xlu1 %904  ;;  %v8850_v61 = vpop.xlane.xlu0 %901  ;;  %v11576_v18 = vld [vmem:[#allocation25_spill] sm:$0xff] }
 0x23d   :  { %v1253_v54 = vsel %vm11560_vm0, %v11576_v18, 0.0  ;;  %v1256_v18 = vsel %vm11582_vm1, %v11581_v10, 0.0  ;;  %v11586_v10 = vld [vmem:[#allocation202_spill] sm:$0xff]  ;;  %vm11593_vm1 = vmmov %vm11560_vm0 }
 0x23e   :  { %v1129_v19 = vmax.f32 %v11586_v10, %v8826_v22  ;;  %v3157_v22 = vsel %vm11595_vm15, %v3156_v46, %v3152_v47  ;;  %v11596_v10 = vld [vmem:[#allocation212_spill] sm:$0xff]  ;;  %v11599_v46 = vld [vmem:[#allocation205_spill] sm:$0xff]  ;;  %vm11601_vm15 = vmmov %vm11560_vm0 }
 0x23f   :  { %1248 = vadd.xlane.f32.xlu1 %v1247_v48  ;;  %v1130_v47 = vmax.f32 %v11599_v46, %v8840_v6 }
 0x240   :  { %1245 = vadd.xlane.f32.xlu0 %v1244_v59  ;;  %v8858_v41 = vpop.xlane.xlu1 %910  ;;  %v8860_v56 = vpop.xlane.xlu0 %907  ;;  %v11579_v59 = vld [vmem:[#allocation27_spill] sm:$0xff] }
 0x241   :  { %v1259_v29 = vsel %vm11580_vm14, %v11579_v59, 0.0  ;;  %vm11591_vm14 = vmmov %vm11560_vm0 }
 0x243   :  { %1254 = vadd.xlane.f32.xlu1 %v1253_v54  ;;  %v3161_v54 = vrot.slane %v2731_v7, %v8460_v35  ;;  %v11590_v7 = vld [vmem:[#allocation31_spill] sm:$0xff] }
 0x244   :  { %1251 = vadd.xlane.f32.xlu0 %v1250_v49  ;;  %v917_v48 = vpop.xlane.xlu1 %916  ;;  %v11585_v49 = vld [vmem:[#allocation29_spill] sm:$0xff] }
 0x245   :  { %v1137_v31 = vmax.f32 %v11583_v32, %v917_v48  ;;  %v914_v26 = vpop.xlane.xlu0 %913  ;;  %v1265_v59 = vsel %vm11560_vm0, %v11585_v49, 0.0  ;;  %v1262_v32 = vsel %vm11589_vm4, %v11588_v24, 0.0  ;;  %v11592_v48 = vld [vmem:[#allocation32_spill] sm:$0xff]  ;;  %vm11603_vm4 = vmmov %vm11560_vm0 }
 0x246   :  { %v1136_v42 = vmax.f32 %v11584_v52, %v914_v26  ;;  %v1271_v26 = vsel %vm11591_vm14, %v11590_v7, 0.0  ;;  %v1268_v58 = vsel %vm11593_vm1, %v11592_v48, 0.0  ;;  %v11594_v52 = vld [vmem:[#allocation33_spill] sm:$0xff]  ;;  %v2500_v48 = vpack.c.bf16 %v1129_v19, %v1128_v8  ;;  %vm11605_vm14 = vmmov %vm11560_vm0 }
 0x247   :  { %1260 = vadd.xlane.f32.xlu1 %v1259_v29  ;;  %v1277_v49 = vsel %vm11560_vm0, %v11594_v52, 0.0  ;;  %v2734_v29 = vunpack.c.h.b16 %v2499_v44  ;;  %v1131_v52 = vmax.f32 %v11598_v17, %v8838_v9  ;;  %v11606_v9 = vld [vmem:[#allocation214_spill] sm:$0xff]  ;;  %vm11608_vm1 = vmmov %vm11560_vm0 }
 0x248   :  { %v2504_v36 = vpack.c.bf16 %v1137_v31, %v1136_v42  ;;  %1257 = vadd.xlane.f32.xlu0 %v1256_v18  ;;  %v923_v55 = vpop.xlane.xlu1 %922  ;;  %v3162_v31 = vsel %vm2823_vm5, %v3161_v54, %v3157_v22  ;;  %v11602_v22 = vld [vmem:[#allocation35_spill] sm:$0xff] }
 0x249   :  { %v1139_v37 = vmax.f32 %v11596_v10, %v923_v55  ;;  %v920_v24 = vpop.xlane.xlu0 %919  ;;  %v11600_v55 = vld [vmem:[#allocation34_spill] sm:$0xff] }
 0x24a   :  { %v2743_v18 = vunpack.c.l.b16 %v2504_v36  ;;  %v2744_v42 = vunpack.c.h.b16 %v2504_v36  ;;  %v1138_v7 = vmax.f32 %v11597_v20, %v920_v24  ;;  %v1274_v54 = vsel %vm11601_vm15, %v11600_v55, 0.0  ;;  %v11604_v20 = vld [vmem:[#allocation36_spill] sm:$0xff] }
 0x24b   :  { %1266 = vadd.xlane.f32.xlu1 %v1265_v59  ;;  %v1283_v36 = vsel %vm11603_vm4, %v11602_v22, 0.0  ;;  %v1280_v27 = vsel %vm11605_vm14, %v11604_v20, 0.0  ;;  %v11607_v59 = vld [vmem:[#allocation37_spill] sm:$0xff]  ;;  %v3176_v20 = vrot.slane %v2734_v29, %v8479_v40  ;;  %v2501_v55 = vpack.c.bf16 %v1131_v52, %v1130_v47  ;;  %v11613_v52 = vld [vmem:[#allocation38_spill] sm:$0xff]  ;;  %vm11621_vm4 = vmmov %vm11560_vm0 }
 0x24c   :  { %v2505_v44 = vpack.c.bf16 %v1139_v37, %v1138_v7  ;;  %1263 = vadd.xlane.f32.xlu0 %v1262_v32  ;;  %v929_v63 = vpop.xlane.xlu1 %928  ;;  %v3221_v19 = vrot.slane %v2743_v18, %v8433_v45  ;;  %v3225_v17 = vrot.slane %v2744_v42, %v8436_v25  ;;  %v8914_v24 = vsel %vm11608_vm1, %v11607_v59, 0.0  ;;  %v11609_v37 = vld [vmem:[#allocation215_spill] sm:$0xff]  ;;  %v11610_v42 = vld [vmem:[#allocation206_spill] sm:$0xff]  ;;  %vm11625_vm14 = vmmov %vm11560_vm0 }
 0x24d   :  { %v1141_v8 = vmax.f32 %v11606_v9, %v929_v63  ;;  %v926_v6 = vpop.xlane.xlu0 %925  ;;  %v3167_v32 = vsel %vm2830_vm6, %v3166_v0, %v3162_v31  ;;  %v2735_v18 = vunpack.c.l.b16 %v2500_v48  ;;  %v1133_v63 = vmax.f32 %v11610_v42, %v8848_v38  ;;  %v11611_v9 = vld [vmem:[#allocation207_spill] sm:$0xff]  ;;  %vm11629_vm1 = vmmov %vm11560_vm0 }
 0x24e   :  { %v2745_v7 = vunpack.c.l.b16 %v2505_v44  ;;  %v2746_v10 = vunpack.c.h.b16 %v2505_v44  ;;  %v1140_v46 = vmax.f32 %v11609_v37, %v926_v6  ;;  %v3172_v22 = vsel %vm2837_vm7, %v3171_v16, %v3167_v32  ;;  %v11612_v6 = vld [vmem:[#allocation216_spill] sm:$0xff] }
 0x24f   :  { %1272 = vadd.xlane.f32.xlu1 %v1271_v26  ;;  %v1132_v59 = vmax.f32 %v11611_v9, %v8850_v61  ;;  %v3226_v44 = vsel %vm2802_vm2, %v3225_v17, %v3221_v19  ;;  %v1286_v26 = vsel %vm11560_vm0, %v11613_v52, 0.0  ;;  %v11614_v61 = vld [vmem:[#allocation217_spill] sm:$0xff]  ;;  %v2737_v19 = vunpack.c.l.b16 %v2501_v55 }
 0x250   :  { %v3230_v5 = vrot.slane %v2745_v7, %v8447_v28  ;;  %v2506_v0 = vpack.c.bf16 %v1141_v8, %v1140_v46  ;;  %1269 = vadd.xlane.f32.xlu0 %v1268_v58  ;;  %v935_v31 = vpop.xlane.xlu1 %934  ;;  %v3235_v16 = vrot.slane %v2746_v10, %v8450_v43  ;;  %v3177_v8 = vsel %vm2844_vm8, %v3176_v20, %v3172_v22  ;;  %v11615_v10 = vld [vmem:[#allocation208_spill] sm:$0xff]  ;;  %v11618_v22 = vld [vmem:[#allocation218_spill] sm:$0xff] }
 0x251   :  { %v1143_v29 = vmax.f32 %v11612_v6, %v935_v31  ;;  %v932_v32 = vpop.xlane.xlu0 %931  ;;  %v2736_v58 = vunpack.c.h.b16 %v2500_v48  ;;  %v3181_v7 = vrot.slane %v2735_v18, %v8494_v30  ;;  %v2502_v17 = vpack.c.bf16 %v1133_v63, %v1132_v59 }
 0x252   :  { %v3231_v38 = vsel %vm2809_vm3, %v3230_v5, %v3226_v44  ;;  %v2747_v47 = vunpack.c.l.b16 %v2506_v0  ;;  %v2748_v37 = vunpack.c.h.b16 %v2506_v0  ;;  %v1142_v42 = vmax.f32 %v11614_v61, %v932_v32  ;;  %v11616_v0 = vld [vmem:[#allocation209_spill] sm:$0xff] }
 0x253   :  { %1278 = vadd.xlane.f32.xlu1 %v1277_v49  ;;  %v1135_v46 = vmax.f32 %v11615_v10, %v8858_v41  ;;  %v1134_v44 = vmax.f32 %v11616_v0, %v8860_v56  ;;  %vm11617_vm15 = vcmask 261312   ;;  %v11619_v41 = vld [vmem:[#allocation219_spill] sm:$0xff] }
 0x254   :  { %v3240_v9 = vrot.slane %v2747_v47, %v8460_v35  ;;  %v2507_v31 = vpack.c.bf16 %v1143_v29, %v1142_v42  ;;  %1275 = vadd.xlane.f32.xlu0 %v1274_v54  ;;  %v941_v5 = vpop.xlane.xlu1 %940  ;;  %v3236_v6 = vsel %vm11617_vm15, %v3235_v16, %v3231_v38  ;;  %v3245_v48 = vrot.slane %v2748_v37, %v8465_v39  ;;  %v11620_v56 = vld [vmem:[#allocation39_spill] sm:$0xff]  ;;  %vm11634_vm15 = vmmov %vm11560_vm0 }
 0x255   :  { %v1145_v20 = vmax.f32 %v11618_v22, %v941_v5  ;;  %v938_v18 = vpop.xlane.xlu0 %937  ;;  %v3182_v29 = vsel %vm2851_vm9, %v3181_v7, %v3177_v8  ;;  %v3186_v54 = vrot.slane %v2736_v58, %v8501_v34  ;;  %v2738_v47 = vunpack.c.h.b16 %v2501_v55  ;;  %v11622_v7 = vld [vmem:[#allocation220_spill] sm:$0xff] }
 0x256   :  { %v3241_v49 = vsel %vm2823_vm5, %v3240_v9, %v3236_v6  ;;  %v2749_v59 = vunpack.c.l.b16 %v2507_v31  ;;  %v2750_v63 = vunpack.c.h.b16 %v2507_v31  ;;  %v1144_v32 = vmax.f32 %v11619_v41, %v938_v18  ;;  %v11623_v6 = vld [vmem:[#allocation221_spill] sm:$0xff] }
 0x257   :  { %1284 = vadd.xlane.f32.xlu1 %v1283_v36  ;;  %v1295_v16 = vsel %vm11621_vm4, %v11620_v56, 0.0  ;;  %v3191_v38 = vrot.slane %v2737_v19, %v8508_v50  ;;  %v2739_v37 = vunpack.c.l.b16 %v2502_v17  ;;  %v2503_v9 = vpack.c.bf16 %v1135_v46, %v1134_v44  ;;  %v11624_v46 = vld [vmem:[#allocation40_spill] sm:$0xff] }
 0x258   :  { %v3250_v61 = vrot.slane %v2749_v59, %v8473_v53  ;;  %v2508_v42 = vpack.c.bf16 %v1145_v20, %v1144_v32  ;;  %1281 = vadd.xlane.f32.xlu0 %v1280_v27  ;;  %v947_v10 = vpop.xlane.xlu1 %946  ;;  %v3246_v31 = vsel %vm2830_vm6, %v3245_v48, %v3241_v49  ;;  %v3255_v8 = vrot.slane %v2750_v63, %v8479_v40 }
 0x259   :  { %v1147_v58 = vmax.f32 %v11622_v7, %v947_v10  ;;  %v944_v55 = vpop.xlane.xlu0 %943  ;;  %v3187_v22 = vsel %vm2858_vm10, %v3186_v54, %v3182_v29  ;;  %v3196_v20 = vrot.slane %v2738_v47, %v8518_v1  ;;  %v2740_v27 = vunpack.c.h.b16 %v2502_v17  ;;  %v11626_v17 = vld [vmem:[#allocation222_spill] sm:$0xff] }
 0x25a   :  { %v3251_v36 = vsel %vm2837_vm7, %v3250_v61, %v3246_v31  ;;  %v2751_v5 = vunpack.c.l.b16 %v2508_v42  ;;  %v2752_v0 = vunpack.c.h.b16 %v2508_v42  ;;  %v1146_v19 = vmax.f32 %v11623_v6, %v944_v55 }
 0x25b   :  { %1290 = vadd.xlane.f32.xlu1 %v8914_v24  ;;  %v1292_v44 = vsel %vm11625_vm14, %v11624_v46, 0.0  ;;  %v3192_v48 = vsel %vm11150_vm11, %v3191_v38, %v3187_v22  ;;  %v3201_v18 = vrot.slane %v2739_v37, %v8536_v57  ;;  %v2741_v41 = vunpack.c.l.b16 %v2503_v9  ;;  %v11627_v38 = vld [vmem:[#allocation223_spill] sm:$0xff]  ;;  %vm11637_vm14 = vmmov %vm11560_vm0 }
 0x25c   :  { %v3260_v49 = vrot.slane %v2751_v5, %v8494_v30  ;;  %v2509_v59 = vpack.c.bf16 %v1147_v58, %v1146_v19  ;;  %1287 = vadd.xlane.f32.xlu0 %v1286_v26  ;;  %v953_v63 = vpop.xlane.xlu1 %952  ;;  %v3256_v32 = vsel %vm2844_vm8, %v3255_v8, %v3251_v36  ;;  %v3265_v29 = vrot.slane %v2752_v0, %v8501_v34  ;;  %v11628_v26 = vld [vmem:[#allocation41_spill] sm:$0xff]  ;;  %v11630_v8 = vld [vmem:[#allocation42_spill] sm:$0xff] }
 0x25d   :  { %v1149_v54 = vmax.f32 %v11626_v17, %v953_v63  ;;  %v950_v24 = vpop.xlane.xlu0 %949  ;;  %v3197_v37 = vsel %vm11132_vm12, %v3196_v20, %v3192_v48  ;;  %v3206_v31 = vrot.slane %v2740_v27, %v8539_v13  ;;  %v1301_v7 = vsel %vm11629_vm1, %v11628_v26, 0.0  ;;  %v11631_v20 = vld [vmem:[#allocation224_spill] sm:$0xff] }
 0x25e   :  { %v3261_v47 = vsel %vm2851_vm9, %v3260_v49, %v3256_v32  ;;  %v2753_v61 = vunpack.c.l.b16 %v2509_v59  ;;  %v2754_v42 = vunpack.c.h.b16 %v2509_v59  ;;  %v1148_v10 = vmax.f32 %v11627_v38, %v950_v24  ;;  %v11633_v32 = vld [vmem:[#allocation43_spill] sm:$0xff] }
 0x25f   :  { %1296 = vadd.xlane.f32.xlu1 %v1295_v16  ;;  %v1298_v58 = vsel %vm11560_vm0, %v11630_v8, 0.0  ;;  %v3202_v55 = vsel %vm11131_vm13, %v3201_v18, %v3197_v37  ;;  %v2742_v36 = vunpack.c.h.b16 %v2503_v9  ;;  %v3211_v19 = vrot.slane %v2741_v41, %v8551_v60  ;;  %v11632_v18 = vld [vmem:[#allocation225_spill] sm:$0xff] }
 0x260   :  { %v3270_v5 = vrot.slane %v2753_v61, %v8508_v50  ;;  %v2510_v0 = vpack.c.bf16 %v1149_v54, %v1148_v10  ;;  %1293 = vadd.xlane.f32.xlu0 %v1292_v44  ;;  %v959_v6 = vpop.xlane.xlu1 %958  ;;  %v3266_v22 = vsel %vm2858_vm10, %v3265_v29, %v3261_v47  ;;  %v3275_v16 = vrot.slane %v2754_v42, %v8518_v1  ;;  %v11636_v42 = vld [vmem:[#allocation44_spill] sm:$0xff]  ;;  %v11696_v8 = vld [vmem:[#allocation245_spill] sm:$0xff] }
 0x261   :  { %v1151_v27 = vmax.f32 %v11631_v20, %v959_v6  ;;  %v956_v48 = vpop.xlane.xlu0 %955  ;;  %v1307_v44 = vsel %vm11634_vm15, %v11633_v32, 0.0  ;;  %v3216_v17 = vrot.slane %v2742_v36, %v8554_v15  ;;  %vm11635_vm4 = vcmask 917312   ;;  %vm11640_vm15 = vmmov %vm11637_vm14  ;;  %v11642_v20 = vld [vmem:[#allocation46_spill] sm:$0xff] }
 0x262   :  { %v3271_v49 = vsel %vm11150_vm11, %v3270_v5, %v3266_v22  ;;  %v2755_v59 = vunpack.c.l.b16 %v2510_v0  ;;  %v2756_v63 = vunpack.c.h.b16 %v2510_v0  ;;  %v1150_v9 = vmax.f32 %v11632_v18, %v956_v48 }
 0x263   :  { %1302 = vadd.xlane.f32.xlu1 %v1301_v7  ;;  %v3207_v24 = vsel %vm11635_vm4, %v3206_v31, %v3202_v55  ;;  %v1304_v38 = vsel %vm11637_vm14, %v11636_v42, 0.0  ;;  %v3276_v10 = vsel %vm11132_vm12, %v3275_v16, %v3271_v49  ;;  %vm11638_vm1 = vcmask 982912   ;;  %v11639_v55 = vld [vmem:[#allocation45_spill] sm:$0xff] }
 0x264   :  { %v3280_v41 = vrot.slane %v2755_v59, %v8536_v57  ;;  %v2511_v29 = vpack.c.bf16 %v1151_v27, %v1150_v9  ;;  %1299 = vadd.xlane.f32.xlu0 %v1298_v58  ;;  %v965_v54 = vpop.xlane.xlu1 %964  ;;  %v3285_v47 = vrot.slane %v2756_v63, %v8539_v13  ;;  %v3212_v37 = vsel %vm11638_vm1, %v3211_v19, %v3207_v24  ;;  %v11646_v59 = vld [vmem:[#allocation90_spill] sm:$0xff]  ;;  %v11649_v24 = vld [vmem:[#allocation48_spill] sm:$0xff] }
 0x265   :  { %v962_v61 = vpop.xlane.xlu0 %961  ;;  %vm3455_vm0 = vcmask 1041409   ;;  %v1313_v0 = vsel %vm11640_vm15, %v11639_v55, 0.0  ;;  %vm11641_vm4 = vcmask 1048512   ;;  %v1310_v19 = vsel %vm11637_vm14, %v11642_v20, 0.0  ;;  %vm11648_vm15 = vmmov %vm11637_vm14 }
 0x266   :  { %v2757_v7 = vunpack.c.l.b16 %v2511_v29  ;;  %v2758_v5 = vunpack.c.h.b16 %v2511_v29  ;;  %v3281_v36 = vsel %vm11131_vm13, %v3280_v41, %v3276_v10  ;;  %v3217_v22 = vsel %vm11641_vm4, %v3216_v17, %v3212_v37  ;;  %vm11645_vm12 = vmmov %vm11641_vm4  ;;  %v11651_v37 = vld [vmem:[#allocation49_spill] sm:$0xff] }
 0x267   :  { %1308 = vadd.xlane.f32.xlu1 %v1307_v44  ;;  %vm11643_vm1 = vcmask 917312   ;;  %vm11644_vm13 = vcmask 982912   ;;  %v3456_v63 = vsel %vm3455_vm0, %v3217_v22, %v11646_v59  ;;  %v11647_v44 = vld [vmem:[#allocation47_spill] sm:$0xff]  ;;  %vm11650_vm4 = vmmov %vm11637_vm14 }
 0x268   :  { %v3290_v58 = vrot.slane %v2757_v7, %v8551_v60  ;;  %1305 = vadd.xlane.f32.xlu0 %v1304_v38  ;;  %v971_v31 = vpop.xlane.xlu1 %970  ;;  %v3295_v6 = vrot.slane %v2758_v5, %v8554_v15  ;;  %v3286_v27 = vsel %vm11643_vm1, %v3285_v47, %v3281_v36  ;;  %v1319_v17 = vsel %vm11648_vm15, %v11647_v44, 0.0  ;;  %v11653_v36 = vld [vmem:[#allocation50_spill] sm:$0xff]  ;;  %vm11660_vm14 = vmmov %vm11650_vm4 }
 0x269   :  { %v968_v16 = vpop.xlane.xlu0 %967  ;;  %v1316_v47 = vsel %vm11650_vm4, %v11649_v24, 0.0  ;;  %v3460_v38 = vpack.c.b16 %v3456_v63, %v3456_v63  ;;  %v11659_v63 = vld [vmem:[#allocation51_spill] sm:$0xff]  ;;  %vm11662_vm1 = vmmov %vm11650_vm4 }
 0x26a   :  { %v3291_v48 = vsel %vm11644_vm13, %v3290_v58, %v3286_v27  ;;  %vm11654_vm13 = vmmov %vm11650_vm4  ;;  %v11655_v58 = vld [vmem:[#allocation226_spill] sm:$0xff] }
 0x26b   :  { %1314 = vadd.xlane.f32.xlu1 %v1313_v0  ;;  %v3296_v49 = vsel %vm11645_vm12, %v3295_v6, %v3291_v48  ;;  %vm11652_vm12 = vmmov %vm11650_vm4  ;;  %v1153_v0 = vmax.f32 %v11655_v58, %v965_v54  ;;  %v11656_v6 = vld [vmem:[#allocation227_spill] sm:$0xff]  ;;  %v11658_v48 = vld [vmem:[#allocation229_spill] sm:$0xff] }
 0x26c   :  { %1311 = vadd.xlane.f32.xlu0 %v1310_v19  ;;  %v977_v18 = vpop.xlane.xlu1 %976  ;;  %v3457_v9 = vsel %vm3455_vm0, %v3296_v49, %v8662_v51  ;;  %v1325_v7 = vsel %vm11652_vm12, %v11651_v37, 0.0  ;;  %v1322_v51 = vsel %vm11654_vm13, %v11653_v36, 0.0  ;;  %v1152_v22 = vmax.f32 %v11656_v6, %v962_v61  ;;  %v11657_v19 = vld [vmem:[#allocation228_spill] sm:$0xff]  ;;  %vm11664_vm15 = vmmov %vm11662_vm1  ;;  %v11666_v58 = vld [vmem:[#allocation231_spill] sm:$0xff] }
 0x26d   :  { %v974_v41 = vpop.xlane.xlu0 %973  ;;  %v3461_v29 = vpack.c.b16 %v3457_v9, %v3457_v9  ;;  %v1155_v27 = vmax.f32 %v11657_v19, %v971_v31  ;;  %v1154_v49 = vmax.f32 %v11658_v48, %v968_v16  ;;  %v1331_v9 = vsel %vm11660_vm14, %v11659_v63, 0.0  ;;  %v11663_v31 = vld [vmem:[#allocation53_spill] sm:$0xff]  ;;  %v11667_v48 = vld [vmem:[#allocation54_spill] sm:$0xff]  ;;  %vm11668_vm4 = vmmov %vm11662_vm1 }
 0x26e   :  { %v1337_v16 = vsel %vm11664_vm15, %v11663_v31, 0.0  ;;  %v1156_v6 = vmax.f32 %v11666_v58, %v974_v41  ;;  %v1334_v63 = vsel %vm11668_vm4, %v11667_v48, 0.0  ;;  %vm11670_vm12 = vmmov %vm11662_vm1  ;;  %v11675_v48 = vld [vmem:[#allocation232_spill] sm:$0xff] }
 0x26f   :  { %3692 = vmatprep.mubr.bf16.mxu0 %v3461_v29  ;;  %1320 = vadd.xlane.f32.xlu1 %v1319_v17  ;;  %v11661_v29 = vld [vmem:[#allocation52_spill] sm:$0xff]  ;;  %v2513_v54 = vpack.c.bf16 %v1155_v27, %v1154_v49  ;;  %v11669_v27 = vld [vmem:[#allocation55_spill] sm:$0xff]  ;;  %vm11672_vm13 = vmmov %vm11662_vm1 }
 0x270   :  { %1317 = vadd.xlane.f32.xlu0 %v1316_v47  ;;  %3693 = vmatmul.mubr.bf16.vlgmr.msra.gmra.mrb[0].mxu0 %v3460_v38  ;;  %v983_v10 = vpop.xlane.xlu1 %982  ;;  %v1328_v47 = vsel %vm11662_vm1, %v11661_v29, 0.0  ;;  %v2512_v38 = vpack.c.bf16 %v1153_v0, %v1152_v22  ;;  %v1343_v49 = vsel %vm11670_vm12, %v11669_v27, 0.0  ;;  %vm11674_vm14 = vmmov %vm11662_vm1  ;;  %v11676_v27 = vld [vmem:[#allocation233_spill] sm:$0xff] }
 0x271   :  { %v980_v5 = vpop.xlane.xlu0 %979  ;;  %v2761_v0 = vunpack.c.l.b16 %v2513_v54  ;;  %v1159_v36 = vmax.f32 %v11675_v48, %v983_v10  ;;  %vm11679_vm15 = vmmov %vm11662_vm1 }
 0x272   :  { %v2759_v37 = vunpack.c.l.b16 %v2512_v38  ;;  %v2760_v29 = vunpack.c.h.b16 %v2512_v38  ;;  %v11673_v38 = vld [vmem:[#allocation57_spill] sm:$0xff]  ;;  %vm11681_vm4 = vmmov %vm11662_vm1 }
 0x273   :  { %1326 = vadd.xlane.f32.xlu1 %v1325_v7  ;;  %v11665_v7 = vld [vmem:[#allocation230_spill] sm:$0xff]  ;;  %v3309_v31 = vrot.slane %v2761_v0, %v8447_v28  ;;  %v11680_v0 = vld [vmem:[#allocation60_spill] sm:$0xff]  ;;  %vm11687_vm12 = vmmov %vm11662_vm1 }
 0x274   :  { %1323 = vadd.xlane.f32.xlu0 %v1322_v51  ;;  %v9019_v59 = vpop.xlane.xlu1 %988  ;;  %v1157_v51 = vmax.f32 %v11665_v7, %v977_v18  ;;  %v11671_v18 = vld [vmem:[#allocation56_spill] sm:$0xff]  ;;  %v3300_v7 = vrot.slane %v2759_v37, %v8433_v45  ;;  %v3304_v58 = vrot.slane %v2760_v29, %v8436_v25  ;;  %v11677_v37 = vld [vmem:[#allocation58_spill] sm:$0xff]  ;;  %v1352_v10 = vsel %vm11681_vm4, %v11680_v0, 0.0  ;;  %v11685_v0 = vld [vmem:[#allocation243_spill] sm:$0xff] }
 0x275   :  { %v9023_v17 = vpop.xlane.xlu0 %985  ;;  %v1340_v41 = vsel %vm11672_vm13, %v11671_v18, 0.0  ;;  %v1346_v29 = vsel %vm11662_vm1, %v11677_v37, 0.0  ;;  %v11682_v37 = vld [vmem:[#allocation234_spill] sm:$0xff]  ;;  %vm11689_vm13 = vmmov %vm11662_vm1 }
 0x277   :  { %1332 = vadd.xlane.f32.xlu1 %v1331_v9  ;;  %v2514_v9 = vpack.c.bf16 %v1157_v51, %v1156_v6  ;;  %v1158_v51 = vmax.f32 %v11676_v27, %v980_v5 }
 0x278   :  { %1329 = vadd.xlane.f32.xlu0 %v1328_v47  ;;  %v9027_v61 = vpop.xlane.xlu1 %994 }
 0x279   :  { %v9033_v19 = vpop.xlane.xlu0 %991  ;;  %v2763_v44 = vunpack.c.l.b16 %v2514_v9  ;;  %v2764_v27 = vunpack.c.h.b16 %v2514_v9 }
 0x27b   :  { %1338 = vadd.xlane.f32.xlu1 %v1337_v16  ;;  %v1349_v16 = vsel %vm11674_vm14, %v11673_v38, 0.0  ;;  %v11678_v38 = vld [vmem:[#allocation59_spill] sm:$0xff]  ;;  %v3319_v55 = vrot.slane %v2763_v44, %v8460_v35  ;;  %vm11691_vm14 = vmmov %vm11662_vm1  ;;  %vm11692_vm1 = vcmask 261312  }
 0x27c   :  { %1335 = vadd.xlane.f32.xlu0 %v1334_v63  ;;  %v9037_v22 = vpop.xlane.xlu1 %1000  ;;  %v2762_v63 = vunpack.c.h.b16 %v2513_v54  ;;  %v1355_v54 = vsel %vm11679_vm15, %v11678_v38, 0.0  ;;  %v11684_v38 = vld [vmem:[#allocation242_spill] sm:$0xff]  ;;  %vm11695_vm15 = vmmov %vm11681_vm4 }
 0x27d   :  { %v9041_v47 = vpop.xlane.xlu0 %997 }
 0x27e   :  { %v3314_v48 = vrot.slane %v2762_v63, %v8450_v43 }
 0x27f   :  { %1344 = vadd.xlane.f32.xlu1 %v1343_v49  ;;  %v3305_v49 = vsel %vm2802_vm2, %v3304_v58, %v3300_v7  ;;  %v1161_v7 = vmax.f32 %v11682_v37, %v9019_v59  ;;  %v11683_v58 = vld [vmem:[#allocation235_spill] sm:$0xff]  ;;  %v3324_v37 = vrot.slane %v2764_v27, %v8465_v39 }
 0x280   :  { %1341 = vadd.xlane.f32.xlu0 %v1340_v41  ;;  %v9052_v6 = vpop.xlane.xlu1 %1006  ;;  %v3310_v5 = vsel %vm2809_vm3, %v3309_v31, %v3305_v49  ;;  %v2515_v41 = vpack.c.bf16 %v1159_v36, %v1158_v51  ;;  %v11686_v31 = vld [vmem:[#allocation61_spill] sm:$0xff]  ;;  %v11688_v36 = vld [vmem:[#allocation62_spill] sm:$0xff]  ;;  %v11690_v51 = vld [vmem:[#allocation63_spill] sm:$0xff] }
 0x281   :  { %v9054_v18 = vpop.xlane.xlu0 %1003  ;;  %v1361_v9 = vsel %vm11687_vm12, %v11686_v31, 0.0  ;;  %v1358_v63 = vsel %vm11689_vm13, %v11688_v36, 0.0  ;;  %v1367_v44 = vsel %vm11691_vm14, %v11690_v51, 0.0  ;;  %v3315_v59 = vsel %vm11692_vm1, %v3314_v48, %v3310_v5  ;;  %v11693_v49 = vld [vmem:[#allocation244_spill] sm:$0xff]  ;;  %vm11701_vm12 = vmmov %vm11681_vm4 }
 0x282   :  { %v2766_v36 = vunpack.c.h.b16 %v2515_v41  ;;  %v11697_v48 = vld [vmem:[#allocation236_spill] sm:$0xff]  ;;  %vm11703_vm13 = vmmov %vm11681_vm4 }
 0x283   :  { %1350 = vadd.xlane.f32.xlu1 %v1349_v16  ;;  %v1160_v16 = vmax.f32 %v11683_v58, %v9023_v17  ;;  %v2765_v17 = vunpack.c.l.b16 %v2515_v41  ;;  %v11694_v58 = vld [vmem:[#allocation64_spill] sm:$0xff]  ;;  %v1163_v27 = vmax.f32 %v11697_v48, %v9027_v61  ;;  %vm11709_vm14 = vmmov %vm11681_vm4 }
 0x284   :  { %1347 = vadd.xlane.f32.xlu0 %v1346_v29  ;;  %v1013_v24 = vpop.xlane.xlu1 %1012  ;;  %v1364_v31 = vsel %vm11695_vm15, %v11694_v58, 0.0  ;;  %vm11717_vm15 = vmmov %vm11681_vm4 }
 0x285   :  { %v1169_v20 = vmax.f32 %v11684_v38, %v1013_v24  ;;  %v1010_v32 = vpop.xlane.xlu0 %1009  ;;  %v2516_v38 = vpack.c.bf16 %v1161_v7, %v1160_v16  ;;  %v11700_v7 = vld [vmem:[#allocation66_spill] sm:$0xff]  ;;  %v3329_v41 = vrot.slane %v2765_v17, %v8473_v53 }
 0x286   :  { %v1168_v42 = vmax.f32 %v11685_v0, %v1010_v32  ;;  %v3320_v32 = vsel %vm2823_vm5, %v3319_v55, %v3315_v59  ;;  %v11699_v55 = vld [vmem:[#allocation65_spill] sm:$0xff]  ;;  %v1370_v16 = vsel %vm11701_vm12, %v11700_v7, 0.0  ;;  %vm11722_vm12 = vmmov %vm11681_vm4 }
 0x287   :  { %1356 = vadd.xlane.f32.xlu1 %v1355_v54  ;;  %v3325_v59 = vsel %vm2830_vm6, %v3324_v37, %v3320_v32  ;;  %v11705_v32 = vld [vmem:[#allocation247_spill] sm:$0xff] }
 0x288   :  { %v2520_v29 = vpack.c.bf16 %v1169_v20, %v1168_v42  ;;  %1353 = vadd.xlane.f32.xlu0 %v1352_v10  ;;  %v1019_v24 = vpop.xlane.xlu1 %1018  ;;  %v11698_v42 = vld [vmem:[#allocation237_spill] sm:$0xff]  ;;  %v1373_v10 = vsel %vm11681_vm4, %v11699_v55, 0.0  ;;  %v3334_v55 = vrot.slane %v2766_v36, %v8479_v40 }
 0x289   :  { %v1171_v54 = vmax.f32 %v11693_v49, %v1019_v24  ;;  %v1016_v0 = vpop.xlane.xlu0 %1015  ;;  %v1162_v20 = vmax.f32 %v11698_v42, %v9033_v19  ;;  %v11702_v24 = vld [vmem:[#allocation67_spill] sm:$0xff]  ;;  %v2767_v49 = vunpack.c.l.b16 %v2516_v38 }
 0x28a   :  { %v2775_v26 = vunpack.c.l.b16 %v2520_v29  ;;  %v2776_v51 = vunpack.c.h.b16 %v2520_v29  ;;  %v1170_v5 = vmax.f32 %v11696_v8, %v1016_v0  ;;  %v1379_v61 = vsel %vm11703_vm13, %v11702_v24, 0.0  ;;  %v11704_v0 = vld [vmem:[#allocation246_spill] sm:$0xff]  ;;  %v11707_v24 = vld [vmem:[#allocation239_spill] sm:$0xff]  ;;  %vm11725_vm13 = vmmov %vm11681_vm4 }
 0x28b   :  { %1362 = vadd.xlane.f32.xlu1 %v1361_v9  ;;  %v1164_v56 = vmax.f32 %v11707_v24, %v9041_v47 }
 0x28c   :  { %v2521_v29 = vpack.c.bf16 %v1171_v54, %v1170_v5  ;;  %1359 = vadd.xlane.f32.xlu0 %v1358_v63  ;;  %v1025_v8 = vpop.xlane.xlu1 %1024  ;;  %v3379_v19 = vrot.slane %v2775_v26, %v8433_v45  ;;  %v3383_v9 = vrot.slane %v2776_v51, %v8436_v25  ;;  %v2768_v54 = vunpack.c.h.b16 %v2516_v38  ;;  %v11706_v5 = vld [vmem:[#allocation238_spill] sm:$0xff] }
 0x28d   :  { %v1173_v48 = vmax.f32 %v11704_v0, %v1025_v8  ;;  %v1022_v42 = vpop.xlane.xlu0 %1021  ;;  %v2517_v63 = vpack.c.bf16 %v1163_v27, %v1162_v20  ;;  %v1165_v58 = vmax.f32 %v11706_v5, %v9037_v22  ;;  %v3330_v26 = vsel %vm2837_vm7, %v3329_v41, %v3325_v59  ;;  %v11708_v0 = vld [vmem:[#allocation68_spill] sm:$0xff] }
 0x28e   :  { %v2777_v7 = vunpack.c.l.b16 %v2521_v29  ;;  %v2778_v37 = vunpack.c.h.b16 %v2521_v29  ;;  %v1172_v17 = vmax.f32 %v11705_v32, %v1022_v42  ;;  %v1376_v29 = vsel %vm11709_vm14, %v11708_v0, 0.0  ;;  %v11710_v20 = vld [vmem:[#allocation248_spill] sm:$0xff] }
 0x28f   :  { %1368 = vadd.xlane.f32.xlu1 %v1367_v44  ;;  %v3339_v38 = vrot.slane %v2767_v49, %v8494_v30  ;;  %v3384_v27 = vsel %vm2802_vm2, %v3383_v9, %v3379_v19  ;;  %v2769_v32 = vunpack.c.l.b16 %v2517_v63  ;;  %v11712_v49 = vld [vmem:[#allocation240_spill] sm:$0xff]  ;;  %v11713_v9 = vld [vmem:[#allocation241_spill] sm:$0xff]  ;;  %vm11727_vm14 = vcmask 786112  }
 0x290   :  { %v3388_v51 = vrot.slane %v2777_v7, %v8447_v28  ;;  %v2522_v8 = vpack.c.bf16 %v1173_v48, %v1172_v17  ;;  %1365 = vadd.xlane.f32.xlu0 %v1364_v31  ;;  %v1031_v36 = vpop.xlane.xlu1 %1030  ;;  %v3393_v22 = vrot.slane %v2778_v37, %v8450_v43  ;;  %v11711_v7 = vld [vmem:[#allocation249_spill] sm:$0xff]  ;;  %v3335_v31 = vsel %vm2844_vm8, %v3334_v55, %v3330_v26  ;;  %v11714_v26 = vld [vmem:[#allocation250_spill] sm:$0xff] }
 0x291   :  { %v1175_v42 = vmax.f32 %v11710_v20, %v1031_v36  ;;  %v1028_v47 = vpop.xlane.xlu0 %1027  ;;  %v3344_v48 = vrot.slane %v2768_v54, %v8501_v34  ;;  %v2518_v17 = vpack.c.bf16 %v1165_v58, %v1164_v56  ;;  %v1167_v19 = vmax.f32 %v11712_v49, %v9052_v6  ;;  %v11715_v20 = vld [vmem:[#allocation251_spill] sm:$0xff] }
 0x292   :  { %v3389_v44 = vsel %vm2809_vm3, %v3388_v51, %v3384_v27  ;;  %v2779_v59 = vunpack.c.l.b16 %v2522_v8  ;;  %v2780_v41 = vunpack.c.h.b16 %v2522_v8  ;;  %v1174_v24 = vmax.f32 %v11711_v7, %v1028_v47 }
 0x293   :  { %1374 = vadd.xlane.f32.xlu1 %v1373_v10  ;;  %v1166_v37 = vmax.f32 %v11713_v9, %v9054_v18  ;;  %v3340_v36 = vsel %vm2851_vm9, %v3339_v38, %v3335_v31  ;;  %v3394_v55 = vsel %vm11692_vm1, %v3393_v22, %v3389_v44  ;;  %v2770_v47 = vunpack.c.h.b16 %v2517_v63  ;;  %vm11729_vm1 = vmmov %vm11681_vm4 }
 0x294   :  { %v3398_v5 = vrot.slane %v2779_v59, %v8460_v35  ;;  %v2523_v51 = vpack.c.bf16 %v1175_v42, %v1174_v24  ;;  %1371 = vadd.xlane.f32.xlu0 %v1370_v16  ;;  %v1037_v8 = vpop.xlane.xlu1 %1036  ;;  %v3403_v54 = vrot.slane %v2780_v41, %v8465_v39  ;;  %v3349_v42 = vrot.slane %v2769_v32, %v8508_v50  ;;  %v11716_v16 = vld [vmem:[#allocation69_spill] sm:$0xff]  ;;  %v11718_v59 = vld [vmem:[#allocation70_spill] sm:$0xff] }
 0x295   :  { %v1177_v56 = vmax.f32 %v11714_v26, %v1037_v8  ;;  %v1034_v58 = vpop.xlane.xlu0 %1033  ;;  %v1385_v38 = vsel %vm11717_vm15, %v11716_v16, 0.0  ;;  %v1382_v22 = vsel %vm11681_vm4, %v11718_v59, 0.0  ;;  %v2771_v44 = vunpack.c.l.b16 %v2518_v17  ;;  %v11720_v26 = vld [vmem:[#allocation253_spill] sm:$0xff]  ;;  %vm11733_vm4 = vmmov %vm11729_vm1 }
 0x296   :  { %v3399_v10 = vsel %vm2823_vm5, %v3398_v5, %v3394_v55  ;;  %v2781_v6 = vunpack.c.l.b16 %v2523_v51  ;;  %v2782_v27 = vunpack.c.h.b16 %v2523_v51  ;;  %v1176_v18 = vmax.f32 %v11715_v20, %v1034_v58 }
 0x297   :  { %1380 = vadd.xlane.f32.xlu1 %v1379_v61  ;;  %v2519_v41 = vpack.c.bf16 %v1167_v19, %v1166_v37  ;;  %v3345_v49 = vsel %vm2858_vm10, %v3344_v48, %v3340_v36  ;;  %v3404_v63 = vsel %vm2830_vm6, %v3403_v54, %v3399_v10  ;;  %v11719_v61 = vld [vmem:[#allocation252_spill] sm:$0xff]  ;;  %v11721_v48 = vld [vmem:[#allocation71_spill] sm:$0xff]  ;;  %v3359_v54 = vrot.slane %v2771_v44, %v8536_v57 }
 0x298   :  { %v3408_v7 = vrot.slane %v2781_v6, %v8473_v53  ;;  %v2524_v24 = vpack.c.bf16 %v1177_v56, %v1176_v18  ;;  %1377 = vadd.xlane.f32.xlu0 %v1376_v29  ;;  %v1043_v31 = vpop.xlane.xlu1 %1042  ;;  %v3413_v32 = vrot.slane %v2782_v27, %v8479_v40  ;;  %v3350_v37 = vsel %vm11150_vm11, %v3349_v42, %v3345_v49  ;;  %v11723_v42 = vld [vmem:[#allocation254_spill] sm:$0xff]  ;;  %v11726_v49 = vld [vmem:[#allocation255_spill] sm:$0xff] }
 0x299   :  { %v1179_v9 = vmax.f32 %v11719_v61, %v1043_v31  ;;  %v1040_v5 = vpop.xlane.xlu0 %1039  ;;  %v3354_v29 = vrot.slane %v2770_v47, %v8518_v1  ;;  %v2772_v56 = vunpack.c.h.b16 %v2518_v17  ;;  %v1391_v36 = vsel %vm11722_vm12, %v11721_v48, 0.0  ;;  %v11724_v17 = vld [vmem:[#allocation72_spill] sm:$0xff] }
 0x29a   :  { %v3409_v51 = vsel %vm2837_vm7, %v3408_v7, %v3404_v63  ;;  %v2783_v8 = vunpack.c.l.b16 %v2524_v24  ;;  %v2784_v55 = vunpack.c.h.b16 %v2524_v24  ;;  %v1178_v19 = vmax.f32 %v11720_v26, %v1040_v5 }
 0x29b   :  { %1386 = vadd.xlane.f32.xlu1 %v1385_v38  ;;  %v2773_v58 = vunpack.c.l.b16 %v2519_v41  ;;  %v3414_v20 = vsel %vm2844_vm8, %v3413_v32, %v3409_v51  ;;  %v1388_v38 = vsel %vm11725_vm13, %v11724_v17, 0.0  ;;  %v3355_v61 = vsel %vm11727_vm14, %v3354_v29, %v3350_v37  ;;  %v11728_v32 = vld [vmem:[#allocation73_spill] sm:$0xff]  ;;  %v11731_v29 = vld [vmem:[#allocation256_spill] sm:$0xff]  ;;  %vm11737_vm13 = vmmov %vm11729_vm1 }
 0x29c   :  { %v3418_v10 = vrot.slane %v2783_v8, %v8494_v30  ;;  %v2525_v6 = vpack.c.bf16 %v1179_v9, %v1178_v19  ;;  %1383 = vadd.xlane.f32.xlu0 %v1382_v22  ;;  %v1049_v27 = vpop.xlane.xlu1 %1048  ;;  %v3423_v18 = vrot.slane %v2784_v55, %v8501_v34  ;;  %v3364_v22 = vrot.slane %v2772_v56, %v8539_v13  ;;  %v11916_v17 = vld [vmem:[#allocation41_spill] sm:$0xff] }
 0x29d   :  { %v1181_v7 = vmax.f32 %v11723_v42, %v1049_v27  ;;  %v1046_v47 = vpop.xlane.xlu0 %1045  ;;  %v2774_v9 = vunpack.c.h.b16 %v2519_v41  ;;  %v1397_v5 = vsel %vm11729_vm1, %v11728_v32, 0.0  ;;  %vm11730_vm15 = vcmask 851712  }
 0x29e   :  { %v3419_v24 = vsel %vm2851_vm9, %v3418_v10, %v3414_v20  ;;  %v2785_v31 = vunpack.c.l.b16 %v2525_v6  ;;  %v2786_v44 = vunpack.c.h.b16 %v2525_v6  ;;  %v1180_v63 = vmax.f32 %v11726_v49, %v1046_v47 }
 0x29f   :  { %1392 = vadd.xlane.f32.xlu1 %v1391_v36  ;;  %v3360_v51 = vsel %vm11730_vm15, %v3359_v54, %v3355_v61  ;;  %v3369_v8 = vrot.slane %v2773_v58, %v8551_v60  ;;  %v3424_v10 = vsel %vm2858_vm10, %v3423_v18, %v3419_v24  ;;  %v11732_v36 = vld [vmem:[#allocation74_spill] sm:$0xff]  ;;  %v11734_v58 = vld [vmem:[#allocation257_spill] sm:$0xff]  ;;  %vm11735_vm12 = vcmask 917312  }
 0x2a0   :  { %v3428_v55 = vrot.slane %v2785_v31, %v8508_v50  ;;  %v2526_v26 = vpack.c.bf16 %v1181_v7, %v1180_v63  ;;  %1389 = vadd.xlane.f32.xlu0 %v1388_v38  ;;  %v1055_v19 = vpop.xlane.xlu1 %1054  ;;  %v3433_v37 = vrot.slane %v2786_v44, %v8518_v1  ;;  %v1394_v6 = vsel %vm11733_vm4, %v11732_v36, 0.0  ;;  %v11736_v31 = vld [vmem:[#allocation75_spill] sm:$0xff] }
 0x2a1   :  { %v1183_v56 = vmax.f32 %v11731_v29, %v1055_v19  ;;  %v1052_v41 = vpop.xlane.xlu0 %1051  ;;  %v3374_v7 = vrot.slane %v2774_v9, %v8554_v15  ;;  %v3365_v47 = vsel %vm11735_vm12, %v3364_v22, %v3360_v51  ;;  %v1403_v44 = vsel %vm11737_vm13, %v11736_v31, 0.0  ;;  %vm11743_vm12 = vmmov %vm11729_vm1 }
 0x2a2   :  { %v3429_v27 = vsel %vm11150_vm11, %v3428_v55, %v3424_v10  ;;  %v2787_v54 = vunpack.c.l.b16 %v2526_v26  ;;  %v2788_v20 = vunpack.c.h.b16 %v2526_v26  ;;  %v1182_v42 = vmax.f32 %v11734_v58, %v1052_v41  ;;  %v11739_v55 = vld [vmem:[#allocation76_spill] sm:$0xff]  ;;  %v11742_v10 = vld [vmem:[#allocation79_spill] sm:$0xff] }
 0x2a3   :  { %1398 = vadd.xlane.f32.xlu1 %v1397_v5  ;;  %vm11738_vm14 = vcmask 982912   ;;  %v1400_v26 = vsel %vm11729_vm1, %v11739_v55, 0.0  ;;  %vm11740_vm15 = vcmask 786112   ;;  %vm11741_vm4 = vcmask 851712  }
 0x2a4   :  { %v3438_v18 = vrot.slane %v2787_v54, %v8536_v57  ;;  %v2527_v38 = vpack.c.bf16 %v1183_v56, %v1182_v42  ;;  %1395 = vadd.xlane.f32.xlu0 %v1394_v6  ;;  %v1189_v24 = vpop.xlane.xlu1 %1188  ;;  %v3370_v49 = vsel %vm11738_vm14, %v3369_v8, %v3365_v47  ;;  %v3443_v63 = vrot.slane %v2788_v20, %v8539_v13  ;;  %vm11746_vm14 = vmmov %vm11729_vm1 }
 0x2a5   :  { %v1186_v61 = vpop.xlane.xlu0 %1185  ;;  %v3434_v9 = vsel %vm11740_vm15, %v3433_v37, %v3429_v27  ;;  %v1409_v29 = vsel %vm11743_vm12, %v11742_v10, 0.0  ;;  %vm11744_vm13 = vcmask 1048512   ;;  %v11745_v27 = vld [vmem:[#allocation80_spill] sm:$0xff]  ;;  %vm11747_vm1 = vcmask 917312  }
 0x2a6   :  { %v2789_v5 = vunpack.c.l.b16 %v2527_v38  ;;  %v2790_v22 = vunpack.c.h.b16 %v2527_v38  ;;  %v3741_v51 = vpack.c.bf16 %v1189_v24, %v1186_v61  ;;  %v3439_v19 = vsel %vm11741_vm4, %v3438_v18, %v3434_v9  ;;  %vm11749_vm4 = vmmov %vm11744_vm13  ;;  %v11750_v9 = vld [vmem:[#allocation83_spill] sm:$0xff] }
 0x2a7   :  { %1404 = vadd.xlane.f32.xlu1 %v1403_v44  ;;  %v3375_v56 = vsel %vm11744_vm13, %v3374_v7, %v3370_v49  ;;  %v1406_v58 = vsel %vm11746_vm14, %v11745_v27, 0.0  ;;  %v3444_v42 = vsel %vm11747_vm1, %v3443_v63, %v3439_v19  ;;  %vm11748_vm15 = vcmask 982912   ;;  %v11751_v19 = vld [vmem:[#allocation84_spill] sm:$0xff]  ;;  %vm11752_vm13 = vmmov %vm11743_vm12  ;;  %v11893_v27 = vld [vmem:[#allocation17_spill] sm:$0xff] }
 0x2a8   :  { %v3448_v8 = vrot.slane %v2789_v5, %v8551_v60  ;;  %v3942_v41 = vunpack.c.l.b16 %v3741_v51  ;;  %v3943_v6 = vunpack.c.h.b16 %v3741_v51  ;;  %1401 = vadd.xlane.f32.xlu0 %v1400_v26  ;;  %v1195_v54 = vpop.xlane.xlu1 %1194  ;;  %v3453_v20 = vrot.slane %v2790_v22, %v8554_v15  ;;  %vm11754_vm14 = vmmov %vm11743_vm12 }
 0x2a9   :  { %v1192_v37 = vpop.xlane.xlu0 %1191  ;;  %v3458_v44 = vsel %vm3455_vm0, %v3375_v56, %v8739_v33  ;;  %v1415_v5 = vsel %vm11743_vm12, %v11750_v9, 0.0  ;;  %vm11755_vm1 = vcmask 261312  }
 0x2aa   :  { %v3742_v47 = vpack.c.bf16 %v1195_v54, %v1192_v37  ;;  %v3449_v18 = vsel %vm11748_vm15, %v3448_v8, %v3444_v42  ;;  %v4073_v38 = vrot.slane %v3942_v41, %v8433_v45  ;;  %v4077_v7 = vrot.slane %v3943_v6, %v8436_v25  ;;  %vm11757_vm15 = vmmov %vm11743_vm12 }
 0x2ab   :  { %1410 = vadd.xlane.f32.xlu1 %v1409_v29  ;;  %v3454_v24 = vsel %vm11749_vm4, %v3453_v20, %v3449_v18  ;;  %v1412_v29 = vsel %vm11752_vm13, %v11751_v19, 0.0  ;;  %v3462_v56 = vpack.c.b16 %v3458_v44, %v3458_v44  ;;  %vm11759_vm4 = vmmov %vm11743_vm12  ;;  %v11778_v19 = vld [vmem:[#allocation108_spill] sm:$0xff] }
 0x2ac   :  { %v3944_v49 = vunpack.c.l.b16 %v3742_v47  ;;  %v3945_v61 = vunpack.c.h.b16 %v3742_v47  ;;  %1407 = vadd.xlane.f32.xlu0 %v1406_v58  ;;  %v1201_v26 = vpop.xlane.xlu1 %1200  ;;  %v3459_v63 = vsel %vm3455_vm0, %v3454_v24, %v8816_v23  ;;  %v4078_v6 = vsel %vm2802_vm2, %v4077_v7, %v4073_v38  ;;  %v11753_v58 = vld [vmem:[#allocation87_spill] sm:$0xff]  ;;  %v11756_v24 = vld [vmem:[#allocation88_spill] sm:$0xff]  ;;  %vm11761_vm12 = vmmov %vm11759_vm4 }
 0x2ad   :  { %v1198_v22 = vpop.xlane.xlu0 %1197  ;;  %v3463_v51 = vpack.c.b16 %v3459_v63, %v3459_v63  ;;  %v1421_v42 = vsel %vm11754_vm14, %v11753_v58, 0.0  ;;  %v1418_v44 = vsel %vm11757_vm15, %v11756_v24, 0.0  ;;  %vm11763_vm13 = vmmov %vm11759_vm4  ;;  %v11773_v24 = vld [vmem:[#allocation104_spill] sm:$0xff] }
 0x2ae   :  { %v4082_v8 = vrot.slane %v3944_v49, %v8447_v28  ;;  %v4087_v41 = vrot.slane %v3945_v61, %v8450_v43  ;;  %v3743_v33 = vpack.c.bf16 %v1201_v26, %v1198_v22  ;;  %v11758_v22 = vld [vmem:[#allocation91_spill] sm:$0xff]  ;;  %vm11765_vm14 = vmmov %vm11759_vm4 }
 0x2af   :  { %3732 = vmatprep.mubr.bf16.mxu1 %v3463_v51  ;;  %1416 = vadd.xlane.f32.xlu1 %v1415_v5  ;;  %v1427_v51 = vsel %vm11759_vm4, %v11758_v22, 0.0  ;;  %v11850_v22 = vld [vmem:[#allocation167_spill] sm:$0xff] }
 0x2b0   :  { %v4083_v23 = vsel %vm2809_vm3, %v4082_v8, %v4078_v6  ;;  %v3946_v54 = vunpack.c.l.b16 %v3743_v33  ;;  %v3947_v20 = vunpack.c.h.b16 %v3743_v33  ;;  %1413 = vadd.xlane.f32.xlu0 %v1412_v29  ;;  %3733 = vmatmul.mubr.bf16.vlgmr.msra.gmra.mrb[0].mxu1 %v3462_v56  ;;  %v1207_v37 = vpop.xlane.xlu1 %1206 }
 0x2b1   :  { %v4088_v47 = vsel %vm11755_vm1, %v4087_v41, %v4083_v23  ;;  %v1204_v18 = vpop.xlane.xlu0 %1203  ;;  %v11760_v41 = vld [vmem:[#allocation92_spill] sm:$0xff]  ;;  %vm11767_vm1 = vmmov %vm11759_vm4 }
 0x2b2   :  { %v4092_v38 = vrot.slane %v3946_v54, %v8460_v35  ;;  %v4097_v7 = vrot.slane %v3947_v20, %v8465_v39  ;;  %v3744_v49 = vpack.c.bf16 %v1207_v37, %v1204_v18  ;;  %v1424_v33 = vsel %vm11761_vm12, %v11760_v41, 0.0  ;;  %vm11769_vm15 = vmmov %vm11767_vm1 }
 0x2b3   :  { %1422 = vadd.xlane.f32.xlu1 %v1421_v42  ;;  %vm11771_vm4 = vmmov %vm11767_vm1  ;;  %vm11772_vm12 = vcmask 786112  }
 0x2b4   :  { %v4093_v61 = vsel %vm2823_vm5, %v4092_v38, %v4088_v47  ;;  %v3948_v26 = vunpack.c.l.b16 %v3744_v49  ;;  %v3949_v63 = vunpack.c.h.b16 %v3744_v49  ;;  %1419 = vadd.xlane.f32.xlu0 %v1418_v44  ;;  %v1213_v5 = vpop.xlane.xlu1 %1212  ;;  %v11762_v47 = vld [vmem:[#allocation95_spill] sm:$0xff] }
 0x2b5   :  { %v4098_v29 = vsel %vm2830_vm6, %v4097_v7, %v4093_v61  ;;  %v1210_v8 = vpop.xlane.xlu0 %1209  ;;  %v1433_v18 = vsel %vm11763_vm13, %v11762_v47, 0.0  ;;  %v11764_v7 = vld [vmem:[#allocation96_spill] sm:$0xff]  ;;  %vm11774_vm13 = vmmov %vm11767_vm1  ;;  %v11845_v47 = vld [vmem:[#allocation163_spill] sm:$0xff] }
 0x2b6   :  { %v4102_v56 = vrot.slane %v3948_v26, %v8473_v53  ;;  %v4107_v6 = vrot.slane %v3949_v63, %v8479_v40  ;;  %v3745_v23 = vpack.c.bf16 %v1213_v5, %v1210_v8  ;;  %v1430_v49 = vsel %vm11765_vm14, %v11764_v7, 0.0 }
 0x2b7   :  { %1428 = vadd.xlane.f32.xlu1 %v1427_v51  ;;  %v1442_v9 = vsel %vm11774_vm13, %v11773_v24, 0.0  ;;  %vm11775_vm14 = vcmask 851712   ;;  %vm11782_vm13 = vmmov %vm11767_vm1 }
 0x2b8   :  { %v4103_v54 = vsel %vm2837_vm7, %v4102_v56, %v4098_v29  ;;  %v3950_v20 = vunpack.c.l.b16 %v3745_v23  ;;  %v3951_v37 = vunpack.c.h.b16 %v3745_v23  ;;  %1425 = vadd.xlane.f32.xlu0 %v1424_v33  ;;  %v1219_v42 = vpop.xlane.xlu1 %1218  ;;  %v11766_v33 = vld [vmem:[#allocation99_spill] sm:$0xff] }
 0x2b9   :  { %v4108_v44 = vsel %vm2844_vm8, %v4107_v6, %v4103_v54  ;;  %v1216_v38 = vpop.xlane.xlu0 %1215  ;;  %v1439_v56 = vsel %vm11767_vm1, %v11766_v33, 0.0  ;;  %v11768_v54 = vld [vmem:[#allocation100_spill] sm:$0xff]  ;;  %v11839_v33 = vld [vmem:[#allocation159_spill] sm:$0xff] }
 0x2ba   :  { %v4112_v61 = vrot.slane %v3950_v20, %v8494_v30  ;;  %v4117_v26 = vrot.slane %v3951_v37, %v8501_v34  ;;  %v3746_v63 = vpack.c.bf16 %v1219_v42, %v1216_v38  ;;  %v1436_v58 = vsel %vm11769_vm15, %v11768_v54, 0.0 }
 0x2bb   :  { %1434 = vadd.xlane.f32.xlu1 %v1433_v18  ;;  %vm11777_vm15 = vcmask 917312  }
 0x2bc   :  { %v4113_v5 = vsel %vm2851_vm9, %v4112_v61, %v4108_v44  ;;  %v3952_v51 = vunpack.c.l.b16 %v3746_v63  ;;  %v3953_v29 = vunpack.c.h.b16 %v3746_v63  ;;  %1431 = vadd.xlane.f32.xlu0 %v1430_v49  ;;  %v1225_v8 = vpop.xlane.xlu1 %1224  ;;  %v11770_v61 = vld [vmem:[#allocation103_spill] sm:$0xff] }
 0x2bd   :  { %v4118_v6 = vsel %vm2858_vm10, %v4117_v26, %v4113_v5  ;;  %v1222_v23 = vpop.xlane.xlu0 %1221  ;;  %v1445_v63 = vsel %vm11771_vm4, %v11770_v61, 0.0  ;;  %vm11779_vm4 = vmmov %vm11767_vm1  ;;  %v7163_v61 = vld [vmem:[#allocation2 + $0x140] sm:$0xff]  }
 0x2be   :  { %v4122_v20 = vrot.slane %v3952_v51, %v8508_v50  ;;  %v4127_v37 = vrot.slane %v3953_v29, %v8518_v1  ;;  %v3747_v42 = vpack.c.bf16 %v1225_v8, %v1222_v23  ;;  %v1448_v10 = vsel %vm11779_vm4, %v11778_v19, 0.0  ;;  %6716 = vmatprep.subr.bf16.mxu0 %v7163_v61 }
 0x2bf   :  { %1440 = vadd.xlane.f32.xlu1 %v1439_v56 }
 0x2c0   :  { %v4123_v18 = vsel %vm11150_vm11, %v4122_v20, %v4118_v6  ;;  %v3954_v44 = vunpack.c.l.b16 %v3747_v42  ;;  %v3955_v38 = vunpack.c.h.b16 %v3747_v42  ;;  %1437 = vadd.xlane.f32.xlu0 %v1436_v58  ;;  %v1231_v49 = vpop.xlane.xlu1 %1230  ;;  %v11776_v20 = vld [vmem:[#allocation107_spill] sm:$0xff] }
 0x2c1   :  { %v4128_v26 = vsel %vm11772_vm12, %v4127_v37, %v4123_v18  ;;  %v1228_v5 = vpop.xlane.xlu0 %1227  ;;  %v1451_v42 = vsel %vm11767_vm1, %v11776_v20, 0.0  ;;  %vm11780_vm12 = vcmask 982912  }
 0x2c2   :  { %v4132_v51 = vrot.slane %v3954_v44, %v8536_v57  ;;  %v4137_v29 = vrot.slane %v3955_v38, %v8539_v13  ;;  %v3748_v8 = vpack.c.bf16 %v1231_v49, %v1228_v5 }
 0x2c3   :  { %1446 = vadd.xlane.f32.xlu1 %v1445_v63 }
 0x2c4   :  { %v4133_v56 = vsel %vm11775_vm14, %v4132_v51, %v4128_v26  ;;  %v3956_v6 = vunpack.c.l.b16 %v3748_v8  ;;  %v3957_v58 = vunpack.c.h.b16 %v3748_v8  ;;  %1443 = vadd.xlane.f32.xlu0 %v1442_v9  ;;  %v1237_v23 = vpop.xlane.xlu1 %1236  ;;  %v11781_v51 = vld [vmem:[#allocation111_spill] sm:$0xff]  ;;  %vm11784_vm14 = vmmov %vm11767_vm1  ;;  %vm11785_vm1 = vcmask 1048512  }
 0x2c5   :  { %v4138_v37 = vsel %vm11777_vm15, %v4137_v29, %v4133_v56  ;;  %v1234_v18 = vpop.xlane.xlu0 %1233  ;;  %v1457_v8 = vsel %vm11782_vm13, %v11781_v51, 0.0  ;;  %v11783_v56 = vld [vmem:[#allocation112_spill] sm:$0xff]  ;;  %vm11788_vm15 = vmmov %vm11779_vm4  ;;  %vm11792_vm13 = vcmask 261312  }
 0x2c6   :  { %v4142_v44 = vrot.slane %v3956_v6, %v8551_v60  ;;  %v4147_v38 = vrot.slane %v3957_v58, %v8554_v15  ;;  %v3749_v49 = vpack.c.bf16 %v1237_v23, %v1234_v18  ;;  %v1454_v20 = vsel %vm11784_vm14, %v11783_v56, 0.0  ;;  %v11787_v18 = vld [vmem:[#allocation115_spill] sm:$0xff]  ;;  %v11789_v51 = vld [vmem:[#allocation116_spill] sm:$0xff]  ;;  %vm11794_vm14 = vmmov %vm11779_vm4 }
 0x2c7   :  { %1452 = vadd.xlane.f32.xlu1 %v1451_v42  ;;  %v1460_v56 = vsel %vm11779_vm4, %v11789_v51, 0.0 }
 0x2c8   :  { %v4143_v63 = vsel %vm11780_vm12, %v4142_v44, %v4138_v37  ;;  %v3958_v26 = vunpack.c.l.b16 %v3749_v49  ;;  %v3959_v9 = vunpack.c.h.b16 %v3749_v49  ;;  %1449 = vadd.xlane.f32.xlu0 %v1448_v10  ;;  %v1243_v5 = vpop.xlane.xlu1 %1242  ;;  %v1463_v44 = vsel %vm11788_vm15, %v11787_v18, 0.0  ;;  %v11790_v18 = vld [vmem:[#allocation119_spill] sm:$0xff]  ;;  %vm11791_vm12 = vmmov %vm11779_vm4 }
 0x2c9   :  { %v1240_v29 = vpop.xlane.xlu0 %1239  ;;  %v9256_v19 = vsel %vm11785_vm1, %v4147_v38, %v4143_v63  ;;  %v1469_v51 = vsel %vm11791_vm12, %v11790_v18, 0.0  ;;  %vm11796_vm1 = vmmov %vm11779_vm4 }
 0x2ca   :  { %11786 = vst [vmem:[#allocation93_spill] sm:$0xff] %v9256_v19  ;;  %v3750_v6 = vpack.c.bf16 %v1243_v5, %v1240_v29  ;;  %v4152_v58 = vrot.slane %v3958_v26, %v8433_v45  ;;  %v4156_v23 = vrot.slane %v3959_v9, %v8436_v25  ;;  %v7164_v5 = vld [vmem:[#allocation2 + $0x100] sm:$0xff]   ;;  %vm11798_vm15 = vmmov %vm11796_vm1 }
 0x2cb   :  { %1458 = vadd.xlane.f32.xlu1 %v1457_v8  ;;  %6717 = vmatpush3.bf16.msra.mxu0 %v7164_v5  ;;  %vm11800_vm4 = vmmov %vm11796_vm1 }
 0x2cc   :  { %v3960_v42 = vunpack.c.l.b16 %v3750_v6  ;;  %v3961_v37 = vunpack.c.h.b16 %v3750_v6  ;;  %1455 = vadd.xlane.f32.xlu0 %v1454_v20  ;;  %v1249_v10 = vpop.xlane.xlu1 %1248  ;;  %v4157_v9 = vsel %vm2802_vm2, %v4156_v23, %v4152_v58  ;;  %vm11802_vm12 = vmmov %vm11796_vm1 }
 0x2cd   :  { %v1246_v49 = vpop.xlane.xlu0 %1245 }
 0x2ce   :  { %v4161_v38 = vrot.slane %v3960_v42, %v8447_v28  ;;  %v4166_v63 = vrot.slane %v3961_v37, %v8450_v43  ;;  %v3751_v26 = vpack.c.bf16 %v1249_v10, %v1246_v49  ;;  %v11793_v37 = vld [vmem:[#allocation120_spill] sm:$0xff] }
 0x2cf   :  { %1464 = vadd.xlane.f32.xlu1 %v1463_v44  ;;  %v1466_v10 = vsel %vm11794_vm14, %v11793_v37, 0.0  ;;  %v7165_v49 = vld [vmem:[#allocation2 + $0x148] sm:$0xff]   ;;  %vm11806_vm14 = vmmov %vm11796_vm1 }
 0x2d0   :  { %v4162_v20 = vsel %vm2809_vm3, %v4161_v38, %v4157_v9  ;;  %v3962_v8 = vunpack.c.l.b16 %v3751_v26  ;;  %v3963_v29 = vunpack.c.h.b16 %v3751_v26  ;;  %1461 = vadd.xlane.f32.xlu0 %v1460_v56  ;;  %v1255_v6 = vpop.xlane.xlu1 %1254  ;;  %v7166_v44 = vld [vmem:[#allocation2 + $0x108] sm:$0xff]   ;;  %6718 = vmatprep.subr.bf16.mxu0 %v7165_v49  ;;  %v7168_v49 = vld [vmem:[#allocation2 + $0x110] sm:$0xff]  }
 0x2d1   :  { %v4167_v42 = vsel %vm11792_vm13, %v4166_v63, %v4162_v20  ;;  %v1252_v24 = vpop.xlane.xlu0 %1251  ;;  %v11795_v63 = vld [vmem:[#allocation123_spill] sm:$0xff]  ;;  %6719 = vmatpush3.bf16.msra.mxu0 %v7166_v44  ;;  %vm11804_vm13 = vmmov %vm11796_vm1 }
 0x2d2   :  { %v4171_v58 = vrot.slane %v3962_v8, %v8460_v35  ;;  %v4176_v61 = vrot.slane %v3963_v29, %v8465_v39  ;;  %v3752_v23 = vpack.c.bf16 %v1255_v6, %v1252_v24  ;;  %v1475_v9 = vsel %vm11796_vm1, %v11795_v63, 0.0  ;;  %v11797_v8 = vld [vmem:[#allocation124_spill] sm:$0xff]  ;;  %v7167_v24 = vld [vmem:[#allocation2 + $0x150] sm:$0xff]  }
 0x2d3   :  { %1470 = vadd.xlane.f32.xlu1 %v1469_v51  ;;  %v1472_v29 = vsel %vm11798_vm15, %v11797_v8, 0.0  ;;  %6720 = vmatprep.subr.bf16.mxu0 %v7167_v24  ;;  %v7170_v24 = vld [vmem:[#allocation2 + $0x118] sm:$0xff]   ;;  %vm11808_vm15 = vcmask 786112  }
 0x2d4   :  { %v4172_v56 = vsel %vm2823_vm5, %v4171_v58, %v4167_v42  ;;  %v3964_v38 = vunpack.c.l.b16 %v3752_v23  ;;  %v3965_v26 = vunpack.c.h.b16 %v3752_v23  ;;  %1467 = vadd.xlane.f32.xlu0 %v1466_v10  ;;  %v1261_v5 = vpop.xlane.xlu1 %1260 }
 0x2d5   :  { %v4177_v20 = vsel %vm2830_vm6, %v4176_v61, %v4172_v56  ;;  %v1258_v18 = vpop.xlane.xlu0 %1257  ;;  %v11799_v61 = vld [vmem:[#allocation127_spill] sm:$0xff]  ;;  %6721 = vmatpush3.bf16.msra.mxu0 %v7168_v49 }
 0x2d6   :  { %v4181_v51 = vrot.slane %v3964_v38, %v8473_v53  ;;  %v4186_v6 = vrot.slane %v3965_v26, %v8479_v40  ;;  %v3753_v42 = vpack.c.bf16 %v1261_v5, %v1258_v18  ;;  %v1481_v56 = vsel %vm11800_vm4, %v11799_v61, 0.0  ;;  %v11801_v38 = vld [vmem:[#allocation128_spill] sm:$0xff]  ;;  %v7169_v18 = vld [vmem:[#allocation2 + $0x158] sm:$0xff]   ;;  %vm11810_vm4 = vmmov %vm11796_vm1 }
 0x2d7   :  { %1476 = vadd.xlane.f32.xlu1 %v1475_v9  ;;  %v1478_v26 = vsel %vm11802_vm12, %v11801_v38, 0.0  ;;  %6722 = vmatprep.subr.bf16.mxu0 %v7169_v18  ;;  %v7172_v18 = vld [vmem:[#allocation2 + $0x120] sm:$0xff]   ;;  %vm11811_vm12 = vcmask 851712  }
 0x2d8   :  { %v4182_v10 = vsel %vm2837_vm7, %v4181_v51, %v4177_v20  ;;  %v3966_v58 = vunpack.c.l.b16 %v3753_v42  ;;  %v3967_v23 = vunpack.c.h.b16 %v3753_v42  ;;  %1473 = vadd.xlane.f32.xlu0 %v1472_v29  ;;  %v1267_v44 = vpop.xlane.xlu1 %1266 }
 0x2d9   :  { %v4187_v37 = vsel %vm2844_vm8, %v4186_v6, %v4182_v10  ;;  %v1264_v63 = vpop.xlane.xlu0 %1263  ;;  %v11803_v6 = vld [vmem:[#allocation131_spill] sm:$0xff]  ;;  %6723 = vmatpush3.bf16.msra.mxu0 %v7170_v24 }
 0x2da   :  { %v4191_v5 = vrot.slane %v3966_v58, %v8494_v30  ;;  %v4196_v9 = vrot.slane %v3967_v23, %v8501_v34  ;;  %v3754_v20 = vpack.c.bf16 %v1267_v44, %v1264_v63  ;;  %v1487_v10 = vsel %vm11804_vm13, %v11803_v6, 0.0  ;;  %v11805_v58 = vld [vmem:[#allocation132_spill] sm:$0xff]  ;;  %vm11813_vm13 = vmmov %vm11796_vm1 }
 0x2db   :  { %1482 = vadd.xlane.f32.xlu1 %v1481_v56  ;;  %v1484_v23 = vsel %vm11806_vm14, %v11805_v58, 0.0  ;;  %v7171_v63 = vld [vmem:[#allocation2 + $0x160] sm:$0xff]   ;;  %vm11814_vm14 = vcmask 917312  }
 0x2dc   :  { %v4192_v29 = vsel %vm2851_vm9, %v4191_v5, %v4187_v37  ;;  %v3968_v51 = vunpack.c.l.b16 %v3754_v20  ;;  %v3969_v42 = vunpack.c.h.b16 %v3754_v20  ;;  %1479 = vadd.xlane.f32.xlu0 %v1478_v26  ;;  %v1273_v49 = vpop.xlane.xlu1 %1272  ;;  %6724 = vmatprep.subr.bf16.mxu0 %v7171_v63  ;;  %v7174_v63 = vld [vmem:[#allocation2 + $0x128] sm:$0xff]  }
 0x2dd   :  { %v4197_v61 = vsel %vm2858_vm10, %v4196_v9, %v4192_v29  ;;  %v1270_v38 = vpop.xlane.xlu0 %1269  ;;  %v11807_v9 = vld [vmem:[#allocation135_spill] sm:$0xff]  ;;  %6725 = vmatpush3.bf16.msra.mxu0 %v7172_v18 }
 0x2de   :  { %v4201_v44 = vrot.slane %v3968_v51, %v8508_v50  ;;  %v4206_v56 = vrot.slane %v3969_v42, %v8518_v1  ;;  %v3755_v37 = vpack.c.bf16 %v1273_v49, %v1270_v38  ;;  %v1493_v29 = vsel %vm11796_vm1, %v11807_v9, 0.0  ;;  %v11809_v42 = vld [vmem:[#allocation136_spill] sm:$0xff]  ;;  %v7175_v9 = vld [vmem:[#allocation2 + $0x170] sm:$0xff]  }
 0x2df   :  { %1488 = vadd.xlane.f32.xlu1 %v1487_v10  ;;  %v1490_v38 = vsel %vm11810_vm4, %v11809_v42, 0.0  ;;  %v7173_v49 = vld [vmem:[#allocation2 + $0x168] sm:$0xff]   ;;  %vm11820_vm4 = vmmov %vm11796_vm1 }
 0x2e0   :  { %v4202_v26 = vsel %vm11150_vm11, %v4201_v44, %v4197_v61  ;;  %v3970_v5 = vunpack.c.l.b16 %v3755_v37  ;;  %v3971_v20 = vunpack.c.h.b16 %v3755_v37  ;;  %1485 = vadd.xlane.f32.xlu0 %v1484_v23  ;;  %v9300_v24 = vpop.xlane.xlu1 %1278  ;;  %6726 = vmatprep.subr.bf16.mxu0 %v7173_v49  ;;  %v11812_v37 = vld [vmem:[#allocation139_spill] sm:$0xff] }
 0x2e1   :  { %v4207_v6 = vsel %vm11808_vm15, %v4206_v56, %v4202_v26  ;;  %v9305_v51 = vpop.xlane.xlu0 %1275  ;;  %v1499_v56 = vsel %vm11813_vm13, %v11812_v37, 0.0  ;;  %6727 = vmatpush3.bf16.msra.mxu0 %v7174_v63  ;;  %vm11818_vm15 = vmmov %vm11796_vm1  ;;  %v7178_v37 = vld [vmem:[#allocation2 + $0x138] sm:$0xff]  }
 0x2e2   :  { %v4211_v10 = vrot.slane %v3970_v5, %v8536_v57  ;;  %v4216_v61 = vrot.slane %v3971_v20, %v8539_v13  ;;  %v11816_v5 = vld [vmem:[#allocation140_spill] sm:$0xff]  ;;  %6728 = vmatprep.subr.bf16.mxu0 %v7175_v9  ;;  %v11822_v9 = vld [vmem:[#allocation147_spill] sm:$0xff]  ;;  %vm11826_vm13 = vmmov %vm11796_vm1 }
 0x2e3   :  { %1494 = vadd.xlane.f32.xlu1 %v1493_v29  ;;  %v1496_v20 = vsel %vm11796_vm1, %v11816_v5, 0.0  ;;  %v7176_v29 = vld [vmem:[#allocation2 + $0x130] sm:$0xff]  }
 0x2e4   :  { %v4212_v23 = vsel %vm11811_vm12, %v4211_v10, %v4207_v6  ;;  %1491 = vadd.xlane.f32.xlu0 %v1490_v38  ;;  %v9312_v44 = vpop.xlane.xlu1 %1284  ;;  %v11817_v38 = vld [vmem:[#allocation143_spill] sm:$0xff]  ;;  %vm11823_vm12 = vmmov %vm11796_vm1  ;;  %v11932_v13 = vld [vmem:[#allocation57_spill] sm:$0xff] }
 0x2e5   :  { %v9317_v18 = vsel %vm11814_vm14, %v4216_v61, %v4212_v23  ;;  %v9319_v26 = vpop.xlane.xlu0 %1281  ;;  %v1505_v49 = vsel %vm11818_vm15, %v11817_v38, 0.0  ;;  %6729 = vmatpush3.bf16.msra.mxu0 %v7176_v29  ;;  %v11819_v61 = vld [vmem:[#allocation144_spill] sm:$0xff]  ;;  %v7177_v23 = vld [vmem:[#allocation2 + $0x178] sm:$0xff]   ;;  %vm11829_vm14 = vmmov %vm11796_vm1 }
 0x2e6   :  { %11815 = vst [vmem:[#allocation94_spill] sm:$0xff] %v9317_v18  ;;  %v1502_v63 = vsel %vm11820_vm4, %v11819_v61, 0.0  ;;  %6730 = vmatprep.subr.bf16.mxu0 %v7177_v23  ;;  %v11825_v38 = vld [vmem:[#allocation148_spill] sm:$0xff]  ;;  %v11828_v61 = vld [vmem:[#allocation151_spill] sm:$0xff]  ;;  %vm11834_vm15 = vmmov %vm11796_vm1 }
 0x2e7   :  { %1500 = vadd.xlane.f32.xlu1 %v1499_v56  ;;  %v1511_v56 = vsel %vm11823_vm12, %v11822_v9, 0.0  ;;  %v1508_v29 = vsel %vm11826_vm13, %v11825_v38, 0.0  ;;  %v11833_v9 = vld [vmem:[#allocation155_spill] sm:$0xff]  ;;  %vm11837_vm4 = vmmov %vm11796_vm1 }
 0x2e8   :  { %1497 = vadd.xlane.f32.xlu0 %v1496_v20  ;;  %v9323_v6 = vpop.xlane.xlu1 %1290  ;;  %v1523_v8 = vsel %vm11834_vm15, %v11833_v9, 0.0  ;;  %vm11840_vm12 = vmmov %vm11796_vm1 }
 0x2e9   :  { %v9327_v10 = vpop.xlane.xlu0 %1287  ;;  %6731 = vmatpush3.bf16.msra.mxu0 %v7178_v37  ;;  %v1529_v54 = vsel %vm11840_vm12, %v11839_v33, 0.0  ;;  %vm11843_vm13 = vmmov %vm11796_vm1 }
 0x2ea   :  { %vm11851_vm15 = vmmov %vm11796_vm1 }
 0x2eb   :  { %1506 = vadd.xlane.f32.xlu1 %v1505_v49  ;;  %v1517_v49 = vsel %vm11829_vm14, %v11828_v61, 0.0  ;;  %vm11846_vm14 = vmmov %vm11796_vm1  ;;  %v1541_v41 = vsel %vm11851_vm15, %v11850_v22, 0.0 }
 0x2ec   :  { %1503 = vadd.xlane.f32.xlu0 %v1502_v63  ;;  %v9331_v5 = vpop.xlane.xlu1 %1296  ;;  %v11831_v63 = vld [vmem:[#allocation152_spill] sm:$0xff]  ;;  %v1535_v7 = vsel %vm11846_vm14, %v11845_v47, 0.0  ;;  %vm11857_vm12 = vmmov %vm11796_vm1 }
 0x2ed   :  { %11821 = vst [vmem:[#allocation97_spill] sm:$0xff] %v9331_v5  ;;  %v9335_v20 = vpop.xlane.xlu0 %1293  ;;  %v1514_v58 = vsel %vm11796_vm1, %v11831_v63, 0.0  ;;  %vm11862_vm14 = vmmov %vm11796_vm1  ;;  %v11933_v5 = vld [vmem:[#allocation60_spill] sm:$0xff] }
 0x2ee   :  { %11824 = vst [vmem:[#allocation98_spill] sm:$0xff] %v9335_v20  ;;  %vm11866_vm15 = vmmov %vm11796_vm1  ;;  %v11934_v20 = vld [vmem:[#allocation59_spill] sm:$0xff] }
 0x2ef   :  { %1512 = vadd.xlane.f32.xlu1 %v1511_v56  ;;  %v11836_v56 = vld [vmem:[#allocation156_spill] sm:$0xff] }
 0x2f0   :  { %1509 = vadd.xlane.f32.xlu0 %v1508_v29  ;;  %v9339_v42 = vpop.xlane.xlu1 %1302  ;;  %v1520_v29 = vsel %vm11837_vm4, %v11836_v56, 0.0  ;;  %vm11854_vm4 = vmmov %vm11796_vm1 }
 0x2f1   :  { %11827 = vst [vmem:[#allocation101_spill] sm:$0xff] %v9339_v42  ;;  %v9343_v23 = vpop.xlane.xlu0 %1299 }
 0x2f2   :  { %11830 = vst [vmem:[#allocation102_spill] sm:$0xff] %v9343_v23 }
 0x2f3   :  { %1518 = vadd.xlane.f32.xlu1 %v1517_v49 }
 0x2f4   :  { %1515 = vadd.xlane.f32.xlu0 %v1514_v58  ;;  %v9347_v37 = vpop.xlane.xlu1 %1308  ;;  %v11842_v58 = vld [vmem:[#allocation160_spill] sm:$0xff] }
 0x2f5   :  { %11832 = vst [vmem:[#allocation105_spill] sm:$0xff] %v9347_v37  ;;  %v9351_v38 = vpop.xlane.xlu0 %1305  ;;  %v1526_v49 = vsel %vm11843_vm13, %v11842_v58, 0.0  ;;  %vm11860_vm13 = vmmov %vm11796_vm1 }
 0x2f6   :  { %11835 = vst [vmem:[#allocation106_spill] sm:$0xff] %v9351_v38 }
 0x2f7   :  { %1524 = vadd.xlane.f32.xlu1 %v1523_v8  ;;  %v11848_v8 = vld [vmem:[#allocation164_spill] sm:$0xff] }
 0x2f8   :  { %1521 = vadd.xlane.f32.xlu0 %v1520_v29  ;;  %v9355_v61 = vpop.xlane.xlu1 %1314  ;;  %v1532_v29 = vsel %vm11796_vm1, %v11848_v8, 0.0 }
 0x2f9   :  { %11838 = vst [vmem:[#allocation109_spill] sm:$0xff] %v9355_v61  ;;  %v9359_v63 = vpop.xlane.xlu0 %1311 }
 0x2fa   :  { %11841 = vst [vmem:[#allocation110_spill] sm:$0xff] %v9359_v63  ;;  %v11902_v63 = vld [vmem:[#allocation28_spill] sm:$0xff] }
 0x2fb   :  { %1530 = vadd.xlane.f32.xlu1 %v1529_v54  ;;  %v11853_v54 = vld [vmem:[#allocation168_spill] sm:$0xff] }
 0x2fc   :  { %1527 = vadd.xlane.f32.xlu0 %v1526_v49  ;;  %v9363_v9 = vpop.xlane.xlu1 %1320  ;;  %v1538_v49 = vsel %vm11854_vm4, %v11853_v54, 0.0  ;;  %vm11869_vm4 = vmmov %vm11796_vm1 }
 0x2fd   :  { %11844 = vst [vmem:[#allocation113_spill] sm:$0xff] %v9363_v9  ;;  %v9367_v56 = vpop.xlane.xlu0 %1317  ;;  %v11856_v9 = vld [vmem:[#allocation171_spill] sm:$0xff] }
 0x2fe   :  { %11847 = vst [vmem:[#allocation114_spill] sm:$0xff] %v9367_v56  ;;  %v1547_v56 = vsel %vm11857_vm12, %v11856_v9, 0.0  ;;  %v11865_v9 = vld [vmem:[#allocation179_spill] sm:$0xff]  ;;  %vm11871_vm12 = vmmov %vm11796_vm1 }
 0x2ff   :  { %1536 = vadd.xlane.f32.xlu1 %v1535_v7  ;;  %v11859_v7 = vld [vmem:[#allocation172_spill] sm:$0xff] }
 0x300   :  { %1533 = vadd.xlane.f32.xlu0 %v1532_v29  ;;  %v9371_v33 = vpop.xlane.xlu1 %1326  ;;  %v1544_v29 = vsel %vm11860_vm13, %v11859_v7, 0.0  ;;  %vm11874_vm13 = vmmov %vm11796_vm1 }
 0x301   :  { %11849 = vst [vmem:[#allocation117_spill] sm:$0xff] %v9371_v33  ;;  %v9375_v58 = vpop.xlane.xlu0 %1323  ;;  %v1553_v33 = vsel %vm11862_vm14, %v11535_v62, 0.0  ;;  %vm11935_vm14 = vcmask 261312  }
 0x302   :  { %11852 = vst [vmem:[#allocation118_spill] sm:$0xff] %v9375_v58  ;;  %v1559_v58 = vsel %vm11866_vm15, %v11865_v9, 0.0  ;;  %vm11951_vm15 = vcmask 786112  }
 0x303   :  { %1542 = vadd.xlane.f32.xlu1 %v1541_v41  ;;  %v1550_v41 = vsel %vm11796_vm1, %v11538_v14, 0.0  ;;  %v11873_v14 = vld [vmem:[#allocation184_spill] sm:$0xff]  ;;  %vm11940_vm1 = vmmov %vm11935_vm14 }
 0x304   :  { %1539 = vadd.xlane.f32.xlu0 %v1538_v49  ;;  %v9379_v47 = vpop.xlane.xlu1 %1332  ;;  %v1562_v9 = vsel %vm11874_vm13, %v11873_v14, 0.0  ;;  %v7186_v14 = vld [vmem:[#allocation2 + $0x198] sm:$0xff]   ;;  %vm11963_vm13 = vcmask 982912  }
 0x305   :  { %11855 = vst [vmem:[#allocation121_spill] sm:$0xff] %v9379_v47  ;;  %v9383_v8 = vpop.xlane.xlu0 %1329  ;;  %v7180_v47 = vld [vmem:[#allocation2 + $0x180] sm:$0xff]  }
 0x306   :  { %11858 = vst [vmem:[#allocation122_spill] sm:$0xff] %v9383_v8  ;;  %v11892_v8 = vld [vmem:[#allocation18_spill] sm:$0xff] }
 0x307   :  { %1548 = vadd.xlane.f32.xlu1 %v1547_v56  ;;  %v11868_v56 = vld [vmem:[#allocation180_spill] sm:$0xff] }
 0x308   :  { %1545 = vadd.xlane.f32.xlu0 %v1544_v29  ;;  %v9387_v22 = vpop.xlane.xlu1 %1338  ;;  %v1556_v29 = vsel %vm11869_vm4, %v11868_v56, 0.0  ;;  %vm11954_vm4 = vcmask 851712  }
 0x309   :  { %11861 = vst [vmem:[#allocation125_spill] sm:$0xff] %v9387_v22  ;;  %v9391_v54 = vpop.xlane.xlu0 %1335  ;;  %v7179_v22 = vld [vmem:[#allocation2 + $0x1c0] sm:$0xff]  }
 0x30a   :  { %11863 = vst [vmem:[#allocation126_spill] sm:$0xff] %v9391_v54  ;;  %6738 = vmatprep.subr.bf16.mxu1 %v7179_v22 }
 0x30b   :  { %1554 = vadd.xlane.f32.xlu1 %v1553_v33  ;;  %v1565_v33 = vsel %vm11871_vm12, %v8118_v21, 0.0  ;;  %6739 = vmatpush3.bf16.msra.mxu1 %v7180_v47  ;;  %vm11960_vm12 = vcmask 917312  }
 0x30c   :  { %1551 = vadd.xlane.f32.xlu0 %v1550_v41  ;;  %v9395_v49 = vpop.xlane.xlu1 %1344 }
 0x30d   :  { %11864 = vst [vmem:[#allocation129_spill] sm:$0xff] %v9395_v49  ;;  %v9399_v7 = vpop.xlane.xlu0 %1341  ;;  %v7181_v49 = vld [vmem:[#allocation2 + $0x1c8] sm:$0xff]  }
 0x30e   :  { %11867 = vst [vmem:[#allocation130_spill] sm:$0xff] %v9399_v7  ;;  %v7182_v7 = vld [vmem:[#allocation2 + $0x188] sm:$0xff]   ;;  %6740 = vmatprep.subr.bf16.mxu1 %v7181_v49  ;;  %v7187_v49 = vld [vmem:[#allocation2 + $0x1e0] sm:$0xff]  }
 0x30f   :  { %1560 = vadd.xlane.f32.xlu1 %v1559_v58  ;;  %6741 = vmatpush3.bf16.msra.mxu1 %v7182_v7  ;;  %v7183_v58 = vld [vmem:[#allocation2 + $0x1d0] sm:$0xff]   ;;  %v7188_v7 = vld [vmem:[#allocation2 + $0x1a0] sm:$0xff]  }
 0x310   :  { %1557 = vadd.xlane.f32.xlu0 %v1556_v29  ;;  %v9403_v62 = vpop.xlane.xlu1 %1350  ;;  %v7184_v29 = vld [vmem:[#allocation2 + $0x190] sm:$0xff]   ;;  %6742 = vmatprep.subr.bf16.mxu1 %v7183_v58  ;;  %v6816_v58 = vpack.i.bf16 %v7324_v4, %v7320_v2 }
 0x311   :  { %11870 = vst [vmem:[#allocation133_spill] sm:$0xff] %v9403_v62  ;;  %v9407_v41 = vpop.xlane.xlu0 %1347  ;;  %v7185_v62 = vld [vmem:[#allocation2 + $0x1d8] sm:$0xff]   ;;  %v7192_v2 = vld [vmem:[#allocation2 + $0x1b0] sm:$0xff]  }
 0x312   :  { %11872 = vst [vmem:[#allocation134_spill] sm:$0xff] %v9407_v41 }
 0x313   :  { %1566 = vadd.xlane.f32.xlu1 %v1565_v33  ;;  %6743 = vmatpush3.bf16.msra.mxu1 %v7184_v29 }
 0x314   :  { %1563 = vadd.xlane.f32.xlu0 %v1562_v9  ;;  %v9411_v56 = vpop.xlane.xlu1 %1356  ;;  %6744 = vmatprep.subr.bf16.mxu1 %v7185_v62 }
 0x315   :  { %11875 = vst [vmem:[#allocation137_spill] sm:$0xff] %v9411_v56  ;;  %v9413_v22 = vpop.xlane.xlu0 %1353  ;;  %v7193_v56 = vld [vmem:[#allocation2 + $0x1f8] sm:$0xff]  }
 0x316   :  { %11876 = vst [vmem:[#allocation138_spill] sm:$0xff] %v9413_v22  ;;  %v7194_v22 = vld [vmem:[#allocation2 + $0x1b8] sm:$0xff]  }
 0x317   :  { %6745 = vmatpush3.bf16.msra.mxu1 %v7186_v14  ;;  %v6821_v14 = vpack.i.bf16 %v7339_v11, %v7341_v12  ;;  %v11886_v11 = vld [vmem:[#allocation12_spill] sm:$0xff]  ;;  %v11887_v12 = vld [vmem:[#allocation11_spill] sm:$0xff] }
 0x318   :  { %v9415_v21 = vpop.xlane.xlu1 %1362  ;;  %6746 = vmatprep.subr.bf16.mxu1 %v7187_v49 }
 0x319   :  { %11877 = vst [vmem:[#allocation141_spill] sm:$0xff] %v9415_v21  ;;  %v9417_v47 = vpop.xlane.xlu0 %1359  ;;  %v7189_v21 = vld [vmem:[#allocation2 + $0x1e8] sm:$0xff]  }
 0x31a   :  { %11878 = vst [vmem:[#allocation142_spill] sm:$0xff] %v9417_v47  ;;  %v7190_v47 = vld [vmem:[#allocation2 + $0x1a8] sm:$0xff]  }
 0x31b   :  { %6747 = vmatpush3.bf16.msra.mxu1 %v7188_v7  ;;  %v11884_v7 = vld [vmem:[#allocation10_spill] sm:$0xff] }
 0x31c   :  { %v9419_v41 = vpop.xlane.xlu1 %1368  ;;  %6748 = vmatprep.subr.bf16.mxu1 %v7189_v21  ;;  %v11885_v21 = vld [vmem:[#allocation9_spill] sm:$0xff] }
 0x31d   :  { %11879 = vst [vmem:[#allocation145_spill] sm:$0xff] %v9419_v41  ;;  %v9421_v9 = vpop.xlane.xlu0 %1365  ;;  %v7191_v41 = vld [vmem:[#allocation2 + $0x1f0] sm:$0xff]  }
 0x31e   :  { %11880 = vst [vmem:[#allocation146_spill] sm:$0xff] %v9421_v9 }
 0x31f   :  { %6749 = vmatpush3.bf16.msra.mxu1 %v7190_v47  ;;  %v6831_v47 = vpack.i.bf16 %v11887_v12, %v11886_v11  ;;  %v6846_v11 = vpack.i.bf16 %v11893_v27, %v11892_v8  ;;  %v11895_v12 = vld [vmem:[#allocation19_spill] sm:$0xff] }
 0x320   :  { %v9423_v33 = vpop.xlane.xlu1 %1374  ;;  %6750 = vmatprep.subr.bf16.mxu1 %v7191_v41  ;;  %v11888_v41 = vld [vmem:[#allocation14_spill] sm:$0xff] }
 0x321   :  { %11881 = vst [vmem:[#allocation149_spill] sm:$0xff] %v9423_v33  ;;  %v9427_v29 = vpop.xlane.xlu0 %1371  ;;  %v11883_v33 = vld [vmem:[#allocation8_spill] sm:$0xff] }
 0x322   :  { %11882 = vst [vmem:[#allocation150_spill] sm:$0xff] %v9427_v29  ;;  %v6811_v9 = vpack.i.bf16 %v11883_v33, %v7322_v3  ;;  %v6826_v29 = vpack.i.bf16 %v11885_v21, %v11884_v7  ;;  %v11889_v33 = vld [vmem:[#allocation13_spill] sm:$0xff]  ;;  %v11891_v7 = vld [vmem:[#allocation15_spill] sm:$0xff] }
 0x323   :  { %6751 = vmatpush3.bf16.msra.mxu1 %v7192_v2  ;;  %v11890_v2 = vld [vmem:[#allocation16_spill] sm:$0xff] }
 0x324   :  { %6817 = vrot.lane.b32.xlu1 %v6816_v58, %s7278_s0  ;;  %v1381_v62 = vpop.xlane.xlu1 %1380  ;;  %6752 = vmatprep.subr.bf16.mxu1 %v7193_v56  ;;  %v6841_v21 = vpack.i.bf16 %v11891_v7, %v11890_v2  ;;  %v11899_v7 = vld [vmem:[#allocation23_spill] sm:$0xff] }
 0x325   :  { %v1378_v49 = vpop.xlane.xlu0 %1377 }
 0x326   :  { %v3773_v19 = vpack.c.bf16 %v1381_v62, %v1378_v49  ;;  %v11908_v62 = vld [vmem:[#allocation34_spill] sm:$0xff]  ;;  %v11909_v49 = vld [vmem:[#allocation33_spill] sm:$0xff] }
 0x327   :  { %6753 = vmatpush3.bf16.msra.mxu1 %v7194_v22 }
 0x328   :  { %6822 = vrot.lane.b32.xlu1 %v6821_v14, %s7278_s0  ;;  %v1387_v4 = vpop.xlane.xlu1 %1386  ;;  %v6836_v14 = vpack.i.bf16 %v11889_v33, %v11888_v41  ;;  %v11897_v41 = vld [vmem:[#allocation21_spill] sm:$0xff]  ;;  %v4007_v36 = vunpack.c.h.b16 %v3773_v19 }
 0x329   :  { %v1384_v58 = vpop.xlane.xlu0 %1383 }
 0x32a   :  { %6812 = vrot.lane.b32.xlu0 %v6811_v9, %s7278_s0  ;;  %v3774_v31 = vpack.c.bf16 %v1387_v4, %v1384_v58  ;;  %v11910_v4 = vld [vmem:[#allocation36_spill] sm:$0xff]  ;;  %v11911_v58 = vld [vmem:[#allocation35_spill] sm:$0xff] }
 0x32c   :  { %6827 = vrot.lane.b32.xlu1 %v6826_v29, %s7278_s0  ;;  %v1393_v3 = vpop.xlane.xlu1 %1392  ;;  %v11894_v29 = vld [vmem:[#allocation20_spill] sm:$0xff] }
 0x32d   :  { %v1390_v54 = vpop.xlane.xlu0 %1389  ;;  %v6851_v61 = vpack.i.bf16 %v11895_v12, %v11894_v29  ;;  %v11901_v29 = vld [vmem:[#allocation25_spill] sm:$0xff] }
 0x32e   :  { %6832 = vrot.lane.b32.xlu0 %v6831_v47, %s7278_s0  ;;  %v11896_v47 = vld [vmem:[#allocation22_spill] sm:$0xff]  ;;  %v3775_v37 = vpack.c.bf16 %v1393_v3, %v1390_v54  ;;  %v11913_v3 = vld [vmem:[#allocation39_spill] sm:$0xff] }
 0x32f   :  { %v6856_v33 = vpack.i.bf16 %v11897_v41, %v11896_v47  ;;  %v11903_v47 = vld [vmem:[#allocation27_spill] sm:$0xff] }
 0x330   :  { %6837 = vrot.lane.b32.xlu1 %v6836_v14, %s7278_s0  ;;  %v1399_v9 = vpop.xlane.xlu1 %1398  ;;  %v11898_v14 = vld [vmem:[#allocation24_spill] sm:$0xff]  ;;  %v6871_v41 = vpack.i.bf16 %v11903_v47, %v11902_v63  ;;  %v4008_v47 = vunpack.c.l.b16 %v3774_v31  ;;  %v4010_v18 = vunpack.c.l.b16 %v3775_v37 }
 0x331   :  { %v1396_v56 = vpop.xlane.xlu0 %1395  ;;  %v6861_v27 = vpack.i.bf16 %v11899_v7, %v11898_v14  ;;  %v11904_v14 = vld [vmem:[#allocation30_spill] sm:$0xff]  ;;  %v11905_v7 = vld [vmem:[#allocation29_spill] sm:$0xff] }
 0x332   :  { %6842 = vrot.lane.b32.xlu0 %v6841_v21, %s7278_s0  ;;  %v11900_v21 = vld [vmem:[#allocation26_spill] sm:$0xff] }
 0x333   :  { %v6866_v12 = vpack.i.bf16 %v11901_v29, %v11900_v21  ;;  %v11906_v21 = vld [vmem:[#allocation32_spill] sm:$0xff]  ;;  %v11907_v29 = vld [vmem:[#allocation31_spill] sm:$0xff] }
 0x334   :  { %6847 = vrot.lane.b32.xlu1 %v6846_v11, %s7278_s0  ;;  %v9453_v22 = vpop.xlane.xlu1 %1404  ;;  %v6881_v32 = vpack.i.bf16 %v11907_v29, %v11906_v21 }
 0x335   :  { %v9457_v2 = vpop.xlane.xlu0 %1401 }
 0x336   :  { %6852 = vrot.lane.b32.xlu0 %v6851_v61, %s7278_s0 }
 0x338   :  { %6857 = vrot.lane.b32.xlu1 %v6856_v33, %s7278_s0  ;;  %v9463_v8 = vpop.xlane.xlu1 %1410  ;;  %v6876_v33 = vpack.i.bf16 %v11905_v7, %v11904_v14 }
 0x339   :  { %v9467_v11 = vpop.xlane.xlu0 %1407 }
 0x33a   :  { %6862 = vrot.lane.b32.xlu0 %v6861_v27, %s7278_s0  ;;  %v4006_v27 = vunpack.c.l.b16 %v3773_v19  ;;  %v4393_v19 = vrot.slane %v4007_v36, %v8436_v25 }
 0x33c   :  { %6867 = vrot.lane.b32.xlu1 %v6866_v12, %s7278_s0  ;;  %v9473_v61 = vpop.xlane.xlu1 %1416  ;;  %v6886_v12 = vpack.i.bf16 %v11909_v49, %v11908_v62  ;;  %v4389_v7 = vrot.slane %v4006_v27, %v8433_v45  ;;  %v11912_v62 = vld [vmem:[#allocation37_spill] sm:$0xff]  ;;  %v6901_v49 = vpack.i.bf16 %v11913_v3, %v11624_v46  ;;  %v11919_v46 = vld [vmem:[#allocation46_spill] sm:$0xff] }
 0x33d   :  { %v9477_v55 = vpop.xlane.xlu0 %1413  ;;  %v6896_v54 = vpack.i.bf16 %v11912_v62, %v11613_v52  ;;  %v11917_v52 = vld [vmem:[#allocation44_spill] sm:$0xff]  ;;  %v11918_v62 = vld [vmem:[#allocation43_spill] sm:$0xff]  ;;  %v11920_v3 = vld [vmem:[#allocation45_spill] sm:$0xff] }
 0x33e   :  { %6872 = vrot.lane.b32.xlu0 %v6871_v41, %s7278_s0  ;;  %v6891_v41 = vpack.i.bf16 %v11911_v58, %v11910_v4  ;;  %v9500_v4 = vpack.c.bf16 %v1399_v9, %v1396_v56  ;;  %v6911_v59 = vpack.i.bf16 %v11918_v62, %v11917_v52  ;;  %v4394_v9 = vsel %vm2802_vm2, %v4393_v19, %v4389_v7  ;;  %v11921_v56 = vld [vmem:[#allocation48_spill] sm:$0xff] }
 0x33f   :  { %v4408_v7 = vrot.slane %v4010_v18, %v8460_v35  ;;  %v9534_v18 = vpack.c.bf16 %v9300_v24, %v9305_v51 }
 0x340   :  { %6877 = vrot.lane.b32.xlu1 %v6876_v33, %s7278_s0  ;;  %v9483_v63 = vpop.xlane.xlu1 %1422  ;;  %v4009_v33 = vunpack.c.h.b16 %v3774_v31  ;;  %v4012_v19 = vunpack.c.l.b16 %v9500_v4  ;;  %v4013_v24 = vunpack.c.h.b16 %v9500_v4 }
 0x341   :  { %v9487_v14 = vpop.xlane.xlu0 %1419 }
 0x342   :  { %6882 = vrot.lane.b32.xlu0 %v6881_v32, %s7278_s0  ;;  %v4398_v32 = vrot.slane %v4008_v47, %v8447_v28  ;;  %v6916_v47 = vpack.i.bf16 %v11920_v3, %v11919_v46  ;;  %v4403_v42 = vrot.slane %v4009_v33, %v8450_v43  ;;  %v11927_v3 = vld [vmem:[#allocation54_spill] sm:$0xff]  ;;  %v4418_v51 = vrot.slane %v4012_v19, %v8473_v53  ;;  %v11938_v19 = vld [vmem:[#allocation64_spill] sm:$0xff] }
 0x343   :  { %v6688_v21 = vpop.f32.mrb[0].mxu0 }
 0x344   :  { %v6689_v29 = vpop.f32.mrb[1].mxu0  ;;  %6887 = vrot.lane.b32.xlu1 %v6886_v12, %s7278_s0  ;;  %v1429_v38 = vpop.xlane.xlu1 %1428  ;;  %v11915_v12 = vld [vmem:[#allocation42_spill] sm:$0xff]  ;;  %v4399_v62 = vsel %vm2809_vm3, %v4398_v32, %v4394_v9 }
 0x345   :  { %v9502_v27 = vadd.f32 %v6689_v29, %v6688_v21  ;;  %v6691_v36 = vpop.f32.mrb[2].mxu0  ;;  %v1426_v58 = vpop.xlane.xlu0 %1425  ;;  %v6906_v16 = vpack.i.bf16 %v11916_v17, %v11915_v12  ;;  %v11922_v21 = vld [vmem:[#allocation47_spill] sm:$0xff]  ;;  %v4011_v17 = vunpack.c.h.b16 %v3775_v37  ;;  %v11929_v37 = vld [vmem:[#allocation56_spill] sm:$0xff] }
 0x346   :  { %v3781_v31 = vpack.c.bf16 %v1429_v38, %v1426_v58  ;;  %v6692_v48 = vpop.f32.mrb[3].mxu0  ;;  %6892 = vrot.lane.b32.xlu0 %v6891_v41, %s7278_s0  ;;  %v6921_v29 = vpack.i.bf16 %v11922_v21, %v11921_v56  ;;  %v11923_v36 = vld [vmem:[#allocation50_spill] sm:$0xff]  ;;  %v11926_v58 = vld [vmem:[#allocation51_spill] sm:$0xff]  ;;  %v11928_v56 = vld [vmem:[#allocation53_spill] sm:$0xff]  ;;  %v3777_v41 = vpack.c.bf16 %v9453_v22, %v9457_v2  ;;  %v4404_v2 = vsel %vm11935_vm14, %v4403_v42, %v4399_v62 }
 0x347   :  { %11914 = vst [vmem:[#allocation153_spill] sm:$0xff] %v9502_v27  ;;  %v11924_v27 = vld [vmem:[#allocation49_spill] sm:$0xff]  ;;  %v11925_v48 = vld [vmem:[#allocation52_spill] sm:$0xff]  ;;  %v11931_v38 = vld [vmem:[#allocation58_spill] sm:$0xff]  ;;  %v3778_v42 = vpack.c.bf16 %v9463_v8, %v9467_v11 }
 0x348   :  { %v4022_v12 = vunpack.c.l.b16 %v3781_v31  ;;  %v4023_v23 = vunpack.c.h.b16 %v3781_v31  ;;  %6897 = vrot.lane.b32.xlu1 %v6896_v54, %s7278_s0  ;;  %v1435_v52 = vpop.xlane.xlu1 %1434  ;;  %v11930_v31 = vld [vmem:[#allocation55_spill] sm:$0xff]  ;;  %v4409_v54 = vsel %vm2823_vm5, %v4408_v7, %v4404_v2  ;;  %v4014_v22 = vunpack.c.l.b16 %v3777_v41  ;;  %vm11964_vm14 = vmmov %vm11951_vm15 }
 0x349   :  { %v1432_v46 = vpop.xlane.xlu0 %1431 }
 0x34a   :  { %v3782_v33 = vpack.c.bf16 %v1435_v52, %v1432_v46  ;;  %6902 = vrot.lane.b32.xlu0 %v6901_v49, %s7278_s0  ;;  %v4468_v9 = vrot.slane %v4022_v12, %v8433_v45  ;;  %v4472_v21 = vrot.slane %v4023_v23, %v8436_v25  ;;  %v4413_v49 = vrot.slane %v4011_v17, %v8465_v39 }
 0x34c   :  { %v4024_v52 = vunpack.c.l.b16 %v3782_v33  ;;  %v4025_v46 = vunpack.c.h.b16 %v3782_v33  ;;  %6907 = vrot.lane.b32.xlu1 %v6906_v16, %s7278_s0  ;;  %v1441_v32 = vpop.xlane.xlu1 %1440  ;;  %v3972_v16 = vunpack.c.l.b16 %v9534_v18  ;;  %v4473_v7 = vsel %vm2802_vm2, %v4472_v21, %v4468_v9  ;;  %v11939_v33 = vld [vmem:[#allocation63_spill] sm:$0xff] }
 0x34d   :  { %v1438_v12 = vpop.xlane.xlu0 %1437  ;;  %v6961_v2 = vpack.i.bf16 %v11939_v33, %v11938_v19  ;;  %v4414_v45 = vsel %vm2830_vm6, %v4413_v49, %v4409_v54  ;;  %v4423_v21 = vrot.slane %v4013_v24, %v8479_v40  ;;  %v4015_v9 = vunpack.c.h.b16 %v3777_v41  ;;  %v11966_v33 = vld [vmem:[#allocation70_spill] sm:$0xff] }
 0x34e   :  { %v4477_v17 = vrot.slane %v4024_v52, %v8447_v28  ;;  %v3783_v62 = vpack.c.bf16 %v1441_v32, %v1438_v12  ;;  %6912 = vrot.lane.b32.xlu0 %v6911_v59, %s7278_s0  ;;  %v4482_v4 = vrot.slane %v4025_v46, %v8450_v43  ;;  %v3973_v59 = vunpack.c.h.b16 %v9534_v18 }
 0x34f   :  { %v4419_v32 = vsel %vm2837_vm7, %v4418_v51, %v4414_v45  ;;  %v4428_v46 = vrot.slane %v4014_v22, %v8494_v30  ;;  %v4016_v12 = vunpack.c.l.b16 %v3778_v42  ;;  %v11941_v45 = vld [vmem:[#allocation66_spill] sm:$0xff]  ;;  %v11942_v51 = vld [vmem:[#allocation65_spill] sm:$0xff] }
 0x350   :  { %v4478_v23 = vsel %vm2809_vm3, %v4477_v17, %v4473_v7  ;;  %v4026_v25 = vunpack.c.l.b16 %v3783_v62  ;;  %v4027_v8 = vunpack.c.h.b16 %v3783_v62  ;;  %6917 = vrot.lane.b32.xlu1 %v6916_v47, %s7278_s0  ;;  %v1447_v11 = vpop.xlane.xlu1 %1446  ;;  %v3779_v47 = vpack.c.bf16 %v9473_v61, %v9477_v55  ;;  %v11944_v7 = vld [vmem:[#allocation67_spill] sm:$0xff] }
 0x351   :  { %v1444_v52 = vpop.xlane.xlu0 %1443  ;;  %v4483_v17 = vsel %vm11940_vm1, %v4482_v4, %v4478_v23  ;;  %v6966_v24 = vpack.i.bf16 %v11942_v51, %v11941_v45  ;;  %v6971_v55 = vpack.i.bf16 %v11944_v7, %v11708_v0  ;;  %v9580_v61 = vrot.slane %v3972_v16, %v8551_v60  ;;  %vm11965_vm1 = vmmov %vm11954_vm4 }
 0x352   :  { %v4487_v54 = vrot.slane %v4026_v25, %v8460_v35  ;;  %v3784_v49 = vpack.c.bf16 %v1447_v11, %v1444_v52  ;;  %6922 = vrot.lane.b32.xlu0 %v6921_v29, %s7278_s0  ;;  %v4492_v18 = vrot.slane %v4027_v8, %v8465_v39  ;;  %v11943_v25 = vpack.i.bf16 %v11924_v27, %v11923_v36 }
 0x353   :  { %v4424_v23 = vsel %vm2844_vm8, %v4423_v21, %v4419_v32  ;;  %v4433_v4 = vrot.slane %v4015_v9, %v8501_v34  ;;  %v4017_v8 = vunpack.c.h.b16 %v3778_v42  ;;  %v4018_v16 = vunpack.c.l.b16 %v3779_v47 }
 0x354   :  { %v4488_v41 = vsel %vm2823_vm5, %v4487_v54, %v4483_v17  ;;  %v4028_v62 = vunpack.c.l.b16 %v3784_v49  ;;  %v4029_v22 = vunpack.c.h.b16 %v3784_v49  ;;  %6927 = vrot.lane.b32.xlu1 %v11943_v25, %s7278_s0  ;;  %v1453_v29 = vpop.xlane.xlu1 %1452  ;;  %v4429_v52 = vsel %vm2851_vm9, %v4428_v46, %v4424_v23 }
 0x355   :  { %v1450_v11 = vpop.xlane.xlu0 %1449  ;;  %v4438_v54 = vrot.slane %v4016_v12, %v8508_v50  ;;  %v11945_v49 = vpack.i.bf16 %v11926_v58, %v11925_v48  ;;  %v3780_v32 = vpack.c.bf16 %v9483_v63, %v9487_v14  ;;  %v4493_v21 = vsel %vm2830_vm6, %v4492_v18, %v4488_v41 }
 0x356   :  { %v4497_v27 = vrot.slane %v4028_v62, %v8473_v53  ;;  %v3785_v36 = vpack.c.bf16 %v1453_v29, %v1450_v11  ;;  %v4502_v42 = vrot.slane %v4029_v22, %v8479_v40  ;;  %v3757_v9 = vpack.c.bf16 %v9312_v44, %v9319_v26 }
 0x357   :  { %6932 = vrot.lane.b32.xlu0 %v11945_v49, %s7278_s0  ;;  %v11946_v48 = vpack.i.bf16 %v11928_v56, %v11927_v3  ;;  %v9603_v62 = vrot.slane %v3973_v59, %v8554_v15  ;;  %v3758_v63 = vpack.c.bf16 %v9323_v6, %v9327_v10  ;;  %v4434_v14 = vsel %vm2858_vm10, %v4433_v4, %v4429_v52  ;;  %v11949_v52 = vld [vmem:[#allocation98_spill] sm:$0xff] }
 0x358   :  { %v4498_v46 = vsel %vm2837_vm7, %v4497_v27, %v4493_v21  ;;  %v4030_v12 = vunpack.c.l.b16 %v3785_v36  ;;  %v4031_v17 = vunpack.c.h.b16 %v3785_v36  ;;  %v1459_v58 = vpop.xlane.xlu1 %1458  ;;  %v4443_v44 = vrot.slane %v4017_v8, %v8518_v1 }
 0x359   :  { %6937 = vrot.lane.b32.xlu1 %v11946_v48, %s7278_s0  ;;  %v1456_v26 = vpop.xlane.xlu0 %1455  ;;  %v4439_v18 = vsel %vm11150_vm11, %v4438_v54, %v4434_v14  ;;  %v4019_v41 = vunpack.c.h.b16 %v3779_v47  ;;  %v11947_v3 = vpack.i.bf16 %v11930_v31, %v11929_v37  ;;  %v4448_v56 = vrot.slane %v4018_v16, %v8536_v57  ;;  %v11950_v54 = vld [vmem:[#allocation97_spill] sm:$0xff] }
 0x35a   :  { %v4507_v22 = vrot.slane %v4030_v12, %v8494_v30  ;;  %v3786_v25 = vpack.c.bf16 %v1459_v58, %v1456_v26  ;;  %v4020_v59 = vunpack.c.l.b16 %v3780_v32  ;;  %v4503_v6 = vsel %vm2844_vm8, %v4502_v42, %v4498_v46  ;;  %v11952_v16 = vld [vmem:[#allocation85_spill] sm:$0xff]  ;;  %v11955_v58 = vld [vmem:[#allocation82_spill] sm:$0xff] }
 0x35b   :  { %6942 = vrot.lane.b32.xlu0 %v11947_v3, %s7278_s0  ;;  %v4512_v10 = vrot.slane %v4031_v17, %v8501_v34  ;;  %v3974_v29 = vunpack.c.l.b16 %v3757_v9  ;;  %v11948_v8 = vpack.i.bf16 %v11932_v13, %v11931_v38  ;;  %v3975_v37 = vunpack.c.h.b16 %v3757_v9 }
 0x35c   :  { %v4508_v23 = vsel %vm2851_vm9, %v4507_v22, %v4503_v6  ;;  %v4032_v4 = vunpack.c.l.b16 %v3786_v25  ;;  %v4033_v47 = vunpack.c.h.b16 %v3786_v25  ;;  %v1465_v11 = vpop.xlane.xlu1 %1464  ;;  %v3976_v31 = vunpack.c.l.b16 %v3758_v63 }
 0x35d   :  { %6947 = vrot.lane.b32.xlu1 %v11948_v8, %s7278_s0  ;;  %v9625_v27 = vpack.c.bf16 %v11950_v54, %v11949_v52  ;;  %v4444_v36 = vsel %vm11951_vm15, %v4443_v44, %v4439_v18  ;;  %v1462_v49 = vpop.xlane.xlu0 %1461  ;;  %v4453_v21 = vrot.slane %v4019_v41, %v11952_v16  ;;  %v4021_v42 = vunpack.c.h.b16 %v3780_v32  ;;  %v11956_v18 = vld [vmem:[#allocation61_spill] sm:$0xff]  ;;  %v11957_v41 = vld [vmem:[#allocation62_spill] sm:$0xff]  ;;  %vm11971_vm15 = vmmov %vm11963_vm13 }
 0x35e   :  { %v4517_v46 = vrot.slane %v4032_v4, %v8508_v50  ;;  %v3787_v12 = vpack.c.bf16 %v1465_v11, %v1462_v49  ;;  %v11953_v13 = vpack.i.bf16 %v11934_v20, %v11933_v5  ;;  %v4449_v38 = vsel %vm11954_vm4, %v4448_v56, %v4444_v36  ;;  %v11959_v20 = vld [vmem:[#allocation78_spill] sm:$0xff]  ;;  %v11962_v8 = vld [vmem:[#allocation101_spill] sm:$0xff] }
 0x35f   :  { %v4458_v9 = vrot.slane %v4020_v59, %v8551_v60  ;;  %v4513_v17 = vsel %vm2858_vm10, %v4512_v10, %v4508_v23  ;;  %v4522_v48 = vrot.slane %v4033_v47, %v8518_v1  ;;  %v4231_v14 = vrot.slane %v3974_v29, %v11955_v58  ;;  %v11961_v47 = vld [vmem:[#allocation102_spill] sm:$0xff] }
 0x360   :  { %6952 = vrot.lane.b32.xlu0 %v11953_v13, %s7278_s0  ;;  %v4518_v32 = vsel %vm11150_vm11, %v4517_v46, %v4513_v17  ;;  %v4034_v44 = vunpack.c.l.b16 %v3787_v12  ;;  %v4035_v26 = vunpack.c.h.b16 %v3787_v12  ;;  %v11958_v22 = vpack.i.bf16 %v11956_v18, %v11957_v41  ;;  %v1471_v5 = vpop.xlane.xlu1 %1470  ;;  %v11968_v12 = vld [vmem:[#allocation72_spill] sm:$0xff]  ;;  %v11969_v13 = vld [vmem:[#allocation71_spill] sm:$0xff] }
 0x361   :  { %v4235_v25 = vrot.slane %v3975_v37, %v11959_v20  ;;  %v3977_v3 = vunpack.c.h.b16 %v3758_v63  ;;  %v4240_v56 = vrot.slane %v3976_v31, %v8447_v28  ;;  %v3978_v59 = vunpack.c.l.b16 %v9625_v27  ;;  %v1468_v6 = vpop.xlane.xlu0 %1467 }
 0x362   :  { %6957 = vrot.lane.b32.xlu1 %v11958_v22, %s7278_s0  ;;  %v4454_v10 = vsel %vm11960_vm12, %v4453_v21, %v4449_v38  ;;  %v4463_v29 = vrot.slane %v4021_v42, %v8554_v15  ;;  %v4527_v23 = vrot.slane %v4034_v44, %v8536_v57  ;;  %v3788_v4 = vpack.c.bf16 %v1471_v5, %v1468_v6  ;;  %v11975_v22 = vld [vmem:[#allocation74_spill] sm:$0xff]  ;;  %v11976_v5 = vld [vmem:[#allocation73_spill] sm:$0xff] }
 0x363   :  { %v3760_v63 = vpack.c.bf16 %v11962_v8, %v11961_v47  ;;  %v4459_v11 = vsel %vm11963_vm13, %v4458_v9, %v4454_v10  ;;  %v4523_v37 = vsel %vm11964_vm14, %v4522_v48, %v4518_v32  ;;  %v4532_v31 = vrot.slane %v4035_v26, %v11952_v16  ;;  %v11970_v9 = vld [vmem:[#allocation94_spill] sm:$0xff]  ;;  %v11981_v10 = vld [vmem:[#allocation93_spill] sm:$0xff] }
 0x364   :  { %6962 = vrot.lane.b32.xlu0 %v6961_v2, %s7278_s0  ;;  %v4528_v52 = vsel %vm11965_vm1, %v4527_v23, %v4523_v37  ;;  %v4036_v54 = vunpack.c.l.b16 %v3788_v4  ;;  %v4037_v36 = vunpack.c.h.b16 %v3788_v4  ;;  %v9664_v19 = vpop.xlane.xlu1 %1476  ;;  %v11967_v2 = vld [vmem:[#allocation69_spill] sm:$0xff]  ;;  %v4236_v21 = vsel %vm2802_vm2, %v4235_v25, %v4231_v14  ;;  %v11973_v26 = vld [vmem:[#allocation106_spill] sm:$0xff] }
 0x365   :  { %v6976_v49 = vpack.i.bf16 %v11967_v2, %v11966_v33  ;;  %v4245_v42 = vrot.slane %v3977_v3, %v8450_v43  ;;  %v9670_v46 = vpop.xlane.xlu0 %1473  ;;  %v6981_v38 = vpack.i.bf16 %v11969_v13, %v11968_v12  ;;  %v4222_v17 = vsel %vm11971_vm15, %v9580_v61, %v11970_v9  ;;  %v11987_v12 = vld [vmem:[#allocation91_spill] sm:$0xff]  ;;  %v11988_v13 = vld [vmem:[#allocation96_spill] sm:$0xff] }
 0x366   :  { %6967 = vrot.lane.b32.xlu1 %v6966_v24, %s7278_s0  ;;  %v3979_v45 = vunpack.c.h.b16 %v9625_v27  ;;  %v4537_v51 = vrot.slane %v4036_v54, %v8551_v60  ;;  %v4542_v24 = vrot.slane %v4037_v36, %v8554_v15  ;;  %vm11972_vm4 = vcmask 1048512   ;;  %v11974_v27 = vld [vmem:[#allocation105_spill] sm:$0xff] }
 0x367   :  { %v4464_v48 = vsel %vm11972_vm4, %v4463_v29, %v4459_v11  ;;  %v4241_v14 = vsel %vm2809_vm3, %v4240_v56, %v4236_v21  ;;  %v4250_v32 = vrot.slane %v3978_v59, %v8460_v35  ;;  %v3980_v44 = vunpack.c.l.b16 %v3760_v63  ;;  %vm11977_vm14 = vmmov %vm11972_vm4  ;;  %v11979_v56 = vld [vmem:[#allocation76_spill] sm:$0xff]  ;;  %v11980_v59 = vld [vmem:[#allocation75_spill] sm:$0xff] }
 0x368   :  { %6972 = vrot.lane.b32.xlu0 %v6971_v55, %s7278_s0  ;;  %v4533_v61 = vsel %vm11960_vm12, %v4532_v31, %v4528_v52  ;;  %v3761_v18 = vpack.c.bf16 %v11974_v27, %v11973_v26  ;;  %v9691_v41 = vpop.xlane.xlu1 %1482  ;;  %v6986_v0 = vpack.i.bf16 %v11976_v5, %v11975_v22  ;;  %v4227_v25 = vsel %vm11977_vm14, %v9603_v62, %v4222_v17  ;;  %vm11978_vm1 = vmmov %vm11972_vm4  ;;  %v11983_v52 = vld [vmem:[#allocation110_spill] sm:$0xff]  ;;  %v11984_v54 = vld [vmem:[#allocation109_spill] sm:$0xff] }
 0x369   :  { %v4538_v7 = vsel %vm11963_vm13, %v4537_v51, %v4533_v61  ;;  %v9696_v55 = vpop.xlane.xlu0 %1479  ;;  %v6991_v6 = vpack.i.bf16 %v11980_v59, %v11979_v56  ;;  %v4702_v29 = vsel %vm3455_vm0, %v4464_v48, %v11981_v10  ;;  %vm11982_vm15 = vcmask 261312   ;;  %v11990_v51 = vld [vmem:[#allocation121_spill] sm:$0xff]  ;;  %v11993_v22 = vld [vmem:[#allocation114_spill] sm:$0xff] }
 0x36a   :  { %6977 = vrot.lane.b32.xlu1 %v6976_v49, %s7278_s0  ;;  %v4543_v3 = vsel %vm11978_vm1, %v4542_v24, %v4538_v7  ;;  %v4246_v23 = vsel %vm11982_vm15, %v4245_v42, %v4241_v14  ;;  %v4255_v4 = vrot.slane %v3979_v45, %v8465_v39  ;;  %v3981_v47 = vunpack.c.h.b16 %v3760_v63  ;;  %v11985_v49 = vld [vmem:[#allocation80_spill] sm:$0xff]  ;;  %v11989_v45 = vld [vmem:[#allocation122_spill] sm:$0xff]  ;;  %v11994_v5 = vld [vmem:[#allocation113_spill] sm:$0xff] }
 0x36b   :  { %v4703_v8 = vsel %vm3455_vm0, %v4543_v3, %v4227_v25  ;;  %v4251_v11 = vsel %vm2823_vm5, %v4250_v32, %v4246_v23  ;;  %v4260_v62 = vrot.slane %v3980_v44, %v8473_v53  ;;  %v3982_v31 = vunpack.c.l.b16 %v3761_v18  ;;  %v11986_v63 = vld [vmem:[#allocation92_spill] sm:$0xff]  ;;  %v11991_v32 = vld [vmem:[#allocation126_spill] sm:$0xff]  ;;  %v11992_v44 = vld [vmem:[#allocation125_spill] sm:$0xff] }
 0x36c   :  { %6982 = vrot.lane.b32.xlu0 %v6981_v38, %s7278_s0  ;;  %v4707_v37 = vpack.c.b16 %v4703_v8, %v4703_v8  ;;  %v3762_v36 = vpack.c.bf16 %v11984_v54, %v11983_v52  ;;  %v9714_v33 = vpop.xlane.xlu1 %1488  ;;  %v4706_v2 = vpack.c.b16 %v4702_v29, %v4702_v29  ;;  %v6996_v21 = vpack.i.bf16 %v11986_v63, %v11985_v49  ;;  %v11995_v25 = vld [vmem:[#allocation95_spill] sm:$0xff]  ;;  %v11996_v3 = vld [vmem:[#allocation156_spill] sm:$0xff]  ;;  %vm12027_vm13 = vmmov %vm11982_vm15 }
 0x36d   :  { %v9718_v42 = vpop.xlane.xlu0 %1485  ;;  %v7001_v38 = vpack.i.bf16 %v11988_v13, %v11987_v12  ;;  %v4256_v9 = vsel %vm2830_vm6, %v4255_v4, %v4251_v11  ;;  %v4265_v17 = vrot.slane %v3981_v47, %v8479_v40  ;;  %v3765_v24 = vpack.c.bf16 %v11990_v51, %v11989_v45  ;;  %v11997_v29 = vld [vmem:[#allocation155_spill] sm:$0xff]  ;;  %v11998_v23 = vld [vmem:[#allocation100_spill] sm:$0xff]  ;;  %vm12057_vm14 = vmmov %vm12027_vm13 }
 0x36e   :  { %6987 = vrot.lane.b32.xlu1 %v6986_v0, %s7278_s0  ;;  %4938 = vmatprep.mubr.bf16.mxu0 %v4707_v37  ;;  %v4261_v48 = vsel %vm2837_vm7, %v4260_v62, %v4256_v9  ;;  %v3983_v14 = vunpack.c.h.b16 %v3761_v18  ;;  %v3766_v61 = vpack.c.bf16 %v11992_v44, %v11991_v32  ;;  %v4270_v26 = vrot.slane %v3982_v31, %v8494_v30  ;;  %v11999_v62 = vld [vmem:[#allocation130_spill] sm:$0xff]  ;;  %v12000_v37 = vld [vmem:[#allocation129_spill] sm:$0xff]  ;;  %v12001_v63 = vld [vmem:[#allocation99_spill] sm:$0xff] }
 0x36f   :  { %4939 = vmatmul.mubr.bf16.vlgmr.msra.gmra.mrb[4].mxu0 %v4706_v2  ;;  %v3984_v27 = vunpack.c.l.b16 %v3762_v36  ;;  %v3763_v0 = vpack.c.bf16 %v11994_v5, %v11993_v22  ;;  %v7006_v56 = vpack.i.bf16 %v11996_v3, %v11995_v25  ;;  %v4266_v18 = vsel %vm2844_vm8, %v4265_v17, %v4261_v48  ;;  %v12005_v17 = vld [vmem:[#allocation159_spill] sm:$0xff]  ;;  %v12006_v45 = vld [vmem:[#allocation128_spill] sm:$0xff]  ;;  %v12008_v48 = vld [vmem:[#allocation117_spill] sm:$0xff] }
 0x370   :  { %6992 = vrot.lane.b32.xlu0 %v6991_v6, %s7278_s0  ;;  %v9734_v7 = vpop.xlane.xlu1 %1494  ;;  %v3990_v6 = vunpack.c.l.b16 %v3765_v24  ;;  %v3991_v10 = vunpack.c.h.b16 %v3765_v24  ;;  %v7011_v4 = vpack.i.bf16 %v11998_v23, %v11997_v29  ;;  %v4275_v47 = vrot.slane %v3983_v14, %v8501_v34  ;;  %v12007_v24 = vld [vmem:[#allocation118_spill] sm:$0xff]  ;;  %v12011_v23 = vld [vmem:[#allocation133_spill] sm:$0xff]  ;;  %vm12066_vm1 = vmmov %vm12027_vm13 }
 0x371   :  { %v9738_v59 = vpop.xlane.xlu0 %1491  ;;  %v3985_v8 = vunpack.c.h.b16 %v3762_v36  ;;  %v3992_v11 = vunpack.c.l.b16 %v3766_v61  ;;  %v3767_v31 = vpack.c.bf16 %v12000_v37, %v11999_v62  ;;  %v4271_v52 = vsel %vm2851_vm9, %v4270_v26, %v4266_v18  ;;  %v12004_v36 = vld [vmem:[#allocation160_spill] sm:$0xff]  ;;  %v12010_v29 = vld [vmem:[#allocation134_spill] sm:$0xff]  ;;  %v12014_v62 = vld [vmem:[#allocation103_spill] sm:$0xff] }
 0x372   :  { %6997 = vrot.lane.b32.xlu1 %v6996_v21, %s7278_s0  ;;  %v4280_v54 = vrot.slane %v3984_v27, %v8508_v50  ;;  %v3986_v2 = vunpack.c.l.b16 %v3763_v0  ;;  %v12002_v21 = vld [vmem:[#allocation124_spill] sm:$0xff]  ;;  %v7026_v51 = vpack.i.bf16 %v12006_v45, %v12005_v17  ;;  %v9762_v14 = vpack.c.bf16 %v12008_v48, %v12007_v24 }
 0x373   :  { %v7016_v12 = vpack.i.bf16 %v12002_v21, %v12001_v63  ;;  %v4310_v32 = vrot.slane %v3990_v6, %v11955_v58  ;;  %v4314_v44 = vrot.slane %v3991_v10, %v11959_v20  ;;  %v3993_v26 = vunpack.c.h.b16 %v3766_v61  ;;  %v12021_v24 = vld [vmem:[#allocation132_spill] sm:$0xff] }
 0x374   :  { %7002 = vrot.lane.b32.xlu0 %v7001_v38, %s7278_s0  ;;  %v9750_v49 = vpop.xlane.xlu1 %1500  ;;  %v12003_v38 = vld [vmem:[#allocation123_spill] sm:$0xff]  ;;  %12009 = vst [vmem:[#allocation154_spill] sm:$0xff] %v9762_v14  ;;  %v4276_v27 = vsel %vm2858_vm10, %v4275_v47, %v4271_v52  ;;  %v4285_v22 = vrot.slane %v3985_v8, %v8518_v1  ;;  %v4319_v5 = vrot.slane %v3992_v11, %v8447_v28  ;;  %v3994_v25 = vunpack.c.l.b16 %v3767_v31  ;;  %v12013_v47 = vld [vmem:[#allocation104_spill] sm:$0xff] }
 0x375   :  { %v9754_v13 = vpop.xlane.xlu0 %1497  ;;  %v7021_v9 = vpack.i.bf16 %v12004_v36, %v12003_v38  ;;  %v4281_v3 = vsel %vm11150_vm11, %v4280_v54, %v4276_v27  ;;  %v4290_v18 = vrot.slane %v3986_v2, %v8536_v57  ;;  %v3768_v6 = vpack.c.bf16 %v12011_v23, %v12010_v29  ;;  %v12015_v11 = vld [vmem:[#allocation164_spill] sm:$0xff]  ;;  %v12029_v29 = vld [vmem:[#allocation137_spill] sm:$0xff] }
 0x376   :  { %7007 = vrot.lane.b32.xlu1 %v7006_v56, %s7278_s0  ;;  %v3987_v56 = vunpack.c.h.b16 %v3763_v0  ;;  %v7036_v37 = vpack.i.bf16 %v12015_v11, %v12014_v62  ;;  %v3988_v52 = vunpack.c.l.b16 %v9762_v14  ;;  %v4315_v0 = vsel %vm2802_vm2, %v4314_v44, %v4310_v32  ;;  %v12045_v32 = vld [vmem:[#allocation175_spill] sm:$0xff]  ;;  %v12046_v14 = vld [vmem:[#allocation84_spill] sm:$0xff] }
 0x377   :  { %v4324_v54 = vrot.slane %v3993_v26, %v8450_v43  ;;  %v3995_v2 = vunpack.c.h.b16 %v3767_v31  ;;  %vm12016_vm4 = vcmask 786112   ;;  %v4320_v21 = vsel %vm2809_vm3, %v4319_v5, %v4315_v0  ;;  %v12023_v26 = vld [vmem:[#allocation108_spill] sm:$0xff] }
 0x378   :  { %7012 = vrot.lane.b32.xlu0 %v7011_v4, %s7278_s0  ;;  %v9775_v61 = vpop.xlane.xlu1 %1506  ;;  %v12012_v4 = vld [vmem:[#allocation127_spill] sm:$0xff]  ;;  %v4286_v63 = vsel %vm12016_vm4, %v4285_v22, %v4281_v3  ;;  %v3789_v38 = vpack.c.bf16 %v9664_v19, %v9670_v46  ;;  %vm12017_vm12 = vcmask 851712   ;;  %v9796_v17 = vrot.slane %v3987_v56, %v11952_v16  ;;  %v12025_v5 = vld [vmem:[#allocation168_spill] sm:$0xff]  ;;  %vm12076_vm15 = vmmov %vm12016_vm4 }
 0x379   :  { %v9777_v10 = vpop.xlane.xlu0 %1503  ;;  %v7031_v8 = vpack.i.bf16 %v12013_v47, %v12012_v4  ;;  %v9793_v36 = vsel %vm12017_vm12, %v4290_v18, %v4286_v63  ;;  %v3996_v45 = vunpack.c.l.b16 %v3768_v6  ;;  %v3790_v44 = vpack.c.bf16 %v9691_v41, %v9696_v55  ;;  %v12022_v46 = vld [vmem:[#allocation131_spill] sm:$0xff]  ;;  %v12028_v18 = vld [vmem:[#allocation138_spill] sm:$0xff]  ;;  %v12032_v0 = vld [vmem:[#allocation136_spill] sm:$0xff] }
 0x37a   :  { %7017 = vrot.lane.b32.xlu1 %v7016_v12, %s7278_s0  ;;  %v4329_v12 = vrot.slane %v3994_v25, %v8460_v35  ;;  %12018 = vst [vmem:[#allocation157_spill] sm:$0xff] %v9793_v36  ;;  %12019 = vst [vmem:[#allocation158_spill] sm:$0xff] %v9796_v17  ;;  %v7046_v27 = vpack.i.bf16 %v12023_v26, %v12022_v46  ;;  %v12024_v22 = vld [vmem:[#allocation107_spill] sm:$0xff]  ;;  %v4325_v3 = vsel %vm12027_vm13, %v4324_v54, %v4320_v21  ;;  %v12034_v63 = vld [vmem:[#allocation112_spill] sm:$0xff] }
 0x37b   :  { %v7051_v25 = vpack.i.bf16 %v12025_v5, %v12024_v22  ;;  %v4334_v56 = vrot.slane %v3995_v2, %v8465_v39  ;;  %v3769_v23 = vpack.c.bf16 %v12029_v29, %v12028_v18  ;;  %v3997_v55 = vunpack.c.h.b16 %v3768_v6  ;;  %v12033_v2 = vld [vmem:[#allocation135_spill] sm:$0xff]  ;;  %v12040_v22 = vld [vmem:[#allocation140_spill] sm:$0xff]  ;;  %vm12083_vm13 = vmmov %vm12017_vm12 }
 0x37c   :  { %7022 = vrot.lane.b32.xlu0 %v7021_v9, %s7278_s0  ;;  %v9799_v31 = vpop.xlane.xlu1 %1512  ;;  %v12020_v9 = vld [vmem:[#allocation163_spill] sm:$0xff]  ;;  %v4330_v41 = vsel %vm2823_vm5, %v4329_v12, %v4325_v3  ;;  %v4038_v4 = vunpack.c.l.b16 %v3789_v38  ;;  %v4039_v47 = vunpack.c.h.b16 %v3789_v38  ;;  %v4339_v62 = vrot.slane %v3996_v45, %v8473_v53 }
 0x37d   :  { %v7041_v48 = vpack.i.bf16 %v12021_v24, %v12020_v9  ;;  %v9806_v19 = vpop.xlane.xlu0 %1509  ;;  %v7061_v21 = vpack.i.bf16 %v12034_v63, %v12033_v2  ;;  %v12035_v9 = vld [vmem:[#allocation111_spill] sm:$0xff]  ;;  %v12036_v24 = vld [vmem:[#allocation172_spill] sm:$0xff]  ;;  %v4040_v12 = vunpack.c.l.b16 %v3790_v44  ;;  %v3791_v38 = vpack.c.bf16 %v9714_v33, %v9718_v42 }
 0x37e   :  { %7027 = vrot.lane.b32.xlu1 %v7026_v51, %s7278_s0  ;;  %v9813_v51 = vrot.slane %v3988_v52, %v8551_v60  ;;  %v12031_v52 = vld [vmem:[#allocation167_spill] sm:$0xff]  ;;  %v4335_v18 = vsel %vm2830_vm6, %v4334_v56, %v4330_v41  ;;  %v3998_v29 = vunpack.c.l.b16 %v3769_v23  ;;  %v12044_v63 = vld [vmem:[#allocation176_spill] sm:$0xff]  ;;  %v4344_v33 = vrot.slane %v3997_v55, %v8479_v40 }
 0x37f   :  { %v7056_v54 = vpack.i.bf16 %v12032_v0, %v12031_v52  ;;  %v6252_v6 = vld [vmem:[%s10895_s2] ss:$0 sm:$0xff]  ;;  %v12042_v52 = vld [vmem:[#allocation116_spill] sm:$0xff]  ;;  %v4547_v42 = vrot.slane %v4038_v4, %v11955_v58  ;;  %v4551_v26 = vrot.slane %v4039_v47, %v11959_v20  ;;  %v4340_v56 = vsel %vm2837_vm7, %v4339_v62, %v4335_v18  ;;  %v12050_v18 = vld [vmem:[#allocation141_spill] sm:$0xff] }
 0x380   :  { %12026 = vst [vmem:[#allocation161_spill] sm:$0xff] %v9813_v51  ;;  %7032 = vrot.lane.b32.xlu0 %v7031_v8, %s7278_s0  ;;  %v9823_v11 = vpop.xlane.xlu1 %1518  ;;  %v12038_v45 = vld [vmem:[#allocation171_spill] sm:$0xff]  ;;  %v3999_v41 = vunpack.c.h.b16 %v3769_v23  ;;  %v4041_v15 = vunpack.c.h.b16 %v3790_v44  ;;  %v4556_v55 = vrot.slane %v4040_v12, %v8447_v28  ;;  %v4042_v60 = vunpack.c.l.b16 %v3791_v38  ;;  %v12049_v23 = vld [vmem:[#allocation142_spill] sm:$0xff] }
 0x381   :  { %12030 = vst [vmem:[#allocation162_spill] sm:$0xff] %v9823_v11  ;;  %v12039_v46 = vld [vmem:[#allocation79_spill] sm:$0xff]  ;;  %v9859_v4 = vpack.c.bf16 %v9734_v7, %v9738_v59  ;;  %v4349_v62 = vrot.slane %v3998_v29, %v8494_v30  ;;  %v4345_v11 = vsel %vm2844_vm8, %v4344_v33, %v4340_v56  ;;  %v4552_v7 = vsel %vm2802_vm2, %v4551_v26, %v4547_v42 }
 0x382   :  { %7037 = vrot.lane.b32.xlu1 %v7036_v37, %s7278_s0  ;;  %v9836_v37 = vpop.xlane.xlu0 %1515  ;;  %v12041_v5 = vld [vmem:[#allocation139_spill] sm:$0xff]  ;;  %v4561_v29 = vrot.slane %v4041_v15, %v8450_v43  ;;  %v4566_v33 = vrot.slane %v4042_v60, %v8460_v35 }
 0x383   :  { %12037 = vst [vmem:[#allocation165_spill] sm:$0xff] %v9836_v37  ;;  %v12043_v0 = vld [vmem:[#allocation115_spill] sm:$0xff]  ;;  %v6710_v51 = vpop.f32.mrb[0].mxu1  ;;  %v4043_v37 = vunpack.c.h.b16 %v3791_v38  ;;  %v4044_v26 = vunpack.c.l.b16 %v9859_v4  ;;  %v4350_v42 = vsel %vm2851_vm9, %v4349_v62, %v4345_v11  ;;  %v3793_v38 = vpack.c.bf16 %v9750_v49, %v9754_v13 }
 0x384   :  { %7042 = vrot.lane.b32.xlu0 %v7041_v48, %s7278_s0  ;;  %v12047_v3 = vld [vmem:[#allocation83_spill] sm:$0xff]  ;;  %v12048_v48 = vld [vmem:[#allocation153_spill] sm:$0xff]  ;;  %v6711_v2 = vpop.f32.mrb[1].mxu1  ;;  %v1525_v8 = vpop.xlane.xlu1 %1524  ;;  %v12058_v49 = vpack.i.bf16 %v12036_v24, %v12035_v9  ;;  %v12059_v9 = vpack.i.bf16 %v12039_v46, %v12038_v45  ;;  %v12062_v45 = vpack.i.bf16 %v12041_v5, %v12040_v22  ;;  %v12065_v22 = vpack.i.bf16 %v12043_v0, %v12042_v52 }
 0x385   :  { %v3695_v36 = vadd.f32 %v12048_v48, %v6252_v6  ;;  %v6712_v47 = vadd.f32 %v6711_v2, %v6710_v51  ;;  %v6713_v16 = vpop.f32.mrb[2].mxu1  ;;  %v9864_v6 = vpack.c.bf16 %v12050_v18, %v12049_v23  ;;  %v12052_v12 = vld [vmem:[#allocation143_spill] sm:$0xff]  ;;  %v4571_v11 = vrot.slane %v4043_v37, %v8465_v39 }
 0x386   :  { %7047 = vrot.lane.b32.xlu1 %v7046_v27, %s7278_s0  ;;  %v1522_v17 = vpop.xlane.xlu0 %1521  ;;  %v6714_v48 = vpop.f32.mrb[3].mxu1  ;;  %v12051_v27 = vld [vmem:[#allocation144_spill] sm:$0xff]  ;;  %v12054_v51 = vld [vmem:[#allocation119_spill] sm:$0xff]  ;;  %v3794_v37 = vpack.c.bf16 %v9775_v61, %v9777_v10  ;;  %v12067_v52 = vpack.i.bf16 %v12045_v32, %v12044_v63  ;;  %v12068_v32 = vpack.i.bf16 %v12047_v3, %v12046_v14  ;;  %v12071_v3 = vld [vmem:[#allocation150_spill] sm:$0xff] }
 0x387   :  { %v3797_v44 = vpack.c.bf16 %v1525_v8, %v1522_v17  ;;  %v7096_v57 = vpack.i.bf16 %v12052_v12, %v12051_v27  ;;  %v3735_v59 = vadd.f32 %v6712_v47, %v3695_v36  ;;  %v12053_v16 = vld [vmem:[#allocation120_spill] sm:$0xff]  ;;  %v4557_v8 = vsel %vm2809_vm3, %v4556_v55, %v4552_v7  ;;  %v12056_v47 = vld [vmem:[#allocation179_spill] sm:$0xff] }
 0x388   :  { %7052 = vrot.lane.b32.xlu0 %v7051_v25, %s7278_s0  ;;  %v7101_v2 = vpack.i.bf16 %v12054_v51, %v12053_v16  ;;  %v1531_v17 = vpop.xlane.xlu1 %1530  ;;  %v4354_v25 = vrot.slane %v3999_v41, %v8501_v34  ;;  %v4000_v15 = vunpack.c.l.b16 %v9864_v6  ;;  %v12055_v55 = vld [vmem:[#allocation180_spill] sm:$0xff]  ;;  %v4562_v48 = vsel %vm12057_vm14, %v4561_v29, %v4557_v8 }
 0x389   :  { %v4054_v23 = vunpack.c.l.b16 %v3797_v44  ;;  %v4055_v18 = vunpack.c.h.b16 %v3797_v44  ;;  %3740 = vst [vmem:[#allocation5] sm:$0x3] %v3735_v59  ;;  %v7106_v44 = vpack.i.bf16 %v12056_v47, %v12055_v55  ;;  %v4045_v59 = vunpack.c.h.b16 %v9859_v4  ;;  %v12080_v47 = vld [vmem:[#allocation86_spill] sm:$0xff] }
 0x38a   :  { %7057 = vrot.lane.b32.xlu1 %v7056_v54, %s7278_s0  ;;  %v1528_v36 = vpop.xlane.xlu0 %1527  ;;  %v4001_v54 = vunpack.c.h.b16 %v9864_v6  ;;  %v4567_v6 = vsel %vm2823_vm5, %v4566_v33, %v4562_v48  ;;  %v4046_v29 = vunpack.c.l.b16 %v3793_v38  ;;  %v4359_v24 = vrot.slane %v4000_v15, %v8508_v50  ;;  %v12060_v33 = vld [vmem:[#allocation88_spill] sm:$0xff]  ;;  %v12063_v15 = vld [vmem:[#allocation146_spill] sm:$0xff]  ;;  %v12064_v48 = vld [vmem:[#allocation145_spill] sm:$0xff] }
 0x38b   :  { %v3798_v56 = vpack.c.bf16 %v1531_v17, %v1528_v36  ;;  %v4626_v41 = vrot.slane %v4054_v23, %v11955_v58  ;;  %v4630_v60 = vrot.slane %v4055_v18, %v11959_v20  ;;  %v4576_v23 = vrot.slane %v4044_v26, %v8473_v53  ;;  %v12061_v26 = vld [vmem:[#allocation87_spill] sm:$0xff] }
 0x38c   :  { %7062 = vrot.lane.b32.xlu0 %v7061_v21, %s7278_s0  ;;  %v1537_v13 = vpop.xlane.xlu1 %1536  ;;  %v4355_v21 = vsel %vm2858_vm10, %v4354_v25, %v4350_v42  ;;  %v7111_v36 = vpack.i.bf16 %v12061_v26, %v12060_v33  ;;  %v4572_v42 = vsel %vm2830_vm6, %v4571_v11, %v4567_v6  ;;  %v4364_v5 = vrot.slane %v4001_v54, %v8518_v1 }
 0x38d   :  { %v4056_v62 = vunpack.c.l.b16 %v3798_v56  ;;  %v4057_v7 = vunpack.c.h.b16 %v3798_v56  ;;  %v4631_v25 = vsel %vm2802_vm2, %v4630_v60, %v4626_v41  ;;  %v9919_v41 = vpack.c.bf16 %v12064_v48, %v12063_v15 }
 0x38e   :  { %7067 = vrot.lane.b32.xlu1 %v12058_v49, %s7278_s0  ;;  %v1534_v18 = vpop.xlane.xlu0 %1533  ;;  %v4577_v60 = vsel %vm2837_vm7, %v4576_v23, %v4572_v42  ;;  %v4586_v49 = vrot.slane %v4046_v29, %v8494_v30  ;;  %v3795_v23 = vpack.c.bf16 %v9799_v31, %v9806_v19  ;;  %v4360_v29 = vsel %vm11150_vm11, %v4359_v24, %v4355_v21 }
 0x38f   :  { %v4635_v17 = vrot.slane %v4056_v62, %v8447_v28  ;;  %v3799_v8 = vpack.c.bf16 %v1537_v13, %v1534_v18  ;;  %v4640_v4 = vrot.slane %v4057_v7, %v8450_v43  ;;  %v4581_v62 = vrot.slane %v4045_v59, %v8479_v40 }
 0x390   :  { %7072 = vrot.lane.b32.xlu0 %v12059_v9, %s7278_s0  ;;  %v1543_v46 = vpop.xlane.xlu1 %1542  ;;  %v4047_v7 = vunpack.c.h.b16 %v3793_v38  ;;  %v4048_v13 = vunpack.c.l.b16 %v3794_v37  ;;  %v4002_v54 = vunpack.c.l.b16 %v9919_v41  ;;  %v4050_v63 = vunpack.c.l.b16 %v3795_v23 }
 0x391   :  { %v4636_v61 = vsel %vm2809_vm3, %v4635_v17, %v4631_v25  ;;  %v4058_v10 = vunpack.c.l.b16 %v3799_v8  ;;  %v4059_v56 = vunpack.c.h.b16 %v3799_v8  ;;  %v4582_v31 = vsel %vm2844_vm8, %v4581_v62, %v4577_v60 }
 0x392   :  { %7077 = vrot.lane.b32.xlu1 %v12062_v45, %s7278_s0  ;;  %v1540_v11 = vpop.xlane.xlu0 %1539  ;;  %v4641_v59 = vsel %vm12066_vm1, %v4640_v4, %v4636_v61  ;;  %v4591_v19 = vrot.slane %v4047_v7, %v8501_v34  ;;  %v4049_v25 = vunpack.c.h.b16 %v3794_v37  ;;  %v4587_v21 = vsel %vm2851_vm9, %v4586_v49, %v4582_v31  ;;  %v12072_v7 = vld [vmem:[#allocation149_spill] sm:$0xff] }
 0x393   :  { %v4645_v6 = vrot.slane %v4058_v10, %v8460_v35  ;;  %v3800_v18 = vpack.c.bf16 %v1543_v46, %v1540_v11  ;;  %v4650_v38 = vrot.slane %v4059_v56, %v8465_v39  ;;  %v4596_v24 = vrot.slane %v4048_v13, %v8508_v50  ;;  %v12069_v10 = vld [vmem:[#allocation165_spill] sm:$0xff]  ;;  %v12070_v56 = vld [vmem:[#allocation162_spill] sm:$0xff] }
 0x394   :  { %7082 = vrot.lane.b32.xlu0 %v12065_v22, %s7278_s0  ;;  %v1549_v0 = vpop.xlane.xlu1 %1548  ;;  %v3796_v45 = vpack.c.bf16 %v12070_v56, %v12069_v10  ;;  %v4003_v15 = vunpack.c.h.b16 %v9919_v41  ;;  %v9962_v11 = vpack.c.bf16 %v12072_v7, %v12071_v3  ;;  %v4592_v49 = vsel %vm2858_vm10, %v4591_v19, %v4587_v21  ;;  %v12073_v41 = vld [vmem:[#allocation148_spill] sm:$0xff] }
 0x395   :  { %v4646_v17 = vsel %vm2823_vm5, %v4645_v6, %v4641_v59  ;;  %v4060_v8 = vunpack.c.l.b16 %v3800_v18  ;;  %v4061_v9 = vunpack.c.h.b16 %v3800_v18  ;;  %v4601_v13 = vrot.slane %v4049_v25, %v8518_v1  ;;  %v12074_v18 = vld [vmem:[#allocation147_spill] sm:$0xff]  ;;  %v12077_v21 = vld [vmem:[#allocation184_spill] sm:$0xff] }
 0x396   :  { %7087 = vrot.lane.b32.xlu1 %v12067_v52, %s7278_s0  ;;  %v1546_v4 = vpop.xlane.xlu0 %1545  ;;  %v4651_v46 = vsel %vm2830_vm6, %v4650_v38, %v4646_v17  ;;  %v7116_v22 = vpack.i.bf16 %v12074_v18, %v12073_v41  ;;  %v4597_v59 = vsel %vm11150_vm11, %v4596_v24, %v4592_v49  ;;  %v4051_v38 = vunpack.c.h.b16 %v3795_v23  ;;  %v12078_v24 = vld [vmem:[#allocation183_spill] sm:$0xff]  ;;  %v12085_v49 = vld [vmem:[#allocation89_spill] sm:$0xff] }
 0x397   :  { %v4655_v42 = vrot.slane %v4060_v8, %v8473_v53  ;;  %v3801_v61 = vpack.c.bf16 %v1549_v0, %v1546_v4  ;;  %v4660_v37 = vrot.slane %v4061_v9, %v8479_v40  ;;  %v4052_v8 = vunpack.c.l.b16 %v3796_v45  ;;  %v12086_v18 = vld [vmem:[#allocation157_spill] sm:$0xff] }
 0x398   :  { %7092 = vrot.lane.b32.xlu0 %v12068_v32, %s7278_s0  ;;  %v1555_v14 = vpop.xlane.xlu1 %1554  ;;  %v4365_v0 = vsel %vm12076_vm15, %v4364_v5, %v4360_v29  ;;  %v4602_v25 = vsel %vm12016_vm4, %v4601_v13, %v4597_v59  ;;  %v7121_v5 = vpack.i.bf16 %v12078_v24, %v12077_v21  ;;  %v12079_v29 = vld [vmem:[#allocation85_spill] sm:$0xff]  ;;  %vm12084_vm14 = vcmask 917312  }
 0x399   :  { %v4656_v48 = vsel %vm2837_vm7, %v4655_v42, %v4651_v46  ;;  %v4062_v60 = vunpack.c.l.b16 %v3801_v61  ;;  %v4063_v62 = vunpack.c.h.b16 %v3801_v61  ;;  %v4611_v42 = vrot.slane %v4051_v38, %v12079_v29  ;;  %vm12088_vm1 = vmmov %vm12084_vm14 }
 0x39a   :  { %7097 = vrot.lane.b32.xlu1 %v7096_v57, %s7278_s0  ;;  %v1552_v6 = vpop.xlane.xlu0 %1551  ;;  %v12075_v57 = vld [vmem:[#allocation77_spill] sm:$0xff]  ;;  %v4661_v9 = vsel %vm2844_vm8, %v4660_v37, %v4656_v48  ;;  %v4053_v61 = vunpack.c.h.b16 %v3796_v45  ;;  %v12081_v48 = vld [vmem:[#allocation152_spill] sm:$0xff]  ;;  %v4374_v26 = vrot.slane %v4003_v15, %v12079_v29  ;;  %vm12089_vm15 = vcmask 982912  }
 0x39b   :  { %v4665_v17 = vrot.slane %v4062_v60, %v8494_v30  ;;  %v3802_v27 = vpack.c.bf16 %v1555_v14, %v1552_v6  ;;  %v4606_v12 = vrot.slane %v4050_v63, %v12075_v57  ;;  %v4670_v52 = vrot.slane %v4063_v62, %v8501_v34  ;;  %v12082_v60 = vld [vmem:[#allocation151_spill] sm:$0xff] }
 0x39c   :  { %7102 = vrot.lane.b32.xlu0 %v7101_v2, %s7278_s0  ;;  %v1561_v16 = vpop.xlane.xlu1 %1560  ;;  %v4369_v51 = vrot.slane %v4002_v54, %v12075_v57  ;;  %v4004_v2 = vunpack.c.l.b16 %v9962_v11  ;;  %v7126_v62 = vpack.i.bf16 %v12082_v60, %v12081_v48  ;;  %v4621_v13 = vrot.slane %v4053_v61, %v12085_v49 }
 0x39d   :  { %v4666_v31 = vsel %vm2851_vm9, %v4665_v17, %v4661_v9  ;;  %v4064_v23 = vunpack.c.l.b16 %v3802_v27  ;;  %v4065_v19 = vunpack.c.h.b16 %v3802_v27  ;;  %v4607_v55 = vsel %vm12017_vm12, %v4606_v12, %v4602_v25  ;;  %v12090_v17 = vld [vmem:[#allocation154_spill] sm:$0xff] }
 0x39e   :  { %7107 = vrot.lane.b32.xlu1 %v7106_v44, %s7278_s0  ;;  %v1558_v4 = vpop.xlane.xlu0 %1557  ;;  %v4616_v44 = vrot.slane %v4052_v8, %v12080_v47  ;;  %v4671_v54 = vsel %vm2858_vm10, %v4670_v52, %v4666_v31  ;;  %v4370_v33 = vsel %vm12083_vm13, %v4369_v51, %v4365_v0  ;;  %v4379_v14 = vrot.slane %v4004_v2, %v12080_v47  ;;  %v12092_v31 = vld [vmem:[#allocation161_spill] sm:$0xff]  ;;  %vm12093_vm13 = vmmov %vm12089_vm15 }
 0x39f   :  { %v4675_v32 = vrot.slane %v4064_v23, %v8508_v50  ;;  %v3803_v63 = vpack.c.bf16 %v1561_v16, %v1558_v4  ;;  %v4680_v10 = vrot.slane %v4065_v19, %v8518_v1  ;;  %v4612_v7 = vsel %vm12084_vm14, %v4611_v42, %v4607_v55  ;;  %vm12094_vm14 = vmmov %vm12088_vm1 }
 0x3a0   :  { %7112 = vrot.lane.b32.xlu0 %v7111_v36, %s7278_s0  ;;  %v1567_v37 = vpop.xlane.xlu1 %1566  ;;  %v4005_v36 = vunpack.c.h.b16 %v9962_v11  ;;  %v4617_v15 = vsel %vm12089_vm15, %v4616_v44, %v4612_v7  ;;  %v12091_v27 = vunpack.c.h.b16 %v12090_v17  ;;  %v4375_v19 = vsel %vm12094_vm14, %v4374_v26, %v4370_v33 }
 0x3a1   :  { %v4676_v56 = vsel %vm11150_vm11, %v4675_v32, %v4671_v54  ;;  %v4066_v46 = vunpack.c.l.b16 %v3803_v63  ;;  %v4067_v45 = vunpack.c.h.b16 %v3803_v63  ;;  %vm12096_vm15 = vcmask 1048512  }
 0x3a2   :  { %7117 = vrot.lane.b32.xlu1 %v7116_v22, %s7278_s0  ;;  %v1564_v3 = vpop.xlane.xlu0 %1563  ;;  %v12087_v22 = vld [vmem:[#allocation158_spill] sm:$0xff]  ;;  %v4681_v11 = vsel %vm12016_vm4, %v4680_v10, %v4676_v56  ;;  %v4305_v12 = vrot.slane %v12091_v27, %v12085_v49  ;;  %v4384_v16 = vrot.slane %v4005_v36, %v12085_v49  ;;  %v4622_v21 = vsel %vm12096_vm15, %v4621_v13, %v4617_v15  ;;  %vm12097_vm4 = vmmov %vm12094_vm14 }
 0x3a3   :  { %v4685_v6 = vrot.slane %v4066_v46, %v12075_v57  ;;  %v3804_v41 = vpack.c.bf16 %v1567_v37, %v1564_v3  ;;  %v4296_v59 = vsel %vm12088_vm1, %v12087_v22, %v12086_v18  ;;  %v4690_v38 = vrot.slane %v4067_v45, %v12079_v29  ;;  %vm12095_vm1 = vmmov %vm12093_vm13 }
 0x3a4   :  { %7122 = vrot.lane.b32.xlu0 %v7121_v5, %s7278_s0  ;;  %v10021_v0 = vpop.permute.xlu1 %6817  ;;  %v4301_v23 = vsel %vm12093_vm13, %v12092_v31, %v4296_v59  ;;  %v4380_v4 = vsel %vm12095_vm1, %v4379_v14, %v4375_v19  ;;  %vm12099_vm13 = vmmov %vm12096_vm15 }
 0x3a5   :  { %v4686_v8 = vsel %vm12017_vm12, %v4685_v6, %v4681_v11  ;;  %v4068_v9 = vunpack.c.l.b16 %v3804_v41  ;;  %v4069_v52 = vunpack.c.h.b16 %v3804_v41  ;;  %vm12098_vm12 = vmmov %vm12095_vm1  ;;  %v4306_v61 = vsel %vm12099_vm13, %v4305_v12, %v4301_v23 }
 0x3a6   :  { %7127 = vrot.lane.b32.xlu1 %v7126_v62, %s7278_s0  ;;  %v10027_v51 = vpop.permute.xlu0 %6812  ;;  %v4691_v24 = vsel %vm12097_vm4, %v4690_v38, %v4686_v8  ;;  %vm12100_vm14 = vmmov %vm12099_vm13  ;;  %v4704_v55 = vsel %vm3455_vm0, %v4622_v21, %v4306_v61 }
 0x3a7   :  { %v4695_v2 = vrot.slane %v4068_v9, %v12080_v47  ;;  %v4700_v25 = vrot.slane %v4069_v52, %v12085_v49  ;;  %v4385_v32 = vsel %vm12100_vm14, %v4384_v16, %v4380_v4  ;;  %vm12101_vm11 = vmmov %vm12099_vm13  ;;  %v4708_v46 = vpack.c.b16 %v4704_v55, %v4704_v55 }
 0x3a8   :  { %v10034_v5 = vpop.permute.xlu1 %6822  ;;  %v6815_v59 = vunpack.i.h.bf16 %v10027_v51 }
 0x3a9   :  { %v4696_v42 = vsel %vm12098_vm12, %v4695_v2, %v4691_v24 }
 0x3aa   :  { %v4701_v63 = vsel %vm12101_vm11, %v4700_v25, %v4696_v42  ;;  %v10041_v44 = vpop.permute.xlu0 %6832  ;;  %vm12102_vm11 = vcmask 130048  }
 0x3ab   :  { %v4705_v54 = vsel %vm3455_vm0, %v4701_v63, %v4385_v32  ;;  %vm12103_vm1 = vmmov %vm12102_vm11 }
 0x3ac   :  { %v4709_v10 = vpack.c.b16 %v4705_v54, %v4705_v54  ;;  %v10044_v56 = vpop.permute.xlu1 %6827  ;;  %vm12104_vm15 = vmmov %vm12103_vm1 }
 0x3ad   :  { %v2083_v27 = vsel %vm12104_vm15, %v6815_v59, 0.0  ;;  %vm12105_vm4 = vmmov %vm12103_vm1 }
 0x3ae   :  { %4978 = vmatprep.mubr.bf16.mxu1 %v4709_v10  ;;  %v10046_v45 = vpop.permute.xlu0 %6842  ;;  %vm12106_vm12 = vmmov %vm12103_vm1 }
 0x3af   :  { %4979 = vmatmul.mubr.bf16.vlgmr.msra.gmra.mrb[4].mxu1 %v4708_v46  ;;  %vm12107_vm13 = vmmov %vm12103_vm1 }
 0x3b0   :  { %v10048_v37 = vpop.permute.xlu1 %6837  ;;  %vm12108_vm14 = vmmov %vm12103_vm1 }
 0x3b1   :  { %vm12110_vm15 = vmmov %vm12103_vm1 }
 0x3b2   :  { %v6853_v48 = vpop.permute.xlu0 %6852 }
 0x3b3   :  { %v6854_v36 = vunpack.i.l.bf16 %v6853_v48  ;;  %v6855_v41 = vunpack.i.h.bf16 %v6853_v48 }
 0x3b4   :  { %v10050_v60 = vpop.permute.xlu1 %6847 }
 0x3b5   :  { %v2128_v13 = vsel %vm12102_vm11, %v6854_v36, 0.0  ;;  %v2131_v15 = vsel %vm12103_vm1, %v6855_v41, 0.0  ;;  %vm12109_vm11 = vmmov %vm12103_vm1 }
 0x3b6   :  { %v10052_v62 = vpop.permute.xlu0 %6862 }
 0x3b8   :  { %v10054_v33 = vpop.permute.xlu1 %6857 }
 0x3b9   :  { %v6860_v17 = vunpack.i.h.bf16 %v10054_v33 }
 0x3ba   :  { %v10056_v26 = vpop.permute.xlu0 %6872 }
 0x3bb   :  { %v2137_v9 = vsel %vm12105_vm4, %v6860_v17, 0.0  ;;  %vm12111_vm4 = vmmov %vm12103_vm1 }
 0x3bc   :  { %v10058_v14 = vpop.permute.xlu1 %6867 }
 0x3be   :  { %v10060_v3 = vpop.permute.xlu0 %6882 }
 0x3c0   :  { %v10062_v7 = vpop.permute.xlu1 %6877 }
 0x3c2   :  { %v10065_v6 = vpop.permute.xlu0 %6892 }
 0x3c3   :  { %2129 = vadd.xlane.f32.xlu0 %v2128_v13 }
 0x3c4   :  { %v10067_v18 = vpop.permute.xlu1 %6887 }
 0x3c6   :  { %v10069_v22 = vpop.permute.xlu0 %6902 }
 0x3c8   :  { %v10073_v11 = vpop.permute.xlu1 %6897 }
 0x3ca   :  { %2132 = vadd.xlane.f32.xlu1 %v2131_v15  ;;  %v10075_v38 = vpop.permute.xlu0 %6912 }
 0x3cc   :  { %v10079_v12 = vpop.permute.xlu1 %6907 }
 0x3ce   :  { %2084 = vadd.xlane.f32.xlu1 %v2083_v27  ;;  %v10081_v8 = vpop.permute.xlu0 %6922  ;;  %v6820_v27 = vunpack.i.h.bf16 %v10021_v0 }
 0x3d0   :  { %v10084_v52 = vpop.permute.xlu1 %6917  ;;  %v2089_v47 = vsel %vm12103_vm1, %v6820_v27, 0.0 }
 0x3d2   :  { %2138 = vadd.xlane.f32.xlu1 %v2137_v9  ;;  %v10086_v31 = vpop.permute.xlu0 %6932  ;;  %v6814_v9 = vunpack.i.l.bf16 %v10027_v51 }
 0x3d3   :  { %v6935_v49 = vunpack.i.h.bf16 %v10086_v31 }
 0x3d4   :  { %v10088_v23 = vpop.permute.xlu1 %6927 }
 0x3d5   :  { %v2227_v51 = vsel %vm12111_vm4, %v6935_v49, 0.0  ;;  %vm12117_vm4 = vmmov %vm12103_vm1 }
 0x3d6   :  { %v10090_v19 = vpop.permute.xlu0 %6942 }
 0x3d8   :  { %v10092_v16 = vpop.permute.xlu1 %6937 }
 0x3da   :  { %v10094_v2 = vpop.permute.xlu0 %6952 }
 0x3dc   :  { %v10096_v25 = vpop.permute.xlu1 %6947 }
 0x3de   :  { %v10098_v4 = vpop.permute.xlu0 %6962 }
 0x3e0   :  { %v10100_v21 = vpop.permute.xlu1 %6957 }
 0x3e2   :  { %v6973_v24 = vpop.permute.xlu0 %6972 }
 0x3e3   :  { %v6975_v42 = vunpack.i.h.bf16 %v6973_v24  ;;  %v6974_v29 = vunpack.i.l.bf16 %v6973_v24  ;;  %v6865_v24 = vunpack.i.h.bf16 %v10052_v62 }
 0x3e4   :  { %v10102_v61 = vpop.permute.xlu1 %6967 }
 0x3e5   :  { %v2275_v32 = vsel %vm12106_vm12, %v6975_v42, 0.0  ;;  %vm12112_vm12 = vmmov %vm12103_vm1 }
 0x3e6   :  { %v10105_v63 = vpop.permute.xlu0 %6982  ;;  %2276 = vadd.xlane.f32.xlu1 %v2275_v32  ;;  %v6859_v32 = vunpack.i.l.bf16 %v10054_v33 }
 0x3e8   :  { %v6978_v55 = vpop.permute.xlu1 %6977 }
 0x3ea   :  { %v10107_v54 = vpop.permute.xlu0 %6992 }
 0x3ec   :  { %v10109_v10 = vpop.permute.xlu1 %6987 }
 0x3ee   :  { %v7003_v46 = vpop.permute.xlu0 %7002 }
 0x3ef   :  { %v7004_v13 = vunpack.i.l.bf16 %v7003_v46 }
 0x3f0   :  { %v10111_v48 = vpop.permute.xlu1 %6997 }
 0x3f1   :  { %v7000_v36 = vunpack.i.h.bf16 %v10111_v48  ;;  %v2323_v17 = vsel %vm12108_vm14, %v7004_v13, 0.0  ;;  %v6980_v13 = vunpack.i.h.bf16 %v6978_v55  ;;  %vm12114_vm14 = vmmov %vm12103_vm1 }
 0x3f2   :  { %v2272_v27 = vsel %vm12114_vm14, %v6974_v29, 0.0  ;;  %vm12120_vm14 = vmmov %vm12103_vm1 }
 0x3f3   :  { %v2320_v41 = vsel %vm12107_vm13, %v7000_v36, 0.0  ;;  %v2080_v36 = vsel %vm12110_vm15, %v6814_v9, 0.0  ;;  %vm12113_vm13 = vmmov %vm12103_vm1  ;;  %v6819_v9 = vunpack.i.l.bf16 %v10021_v0  ;;  %v6979_v0 = vunpack.i.l.bf16 %v6978_v55 }
 0x3f4   :  { %v7008_v59 = vpop.permute.xlu1 %7007  ;;  %2321 = vadd.xlane.f32.xlu0 %v2320_v41  ;;  %v10123_v41 = vpop.permute.xlu0 %7012  ;;  %vm12116_vm15 = vmmov %vm12103_vm1  ;;  %v6864_v55 = vunpack.i.l.bf16 %v10052_v62  ;;  %v6939_v62 = vunpack.i.l.bf16 %v10092_v16 }
 0x3f5   :  { %v7009_v15 = vunpack.i.l.bf16 %v7008_v59  ;;  %v7014_v33 = vunpack.i.l.bf16 %v10123_v41  ;;  %v2086_v29 = vsel %vm12117_vm4, %v6819_v9, 0.0  ;;  %vm12123_vm4 = vmmov %vm12103_vm1 }
 0x3f7   :  { %v2329_v42 = vsel %vm12109_vm11, %v7009_v15, 0.0  ;;  %v2134_v15 = vsel %vm12112_vm12, %v6859_v32, 0.0  ;;  %vm12115_vm11 = vmmov %vm12103_vm1  ;;  %v6895_v32 = vunpack.i.h.bf16 %v10065_v6 }
 0x3f8   :  { %2324 = vadd.xlane.f32.xlu0 %v2323_v17  ;;  %2330 = vadd.xlane.f32.xlu1 %v2329_v42  ;;  %v7005_v17 = vunpack.i.h.bf16 %v7003_v46  ;;  %v2281_v42 = vsel %vm12113_vm13, %v6980_v13, 0.0  ;;  %v6934_v46 = vunpack.i.l.bf16 %v10086_v31  ;;  %v7018_v13 = vpop.permute.xlu1 %7017  ;;  %vm12118_vm12 = vmmov %vm12103_vm1 }
 0x3f9   :  { %vm12119_vm13 = vmmov %vm12103_vm1 }
 0x3fa   :  { %v2326_v49 = vsel %vm12103_vm1, %v7005_v17, 0.0  ;;  %v7019_v17 = vunpack.i.l.bf16 %v7018_v13 }
 0x3fc   :  { %2090 = vadd.xlane.f32.xlu1 %v2089_v47  ;;  %2081 = vadd.xlane.f32.xlu0 %v2080_v36  ;;  %v2419_v47 = vsel %vm12115_vm11, %v7014_v33, 0.0  ;;  %v2143_v36 = vsel %vm12116_vm15, %v6865_v24, 0.0  ;;  %v2224_v33 = vsel %vm12119_vm13, %v6934_v46, 0.0  ;;  %vm12121_vm11 = vmmov %vm12103_vm1  ;;  %v2335_v24 = vsel %vm12103_vm1, %v7019_v17, 0.0 }
 0x3fd   :  { %vm12122_vm15 = vmmov %vm12103_vm1  ;;  %v7015_v17 = vunpack.i.h.bf16 %v10123_v41 }
 0x3fe   :  { %vm12125_vm13 = vmmov %vm12103_vm1 }
 0x400   :  { %2228 = vadd.xlane.f32.xlu1 %v2227_v51  ;;  %2135 = vadd.xlane.f32.xlu0 %v2134_v15  ;;  %v6940_v51 = vunpack.i.h.bf16 %v10092_v16  ;;  %v2179_v15 = vsel %vm12118_vm12, %v6895_v32, 0.0  ;;  %vm12124_vm12 = vmmov %vm12103_vm1 }
 0x402   :  { %v2233_v31 = vsel %vm12120_vm14, %v6940_v51, 0.0  ;;  %vm12126_vm14 = vmmov %vm12103_vm1 }
 0x404   :  { %2282 = vadd.xlane.f32.xlu1 %v2281_v42  ;;  %2273 = vadd.xlane.f32.xlu0 %v2272_v27  ;;  %v7023_v42 = vpop.permute.xlu0 %7022  ;;  %v7010_v27 = vunpack.i.h.bf16 %v7008_v59 }
 0x405   :  { %v7024_v9 = vunpack.i.l.bf16 %v7023_v42 }
 0x406   :  { %v2416_v32 = vsel %vm12122_vm15, %v7010_v27, 0.0  ;;  %v2230_v27 = vsel %vm12103_vm1, %v6939_v62, 0.0  ;;  %vm12128_vm15 = vmmov %vm12103_vm1 }
 0x407   :  { %v2371_v59 = vsel %vm12123_vm4, %v7024_v9, 0.0  ;;  %vm12129_vm4 = vmmov %vm12103_vm1 }
 0x408   :  { %2420 = vadd.xlane.f32.xlu1 %v2419_v47  ;;  %2327 = vadd.xlane.f32.xlu0 %v2326_v49  ;;  %v2278_v47 = vsel %vm12121_vm11, %v6979_v0, 0.0  ;;  %v10144_v49 = vpop.permute.xlu1 %7027  ;;  %v6825_v0 = vunpack.i.h.bf16 %v10034_v5  ;;  %vm12127_vm11 = vmmov %vm12103_vm1  ;;  %v2332_v16 = vsel %vm12129_vm4, %v7015_v17, 0.0 }
 0x409   :  { %v7029_v46 = vunpack.i.l.bf16 %v10144_v49  ;;  %vm12135_vm4 = vmmov %vm12103_vm1 }
 0x40b   :  { %v2425_v51 = vsel %vm12125_vm13, %v7029_v46, 0.0  ;;  %vm12131_vm13 = vmmov %vm12103_vm1 }
 0x40c   :  { %2144 = vadd.xlane.f32.xlu1 %v2143_v36  ;;  %2087 = vadd.xlane.f32.xlu0 %v2086_v29  ;;  %v6894_v36 = vunpack.i.l.bf16 %v10065_v6  ;;  %v2140_v29 = vsel %vm12124_vm12, %v6864_v55, 0.0  ;;  %v2095_v6 = vsel %vm12127_vm11, %v6825_v0, 0.0  ;;  %v7025_v55 = vunpack.i.h.bf16 %v7023_v42  ;;  %vm12130_vm12 = vmmov %vm12103_vm1 }
 0x40d   :  { %vm12133_vm11 = vmmov %vm12103_vm1  ;;  %v6899_v42 = vunpack.i.l.bf16 %v10073_v11 }
 0x410   :  { %2180 = vadd.xlane.f32.xlu1 %v2179_v15  ;;  %2225 = vadd.xlane.f32.xlu0 %v2224_v33  ;;  %v2176_v15 = vsel %vm12126_vm14, %v6894_v36, 0.0  ;;  %v6900_v33 = vunpack.i.h.bf16 %v10073_v11  ;;  %vm12132_vm14 = vmmov %vm12103_vm1  ;;  %v7030_v11 = vunpack.i.h.bf16 %v10144_v49 }
 0x412   :  { %v2185_v9 = vsel %vm12128_vm15, %v6900_v33, 0.0  ;;  %vm12134_vm15 = vmmov %vm12103_vm1 }
 0x414   :  { %2234 = vadd.xlane.f32.xlu1 %v2233_v31  ;;  %2279 = vadd.xlane.f32.xlu0 %v2278_v47  ;;  %v6985_v31 = vunpack.i.h.bf16 %v10105_v63  ;;  %v7020_v47 = vunpack.i.h.bf16 %v7018_v13  ;;  %v6870_v13 = vunpack.i.h.bf16 %v10058_v14 }
 0x416   :  { %v2368_v46 = vsel %vm12131_vm13, %v7020_v47, 0.0  ;;  %v2149_v0 = vsel %vm12103_vm1, %v6870_v13, 0.0  ;;  %vm12137_vm13 = vmmov %vm12103_vm1 }
 0x418   :  { %2336 = vadd.xlane.f32.xlu1 %v2335_v24  ;;  %2417 = vadd.xlane.f32.xlu0 %v2416_v32  ;;  %v10163_v24 = vpop.permute.xlu0 %7032  ;;  %v2287_v32 = vsel %vm12130_vm12, %v6985_v31, 0.0  ;;  %vm12136_vm12 = vmmov %vm12103_vm1 }
 0x419   :  { %v7034_v41 = vunpack.i.l.bf16 %v10163_v24 }
 0x41b   :  { %v2377_v36 = vsel %vm12132_vm14, %v7034_v41, 0.0  ;;  %vm12138_vm14 = vmmov %vm12103_vm1 }
 0x41c   :  { %2372 = vadd.xlane.f32.xlu1 %v2371_v59  ;;  %2141 = vadd.xlane.f32.xlu0 %v2140_v29  ;;  %v6824_v59 = vunpack.i.l.bf16 %v10034_v5  ;;  %v2422_v29 = vsel %vm12133_vm11, %v7025_v55, 0.0  ;;  %v6984_v5 = vunpack.i.l.bf16 %v10105_v63  ;;  %v6830_v63 = vunpack.i.h.bf16 %v10044_v56  ;;  %vm12139_vm11 = vmmov %vm12103_vm1 }
 0x41d   :  { %v6869_v55 = vunpack.i.l.bf16 %v10058_v14 }
 0x41e   :  { %v2092_v62 = vsel %vm12134_vm15, %v6824_v59, 0.0  ;;  %vm12140_vm15 = vmmov %vm12103_vm1 }
 0x41f   :  { %v2101_v13 = vsel %vm12140_vm15, %v6830_v63, 0.0  ;;  %v6875_v63 = vunpack.i.h.bf16 %v10056_v26  ;;  %vm12146_vm15 = vmmov %vm12103_vm1 }
 0x420   :  { %2426 = vadd.xlane.f32.xlu1 %v2425_v51  ;;  %2177 = vadd.xlane.f32.xlu0 %v2176_v15  ;;  %v6945_v51 = vunpack.i.h.bf16 %v10090_v19  ;;  %v7038_v15 = vpop.permute.xlu1 %7037 }
 0x421   :  { %v7039_v33 = vunpack.i.l.bf16 %v7038_v15 }
 0x422   :  { %v2239_v17 = vsel %vm12135_vm4, %v6945_v51, 0.0  ;;  %vm12141_vm4 = vmmov %vm12103_vm1 }
 0x423   :  { %v2341_v47 = vsel %vm12137_vm13, %v7039_v33, 0.0  ;;  %v2146_v14 = vsel %vm12141_vm4, %v6869_v55, 0.0  ;;  %vm12143_vm13 = vmmov %vm12103_vm1 }
 0x424   :  { %2096 = vadd.xlane.f32.xlu1 %v2095_v6  ;;  %2231 = vadd.xlane.f32.xlu0 %v2230_v27  ;;  %v2182_v6 = vsel %vm12136_vm12, %v6899_v42, 0.0  ;;  %v10179_v27 = vpop.permute.xlu0 %7042  ;;  %vm12142_vm12 = vmmov %vm12103_vm1 }
 0x425   :  { %v7044_v31 = vunpack.i.l.bf16 %v10179_v27  ;;  %vm12147_vm4 = vmmov %vm12103_vm1 }
 0x427   :  { %v2431_v41 = vsel %vm12139_vm11, %v7044_v31, 0.0  ;;  %vm12145_vm11 = vmmov %vm12103_vm1 }
 0x428   :  { %2186 = vadd.xlane.f32.xlu1 %v2185_v9  ;;  %2333 = vadd.xlane.f32.xlu0 %v2332_v16  ;;  %v2284_v9 = vsel %vm12138_vm14, %v6984_v5, 0.0  ;;  %v10185_v16 = vpop.permute.xlu1 %7047  ;;  %v7035_v5 = vunpack.i.h.bf16 %v10163_v24  ;;  %vm12144_vm14 = vmmov %vm12103_vm1  ;;  %v6829_v24 = vunpack.i.l.bf16 %v10044_v56  ;;  %v7053_v55 = vpop.permute.xlu0 %7052 }
 0x42c   :  { %2288 = vadd.xlane.f32.xlu1 %v2287_v32  ;;  %2369 = vadd.xlane.f32.xlu0 %v2368_v46  ;;  %v2374_v32 = vsel %vm12103_vm1, %v7030_v11, 0.0  ;;  %v10191_v46 = vpop.permute.xlu1 %7057  ;;  %v7049_v11 = vunpack.i.l.bf16 %v10185_v16  ;;  %v10220_v56 = vpop.permute.xlu0 %7062 }
 0x42d   :  { %v7065_v1 = vunpack.i.h.bf16 %v10220_v56 }
 0x430   :  { %2378 = vadd.xlane.f32.xlu1 %v2377_v36  ;;  %2423 = vadd.xlane.f32.xlu0 %v2422_v29  ;;  %v6905_v36 = vunpack.i.h.bf16 %v10069_v22  ;;  %v6944_v29 = vunpack.i.l.bf16 %v10090_v19  ;;  %v7040_v19 = vunpack.i.h.bf16 %v7038_v15  ;;  %v6904_v15 = vunpack.i.l.bf16 %v10069_v22 }
 0x432   :  { %v2191_v33 = vsel %vm12142_vm12, %v6905_v36, 0.0  ;;  %vm12148_vm12 = vmmov %vm12103_vm1 }
 0x434   :  { %2150 = vadd.xlane.f32.xlu1 %v2149_v0  ;;  %2093 = vadd.xlane.f32.xlu0 %v2092_v62  ;;  %v6990_v62 = vunpack.i.h.bf16 %v10109_v10 }
 0x436   :  { %v2293_v31 = vsel %vm12144_vm14, %v6990_v62, 0.0  ;;  %vm12150_vm14 = vmmov %vm12103_vm1  ;;  %v7045_v62 = vunpack.i.h.bf16 %v10179_v27 }
 0x438   :  { %2240 = vadd.xlane.f32.xlu1 %v2239_v17  ;;  %2183 = vadd.xlane.f32.xlu0 %v2182_v6  ;;  %v2236_v17 = vsel %vm12143_vm13, %v6944_v29, 0.0  ;;  %v10203_v6 = vpop.permute.xlu1 %7067  ;;  %v6989_v29 = vunpack.i.l.bf16 %v10109_v10  ;;  %vm12149_vm13 = vmmov %vm12103_vm1  ;;  %v6835_v10 = vunpack.i.h.bf16 %v10041_v44 }
 0x43c   :  { %2342 = vadd.xlane.f32.xlu1 %v2341_v47  ;;  %2285 = vadd.xlane.f32.xlu0 %v2284_v9  ;;  %v2338_v47 = vsel %vm12145_vm11, %v7035_v5, 0.0  ;;  %v10208_v9 = vpop.permute.xlu1 %7077  ;;  %v7059_v5 = vunpack.i.l.bf16 %v10191_v46  ;;  %vm12151_vm11 = vmmov %vm12103_vm1 }
 0x440   :  { %2432 = vadd.xlane.f32.xlu1 %v2431_v41  ;;  %2375 = vadd.xlane.f32.xlu0 %v2374_v32  ;;  %v2383_v41 = vsel %vm12103_vm1, %v7049_v11, 0.0  ;;  %v2428_v32 = vsel %vm12146_vm15, %v7040_v19, 0.0  ;;  %v10218_v36 = vpop.permute.xlu1 %7087  ;;  %v2290_v19 = vsel %vm12103_vm1, %v6989_v29, 0.0  ;;  %v6874_v11 = vunpack.i.l.bf16 %v10056_v26  ;;  %vm12152_vm15 = vmmov %vm12103_vm1 }
 0x442   :  { %v6732_v49 = vpop.f32.mrb[4].mxu0 }
 0x443   :  { %v6733_v59 = vpop.f32.mrb[5].mxu0 }
 0x444   :  { %v10196_v42 = vadd.f32 %v6733_v59, %v6732_v49  ;;  %v6735_v51 = vpop.f32.mrb[6].mxu0  ;;  %2102 = vadd.xlane.f32.xlu1 %v2101_v13  ;;  %2147 = vadd.xlane.f32.xlu0 %v2146_v14  ;;  %v6950_v49 = vunpack.i.h.bf16 %v10096_v25  ;;  %v2155_v59 = vsel %vm12147_vm4, %v6875_v63, 0.0  ;;  %v2098_v13 = vsel %vm12148_vm12, %v6829_v24, 0.0  ;;  %v10225_v22 = vpop.permute.xlu1 %7097  ;;  %vm12153_vm4 = vmmov %vm12103_vm1 }
 0x445   :  { %v6736_v0 = vpop.f32.mrb[7].mxu0  ;;  %v7054_v51 = vunpack.i.l.bf16 %v7053_v55  ;;  %v6910_v63 = vunpack.i.h.bf16 %v10079_v12  ;;  %vm12154_vm12 = vmmov %vm12103_vm1 }
 0x446   :  { %v2245_v14 = vsel %vm12149_vm13, %v6950_v49, 0.0  ;;  %v2188_v0 = vsel %vm12150_vm14, %v6904_v15, 0.0  ;;  %vm12155_vm13 = vmmov %vm12103_vm1  ;;  %v6995_v49 = vunpack.i.h.bf16 %v10107_v54 }
 0x447   :  { %v2152_v15 = vsel %vm12155_vm13, %v6874_v11, 0.0  ;;  %vm12156_vm14 = vmmov %vm12103_vm1 }
 0x448   :  { %2192 = vadd.xlane.f32.xlu1 %v2191_v33  ;;  %2237 = vadd.xlane.f32.xlu0 %v2236_v17  ;;  %v10229_v33 = vpop.permute.xlu0 %7072  ;;  %v2347_v17 = vsel %vm12151_vm11, %v7054_v51, 0.0  ;;  %v10237_v24 = vpop.permute.xlu1 %7107  ;;  %v2197_v29 = vsel %vm12156_vm14, %v6910_v63, 0.0  ;;  %vm12157_vm11 = vmmov %vm12103_vm1 }
 0x449   :  { %vm12161_vm13 = vmmov %vm12103_vm1 }
 0x44a   :  { %vm12162_vm14 = vmmov %vm12103_vm1 }
 0x44c   :  { %2294 = vadd.xlane.f32.xlu1 %v2293_v31  ;;  %2339 = vadd.xlane.f32.xlu0 %v2338_v47  ;;  %v2437_v31 = vsel %vm12152_vm15, %v7059_v5, 0.0  ;;  %v2380_v47 = vsel %vm12153_vm4, %v7045_v62, 0.0  ;;  %v10239_v27 = vpop.permute.xlu0 %7082  ;;  %v10245_v26 = vpop.permute.xlu1 %7117  ;;  %vm12158_vm15 = vmmov %vm12103_vm1 }
 0x44d   :  { %vm12159_vm4 = vmmov %vm12103_vm1 }
 0x450   :  { %2384 = vadd.xlane.f32.xlu1 %v2383_v41  ;;  %2429 = vadd.xlane.f32.xlu0 %v2428_v32  ;;  %v6949_v41 = vunpack.i.l.bf16 %v10096_v25  ;;  %v2107_v32 = vsel %vm12154_vm12, %v6835_v10, 0.0  ;;  %v7055_v25 = vunpack.i.h.bf16 %v7053_v55  ;;  %v10256_v5 = vpop.permute.xlu1 %7127  ;;  %vm12160_vm12 = vmmov %vm12103_vm1 }
 0x452   :  { %v2242_v51 = vsel %vm12157_vm11, %v6949_v41, 0.0  ;;  %v2434_v55 = vsel %vm12160_vm12, %v7055_v25, 0.0  ;;  %vm12163_vm11 = vmmov %vm12103_vm1  ;;  %v7074_v25 = vunpack.i.l.bf16 %v10229_v33 }
 0x453   :  { %vm12166_vm12 = vmmov %vm12103_vm1 }
 0x454   :  { %2156 = vadd.xlane.f32.xlu1 %v2155_v59  ;;  %2099 = vadd.xlane.f32.xlu0 %v2098_v13  ;;  %v7050_v59 = vunpack.i.h.bf16 %v10185_v16  ;;  %v10249_v13 = vpop.permute.xlu0 %7092 }
 0x456   :  { %v2344_v62 = vsel %vm12158_vm15, %v7050_v59, 0.0  ;;  %vm12164_vm15 = vmmov %vm12103_vm1 }
 0x457   :  { %v10264_v11 = vpop.xlane.xlu1 %2132 }
 0x458   :  { %2246 = vadd.xlane.f32.xlu1 %v2245_v14  ;;  %2189 = vadd.xlane.f32.xlu0 %v2188_v0  ;;  %v7064_v14 = vunpack.i.l.bf16 %v10220_v56  ;;  %v2299_v0 = vsel %vm12103_vm1, %v6995_v49, 0.0  ;;  %v10258_v16 = vpop.permute.xlu0 %7102  ;;  %v7069_v49 = vunpack.i.l.bf16 %v10203_v6 }
 0x45a   :  { %v2389_v10 = vsel %vm12159_vm4, %v7064_v14, 0.0  ;;  %v2353_v14 = vsel %vm12164_vm15, %v7069_v49, 0.0  ;;  %vm12165_vm4 = vmmov %vm12103_vm1 }
 0x45b   :  { %vm12170_vm15 = vmmov %vm12103_vm1 }
 0x45c   :  { %2348 = vadd.xlane.f32.xlu1 %v2347_v17  ;;  %2291 = vadd.xlane.f32.xlu0 %v2290_v19  ;;  %v6834_v17 = vunpack.i.l.bf16 %v10041_v44  ;;  %v6880_v19 = vunpack.i.h.bf16 %v10062_v7  ;;  %v10268_v63 = vpop.permute.xlu0 %7112 }
 0x45e   :  { %v2161_v41 = vsel %vm12161_vm13, %v6880_v19, 0.0  ;;  %v2104_v44 = vsel %vm12162_vm14, %v6834_v17, 0.0  ;;  %v6840_v17 = vunpack.i.h.bf16 %v10048_v37  ;;  %v6879_v19 = vunpack.i.l.bf16 %v10062_v7  ;;  %vm12167_vm13 = vmmov %vm12103_vm1 }
 0x45f   :  { %vm12168_vm14 = vmmov %vm12103_vm1  ;;  %v6915_v7 = vunpack.i.h.bf16 %v10075_v38 }
 0x460   :  { %2438 = vadd.xlane.f32.xlu1 %v2437_v31  ;;  %2381 = vadd.xlane.f32.xlu0 %v2380_v47  ;;  %v6909_v31 = vunpack.i.l.bf16 %v10079_v12  ;;  %v6955_v47 = vunpack.i.h.bf16 %v10094_v2 }
 0x462   :  { %v2251_v59 = vsel %vm12163_vm11, %v6955_v47, 0.0  ;;  %v2194_v12 = vsel %vm12103_vm1, %v6909_v31, 0.0  ;;  %vm12169_vm11 = vmmov %vm12103_vm1 }
 0x463   :  { %v2158_v49 = vsel %vm12169_vm11, %v6879_v19, 0.0  ;;  %v2203_v19 = vsel %vm12103_vm1, %v6915_v7, 0.0  ;;  %v6885_v7 = vunpack.i.h.bf16 %v10060_v3  ;;  %vm12175_vm11 = vmmov %vm12103_vm1 }
 0x464   :  { %2108 = vadd.xlane.f32.xlu1 %v2107_v32  ;;  %2153 = vadd.xlane.f32.xlu0 %v2152_v15  ;;  %v10272_v32 = vpop.xlane.xlu1 %2084  ;;  %v6994_v15 = vunpack.i.l.bf16 %v10107_v54 }
 0x468   :  { %2198 = vadd.xlane.f32.xlu1 %v2197_v29  ;;  %2243 = vadd.xlane.f32.xlu0 %v2242_v51  ;;  %v10278_v29 = vpop.permute.xlu0 %7122  ;;  %v7060_v51 = vunpack.i.h.bf16 %v10191_v46 }
 0x46a   :  { %v2386_v46 = vsel %vm12167_vm13, %v7060_v51, 0.0  ;;  %vm12173_vm13 = vmmov %vm12103_vm1 }
 0x46c   :  { %2300 = vadd.xlane.f32.xlu1 %v2299_v0  ;;  %2345 = vadd.xlane.f32.xlu0 %v2344_v62  ;;  %v2296_v0 = vsel %vm12165_vm4, %v6994_v15, 0.0  ;;  %v10284_v62 = vpop.xlane.xlu1 %2138  ;;  %v10286_v54 = vpop.xlane.xlu0 %2129  ;;  %v2113_v15 = vsel %vm12168_vm14, %v6840_v17, 0.0  ;;  %v7075_v17 = vunpack.i.h.bf16 %v10229_v33  ;;  %vm12171_vm4 = vmmov %vm12103_vm1 }
 0x46d   :  { %vm12174_vm14 = vmmov %vm12103_vm1 }
 0x470   :  { %2390 = vadd.xlane.f32.xlu1 %v2389_v10  ;;  %2435 = vadd.xlane.f32.xlu0 %v2434_v55  ;;  %v2443_v10 = vsel %vm12166_vm12, %v7074_v25, 0.0  ;;  %v6286_v55 = vld [vmem:[%s10895_s2 + $0x1] ss:$0 sm:$0xff]  ;;  %vm12172_vm12 = vmmov %vm12103_vm1 }
 0x473   :  { %v2277_v31 = vpop.xlane.xlu1 %2276 }
 0x474   :  { %2162 = vadd.xlane.f32.xlu1 %v2161_v41  ;;  %2105 = vadd.xlane.f32.xlu0 %v2104_v44 }
 0x478   :  { %2252 = vadd.xlane.f32.xlu1 %v2251_v59  ;;  %2195 = vadd.xlane.f32.xlu0 %v2194_v12  ;;  %v6954_v59 = vunpack.i.l.bf16 %v10094_v2  ;;  %v4941_v12 = vadd.f32 %v10196_v42, %v6286_v55 }
 0x47a   :  { %v2248_v2 = vsel %vm12170_vm15, %v6954_v59, 0.0  ;;  %vm12176_vm15 = vmmov %vm12103_vm1 }
 0x47c   :  { %2354 = vadd.xlane.f32.xlu1 %v2353_v14  ;;  %2297 = vadd.xlane.f32.xlu0 %v2296_v0 }
 0x480   :  { %2444 = vadd.xlane.f32.xlu1 %v2443_v10  ;;  %2387 = vadd.xlane.f32.xlu0 %v2386_v46 }
 0x481   :  { %v2322_v41 = vpop.xlane.xlu0 %2321 }
 0x482   :  { %v6754_v47 = vpop.f32.mrb[4].mxu1 }
 0x483   :  { %v6755_v44 = vpop.f32.mrb[5].mxu1 }
 0x484   :  { %v6756_v51 = vadd.f32 %v6755_v44, %v6754_v47  ;;  %v6757_v25 = vpop.f32.mrb[6].mxu1  ;;  %2114 = vadd.xlane.f32.xlu1 %v2113_v15  ;;  %2159 = vadd.xlane.f32.xlu0 %v2158_v49  ;;  %v7070_v47 = vunpack.i.h.bf16 %v10203_v6  ;;  %v7080_v44 = vunpack.i.h.bf16 %v10208_v9  ;;  %v2305_v15 = vsel %vm12171_vm4, %v7075_v17, 0.0  ;;  %vm12177_vm4 = vmmov %vm12103_vm1 }
 0x485   :  { %v6758_v14 = vpop.f32.mrb[7].mxu1  ;;  %v2325_v10 = vpop.xlane.xlu0 %2324  ;;  %v6839_v49 = vunpack.i.l.bf16 %v10048_v37  ;;  %v6960_v25 = vunpack.i.h.bf16 %v10100_v21 }
 0x486   :  { %v4981_v0 = vadd.f32 %v6756_v51, %v4941_v12  ;;  %v2331_v46 = vpop.xlane.xlu1 %2330  ;;  %v5028_v57 = vpack.c.bf16 %v2325_v10, %v2322_v41  ;;  %v2350_v41 = vsel %vm12172_vm12, %v7065_v1, 0.0  ;;  %v2395_v59 = vsel %vm12173_vm13, %v7080_v44, 0.0  ;;  %vm12178_vm12 = vmmov %vm12103_vm1 }
 0x487   :  { %v2440_v12 = vsel %vm12174_vm14, %v7070_v47, 0.0  ;;  %v6914_v1 = vunpack.i.l.bf16 %v10075_v38  ;;  %v7085_v38 = vunpack.i.h.bf16 %v10239_v27  ;;  %vm12179_vm13 = vmmov %vm12103_vm1  ;;  %vm12180_vm14 = vcmask 261312  }
 0x488   :  { %4987 = vst [vmem:[#allocation5 + $0x2] sm:$0x3] %v4981_v0  ;;  %2204 = vadd.xlane.f32.xlu1 %v2203_v19  ;;  %2249 = vadd.xlane.f32.xlu0 %v2248_v2  ;;  %v2110_v0 = vsel %vm12175_vm11, %v6839_v49, 0.0  ;;  %v5269_v37 = vunpack.c.l.b16 %v5028_v57  ;;  %v5270_v10 = vunpack.c.h.b16 %v5028_v57  ;;  %v2167_v19 = vsel %vm12103_vm1, %v6885_v7, 0.0  ;;  %vm12181_vm11 = vmmov %vm12103_vm1 }
 0x489   :  { %v2082_v55 = vpop.xlane.xlu0 %2081  ;;  %v6999_v2 = vunpack.i.l.bf16 %v10111_v48  ;;  %v7079_v48 = vunpack.i.l.bf16 %v10208_v9  ;;  %v2359_v9 = vsel %vm12179_vm13, %v7085_v38, 0.0  ;;  %vm12185_vm13 = vmmov %vm12103_vm1 }
 0x48a   :  { %v2091_v42 = vpop.xlane.xlu1 %2090  ;;  %v4988_v17 = vpack.c.bf16 %v10272_v32, %v2082_v55  ;;  %v5715_v57 = vrot.slane %v5269_v37, %v11955_v58  ;;  %v5719_v32 = vrot.slane %v5270_v10, %v11959_v20 }
 0x48c   :  { %2306 = vadd.xlane.f32.xlu1 %v2305_v15  ;;  %2351 = vadd.xlane.f32.xlu0 %v2350_v41  ;;  %v2200_v41 = vsel %vm12177_vm4, %v6914_v1, 0.0  ;;  %v5189_v55 = vunpack.c.l.b16 %v4988_v17  ;;  %v5190_v49 = vunpack.c.h.b16 %v4988_v17  ;;  %v5720_v10 = vsel %vm2802_vm2, %v5719_v32, %v5715_v57  ;;  %vm12183_vm4 = vmmov %vm12103_vm1 }
 0x48d   :  { %v10308_v33 = vpop.xlane.xlu0 %2135 }
 0x48e   :  { %v2229_v56 = vpop.xlane.xlu1 %2228  ;;  %v5320_v17 = vrot.slane %v5189_v55, %v11955_v58  ;;  %v2392_v55 = vsel %vm12181_vm11, %v7079_v48, 0.0  ;;  %v4997_v48 = vpack.c.bf16 %v10284_v62, %v10308_v33 }
 0x490   :  { %2396 = vadd.xlane.f32.xlu1 %v2395_v59  ;;  %2441 = vadd.xlane.f32.xlu0 %v2440_v12 }
 0x491   :  { %v2274_v51 = vpop.xlane.xlu0 %2273 }
 0x492   :  { %v10314_v6 = vpop.xlane.xlu1 %2282  ;;  %v10318_v14 = vpack.c.bf16 %v2277_v31, %v2274_v51  ;;  %v2257_v31 = vsel %vm12176_vm15, %v6960_v25, 0.0  ;;  %v7090_v25 = vunpack.i.h.bf16 %v10218_v36  ;;  %vm12182_vm15 = vmmov %vm12180_vm14 }
 0x493   :  { %vm12187_vm11 = vmmov %vm12182_vm15 }
 0x494   :  { %2168 = vadd.xlane.f32.xlu1 %v2167_v19  ;;  %2111 = vadd.xlane.f32.xlu0 %v2110_v0  ;;  %v5324_v19 = vrot.slane %v5190_v49, %v11959_v20 }
 0x495   :  { %v2328_v44 = vpop.xlane.xlu0 %2327 }
 0x496   :  { %v10324_v47 = vpop.xlane.xlu1 %2420  ;;  %v5029_v15 = vpack.c.bf16 %v2331_v46, %v2328_v44  ;;  %v2302_v46 = vsel %vm12178_vm12, %v6999_v2, 0.0  ;;  %v6845_v2 = vunpack.i.h.bf16 %v10046_v45  ;;  %vm12184_vm12 = vmmov %vm12103_vm1 }
 0x498   :  { %v5271_v7 = vunpack.c.l.b16 %v5029_v15  ;;  %v5272_v59 = vunpack.c.h.b16 %v5029_v15  ;;  %2258 = vadd.xlane.f32.xlu1 %v2257_v31  ;;  %2201 = vadd.xlane.f32.xlu0 %v2200_v41  ;;  %v6884_v41 = vunpack.i.l.bf16 %v10060_v3  ;;  %v5325_v3 = vsel %vm2802_vm2, %v5324_v19, %v5320_v17 }
 0x499   :  { %v2088_v51 = vpop.xlane.xlu0 %2087 }
 0x49a   :  { %v10332_v12 = vpop.xlane.xlu1 %2144  ;;  %v5724_v1 = vrot.slane %v5271_v7, %v8447_v28  ;;  %v5729_v0 = vrot.slane %v5272_v59, %v8450_v43  ;;  %v4989_v37 = vpack.c.bf16 %v2091_v42, %v2088_v51  ;;  %v2449_v59 = vsel %vm12103_vm1, %v7090_v25, 0.0 }
 0x49b   :  { %v4996_v51 = vpack.c.bf16 %v10264_v11, %v10286_v54  ;;  %v6959_v25 = vunpack.i.l.bf16 %v10100_v21  ;;  %v2164_v62 = vsel %vm12184_vm12, %v6884_v41, 0.0  ;;  %vm12190_vm12 = vmmov %vm12187_vm11 }
 0x49c   :  { %v5725_v44 = vsel %vm2809_vm3, %v5724_v1, %v5720_v10  ;;  %v5191_v15 = vunpack.c.l.b16 %v4989_v37  ;;  %v5192_v31 = vunpack.c.h.b16 %v4989_v37  ;;  %2360 = vadd.xlane.f32.xlu1 %v2359_v9  ;;  %2303 = vadd.xlane.f32.xlu0 %v2302_v46  ;;  %v5253_v46 = vunpack.c.l.b16 %v10318_v14 }
 0x49d   :  { %v10346_v42 = vsel %vm12180_vm14, %v5729_v0, %v5725_v44  ;;  %v2226_v32 = vpop.xlane.xlu0 %2225  ;;  %v5254_v1 = vunpack.c.h.b16 %v10318_v14  ;;  %v2119_v14 = vsel %vm12183_vm4, %v6845_v2, 0.0  ;;  %v5205_v33 = vunpack.c.l.b16 %v4996_v51  ;;  %vm12186_vm14 = vmmov %vm12103_vm1 }
 0x49e   :  { %v10348_v57 = vpop.xlane.xlu1 %2180  ;;  %v5329_v38 = vrot.slane %v5191_v15, %v8447_v28  ;;  %v5334_v49 = vrot.slane %v5192_v31, %v8450_v43  ;;  %v10353_v7 = vpack.c.bf16 %v2229_v56, %v2226_v32  ;;  %v6920_v56 = vunpack.i.h.bf16 %v10084_v52  ;;  %vm12189_vm4 = vmmov %vm12103_vm1 }
 0x49f   :  { %v5206_v17 = vunpack.c.h.b16 %v4996_v51  ;;  %v5636_v19 = vrot.slane %v5253_v46, %v11955_v58  ;;  %v5640_v9 = vrot.slane %v5254_v1, %v11959_v20  ;;  %v5207_v44 = vunpack.c.l.b16 %v4997_v48 }
 0x4a0   :  { %v5330_v0 = vsel %vm2809_vm3, %v5329_v38, %v5325_v3  ;;  %2450 = vadd.xlane.f32.xlu1 %v2449_v59  ;;  %2393 = vadd.xlane.f32.xlu0 %v2392_v55  ;;  %v7084_v31 = vunpack.i.l.bf16 %v10239_v27  ;;  %v2209_v2 = vsel %vm12185_vm13, %v6920_v56, 0.0  ;;  %v2254_v41 = vsel %vm12186_vm14, %v6959_v25, 0.0  ;;  %vm12191_vm13 = vmmov %vm12103_vm1 }
 0x4a1   :  { %v10367_v37 = vsel %vm12182_vm15, %v5334_v49, %v5330_v0  ;;  %v2280_v54 = vpop.xlane.xlu0 %2279  ;;  %v7095_v55 = vunpack.i.h.bf16 %v10249_v13  ;;  %v5399_v51 = vrot.slane %v5205_v33, %v11955_v58  ;;  %v5403_v27 = vrot.slane %v5206_v17, %v11959_v20  ;;  %vm12188_vm15 = vmmov %vm12103_vm1 }
 0x4a2   :  { %v10369_v11 = vpop.xlane.xlu1 %2234  ;;  %v5021_v10 = vpack.c.bf16 %v10314_v6, %v2280_v54  ;;  %v5208_v3 = vunpack.c.h.b16 %v4997_v48  ;;  %v5641_v46 = vsel %vm2802_vm2, %v5640_v9, %v5636_v19  ;;  %v5408_v1 = vrot.slane %v5207_v44, %v8447_v28  ;;  %vm12192_vm14 = vmmov %vm12103_vm1 }
 0x4a3   :  { %v7089_v54 = vunpack.i.l.bf16 %v10218_v36  ;;  %v2356_v48 = vsel %vm12103_vm1, %v7084_v31, 0.0  ;;  %v2311_v17 = vsel %vm12188_vm15, %v7095_v55, 0.0  ;;  %v6844_v36 = vunpack.i.l.bf16 %v10046_v45  ;;  %vm12194_vm15 = vmmov %vm12103_vm1 }
 0x4a4   :  { %v5255_v21 = vunpack.c.l.b16 %v5021_v10  ;;  %v5256_v15 = vunpack.c.h.b16 %v5021_v10  ;;  %2120 = vadd.xlane.f32.xlu1 %v2119_v14  ;;  %2165 = vadd.xlane.f32.xlu0 %v2164_v62  ;;  %v7100_v14 = vunpack.i.h.bf16 %v10225_v22  ;;  %v5404_v62 = vsel %vm2802_vm2, %v5403_v27, %v5399_v51 }
 0x4a5   :  { %v2418_v6 = vpop.xlane.xlu0 %2417  ;;  %v5413_v33 = vrot.slane %v5208_v3, %v8450_v43  ;;  %v5409_v19 = vsel %vm2809_vm3, %v5408_v1, %v5404_v62  ;;  %v7094_v62 = vunpack.i.l.bf16 %v10249_v13 }
 0x4a6   :  { %v10377_v32 = vpop.xlane.xlu1 %2336  ;;  %v5645_v38 = vrot.slane %v5255_v21, %v8447_v28  ;;  %v5650_v49 = vrot.slane %v5256_v15, %v8450_v43  ;;  %v10385_v59 = vpack.c.bf16 %v10324_v47, %v2418_v6  ;;  %v2401_v45 = vsel %vm12191_vm13, %v7100_v14, 0.0  ;;  %vm12197_vm13 = vmmov %vm12103_vm1 }
 0x4a7   :  { %v5414_v55 = vsel %vm12190_vm12, %v5413_v33, %v5409_v19 }
 0x4a8   :  { %v5646_v0 = vsel %vm2809_vm3, %v5645_v38, %v5641_v46  ;;  %2210 = vadd.xlane.f32.xlu1 %v2209_v2  ;;  %2255 = vadd.xlane.f32.xlu0 %v2254_v41  ;;  %v2446_v41 = vsel %vm12189_vm4, %v7089_v54, 0.0  ;;  %v5237_v38 = vunpack.c.l.b16 %v10353_v7  ;;  %vm12195_vm4 = vmmov %vm12190_vm12 }
 0x4a9   :  { %v10393_v56 = vsel %vm12187_vm11, %v5650_v49, %v5646_v0  ;;  %v2142_v47 = vpop.xlane.xlu0 %2141  ;;  %v5238_v49 = vunpack.c.h.b16 %v10353_v7  ;;  %vm12193_vm11 = vmmov %vm12103_vm1  ;;  %v6919_v7 = vunpack.i.l.bf16 %v10084_v52 }
 0x4aa   :  { %v10395_v25 = vpop.xlane.xlu1 %2372  ;;  %v4998_v10 = vpack.c.bf16 %v10332_v12, %v2142_v47  ;;  %v6890_v12 = vunpack.i.h.bf16 %v10067_v18  ;;  %v2116_v0 = vsel %vm12193_vm11, %v6844_v36, 0.0  ;;  %v6965_v47 = vunpack.i.h.bf16 %v10098_v4  ;;  %vm12196_vm12 = vmmov %vm12103_vm1 }
 0x4ab   :  { %v5557_v54 = vrot.slane %v5237_v38, %v11955_v58  ;;  %vm12199_vm11 = vmmov %vm12103_vm1 }
 0x4ac   :  { %v5209_v9 = vunpack.c.l.b16 %v4998_v10  ;;  %v5210_v44 = vunpack.c.h.b16 %v4998_v10  ;;  %2312 = vadd.xlane.f32.xlu1 %v2311_v17  ;;  %2357 = vadd.xlane.f32.xlu0 %v2356_v48  ;;  %v2173_v1 = vsel %vm12192_vm14, %v6890_v12, 0.0  ;;  %v5561_v10 = vrot.slane %v5238_v49, %v11959_v20  ;;  %vm12198_vm14 = vmmov %vm12103_vm1 }
 0x4ad   :  { %v2178_v15 = vpop.xlane.xlu0 %2177  ;;  %v7105_v17 = vunpack.i.h.bf16 %v10258_v16  ;;  %v2263_v36 = vsel %vm12103_vm1, %v6965_v47, 0.0  ;;  %v2206_v12 = vsel %vm12194_vm15, %v6919_v7, 0.0  ;;  %v6850_v47 = vunpack.i.h.bf16 %v10050_v60  ;;  %vm12200_vm15 = vmmov %vm12103_vm1 }
 0x4ae   :  { %v2427_v21 = vpop.xlane.xlu1 %2426  ;;  %v5418_v31 = vrot.slane %v5209_v9, %v8460_v35  ;;  %v5423_v6 = vrot.slane %v5210_v44, %v8465_v39  ;;  %v10410_v2 = vpack.c.bf16 %v10348_v57, %v2178_v15  ;;  %v5562_v44 = vsel %vm2802_vm2, %v5561_v10, %v5557_v54 }
 0x4b0   :  { %v5419_v51 = vsel %vm2823_vm5, %v5418_v31, %v5414_v55  ;;  %2402 = vadd.xlane.f32.xlu1 %v2401_v45  ;;  %2447 = vadd.xlane.f32.xlu0 %v2446_v41 }
 0x4b1   :  { %v10419_v27 = vsel %vm2830_vm6, %v5423_v6, %v5419_v51  ;;  %v2232_v57 = vpop.xlane.xlu0 %2231  ;;  %v2365_v51 = vsel %vm12197_vm13, %v7105_v17, 0.0  ;;  %vm12202_vm13 = vmmov %vm12103_vm1 }
 0x4b2   :  { %v10421_v3 = vpop.xlane.xlu1 %2096  ;;  %v5013_v46 = vpack.c.bf16 %v10369_v11, %v2232_v57  ;;  %v7099_v57 = vunpack.i.l.bf16 %v10225_v22 }
 0x4b4   :  { %v5239_v48 = vunpack.c.l.b16 %v5013_v46  ;;  %v5240_v14 = vunpack.c.h.b16 %v5013_v46  ;;  %2174 = vadd.xlane.f32.xlu1 %v2173_v1  ;;  %2117 = vadd.xlane.f32.xlu0 %v2116_v0  ;;  %v7110_v46 = vunpack.i.h.bf16 %v10237_v24  ;;  %v5301_v1 = vunpack.c.l.b16 %v10385_v59 }
 0x4b5   :  { %v2334_v11 = vpop.xlane.xlu0 %2333  ;;  %v5302_v0 = vunpack.c.h.b16 %v10385_v59 }
 0x4b6   :  { %v10431_v33 = vpop.xlane.xlu1 %2186  ;;  %v5566_v19 = vrot.slane %v5239_v48, %v8447_v28  ;;  %v5571_v52 = vrot.slane %v5240_v14, %v8450_v43  ;;  %v5030_v9 = vpack.c.bf16 %v10377_v32, %v2334_v11  ;;  %v2308_v32 = vsel %vm12196_vm12, %v7094_v62, 0.0  ;;  %vm12201_vm12 = vmmov %vm12103_vm1 }
 0x4b7   :  { %v5873_v14 = vrot.slane %v5301_v1, %v11955_v58  ;;  %v5877_v59 = vrot.slane %v5302_v0, %v11959_v20  ;;  %v2455_v62 = vsel %vm12198_vm14, %v7110_v46, 0.0  ;;  %vm12203_vm14 = vmmov %vm12103_vm1 }
 0x4b8   :  { %v5567_v15 = vsel %vm2809_vm3, %v5566_v19, %v5562_v44  ;;  %v5273_v13 = vunpack.c.l.b16 %v5030_v9  ;;  %v5274_v31 = vunpack.c.h.b16 %v5030_v9  ;;  %2264 = vadd.xlane.f32.xlu1 %v2263_v36  ;;  %2207 = vadd.xlane.f32.xlu0 %v2206_v12 }
 0x4b9   :  { %v10442_v6 = vsel %vm12195_vm4, %v5571_v52, %v5567_v15  ;;  %v2370_v55 = vpop.xlane.xlu0 %2369  ;;  %v2125_v52 = vsel %vm12103_vm1, %v6850_v47, 0.0  ;;  %v6964_v15 = vunpack.i.l.bf16 %v10098_v4 }
 0x4ba   :  { %v10444_v41 = vpop.xlane.xlu1 %2288  ;;  %v5734_v38 = vrot.slane %v5273_v13, %v8460_v35  ;;  %v5739_v49 = vrot.slane %v5274_v31, %v8465_v39  ;;  %v10450_v45 = vpack.c.bf16 %v10395_v25, %v2370_v55  ;;  %v6889_v25 = vunpack.i.l.bf16 %v10067_v18 }
 0x4bb   :  { %v5878_v13 = vsel %vm2802_vm2, %v5877_v59, %v5873_v14  ;;  %v5221_v31 = vunpack.c.l.b16 %v10410_v2  ;;  %v5222_v55 = vunpack.c.h.b16 %v10410_v2 }
 0x4bc   :  { %v5735_v7 = vsel %vm2823_vm5, %v5734_v38, %v10346_v42  ;;  %2366 = vadd.xlane.f32.xlu1 %v2365_v51  ;;  %2309 = vadd.xlane.f32.xlu0 %v2308_v32  ;;  %v2398_v42 = vsel %vm12199_vm11, %v7099_v57, 0.0  ;;  %v2170_v9 = vsel %vm12200_vm15, %v6889_v25, 0.0  ;;  %v7104_v51 = vunpack.i.l.bf16 %v10258_v16  ;;  %vm12204_vm11 = vmmov %vm12103_vm1 }
 0x4bd   :  { %v10462_v54 = vsel %vm2830_vm6, %v5739_v49, %v5735_v7  ;;  %v2424_v22 = vpop.xlane.xlu0 %2423  ;;  %v7115_v57 = vunpack.i.h.bf16 %v10268_v63  ;;  %v5478_v7 = vrot.slane %v5221_v31, %v11955_v58  ;;  %v5482_v47 = vrot.slane %v5222_v55, %v11959_v20  ;;  %vm12205_vm1 = vmmov %vm12195_vm4 }
 0x4be   :  { %v10464_v10 = vpop.xlane.xlu1 %2378  ;;  %v5045_v48 = vpack.c.bf16 %v2427_v21, %v2424_v22  ;;  %v6925_v21 = vunpack.i.h.bf16 %v10081_v8  ;;  %v2260_v25 = vsel %vm12202_vm13, %v6964_v15, 0.0  ;;  %vm12206_vm15 = vmmov %vm12204_vm11 }
 0x4c0   :  { %v5303_v11 = vunpack.c.l.b16 %v5045_v48  ;;  %v5304_v17 = vunpack.c.h.b16 %v5045_v48  ;;  %2456 = vadd.xlane.f32.xlu1 %v2455_v62  ;;  %2399 = vadd.xlane.f32.xlu0 %v2398_v42  ;;  %v2215_v16 = vsel %vm12201_vm12, %v6925_v21, 0.0  ;;  %v2317_v42 = vsel %vm12203_vm14, %v7115_v57, 0.0  ;;  %vm12210_vm14 = vmmov %vm12205_vm1 }
 0x4c1   :  { %v2094_v19 = vpop.xlane.xlu0 %2093  ;;  %v5483_v21 = vsel %vm2802_vm2, %v5482_v47, %v5478_v7 }
 0x4c2   :  { %v10470_v18 = vpop.xlane.xlu1 %2150  ;;  %v5882_v44 = vrot.slane %v5303_v11, %v8447_v28  ;;  %v5887_v36 = vrot.slane %v5304_v17, %v8450_v43  ;;  %v4990_v12 = vpack.c.bf16 %v10421_v3, %v2094_v19  ;;  %v2362_v11 = vsel %vm12204_vm11, %v7104_v51, 0.0 }
 0x4c3   :  { %v7109_v17 = vunpack.i.l.bf16 %v10237_v24  ;;  %v6849_v24 = vunpack.i.l.bf16 %v10050_v60 }
 0x4c4   :  { %v5883_v32 = vsel %vm2809_vm3, %v5882_v44, %v5878_v13  ;;  %v5193_v38 = vunpack.c.l.b16 %v4990_v12  ;;  %v5194_v49 = vunpack.c.h.b16 %v4990_v12  ;;  %2126 = vadd.xlane.f32.xlu1 %v2125_v52  ;;  %2171 = vadd.xlane.f32.xlu0 %v2170_v9  ;;  %v7120_v9 = vunpack.i.h.bf16 %v10245_v26 }
 0x4c5   :  { %v10486_v3 = vsel %vm12195_vm4, %v5887_v36, %v5883_v32  ;;  %v2184_v46 = vpop.xlane.xlu0 %2183  ;;  %v5285_v44 = vunpack.c.l.b16 %v10450_v45  ;;  %v5286_v36 = vunpack.c.h.b16 %v10450_v45  ;;  %v6970_v32 = vunpack.i.h.bf16 %v10102_v61  ;;  %vm12207_vm4 = vmmov %vm12204_vm11 }
 0x4c6   :  { %v10488_v4 = vpop.xlane.xlu1 %2240  ;;  %v5339_v1 = vrot.slane %v5193_v38, %v8460_v35  ;;  %v5344_v2 = vrot.slane %v5194_v49, %v8465_v39  ;;  %v5005_v0 = vpack.c.bf16 %v10431_v33, %v2184_v46  ;;  %v2407_v60 = vsel %vm12206_vm15, %v7120_v9, 0.0  ;;  %vm12208_vm12 = vmmov %vm12207_vm4 }
 0x4c7   :  { %v5794_v51 = vrot.slane %v5285_v44, %v11955_v58  ;;  %v5798_v57 = vrot.slane %v5286_v36, %v11959_v20  ;;  %v2452_v46 = vsel %vm12207_vm4, %v7109_v17, 0.0  ;;  %vm12209_vm13 = vmmov %vm12207_vm4  ;;  %v7195_v17 = vld [vmem:[#allocation2 + $0x240] sm:$0xff]   ;;  %v6930_v9 = vunpack.i.h.bf16 %v10088_v23 }
 0x4c8   :  { %v5340_v22 = vsel %vm2823_vm5, %v5339_v1, %v10367_v37  ;;  %v5223_v48 = vunpack.c.l.b16 %v5005_v0  ;;  %v5224_v14 = vunpack.c.h.b16 %v5005_v0  ;;  %2216 = vadd.xlane.f32.xlu1 %v2215_v16  ;;  %2261 = vadd.xlane.f32.xlu0 %v2260_v25  ;;  %v2122_v25 = vsel %vm12208_vm12, %v6849_v24, 0.0 }
 0x4c9   :  { %v10500_v59 = vsel %vm2830_vm6, %v5344_v2, %v5340_v22  ;;  %v2286_v33 = vpop.xlane.xlu0 %2285  ;;  %v7125_v22 = vunpack.i.h.bf16 %v10278_v29  ;;  %6760 = vmatprep.subr.bf16.mxu0 %v7195_v17 }
 0x4ca   :  { %v10502_v62 = vpop.xlane.xlu1 %2342  ;;  %v5487_v19 = vrot.slane %v5223_v48, %v8447_v28  ;;  %v5492_v37 = vrot.slane %v5224_v14, %v8450_v43  ;;  %v5022_v52 = vpack.c.bf16 %v10444_v41, %v2286_v33  ;;  %v5799_v48 = vsel %vm2802_vm2, %v5798_v57, %v5794_v51  ;;  %vm12211_vm2 = vmmov %vm12207_vm4 }
 0x4cb   :  { %v2269_v14 = vsel %vm12209_vm13, %v6970_v32, 0.0  ;;  %v2461_v44 = vsel %vm12211_vm2, %v7125_v22, 0.0  ;;  %v7130_v51 = vunpack.i.h.bf16 %v10256_v5  ;;  %vm12213_vm11 = vmmov %vm12211_vm2 }
 0x4cc   :  { %v5488_v12 = vsel %vm2809_vm3, %v5487_v19, %v5483_v21  ;;  %v5257_v15 = vunpack.c.l.b16 %v5022_v52  ;;  %v5258_v13 = vunpack.c.h.b16 %v5022_v52  ;;  %2318 = vadd.xlane.f32.xlu1 %v2317_v42  ;;  %2363 = vadd.xlane.f32.xlu0 %v2362_v11  ;;  %v7196_v52 = vld [vmem:[#allocation2 + $0x200] sm:$0xff]   ;;  %v7114_v21 = vunpack.i.l.bf16 %v10268_v63  ;;  %v7197_v63 = vld [vmem:[#allocation2 + $0x248] sm:$0xff]  }
 0x4cd   :  { %v10517_v31 = vsel %vm12205_vm1, %v5492_v37, %v5488_v12  ;;  %v2376_v55 = vpop.xlane.xlu0 %2375  ;;  %6761 = vmatpush3.bf16.msra.mxu0 %v7196_v52  ;;  %v2221_v57 = vsel %vm12213_vm11, %v6930_v9, 0.0  ;;  %vm12214_vm1 = vmmov %vm12211_vm2 }
 0x4ce   :  { %v10519_v41 = vpop.xlane.xlu1 %2432  ;;  %v5655_v38 = vrot.slane %v5257_v15, %v8460_v35  ;;  %v5660_v45 = vrot.slane %v5258_v13, %v8465_v39  ;;  %v5037_v49 = vpack.c.bf16 %v10464_v10, %v2376_v55  ;;  %6762 = vmatprep.subr.bf16.mxu0 %v7197_v63  ;;  %vm12215_vm15 = vmmov %vm12214_vm1 }
 0x4cf   :  { %vm12216_vm4 = vmmov %vm12214_vm1 }
 0x4d0   :  { %v5656_v1 = vsel %vm2823_vm5, %v5655_v38, %v10393_v56  ;;  %v5287_v2 = vunpack.c.l.b16 %v5037_v49  ;;  %v5288_v0 = vunpack.c.h.b16 %v5037_v49  ;;  %2408 = vadd.xlane.f32.xlu1 %v2407_v60  ;;  %2453 = vadd.xlane.f32.xlu0 %v2452_v46  ;;  %v6924_v56 = vunpack.i.l.bf16 %v10081_v8  ;;  %v7198_v49 = vld [vmem:[#allocation2 + $0x208] sm:$0xff]   ;;  %vm12217_vm12 = vmmov %vm12214_vm1 }
 0x4d1   :  { %v10532_v7 = vsel %vm2830_vm6, %v5660_v45, %v5656_v1  ;;  %v2148_v10 = vpop.xlane.xlu0 %2147  ;;  %v2314_v60 = vsel %vm12214_vm1, %v7114_v21, 0.0  ;;  %6763 = vmatpush3.bf16.msra.mxu0 %v7198_v49  ;;  %vm12218_vm13 = vmmov %vm12214_vm1 }
 0x4d2   :  { %v10534_v47 = vpop.xlane.xlu1 %2102  ;;  %v5803_v58 = vrot.slane %v5287_v2, %v8447_v28  ;;  %v5808_v20 = vrot.slane %v5288_v0, %v8450_v43  ;;  %v4999_v16 = vpack.c.bf16 %v10470_v18, %v2148_v10  ;;  %v7199_v10 = vld [vmem:[#allocation2 + $0x250] sm:$0xff]  }
 0x4d3   :  { %6764 = vmatprep.subr.bf16.mxu0 %v7199_v10 }
 0x4d4   :  { %v5804_v33 = vsel %vm2809_vm3, %v5803_v58, %v5799_v48  ;;  %v5211_v42 = vunpack.c.l.b16 %v4999_v16  ;;  %v5212_v11 = vunpack.c.h.b16 %v4999_v16  ;;  %2270 = vadd.xlane.f32.xlu1 %v2269_v14  ;;  %2123 = vadd.xlane.f32.xlu0 %v2122_v25  ;;  %vm12212_vm3 = vmmov %vm12211_vm2  ;;  %v7200_v25 = vld [vmem:[#allocation2 + $0x210] sm:$0xff]  }
 0x4d5   :  { %v10546_v28 = vsel %vm12210_vm14, %v5808_v20, %v5804_v33  ;;  %v2238_v18 = vpop.xlane.xlu0 %2237  ;;  %v2212_v36 = vsel %vm12212_vm3, %v6924_v56, 0.0  ;;  %v2413_v56 = vsel %vm12215_vm15, %v7130_v51, 0.0  ;;  %6765 = vmatpush3.bf16.msra.mxu0 %v7200_v25  ;;  %vm12219_vm14 = vmmov %vm12214_vm1  ;;  %vm12235_vm15 = vcmask 982912  }
 0x4d6   :  { %v10548_v43 = vpop.xlane.xlu1 %2192  ;;  %v5428_v8 = vrot.slane %v5211_v42, %v8473_v53  ;;  %v5433_v19 = vrot.slane %v5212_v11, %v8479_v40  ;;  %v5014_v37 = vpack.c.bf16 %v10488_v4, %v2238_v18  ;;  %vm12220_vm2 = vmmov %vm12214_vm1  ;;  %vm12233_vm1 = vcmask 917312  }
 0x4d8   :  { %v5429_v12 = vsel %vm2837_vm7, %v5428_v8, %v10419_v27  ;;  %v5241_v15 = vunpack.c.l.b16 %v5014_v37  ;;  %v5242_v13 = vunpack.c.h.b16 %v5014_v37  ;;  %2462 = vadd.xlane.f32.xlu1 %v2461_v44  ;;  %2213 = vadd.xlane.f32.xlu0 %v2212_v36  ;;  %v7119_v27 = vunpack.i.l.bf16 %v10245_v26 }
 0x4d9   :  { %v10560_v24 = vsel %vm2844_vm8, %v5433_v19, %v5429_v12  ;;  %v2340_v55 = vpop.xlane.xlu0 %2339  ;;  %v7202_v19 = vld [vmem:[#allocation2 + $0x218] sm:$0xff]  }
 0x4da   :  { %v10562_v4 = vpop.xlane.xlu1 %2294  ;;  %v5576_v32 = vrot.slane %v5241_v15, %v8460_v35  ;;  %v5581_v38 = vrot.slane %v5242_v13, %v8465_v39  ;;  %v5031_v45 = vpack.c.bf16 %v10502_v62, %v2340_v55  ;;  %v2404_v22 = vsel %vm12216_vm4, %v7119_v27, 0.0  ;;  %v7204_v55 = vld [vmem:[#allocation2 + $0x220] sm:$0xff]   ;;  %vm12236_vm4 = vmmov %vm12233_vm1 }
 0x4dc   :  { %v5577_v46 = vsel %vm2823_vm5, %v5576_v32, %v10442_v6  ;;  %v5275_v1 = vunpack.c.l.b16 %v5031_v45  ;;  %v5276_v2 = vunpack.c.h.b16 %v5031_v45  ;;  %2222 = vadd.xlane.f32.xlu1 %v2221_v57  ;;  %2315 = vadd.xlane.f32.xlu0 %v2314_v60  ;;  %v6969_v6 = vunpack.i.l.bf16 %v10102_v61  ;;  %v7201_v61 = vld [vmem:[#allocation2 + $0x258] sm:$0xff]   ;;  %v7206_v57 = vld [vmem:[#allocation2 + $0x2c0] sm:$0xff]  }
 0x4dd   :  { %v10574_v0 = vsel %vm2830_vm6, %v5581_v38, %v5577_v46  ;;  %v2430_v26 = vpop.xlane.xlu0 %2429  ;;  %6766 = vmatprep.subr.bf16.mxu0 %v7201_v61  ;;  %6782 = vmatprep.subr.bf16.mxu1 %v7206_v57  ;;  %v7219_v57 = vld [vmem:[#allocation2 + $0x2e0] sm:$0xff]  }
 0x4de   :  { %v10576_v62 = vpop.xlane.xlu1 %2384  ;;  %v5744_v58 = vrot.slane %v5275_v1, %v8473_v53  ;;  %v5749_v20 = vrot.slane %v5276_v2, %v8479_v40  ;;  %v5046_v16 = vpack.c.bf16 %v10519_v41, %v2430_v26  ;;  %v2266_v37 = vsel %vm12217_vm12, %v6969_v6, 0.0  ;;  %6767 = vmatpush3.bf16.msra.mxu0 %v7202_v19  ;;  %v7207_v1 = vld [vmem:[#allocation2 + $0x228] sm:$0xff]   ;;  %v7209_v6 = vld [vmem:[#allocation2 + $0x270] sm:$0xff]   ;;  %vm12237_vm12 = vmmov %vm12235_vm15 }
 0x4df   :  { %v7129_v2 = vunpack.i.l.bf16 %v10256_v5  ;;  %v7210_v5 = vld [vmem:[#allocation2 + $0x2c8] sm:$0xff]  }
 0x4e0   :  { %v5745_v48 = vsel %vm2837_vm7, %v5744_v58, %v10462_v54  ;;  %v5305_v14 = vunpack.c.l.b16 %v5046_v16  ;;  %v5306_v33 = vunpack.c.h.b16 %v5046_v16  ;;  %2414 = vadd.xlane.f32.xlu1 %v2413_v56  ;;  %2405 = vadd.xlane.f32.xlu0 %v2404_v22  ;;  %v7124_v54 = vunpack.i.l.bf16 %v10278_v29 }
 0x4e1   :  { %v10587_v42 = vsel %vm2844_vm8, %v5749_v20, %v5745_v48  ;;  %v2100_v41 = vpop.xlane.xlu0 %2099 }
 0x4e2   :  { %v10589_v11 = vpop.xlane.xlu1 %2156  ;;  %v5892_v18 = vrot.slane %v5305_v14, %v8460_v35  ;;  %v5897_v17 = vrot.slane %v5306_v33, %v8465_v39  ;;  %v4991_v8 = vpack.c.bf16 %v10534_v47, %v2100_v41  ;;  %v7203_v47 = vld [vmem:[#allocation2 + $0x260] sm:$0xff]   ;;  %v2458_v63 = vsel %vm12218_vm13, %v7124_v54, 0.0  ;;  %v7212_v14 = vld [vmem:[#allocation2 + $0x288] sm:$0xff]   ;;  %v7214_v54 = vld [vmem:[#allocation2 + $0x2d0] sm:$0xff]  }
 0x4e3   :  { %6768 = vmatprep.subr.bf16.mxu0 %v7203_v47  ;;  %v2410_v33 = vsel %vm12220_vm2, %v7129_v2, 0.0  ;;  %vm12238_vm13 = vcmask 1048512  }
 0x4e4   :  { %v5893_v52 = vsel %vm2823_vm5, %v5892_v18, %v10486_v3  ;;  %v5195_v9 = vunpack.c.l.b16 %v4991_v8  ;;  %v5196_v21 = vunpack.c.h.b16 %v4991_v8  ;;  %2267 = vadd.xlane.f32.xlu0 %v2266_v37  ;;  %v6929_v3 = vunpack.i.l.bf16 %v10088_v23  ;;  %6769 = vmatpush3.bf16.msra.mxu0 %v7204_v55 }
 0x4e5   :  { %v10599_v44 = vsel %vm2830_vm6, %v5897_v17, %v5893_v52  ;;  %v2190_v12 = vpop.xlane.xlu0 %2189 }
 0x4e6   :  { %v10601_v36 = vpop.xlane.xlu1 %2246  ;;  %v5349_v15 = vrot.slane %v5195_v9, %v8473_v53  ;;  %v5354_v29 = vrot.slane %v5196_v21, %v8479_v40  ;;  %v5006_v13 = vpack.c.bf16 %v10548_v43, %v2190_v12  ;;  %v7205_v43 = vld [vmem:[#allocation2 + $0x268] sm:$0xff]   ;;  %v2218_v26 = vsel %vm12219_vm14, %v6929_v3, 0.0  ;;  %v7215_v21 = vld [vmem:[#allocation2 + $0x238] sm:$0xff]   ;;  %vm12239_vm14 = vmmov %vm12238_vm13 }
 0x4e7   :  { %6770 = vmatprep.subr.bf16.mxu0 %v7205_v43 }
 0x4e8   :  { %v5350_v32 = vsel %vm2837_vm7, %v5349_v15, %v10500_v59  ;;  %v5225_v38 = vunpack.c.l.b16 %v5006_v13  ;;  %v5226_v45 = vunpack.c.h.b16 %v5006_v13  ;;  %2459 = vadd.xlane.f32.xlu0 %v2458_v63  ;;  %v7208_v59 = vld [vmem:[#allocation2 + $0x280] sm:$0xff]   ;;  %6771 = vmatpush3.bf16.msra.mxu0 %v7207_v1  ;;  %v7218_v63 = vld [vmem:[#allocation2 + $0x298] sm:$0xff]  }
 0x4e9   :  { %v10611_v49 = vsel %vm2844_vm8, %v5354_v29, %v5350_v32  ;;  %v2292_v51 = vpop.xlane.xlu0 %2291  ;;  %6783 = vmatpush3.bf16.msra.mxu1 %v7208_v59  ;;  %6772 = vmatprep.subr.bf16.mxu0 %v7209_v6  ;;  %v7222_v6 = vld [vmem:[#allocation2 + $0x2a8] sm:$0xff]  }
 0x4ea   :  { %v10613_v27 = vpop.xlane.xlu1 %2348  ;;  %v5497_v23 = vrot.slane %v5225_v38, %v8460_v35  ;;  %v5502_v60 = vrot.slane %v5226_v45, %v8465_v39  ;;  %v5023_v46 = vpack.c.bf16 %v10562_v4, %v2292_v51  ;;  %6784 = vmatprep.subr.bf16.mxu1 %v7210_v5 }
 0x4ec   :  { %v5498_v10 = vsel %vm2823_vm5, %v5497_v23, %v10517_v31  ;;  %v5259_v58 = vunpack.c.l.b16 %v5023_v46  ;;  %v5260_v20 = vunpack.c.h.b16 %v5023_v46  ;;  %2219 = vadd.xlane.f32.xlu0 %v2218_v26  ;;  %v7211_v31 = vld [vmem:[#allocation2 + $0x230] sm:$0xff]   ;;  %v7220_v46 = vld [vmem:[#allocation2 + $0x2a0] sm:$0xff]  }
 0x4ed   :  { %v10623_v16 = vsel %vm2830_vm6, %v5502_v60, %v5498_v10  ;;  %v2382_v4 = vpop.xlane.xlu0 %2381  ;;  %6785 = vmatpush3.bf16.msra.mxu1 %v7212_v14  ;;  %6773 = vmatpush3.bf16.msra.mxu0 %v7211_v31  ;;  %v7223_v14 = vld [vmem:[#allocation2 + $0x2f0] sm:$0xff]  }
 0x4ee   :  { %v10625_v25 = vpop.xlane.xlu1 %2438  ;;  %v5665_v56 = vrot.slane %v5259_v58, %v8473_v53  ;;  %v5670_v22 = vrot.slane %v5260_v20, %v8479_v40  ;;  %v5038_v48 = vpack.c.bf16 %v10576_v62, %v2382_v4  ;;  %v7213_v62 = vld [vmem:[#allocation2 + $0x278] sm:$0xff]   ;;  %6786 = vmatprep.subr.bf16.mxu1 %v7214_v54  ;;  %v7221_v58 = vld [vmem:[#allocation2 + $0x2e8] sm:$0xff]  }
 0x4ef   :  { %6774 = vmatprep.subr.bf16.mxu0 %v7213_v62 }
 0x4f0   :  { %v5666_v41 = vsel %vm2837_vm7, %v5665_v56, %v10532_v7  ;;  %v5289_v61 = vunpack.c.l.b16 %v5038_v48  ;;  %v5290_v18 = vunpack.c.h.b16 %v5038_v48  ;;  %2411 = vadd.xlane.f32.xlu0 %v2410_v33  ;;  %v7216_v7 = vld [vmem:[#allocation2 + $0x290] sm:$0xff]  }
 0x4f1   :  { %v10634_v17 = vsel %vm2844_vm8, %v5670_v22, %v5666_v41  ;;  %v2154_v19 = vpop.xlane.xlu0 %2153  ;;  %6787 = vmatpush3.bf16.msra.mxu1 %v7216_v7  ;;  %6775 = vmatpush3.bf16.msra.mxu0 %v7215_v21 }
 0x4f2   :  { %v2109_v8 = vpop.xlane.xlu1 %2108  ;;  %v5813_v37 = vrot.slane %v5289_v61, %v8460_v35  ;;  %v5818_v52 = vrot.slane %v5290_v18, %v8465_v39  ;;  %v5000_v9 = vpack.c.bf16 %v10589_v11, %v2154_v19  ;;  %v7217_v35 = vld [vmem:[#allocation2 + $0x2d8] sm:$0xff]  }
 0x4f3   :  { %6788 = vmatprep.subr.bf16.mxu1 %v7217_v35 }
 0x4f4   :  { %v5814_v12 = vsel %vm2823_vm5, %v5813_v37, %v10546_v28  ;;  %v5213_v47 = vunpack.c.l.b16 %v5000_v9  ;;  %v5214_v15 = vunpack.c.h.b16 %v5000_v9  ;;  %v7226_v9 = vld [vmem:[#allocation2 + $0x2b8] sm:$0xff]   ;;  %vm12222_vm5 = vcmask 720512  }
 0x4f5   :  { %v10642_v29 = vsel %vm2830_vm6, %v5818_v52, %v5814_v12  ;;  %v2244_v55 = vpop.xlane.xlu0 %2243  ;;  %6789 = vmatpush3.bf16.msra.mxu1 %v7218_v63  ;;  %v7225_v52 = vld [vmem:[#allocation2 + $0x2f8] sm:$0xff]   ;;  %vm12223_vm6 = vcmask 786112   ;;  %vm12240_vm2 = vmmov %vm12222_vm5 }
 0x4f6   :  { %v2199_v13 = vpop.xlane.xlu1 %2198  ;;  %v5438_v39 = vrot.slane %v5213_v47, %v8494_v30  ;;  %v5443_v11 = vrot.slane %v5214_v15, %v8501_v34  ;;  %v5015_v3 = vpack.c.bf16 %v10601_v36, %v2244_v55  ;;  %6790 = vmatprep.subr.bf16.mxu1 %v7219_v57  ;;  %vm12231_vm3 = vmmov %vm12223_vm6 }
 0x4f8   :  { %v5439_v28 = vsel %vm2851_vm9, %v5438_v39, %v10560_v24  ;;  %v5243_v32 = vunpack.c.l.b16 %v5015_v3  ;;  %v5244_v38 = vunpack.c.h.b16 %v5015_v3 }
 0x4f9   :  { %v10650_v45 = vsel %vm2858_vm10, %v5443_v11, %v5439_v28  ;;  %v2346_v43 = vpop.xlane.xlu0 %2345  ;;  %6791 = vmatpush3.bf16.msra.mxu1 %v7220_v46 }
 0x4fa   :  { %v2301_v51 = vpop.xlane.xlu1 %2300  ;;  %v5586_v23 = vrot.slane %v5243_v32, %v8473_v53  ;;  %v5591_v60 = vrot.slane %v5244_v38, %v8479_v40  ;;  %v5032_v36 = vpack.c.bf16 %v10613_v27, %v2346_v43  ;;  %6792 = vmatprep.subr.bf16.mxu1 %v7221_v58 }
 0x4fc   :  { %v5587_v24 = vsel %vm2837_vm7, %v5586_v23, %v10574_v0  ;;  %v5277_v1 = vunpack.c.l.b16 %v5032_v36  ;;  %v5278_v59 = vunpack.c.h.b16 %v5032_v36 }
 0x4fd   :  { %v10658_v2 = vsel %vm2844_vm8, %v5591_v60, %v5587_v24  ;;  %v2436_v10 = vpop.xlane.xlu0 %2435  ;;  %6793 = vmatpush3.bf16.msra.mxu1 %v7222_v6 }
 0x4fe   :  { %v2391_v26 = vpop.xlane.xlu1 %2390  ;;  %v5754_v20 = vrot.slane %v5277_v1, %v8494_v30  ;;  %v5759_v4 = vrot.slane %v5278_v59, %v8501_v34  ;;  %v5047_v27 = vpack.c.bf16 %v10625_v25, %v2436_v10  ;;  %v7224_v25 = vld [vmem:[#allocation2 + $0x2b0] sm:$0xff]   ;;  %6794 = vmatprep.subr.bf16.mxu1 %v7223_v14 }
 0x500   :  { %v5755_v0 = vsel %vm2851_vm9, %v5754_v20, %v10587_v42  ;;  %v5307_v5 = vunpack.c.l.b16 %v5047_v27  ;;  %v5308_v56 = vunpack.c.h.b16 %v5047_v27 }
 0x501   :  { %v10666_v22 = vsel %vm2858_vm10, %v5759_v4, %v5755_v0  ;;  %v2106_v31 = vpop.xlane.xlu0 %2105  ;;  %6795 = vmatpush3.bf16.msra.mxu1 %v7224_v25  ;;  %v12221_v0 = vld [vmem:[#allocation81_spill] sm:$0xff] }
 0x502   :  { %v2163_v48 = vpop.xlane.xlu1 %2162  ;;  %v5902_v33 = vrot.slane %v5307_v5, %v8473_v53  ;;  %v5907_v41 = vrot.slane %v5308_v56, %v8479_v40  ;;  %v4992_v61 = vpack.c.bf16 %v2109_v8, %v2106_v31  ;;  %6796 = vmatprep.subr.bf16.mxu1 %v7225_v52 }
 0x504   :  { %v5903_v18 = vsel %vm2837_vm7, %v5902_v33, %v10599_v44  ;;  %v5197_v42 = vunpack.c.l.b16 %v4992_v61  ;;  %v5198_v19 = vunpack.c.h.b16 %v4992_v61 }
 0x505   :  { %v10673_v62 = vsel %vm2844_vm8, %v5907_v41, %v5903_v18  ;;  %v2196_v37 = vpop.xlane.xlu0 %2195  ;;  %6797 = vmatpush3.bf16.msra.mxu1 %v7226_v9 }
 0x506   :  { %v2253_v54 = vpop.xlane.xlu1 %2252  ;;  %v5359_v21 = vrot.slane %v5197_v42, %v8494_v30  ;;  %v5364_v7 = vrot.slane %v5198_v19, %v8501_v34  ;;  %v5007_v8 = vpack.c.bf16 %v2199_v13, %v2196_v37 }
 0x508   :  { %v5360_v12 = vsel %vm2851_vm9, %v5359_v21, %v10611_v49  ;;  %v5227_v44 = vunpack.c.l.b16 %v5007_v8  ;;  %v5228_v47 = vunpack.c.h.b16 %v5007_v8 }
 0x509   :  { %v10680_v15 = vsel %vm2858_vm10, %v5364_v7, %v5360_v12  ;;  %v2298_v35 = vpop.xlane.xlu0 %2297 }
 0x50a   :  { %v10682_v55 = vpop.xlane.xlu1 %2354  ;;  %v5507_v39 = vrot.slane %v5227_v44, %v8473_v53  ;;  %v5512_v11 = vrot.slane %v5228_v47, %v8479_v40  ;;  %v5024_v3 = vpack.c.bf16 %v2301_v51, %v2298_v35 }
 0x50c   :  { %v5508_v13 = vsel %vm2837_vm7, %v5507_v39, %v10623_v16  ;;  %v5261_v63 = vunpack.c.l.b16 %v5024_v3  ;;  %v5262_v28 = vunpack.c.h.b16 %v5024_v3 }
 0x50d   :  { %v5513_v49 = vsel %vm2844_vm8, %v5512_v11, %v5508_v13  ;;  %v2388_v38 = vpop.xlane.xlu0 %2387 }
 0x50e   :  { %v2445_v32 = vpop.xlane.xlu1 %2444  ;;  %v5675_v43 = vrot.slane %v5261_v63, %v8494_v30  ;;  %v5680_v57 = vrot.slane %v5262_v28, %v8501_v34  ;;  %v5039_v23 = vpack.c.bf16 %v2391_v26, %v2388_v38 }
 0x510   :  { %v5676_v60 = vsel %vm2851_vm9, %v5675_v43, %v10634_v17  ;;  %v5291_v36 = vunpack.c.l.b16 %v5039_v23  ;;  %v5292_v46 = vunpack.c.h.b16 %v5039_v23 }
 0x511   :  { %v10694_v51 = vsel %vm2858_vm10, %v5680_v57, %v5676_v60  ;;  %v2160_v24 = vpop.xlane.xlu0 %2159 }
 0x512   :  { %v2115_v16 = vpop.xlane.xlu1 %2114  ;;  %v5823_v1 = vrot.slane %v5291_v36, %v8473_v53  ;;  %v5828_v59 = vrot.slane %v5292_v46, %v8479_v40  ;;  %v5001_v10 = vpack.c.bf16 %v2163_v48, %v2160_v24 }
 0x514   :  { %v5824_v58 = vsel %vm2837_vm7, %v5823_v1, %v10642_v29  ;;  %v5215_v20 = vunpack.c.l.b16 %v5001_v10  ;;  %v5216_v26 = vunpack.c.h.b16 %v5001_v10  ;;  %vm12224_vm7 = vmmov %vm12222_vm5 }
 0x515   :  { %v5829_v4 = vsel %vm2844_vm8, %v5828_v59, %v5824_v58  ;;  %v2250_v27 = vpop.xlane.xlu0 %2249  ;;  %vm12225_vm8 = vmmov %vm12223_vm6 }
 0x516   :  { %v2205_v17 = vpop.xlane.xlu1 %2204  ;;  %v5448_v6 = vrot.slane %v5215_v20, %v8508_v50  ;;  %v5453_v5 = vrot.slane %v5216_v26, %v12221_v0  ;;  %v5016_v56 = vpack.c.bf16 %v2253_v54, %v2250_v27 }
 0x518   :  { %v5449_v53 = vsel %vm12222_vm5, %v5448_v6, %v10650_v45  ;;  %v5245_v31 = vunpack.c.l.b16 %v5016_v56  ;;  %v5246_v40 = vunpack.c.h.b16 %v5016_v56 }
 0x519   :  { %v10706_v48 = vsel %vm12223_vm6, %v5453_v5, %v5449_v53  ;;  %v2352_v14 = vpop.xlane.xlu0 %2351 }
 0x51a   :  { %v10708_v29 = vpop.xlane.xlu1 %2306  ;;  %v5596_v33 = vrot.slane %v5245_v31, %v8494_v30  ;;  %v5601_v41 = vrot.slane %v5246_v40, %v8501_v34 }
 0x51c   :  { %v5597_v61 = vsel %vm2851_vm9, %v5596_v33, %v10658_v2  ;;  %v5033_v33 = vpack.c.bf16 %v10682_v55, %v2352_v14 }
 0x51d   :  { %v10715_v25 = vsel %vm2858_vm10, %v5601_v41, %v5597_v61  ;;  %v2442_v45 = vpop.xlane.xlu0 %2441 }
 0x51e   :  { %v2397_v18 = vpop.xlane.xlu1 %2396  ;;  %v5048_v42 = vpack.c.bf16 %v2445_v32, %v2442_v45  ;;  %v5279_v45 = vunpack.c.l.b16 %v5033_v33 }
 0x520   :  { %v5309_v19 = vunpack.c.l.b16 %v5048_v42  ;;  %v5310_v54 = vunpack.c.h.b16 %v5048_v42 }
 0x521   :  { %v2112_v52 = vpop.xlane.xlu0 %2111 }
 0x522   :  { %v2169_v37 = vpop.xlane.xlu1 %2168  ;;  %v5912_v9 = vrot.slane %v5309_v19, %v8494_v30  ;;  %v5917_v21 = vrot.slane %v5310_v54, %v8501_v34  ;;  %v4993_v7 = vpack.c.bf16 %v2115_v16, %v2112_v52 }
 0x524   :  { %v5913_v8 = vsel %vm2851_vm9, %v5912_v9, %v10673_v62  ;;  %v5199_v12 = vunpack.c.l.b16 %v4993_v7  ;;  %v5200_v2 = vunpack.c.h.b16 %v4993_v7  ;;  %v5280_v9 = vunpack.c.h.b16 %v5033_v33 }
 0x525   :  { %v10722_v44 = vsel %vm2858_vm10, %v5917_v21, %v5913_v8  ;;  %v2202_v35 = vpop.xlane.xlu0 %2201  ;;  %v5764_v7 = vrot.slane %v5279_v45, %v8508_v50 }
 0x526   :  { %v10724_v47 = vpop.xlane.xlu1 %2258  ;;  %v5369_v39 = vrot.slane %v5199_v12, %v8508_v50  ;;  %v5374_v11 = vrot.slane %v5200_v2, %v12221_v0  ;;  %v5008_v3 = vpack.c.bf16 %v2205_v17, %v2202_v35  ;;  %v12226_v35 = vld [vmem:[#allocation77_spill] sm:$0xff] }
 0x528   :  { %v5370_v13 = vsel %vm12224_vm7, %v5369_v39, %v10680_v15  ;;  %v5229_v63 = vunpack.c.l.b16 %v5008_v3  ;;  %v5230_v28 = vunpack.c.h.b16 %v5008_v3  ;;  %v5769_v39 = vrot.slane %v5280_v9, %v12221_v0 }
 0x529   :  { %v10731_v62 = vsel %vm12225_vm8, %v5374_v11, %v5370_v13  ;;  %v2304_v38 = vpop.xlane.xlu0 %2303  ;;  %vm12244_vm8 = vmmov %vm12233_vm1 }
 0x52a   :  { %v2361_v32 = vpop.xlane.xlu1 %2360  ;;  %v5517_v43 = vrot.slane %v5229_v63, %v8494_v30  ;;  %v5522_v57 = vrot.slane %v5230_v28, %v8501_v34  ;;  %v5025_v13 = vpack.c.bf16 %v10708_v29, %v2304_v38  ;;  %v12228_v63 = vld [vmem:[#allocation85_spill] sm:$0xff] }
 0x52c   :  { %v5518_v23 = vsel %vm2851_vm9, %v5517_v43, %v5513_v49  ;;  %v5263_v38 = vunpack.c.l.b16 %v5025_v13 }
 0x52d   :  { %v10737_v60 = vsel %vm2858_vm10, %v5522_v57, %v5518_v23  ;;  %v2394_v46 = vpop.xlane.xlu0 %2393 }
 0x52e   :  { %v10739_v36 = vpop.xlane.xlu1 %2450  ;;  %v5040_v15 = vpack.c.bf16 %v2397_v18, %v2394_v46  ;;  %v12230_v46 = vld [vmem:[#allocation86_spill] sm:$0xff]  ;;  %v5685_v9 = vrot.slane %v5263_v38, %v8508_v50 }
 0x530   :  { %v5293_v16 = vunpack.c.l.b16 %v5040_v15  ;;  %v5294_v24 = vunpack.c.h.b16 %v5040_v15 }
 0x531   :  { %v2166_v59 = vpop.xlane.xlu0 %2165 }
 0x532   :  { %v2121_v1 = vpop.xlane.xlu1 %2120  ;;  %v5833_v10 = vrot.slane %v5293_v16, %v8494_v30  ;;  %v5838_v58 = vrot.slane %v5294_v24, %v8501_v34  ;;  %v5002_v18 = vpack.c.bf16 %v2169_v37, %v2166_v59 }
 0x534   :  { %v5834_v20 = vsel %vm2851_vm9, %v5833_v10, %v5829_v4  ;;  %v5217_v54 = vunpack.c.l.b16 %v5002_v18  ;;  %v5218_v12 = vunpack.c.h.b16 %v5002_v18  ;;  %vm12227_vm9 = vmmov %vm12222_vm5 }
 0x535   :  { %v10745_v26 = vsel %vm2858_vm10, %v5838_v58, %v5834_v20  ;;  %v2256_v17 = vpop.xlane.xlu0 %2255  ;;  %v5765_v37 = vsel %vm12227_vm9, %v5764_v7, %v10666_v22  ;;  %vm12229_vm10 = vcmask 851712   ;;  %v12234_v20 = vld [vmem:[#allocation89_spill] sm:$0xff]  ;;  %vm12241_vm5 = vmmov %vm12231_vm3 }
 0x536   :  { %v10747_v49 = vpop.xlane.xlu1 %2210  ;;  %v5458_v55 = vrot.slane %v5217_v54, %v12226_v35  ;;  %v5463_v28 = vrot.slane %v5218_v12, %v12228_v63  ;;  %v5770_v24 = vsel %vm12231_vm3, %v5769_v39, %v5765_v37  ;;  %vm12232_vm11 = vmmov %vm12229_vm10  ;;  %v5017_v7 = vpack.c.bf16 %v10724_v47, %v2256_v17 }
 0x537   :  { %v5686_v37 = vsel %vm12240_vm2, %v5685_v9, %v10694_v51  ;;  %vm12242_vm6 = vmmov %vm12229_vm10 }
 0x538   :  { %v5459_v23 = vsel %vm12229_vm10, %v5458_v55, %v10706_v48  ;;  %v5247_v47 = vunpack.c.l.b16 %v5017_v7  ;;  %vm12243_vm7 = vmmov %vm12242_vm6 }
 0x539   :  { %v2358_v6 = vpop.xlane.xlu0 %2357  ;;  %v5464_v58 = vsel %vm12233_vm1, %v5463_v28, %v5459_v23  ;;  %vm12245_vm9 = vmmov %vm12237_vm12 }
 0x53a   :  { %v2313_v27 = vpop.xlane.xlu1 %2312  ;;  %v5034_v42 = vpack.c.bf16 %v2361_v32, %v2358_v6  ;;  %vm12246_vm10 = vmmov %vm12240_vm2 }
 0x53b   :  { %vm12247_vm3 = vmmov %vm12233_vm1 }
 0x53c   :  { %v5281_v8 = vunpack.c.l.b16 %v5034_v42  ;;  %v5282_v11 = vunpack.c.h.b16 %v5034_v42  ;;  %vm12249_vm1 = vmmov %vm12245_vm9 }
 0x53d   :  { %v10751_v56 = vpop.xlane.xlu0 %2447 }
 0x53e   :  { %v10749_v5 = vpop.xlane.xlu1 %2402  ;;  %v5774_v3 = vrot.slane %v5281_v8, %v12226_v35  ;;  %v5779_v22 = vrot.slane %v5282_v11, %v12228_v63  ;;  %v5049_v39 = vpack.c.bf16 %v10739_v36, %v10751_v56  ;;  %v5248_v56 = vunpack.c.h.b16 %v5017_v7 }
 0x540   :  { %v5775_v59 = vsel %vm12232_vm11, %v5774_v3, %v5770_v24  ;;  %v5312_v38 = vunpack.c.h.b16 %v5049_v39  ;;  %vm12248_vm11 = vmmov %vm12240_vm2 }
 0x541   :  { %v2118_v31 = vpop.xlane.xlu0 %2117  ;;  %v5780_v45 = vsel %vm12236_vm4, %v5779_v22, %v5775_v59  ;;  %vm12251_vm4 = vmmov %vm12238_vm13 }
 0x542   :  { %v2175_v53 = vpop.xlane.xlu1 %2174  ;;  %v4994_v33 = vpack.c.bf16 %v2121_v1, %v2118_v31 }
 0x544   :  { %v5201_v12 = vunpack.c.l.b16 %v4994_v33  ;;  %v5202_v17 = vunpack.c.h.b16 %v4994_v33 }
 0x545   :  { %v10755_v30 = vpop.xlane.xlu0 %2207 }
 0x546   :  { %v10753_v40 = vpop.xlane.xlu1 %2264  ;;  %v5379_v28 = vrot.slane %v5201_v12, %v12226_v35 }
 0x548   :  { %v5380_v22 = vsel %vm12242_vm6, %v5379_v28, %v10731_v62 }
 0x549   :  { %v2310_v4 = vpop.xlane.xlu0 %2309 }
 0x54a   :  { %v2367_v34 = vpop.xlane.xlu1 %2366  ;;  %v5026_v54 = vpack.c.bf16 %v2313_v27, %v2310_v4 }
 0x54c   :  { %v5265_v4 = vunpack.c.l.b16 %v5026_v54 }
 0x54d   :  { %v10760_v61 = vpop.xlane.xlu0 %2399 }
 0x54e   :  { %v10758_v41 = vpop.xlane.xlu1 %2456  ;;  %v5695_v36 = vrot.slane %v5265_v4, %v12226_v35  ;;  %v5041_v7 = vpack.c.bf16 %v10749_v5, %v10760_v61 }
 0x551   :  { %v2172_v19 = vpop.xlane.xlu0 %2171 }
 0x552   :  { %v5003_v52 = vpack.c.bf16 %v2175_v53, %v2172_v19  ;;  %v2127_v21 = vpop.xlane.xlu1 %2126  ;;  %v5264_v19 = vunpack.c.h.b16 %v5025_v13 }
 0x554   :  { %v5219_v14 = vunpack.c.l.b16 %v5003_v52  ;;  %v5220_v32 = vunpack.c.h.b16 %v5003_v52  ;;  %v5690_v27 = vrot.slane %v5264_v19, %v12221_v0 }
 0x555   :  { %v10763_v2 = vpop.xlane.xlu0 %2261 }
 0x556   :  { %v10772_v43 = vpop.xlane.xlu1 %2216  ;;  %v5468_v15 = vrot.slane %v5219_v14, %v12230_v46  ;;  %v5473_v6 = vrot.slane %v5220_v32, %v12234_v20  ;;  %v5311_v32 = vunpack.c.l.b16 %v5049_v39  ;;  %v5691_v23 = vsel %vm12241_vm5, %v5690_v27, %v5686_v37 }
 0x557   :  { %v5018_v59 = vpack.c.bf16 %v10753_v40, %v10763_v2  ;;  %v5611_v40 = vrot.slane %v5248_v56, %v12221_v0 }
 0x559   :  { %v2364_v57 = vpop.xlane.xlu0 %2363 }
 0x55a   :  { %v5035_v16 = vpack.c.bf16 %v2367_v34, %v2364_v57  ;;  %v5469_v34 = vsel %vm12235_vm15, %v5468_v15, %v5464_v58  ;;  %v2319_v42 = vpop.xlane.xlu1 %2318  ;;  %v5266_v57 = vunpack.c.h.b16 %v5026_v54  ;;  %v5606_v15 = vrot.slane %v5247_v47, %v8508_v50  ;;  %vm12250_vm15 = vmmov %vm12238_vm13 }
 0x55b   :  { %v5474_v1 = vsel %vm12238_vm13, %v5473_v6, %v5469_v34  ;;  %v5922_v58 = vrot.slane %v5311_v32, %v8508_v50  ;;  %v5009_v6 = vpack.c.bf16 %v10747_v49, %v10755_v30  ;;  %v5249_v54 = vunpack.c.l.b16 %v5018_v59  ;;  %vm12253_vm13 = vmmov %vm12241_vm5 }
 0x55c   :  { %v5283_v10 = vunpack.c.l.b16 %v5035_v16  ;;  %v5284_v29 = vunpack.c.h.b16 %v5035_v16  ;;  %v5384_v16 = vrot.slane %v5202_v17, %v12228_v63  ;;  %v5700_v33 = vrot.slane %v5266_v57, %v12228_v63 }
 0x55d   :  { %v2454_v53 = vpop.xlane.xlu0 %2453  ;;  %v5607_v9 = vsel %vm12246_vm10, %v5606_v15, %v10715_v25  ;;  %v5232_v4 = vunpack.c.h.b16 %v5009_v6  ;;  %v5616_v5 = vrot.slane %v5249_v54, %v12226_v35  ;;  %v5295_v47 = vunpack.c.l.b16 %v5041_v7  ;;  %vm12260_vm10 = vmmov %vm12240_vm2 }
 0x55e   :  { %v5784_v48 = vrot.slane %v5283_v10, %v12230_v46  ;;  %v5789_v18 = vrot.slane %v5284_v29, %v12234_v20  ;;  %v2409_v3 = vpop.xlane.xlu1 %2408  ;;  %v5050_v34 = vpack.c.bf16 %v10758_v41, %v2454_v53  ;;  %v5385_v2 = vsel %vm12244_vm8, %v5384_v16, %v5380_v22 }
 0x55f   :  { %v5231_v41 = vunpack.c.l.b16 %v5009_v6  ;;  %v5532_v16 = vrot.slane %v5232_v4, %v12221_v0 }
 0x560   :  { %v5785_v52 = vsel %vm12237_vm12, %v5784_v48, %v5780_v45  ;;  %v5314_v17 = vunpack.c.h.b16 %v5050_v34  ;;  %vm12252_vm12 = vmmov %vm12241_vm5 }
 0x561   :  { %v2124_v8 = vpop.xlane.xlu0 %2123  ;;  %v5790_v31 = vsel %vm12239_vm14, %v5789_v18, %v5785_v52  ;;  %v5696_v18 = vsel %vm12243_vm7, %v5695_v36, %v5691_v23  ;;  %v5527_v37 = vrot.slane %v5231_v41, %v8508_v50  ;;  %vm12254_vm14 = vmmov %vm12242_vm6 }
 0x562   :  { %v4995_v55 = vpack.c.bf16 %v2127_v21, %v2124_v8  ;;  %v5950_v14 = vsel %vm3455_vm0, %v5790_v31, %v5474_v1  ;;  %v2271_v48 = vpop.xlane.xlu1 %2270  ;;  %v5701_v53 = vsel %vm12247_vm3, %v5700_v33, %v5696_v18  ;;  %v5923_v8 = vsel %vm12248_vm11, %v5922_v58, %v10722_v44  ;;  %vm12255_vm5 = vmmov %vm12242_vm6 }
 0x563   :  { %v5954_v11 = vpack.c.b16 %v5950_v14, %v5950_v14  ;;  %v5927_v1 = vrot.slane %v5312_v38, %v12221_v0  ;;  %v5313_v31 = vunpack.c.l.b16 %v5050_v34  ;;  %vm12256_vm6 = vmmov %vm12247_vm3 }
 0x564   :  { %v5203_v21 = vunpack.c.l.b16 %v4995_v55  ;;  %v5204_v51 = vunpack.c.h.b16 %v4995_v55  ;;  %v5250_v55 = vunpack.c.h.b16 %v5018_v59  ;;  %v5528_v59 = vsel %vm12240_vm2, %v5527_v37, %v10737_v60  ;;  %vm12257_vm7 = vmmov %vm12249_vm1 }
 0x565   :  { %6185 = vmatprep.mubr.bf16.mxu0 %v5954_v11  ;;  %v2214_v13 = vpop.xlane.xlu0 %2213  ;;  %v5932_v32 = vrot.slane %v5313_v31, %v12226_v35  ;;  %vm12258_vm8 = vmmov %vm12252_vm12 }
 0x566   :  { %v5389_v10 = vrot.slane %v5203_v21, %v12230_v46  ;;  %v2463_v39 = vpop.xlane.xlu1 %2462  ;;  %v5010_v25 = vpack.c.bf16 %v10772_v43, %v2214_v13  ;;  %v5612_v21 = vsel %vm12252_vm12, %v5611_v40, %v5607_v9  ;;  %v5928_v13 = vsel %vm12253_vm13, %v5927_v1, %v5923_v8  ;;  %vm12262_vm11 = vmmov %vm12251_vm4 }
 0x567   :  { %v5621_v23 = vrot.slane %v5250_v55, %v12228_v63  ;;  %v5933_v58 = vsel %vm12255_vm5, %v5932_v32, %v5928_v13  ;;  %vm12266_vm12 = vmmov %vm12255_vm5 }
 0x568   :  { %v5390_v52 = vsel %vm12245_vm9, %v5389_v10, %v5385_v2  ;;  %v5233_v36 = vunpack.c.l.b16 %v5010_v25  ;;  %v5843_v10 = vrot.slane %v5295_v47, %v8508_v50  ;;  %v5234_v34 = vunpack.c.h.b16 %v5010_v25  ;;  %vm12259_vm9 = vmmov %vm12247_vm3 }
 0x569   :  { %v2316_v24 = vpop.xlane.xlu0 %2315  ;;  %vm12261_vm3 = vmmov %vm12249_vm1 }
 0x56a   :  { %v5027_v29 = vpack.c.bf16 %v2319_v42, %v2316_v24  ;;  %v5394_v42 = vrot.slane %v5204_v51, %v12234_v20  ;;  %v5617_v51 = vsel %vm12254_vm14, %v5616_v5, %v5612_v21  ;;  %v2223_v38 = vpop.xlane.xlu1 %2222  ;;  %vm12267_vm13 = vmmov %vm12256_vm6 }
 0x56b   :  { %v5622_v18 = vsel %vm12256_vm6, %v5621_v23, %v5617_v51  ;;  %vm12268_vm14 = vmmov %vm12261_vm3 }
 0x56c   :  { %v5267_v62 = vunpack.c.l.b16 %v5027_v29  ;;  %v5268_v45 = vunpack.c.h.b16 %v5027_v29  ;;  %v5395_v14 = vsel %vm12250_vm15, %v5394_v42, %v5390_v52  ;;  %v5937_v29 = vrot.slane %v5314_v17, %v12228_v63  ;;  %vm12264_vm15 = vmmov %vm12255_vm5 }
 0x56d   :  { %v2406_v19 = vpop.xlane.xlu0 %2405  ;;  %vm12269_vm2 = vmmov %vm12256_vm6 }
 0x56e   :  { %v5705_v49 = vrot.slane %v5267_v62, %v12230_v46  ;;  %v5710_v30 = vrot.slane %v5268_v45, %v12234_v20  ;;  %v5042_v57 = vpack.c.bf16 %v2409_v3, %v2406_v19  ;;  %v5296_v3 = vunpack.c.h.b16 %v5041_v7  ;;  %v2415_v8 = vpop.xlane.xlu1 %2414  ;;  %vm12270_vm5 = vmmov %vm12261_vm3 }
 0x56f   :  { %v5537_v62 = vrot.slane %v5233_v36, %v12226_v35  ;;  %v5533_v19 = vsel %vm12258_vm8, %v5532_v16, %v5528_v59  ;;  %v5938_v52 = vsel %vm12259_vm9, %v5937_v29, %v5933_v58  ;;  %v5542_v7 = vrot.slane %v5234_v34, %v12228_v63 }
 0x570   :  { %v5706_v12 = vsel %vm12249_vm1, %v5705_v49, %v5701_v53  ;;  %v5297_v6 = vunpack.c.l.b16 %v5042_v57  ;;  %v5848_v54 = vrot.slane %v5296_v3, %v12221_v0  ;;  %v5298_v49 = vunpack.c.h.b16 %v5042_v57  ;;  %vm12263_vm1 = vmmov %vm12251_vm4 }
 0x571   :  { %v5711_v11 = vsel %vm12251_vm4, %v5710_v30, %v5706_v12  ;;  %v2268_v27 = vpop.xlane.xlu0 %2267  ;;  %v5844_v30 = vsel %vm12260_vm10, %v5843_v10, %v10745_v26  ;;  %v5538_v55 = vsel %vm12264_vm15, %v5537_v62, %v5533_v19  ;;  %vm12265_vm4 = vmmov %vm12258_vm8 }
 0x572   :  { %v5019_v61 = vpack.c.bf16 %v2271_v48, %v2268_v27  ;;  %v5949_v44 = vsel %vm3455_vm0, %v5711_v11, %v5395_v14  ;;  %v5853_v9 = vrot.slane %v5297_v6, %v12226_v35  ;;  %v5849_v35 = vsel %vm12265_vm4, %v5848_v54, %v5844_v30  ;;  %vm12271_vm6 = vmmov %vm12263_vm1 }
 0x573   :  { %v5953_v28 = vpack.c.b16 %v5949_v44, %v5949_v44  ;;  %v5858_v25 = vrot.slane %v5298_v49, %v12228_v63 }
 0x574   :  { %v5251_v43 = vunpack.c.l.b16 %v5019_v61  ;;  %v5252_v56 = vunpack.c.h.b16 %v5019_v61  ;;  %v5854_v27 = vsel %vm12266_vm12, %v5853_v9, %v5849_v35  ;;  %v5543_v61 = vsel %vm12267_vm13, %v5542_v7, %v5538_v55 }
 0x575   :  { %6186 = vmatmul.mubr.bf16.vlgmr.msra.gmra.mrb[8].mxu0 %v5953_v28  ;;  %v2460_v15 = vpop.xlane.xlu0 %2459  ;;  %v5859_v28 = vsel %vm12269_vm2, %v5858_v25, %v5854_v27 }
 0x576   :  { %v5626_v24 = vrot.slane %v5251_v43, %v12230_v46  ;;  %v5051_v22 = vpack.c.bf16 %v2463_v39, %v2460_v15  ;;  %v5631_v45 = vrot.slane %v5252_v56, %v12234_v20 }
 0x578   :  { %v5315_v33 = vunpack.c.l.b16 %v5051_v22  ;;  %v5316_v48 = vunpack.c.h.b16 %v5051_v22  ;;  %v5627_v42 = vsel %vm12257_vm7, %v5626_v24, %v5622_v18  ;;  %vm12272_vm7 = vmmov %vm12263_vm1 }
 0x579   :  { %v2220_v40 = vpop.xlane.xlu0 %2219  ;;  %v5632_v12 = vsel %vm12262_vm11, %v5631_v45, %v5627_v42 }
 0x57a   :  { %v5942_v60 = vrot.slane %v5315_v33, %v12230_v46  ;;  %v5947_v50 = vrot.slane %v5316_v48, %v12234_v20  ;;  %v5011_v2 = vpack.c.bf16 %v2223_v38, %v2220_v40 }
 0x57c   :  { %v5235_v41 = vunpack.c.l.b16 %v5011_v2  ;;  %v5943_v53 = vsel %vm12261_vm3, %v5942_v60, %v5938_v52  ;;  %v5236_v1 = vunpack.c.h.b16 %v5011_v2 }
 0x57d   :  { %v2412_v31 = vpop.xlane.xlu0 %2411  ;;  %v5948_v0 = vsel %vm12263_vm1, %v5947_v50, %v5943_v53 }
 0x57e   :  { %v5547_v14 = vrot.slane %v5235_v41, %v12230_v46  ;;  %v5043_v39 = vpack.c.bf16 %v2415_v8, %v2412_v31  ;;  %v5952_v26 = vsel %vm3455_vm0, %v5948_v0, %v5632_v12  ;;  %v5552_v44 = vrot.slane %v5236_v1, %v12234_v20 }
 0x57f   :  { %v5956_v11 = vpack.c.b16 %v5952_v26, %v5952_v26 }
 0x580   :  { %v5299_v4 = vunpack.c.l.b16 %v5043_v39  ;;  %v5300_v5 = vunpack.c.h.b16 %v5043_v39  ;;  %v5548_v37 = vsel %vm12268_vm14, %v5547_v14, %v5543_v61 }
 0x581   :  { %6225 = vmatprep.mubr.bf16.mxu1 %v5956_v11  ;;  %v5553_v21 = vsel %vm12271_vm6, %v5552_v44, %v5548_v37 }
 0x582   :  { %v5863_v47 = vrot.slane %v5299_v4, %v12230_v46  ;;  %v5868_v17 = vrot.slane %v5300_v5, %v12234_v20  ;;  %v6320_v46 = vld [vmem:[%s10895_s2 + $0x2] ss:$0 sm:$0xff] }
 0x584   :  { %v5864_v63 = vsel %vm12270_vm5, %v5863_v47, %v5859_v28 }
 0x585   :  { %v5869_v32 = vsel %vm12272_vm7, %v5868_v17, %v5864_v63 }
 0x586   :  { %v5951_v57 = vsel %vm3455_vm0, %v5869_v32, %v5553_v21 }
 0x587   :  { %v5955_v43 = vpack.c.b16 %v5951_v57, %v5951_v57 }
 0x589   :  { %6226 = vmatmul.mubr.bf16.vlgmr.msra.gmra.mrb[8].mxu1 %v5955_v43 }
 0x648   :  { %v6776_v13 = vpop.f32.mrb[8].mxu0 }
 0x649   :  { %v6777_v23 = vpop.f32.mrb[9].mxu0 }
 0x64a   :  { %v6778_v36 = vadd.f32 %v6777_v23, %v6776_v13  ;;  %v6779_v56 = vpop.f32.mrb[10].mxu0 }
 0x64b   :  { %v6780_v15 = vpop.f32.mrb[11].mxu0 }
 0x64c   :  { %v6188_v51 = vadd.f32 %v6778_v36, %v6320_v46 }
 0x65c   :  { %v6798_v20 = vpop.f32.mrb[8].mxu1 }
 0x65d   :  { %v6799_v16 = vpop.f32.mrb[9].mxu1 }
 0x65e   :  { %v6800_v24 = vadd.f32 %v6799_v16, %v6798_v20  ;;  %v6801_v22 = vpop.f32.mrb[10].mxu1 }
 0x65f   :  { %v6802_v59 = vpop.f32.mrb[11].mxu1 }
 0x660   :  { %v6228_v3 = vadd.f32 %v6800_v24, %v6188_v51 }
 0x662   :  { %6234 = vst [vmem:[#allocation5 + $0x4] sm:$0x3] %v6228_v3 }
 0x663   :  { %7260 = shalt.err (!%p7257_p12)
}
 0x664   :  { %s7261_s24 = scalar_lea.hbm %s10896_s3, 96 }
 0x665   :  { %p7262_p13 = scmp.ne.s32.totalorder %s10896_s3, %s7261_s24  ;;  %p7265_p0 = scmp.lt.u32.totalorder %s7261_s24, %s10896_s3 }
 0x667   :  { %p7267_p1 = pnand %p7265_p0, %p7262_p13 }
 0x669   :  { %7270 = shalt.err (!%p7267_p1)
}
 0x66a   :  { %s7280_s29 = smov 32   ;;  %s7281_s1 = smov 2  }
 0x66b   :  { %6246 = dma.vmem_to_hbm [thread:$0]  %s6241_s21, 96, %s10896_s3, [#allocation4], %s7280_s29, %s7280_s29, %s7281_s1  }
 0x66c   :  { %7273 = dma.done.wait [#allocation4], 96  }
 0x66d   :  { %7274 = vsyncadd [#allocation4], 4294967200 }
 0x66e   :  { %6250 = vsyncpa [#allocation3], 1 }
 0x66f   :  { %6251 = vsyncpa [#allocation4], 1 }

</bundles_post_ra>
